<compile_context>
chip_gen: v5e
topology: v5e:2x2
jax: 0.10.0
libtpu: 0.0.40
codegen_flags: <defaults>
</compile_context>

<pallas_src>
import functools

import numpy as np

import jax
import jax.numpy as jnp
from jax import lax
from jax.experimental import pallas as pl
from jax.experimental.pallas import tpu as pltpu


# --------------------------------- packing layout helpers ---------------------------------

def _spack_offsets(c, d, n_off, o):
    """Row ranges of the small-parameter pack (static Python ints)."""
    offs, r = {}, 0

    def add(name, rows):
        nonlocal r
        offs[name] = (r, r + rows)
        r += rows

    add("heads_b", 1)      # (1, 2D + n_off)   [mu_b | lv_b | ul_b]
    add("csel", d)         # (D, n_off)        eps-column selector for strict-lower fill
    add("rsc", n_off)      # (n_off, D)        row scatter for strict-lower fill
    add("d1_w", d)         # (D, C)
    add("dec_b", 1)        # (1, C + O)        [d1_b | d2_b]
    add("d2_w", c)         # (C, O)
    add("heads_w", 2 * c)  # (2C, 2D + n_off)  block: [mu_w|0|0 ; 0|lv_w|ul_w]
    return offs, r


# --------------------------------------- the kernel ---------------------------------------

def _vae_fused_kernel(x_ref, eps_ref, wpack_ref, pool_ref, spack_ref, out_ref, *,
                      width, c, d, n_off, out_dim, offs):
    """Whole VAE_covariance forward, VMEM resident.

    x_ref    : (R, 1)        flattened NHW input rows (R = N*H*W), Cin == 1
    eps_ref  : (N, D)        reparameterization noise (== torch.randn_like(mu))
    wpack_ref: (13*2C+12, 2C) conv2/conv3 block-diag taps, conv1 taps, conv biases
    pool_ref : (N, R)        masked average-pooling matrix (zeros on halo/garbage rows)
    spack_ref: (., >=2C)     heads / reparam / decoder parameters (see _spack_offsets)
    out_ref  : (N, O+2D+n_off) packed [logits | mu | log_var | upper_L]
    """
    f32 = jnp.float32
    r = x_ref.shape[0]
    c2 = wpack_ref.shape[1]          # 2*C: branch-concatenated lanes

    def shift_rows(a, s):
        # out[i, :] = a[i + s, :]; vacated tail rows become zero.  They only ever land in
        # padded/garbage output positions that the pooling mask ignores.
        if s == 0:
            return a
        return jnp.concatenate([a[s:, :], jnp.zeros((s, a.shape[1]), f32)], axis=0)

    conv1_rows = 13 * c2
    c1_taps = wpack_ref[conv1_rows:conv1_rows + 9, :]            # (9, 2C)
    b1 = wpack_ref[conv1_rows + 9:conv1_rows + 10, :]            # (1, 2C)
    b2 = wpack_ref[conv1_rows + 10:conv1_rows + 11, :]
    b3 = wpack_ref[conv1_rows + 11:conv1_rows + 12, :]

    # ---- conv1 (Cin=1, 3x3), both branches at once: 9 shifted VPU MACs ----
    x = x_ref[...]                                               # (R, 1)
    x_dx = [shift_rows(x, dx) for dx in range(3)]                # hoisted sublane shifts
    acc = jnp.zeros((r, c2), f32)
    for dy in range(3):
        for dx in range(3):
            src = shift_rows(x_dx[dx], dy * width)               # tile-aligned row shift
            acc = acc + src * c1_taps[dy * 3 + dx:dy * 3 + dx + 1, :]
    y1 = jnp.maximum(acc + b1, 0.0)                              # (R, 2C)

    # ---- conv2 (3x3, block-diagonal 2C->2C): one clean 2-D MXU matmul per tap ----
    y1_dx = [shift_rows(y1, dx) for dx in range(3)]
    acc = jnp.zeros((r, c2), f32)
    for dy in range(3):
        for dx in range(3):
            t = dy * 3 + dx
            src = shift_rows(y1_dx[dx], dy * width)
            acc = acc + jnp.dot(src, wpack_ref[t * c2:(t + 1) * c2, :],
                                preferred_element_type=f32)
    y2 = jnp.maximum(acc + b2, 0.0)

    # ---- conv3 (2x2, block-diagonal 2C->2C) ----
    y2_dx = [shift_rows(y2, dx) for dx in range(2)]
    acc = jnp.zeros((r, c2), f32)
    for dy in range(2):
        for dx in range(2):
            t = 9 + dy * 2 + dx
            src = shift_rows(y2_dx[dx], dy * width)
            acc = acc + jnp.dot(src, wpack_ref[t * c2:(t + 1) * c2, :],
                                preferred_element_type=f32)
    y3 = jnp.maximum(acc + b3, 0.0)                              # (R, 2C)

    # ---- AvgPool over the full remaining extent + Squeeze: one masked matmul ----
    feat = jnp.dot(pool_ref[...], y3, preferred_element_type=f32)    # (N, 2C)

    # ---- all three linear heads in ONE matmul (block-structured weight) ----
    hw0, hw1 = offs["heads_w"]
    hb0, hb1 = offs["heads_b"]
    heads_w = spack_ref[hw0:hw1, 0:2 * d + n_off]
    heads_b = spack_ref[hb0:hb1, 0:2 * d + n_off]
    heads = jnp.dot(feat, heads_w, preferred_element_type=f32) + heads_b  # (N, 2D+n_off)
    mu = heads[:, 0:d]
    log_var = heads[:, d:2 * d]
    upper_l = heads[:, 2 * d:2 * d + n_off]

    # ---- reparameterize: z = L @ eps + mu, no (N, D, D) materialization, no scatter ----
    # TODO(synk): create_cholesky_matrix is not defined in the reference file; we assume
    # diag = exp(0.5 * log_var) and a row-major tril_indices(k=-1) strict-lower fill.
    eps = eps_ref[...]
    csel = spack_ref[offs["csel"][0]:offs["csel"][1], 0:n_off]        # (D, n_off)
    rsc = spack_ref[offs["rsc"][0]:offs["rsc"][1], 0:d]               # (n_off, D)
    eps_cols = jnp.dot(eps, csel, preferred_element_type=f32)         # (N, n_off)
    lower = jnp.dot(upper_l * eps_cols, rsc, preferred_element_type=f32)  # (N, D)
    z = mu + jnp.exp(0.5 * log_var) * eps + lower

    # ---- decoder MLP: Linear -> ReLU -> Linear ----
    d1_w = spack_ref[offs["d1_w"][0]:offs["d1_w"][1], 0:c]            # (D, C)
    d2_w = spack_ref[offs["d2_w"][0]:offs["d2_w"][1], 0:out_dim]      # (C, O)
    dec_b = spack_ref[offs["dec_b"][0]:offs["dec_b"][1], :]           # (1, >=C+O)
    hid = jnp.maximum(jnp.dot(z, d1_w, preferred_element_type=f32) + dec_b[:, 0:c], 0.0)
    logits = jnp.dot(hid, d2_w, preferred_element_type=f32) + dec_b[:, c:c + out_dim]

    # ---- single lane-contiguous packed output: [logits | mu | log_var | upper_L] ----
    out_ref[...] = jnp.concatenate([logits, mu, log_var, upper_l], axis=-1)


def _full_block(shape):
    nd = len(shape)
    return pl.BlockSpec(shape, lambda *args, _nd=nd: (0,) * _nd)


# ------------------------------------ forward wrapper --------------------------------------

def vae_covariance_forward(meta, packed, x_nchw, eps):
    """Returns (logits, mu, log_var, upper_L) like the PyTorch forward."""
    n, cin, h, wdt = x_nchw.shape
    assert cin == 1 and (h, wdt) == (meta["h"], meta["w"])
    c, d, n_off, o = meta["c"], meta["d"], meta["n_off"], meta["o"]

    # NCHW with Cin==1 -> flat (N*H*W, 1) rows; pure relabel, done by XLA outside the kernel.
    x_flat = x_nchw.reshape(n * h * wdt, 1)

    offs, _ = _spack_offsets(c, d, n_off, o)
    kern = functools.partial(_vae_fused_kernel, width=wdt, c=c, d=d, n_off=n_off,
                             out_dim=o, offs=offs)
    out_cols = o + 2 * d + n_off

    packed_out = pl.pallas_call(
        kern,
        out_shape=jax.ShapeDtypeStruct((n, out_cols), jnp.float32),
        grid=(1,),
        in_specs=[
            _full_block(x_flat.shape),
            _full_block(eps.shape),
            _full_block(packed["wpack"].shape),
            _full_block(packed["pool"].shape),
            _full_block(packed["spack"].shape),
        ],
        out_specs=_full_block((n, out_cols)),
        compiler_params=pltpu.CompilerParams(dimension_semantics=("arbitrary",)),
    )(x_flat, eps, packed["wpack"], packed["pool"], packed["spack"])

    logits = packed_out[:, 0:o]
    mu = packed_out[:, o:o + d]
    log_var = packed_out[:, o + d:o + 2 * d]
    upper_L = packed_out[:, o + 2 * d:]
    return logits, mu, log_var, upper_L


# ------------------------------- parameters (torch-like layout) ----------------------------

def init_params(key, hidden_dim, latent_dim, output_dim):
    c, d, o = hidden_dim, latent_dim, output_dim
    n_off = (d * d - d) // 2
    ks = jax.random.split(key, 16)

    def w(k, shape, scale=0.1):
        return (scale * jax.random.normal(k, shape)).astype(jnp.float32)

    # Index 0 = encoder_mu branch, 1 = encoder_sigma_h branch.  Conv weights in OIHW,
    # linear weights stored (in, out).
    return {
        "c1_w": w(ks[0], (2, c, 1, 3, 3)), "c1_b": w(ks[1], (2, c), 0.05),
        "c2_w": w(ks[2], (2, c, c, 3, 3)), "c2_b": w(ks[3], (2, c), 0.05),
        "c3_w": w(ks[4], (2, c, c, 2, 2)), "c3_b": w(ks[5], (2, c), 0.05),
        "mu_w": w(ks[6], (c, d)),   "mu_b": w(ks[7], (d,), 0.05),
        "lv_w": w(ks[8], (c, d)),   "lv_b": w(ks[9], (d,), 0.05),
        "ul_w": w(ks[10], (c, n_off)), "ul_b": w(ks[11], (n_off,), 0.05),
        "d1_w": w(ks[12], (d, c)),  "d1_b": w(ks[13], (c,), 0.05),
        "d2_w": w(ks[14], (c, o)),  "d2_b": w(ks[15], (o,), 0.05),
    }


def pack_params(params, in_dim, batch):
    """Build the (one-time) packed kernel operands from natural parameters."""
    f32 = jnp.float32
    c, d = params["mu_w"].shape
    n_off = params["ul_w"].shape[1]
    o = params["d2_w"].shape[1]
    h, wdt = in_dim
    c2 = 2 * c

    def tapify(wconv, k):  # (Cout, Cin, k, k) -> (k*k, Cin, Cout), row-major (dy, dx)
        return jnp.transpose(wconv, (2, 3, 1, 0)).reshape(k * k, wconv.shape[1],
                                                          wconv.shape[0])

    # conv1 taps (Cin=1), branch-concatenated lanes: (9, 2C)
    conv1_taps = jnp.concatenate([tapify(params["c1_w"][b], 3)[:, 0, :] for b in range(2)],
                                 axis=1)

    def blockdiag_taps(wpair, k):  # per-tap block-diagonal (2C, 2C) weights -> (k*k*2C, 2C)
        t0, t1 = tapify(wpair[0], k), tapify(wpair[1], k)
        z = jnp.zeros_like(t0)
        top = jnp.concatenate([t0, z], axis=2)
        bot = jnp.concatenate([z, t1], axis=2)
        blk = jnp.concatenate([top, bot], axis=1)                 # (k*k, 2C, 2C)
        return blk.reshape(k * k * c2, c2)

    conv2_blk = blockdiag_taps(params["c2_w"], 3)                 # (9*2C, 2C)
    conv3_blk = blockdiag_taps(params["c3_w"], 2)                 # (4*2C, 2C)
    biases = jnp.stack([jnp.concatenate([params["c1_b"][0], params["c1_b"][1]]),
                        jnp.concatenate([params["c2_b"][0], params["c2_b"][1]]),
                        jnp.concatenate([params["c3_b"][0], params["c3_b"][1]])], axis=0)
    wpack = jnp.concatenate([conv2_blk, conv3_blk, conv1_taps, biases], axis=0)

    # Masked global-average-pool matrix over the valid (H-5, W-5) region.
    ii = jnp.arange(h)[:, None]
    jj = jnp.arange(wdt)[None, :]
    valid = ((ii < h - 5) & (jj < wdt - 5)).astype(f32) / float((h - 5) * (wdt - 5))
    pool_mat = jnp.kron(jnp.eye(batch, dtype=f32), valid.reshape(1, h * wdt))  # (N, N*H*W)

    # Heads: [mu_w|0|0 ; 0|lv_w|ul_w] so one matmul from the branch-concatenated features.
    zc_d = jnp.zeros((c, d), f32)
    heads_w = jnp.concatenate([
        jnp.concatenate([params["mu_w"], zc_d, jnp.zeros((c, n_off), f32)], axis=1),
        jnp.concatenate([zc_d, params["lv_w"], params["ul_w"]], axis=1)], axis=0)
    heads_b = jnp.concatenate([params["mu_b"], params["lv_b"], params["ul_b"]])[None, :]

    # Constant selection matrices for the strict-lower-triangular matvec (row-major fill).
    rows, cols = jnp.tril_indices(d, k=-1)
    csel = (cols[None, :] == jnp.arange(d)[:, None]).astype(f32)   # (D, n_off)
    rsc = (rows[:, None] == jnp.arange(d)[None, :]).astype(f32)    # (n_off, D)
    dec_b = jnp.concatenate([params["d1_b"], params["d2_b"]])[None, :]

    width_cols = max(c2, 2 * d + n_off, c + o)

    def padw(a):
        return jnp.pad(a, ((0, 0), (0, width_cols - a.shape[1])))

    spack = jnp.concatenate([padw(heads_b), padw(csel), padw(rsc), padw(params["d1_w"]),
                             padw(dec_b), padw(params["d2_w"]), padw(heads_w)], axis=0)
    _, total_rows = _spack_offsets(c, d, n_off, o)
    assert spack.shape[0] == total_rows

    packed = {"wpack": wpack, "pool": pool_mat, "spack": spack}
    meta = {"c": c, "d": d, "n_off": n_off, "o": o, "h": h, "w": wdt}
    return packed, meta


# ------------------------------- pure-JAX reference check ----------------------------------

def _reference_forward(params, x_nchw, eps):
    def conv_relu(x, w, b):
        y = lax.conv_general_dilated(x, w, (1, 1), "VALID",
                                     dimension_numbers=("NCHW", "OIHW", "NCHW"))
        return jax.nn.relu(y + b[None, :, None, None])

    def branch(bi):
        y = conv_relu(x_nchw, params["c1_w"][bi], params["c1_b"][bi])
        y = conv_relu(y, params["c2_w"][bi], params["c2_b"][bi])
        y = conv_relu(y, params["c3_w"][bi], params["c3_b"][bi])
        return jnp.mean(y, axis=(2, 3))                     # AvgPool over full extent + Squeeze

    feat_mu, feat_sig = branch(0), branch(1)
    mu = feat_mu @ params["mu_w"] + params["mu_b"]
    log_var = feat_sig @ params["lv_w"] + params["lv_b"]
    upper_L = feat_sig @ params["ul_w"] + params["ul_b"]
    d = mu.shape[-1]
    rows, cols = jnp.tril_indices(d, k=-1)
    L = jax.vmap(jnp.diag)(jnp.exp(0.5 * log_var))
    L = L.at[:, rows, cols].set(upper_L)
    z = jnp.einsum("nij,nj->ni", L, eps) + mu
    hid = jax.nn.relu(z @ params["d1_w"] + params["d1_b"])
    logits = hid @ params["d2_w"] + params["d2_b"]
    return logits, mu, log_var, upper_L


# ----------------------------------------- main --------------------------------------------

if __name__ == "__main__":
    batch = 2
    in_dim = (16, 16)
    hidden_dim = 32
    latent_dim = 8
    output_dim = 10
    n_off = (latent_dim * latent_dim - latent_dim) // 2

    key = jax.random.PRNGKey(0)
    kx, kparams, keps = jax.random.split(key, 3)

    x = jax.random.normal(kx, (batch, 1, in_dim[0], in_dim[1]), dtype=jnp.float32)  # NCHW
    params = init_params(kparams, hidden_dim, latent_dim, output_dim)
    packed, meta = pack_params(params, in_dim, batch)
    # eps corresponds to torch.randn_like(mu) inside reparameterize.
    eps = jax.random.normal(keps, (batch, latent_dim), dtype=jnp.float32)

    fwd = jax.jit(functools.partial(vae_covariance_forward, meta))
    logits, mu, log_var, upper_L = fwd(packed, x, eps)
    jax.block_until_ready((logits, mu, log_var, upper_L))

    assert logits.shape == (batch, output_dim)
    assert mu.shape == (batch, latent_dim)
    assert log_var.shape == (batch, latent_dim)
    assert upper_L.shape == (batch, n_off)

    with jax.default_matmul_precision("highest"):
        ref_logits, ref_mu, ref_lv, ref_ul = _reference_forward(params, x, eps)
    for got, want in ((logits, ref_logits), (mu, ref_mu), (log_var, ref_lv),
                      (upper_L, ref_ul)):
        np.testing.assert_allclose(np.asarray(got), np.asarray(want),
                                   rtol=2e-2, atol=3e-3)

    print("KERNEL_OK")
</pallas_src>

<mosaic_0001>
module attributes {stable_mosaic.version = 11 : i64} {
  func.func @_vae_fused_kernel(%arg0: i32, %arg1: memref<512x1xf32, #tpu.memory_space<vmem>>, %arg2: memref<2x8xf32, #tpu.memory_space<vmem>>, %arg3: memref<844x64xf32, #tpu.memory_space<vmem>>, %arg4: memref<2x512xf32, #tpu.memory_space<vmem>>, %arg5: memref<142x64xf32, #tpu.memory_space<vmem>>, %arg6: memref<2x54xf32, #tpu.memory_space<vmem>>) attributes {dimension_semantics = [#tpu.dimension_semantics<arbitrary>], iteration_bounds = array<i64: 1>, scalar_prefetch = 0 : i64, scratch_operands = 0 : i64, tpu.core_type = #tpu.core_type<tc>, window_params = [{pipeline_mode = #tpu.pipeline_mode<synchronous>, transform_indices = @transform_0, window_bounds = array<i64: 512, 1>}, {pipeline_mode = #tpu.pipeline_mode<synchronous>, transform_indices = @transform_1, window_bounds = array<i64: 2, 8>}, {pipeline_mode = #tpu.pipeline_mode<synchronous>, transform_indices = @transform_2, window_bounds = array<i64: 844, 64>}, {pipeline_mode = #tpu.pipeline_mode<synchronous>, transform_indices = @transform_3, window_bounds = array<i64: 2, 512>}, {pipeline_mode = #tpu.pipeline_mode<synchronous>, transform_indices = @transform_4, window_bounds = array<i64: 142, 64>}, {pipeline_mode = #tpu.pipeline_mode<synchronous>, transform_indices = @transform_5, window_bounds = array<i64: 2, 54>}]} {
    %c832 = arith.constant 832 : index
    %c0 = arith.constant 0 : index
    %0 = vector.load %arg3[%c832, %c0] : memref<844x64xf32, #tpu.memory_space<vmem>>, vector<9x64xf32>
    %c841 = arith.constant 841 : index
    %c0_0 = arith.constant 0 : index
    %1 = vector.load %arg3[%c841, %c0_0] : memref<844x64xf32, #tpu.memory_space<vmem>>, vector<1x64xf32>
    %c842 = arith.constant 842 : index
    %c0_1 = arith.constant 0 : index
    %2 = vector.load %arg3[%c842, %c0_1] : memref<844x64xf32, #tpu.memory_space<vmem>>, vector<1x64xf32>
    %c843 = arith.constant 843 : index
    %c0_2 = arith.constant 0 : index
    %3 = vector.load %arg3[%c843, %c0_2] : memref<844x64xf32, #tpu.memory_space<vmem>>, vector<1x64xf32>
    %c0_3 = arith.constant 0 : index
    %c0_4 = arith.constant 0 : index
    %4 = vector.load %arg1[%c0_3, %c0_4] : memref<512x1xf32, #tpu.memory_space<vmem>>, vector<512x1xf32>
    %5 = vector.extract_strided_slice %4 {offsets = [1, 0], sizes = [511, 1], strides = [1, 1]} : vector<512x1xf32> to vector<511x1xf32>
    %cst = arith.constant 0.000000e+00 : f32
    %6 = vector.broadcast %cst : f32 to vector<1x1xf32>
    %7 = tpu.concatenate %5, %6 in 0 : vector<511x1xf32>, vector<1x1xf32> -> vector<512x1xf32>
    %8 = vector.extract_strided_slice %4 {offsets = [2, 0], sizes = [510, 1], strides = [1, 1]} : vector<512x1xf32> to vector<510x1xf32>
    %cst_5 = arith.constant 0.000000e+00 : f32
    %9 = vector.broadcast %cst_5 : f32 to vector<2x1xf32>
    %10 = tpu.concatenate %8, %9 in 0 : vector<510x1xf32>, vector<2x1xf32> -> vector<512x1xf32>
    %cst_6 = arith.constant 0.000000e+00 : f32
    %11 = vector.broadcast %cst_6 : f32 to vector<512x64xf32>
    %12 = vector.extract_strided_slice %0 {offsets = [0, 0], sizes = [1, 64], strides = [1, 1]} : vector<9x64xf32> to vector<1x64xf32>
    %13 = vector.broadcast %4 : vector<512x1xf32> to vector<512x64xf32>
    %14 = vector.broadcast %12 : vector<1x64xf32> to vector<512x64xf32>
    %15 = arith.mulf %13, %14 : vector<512x64xf32>
    %16 = arith.addf %11, %15 : vector<512x64xf32>
    %17 = vector.extract_strided_slice %0 {offsets = [1, 0], sizes = [1, 64], strides = [1, 1]} : vector<9x64xf32> to vector<1x64xf32>
    %18 = vector.broadcast %7 : vector<512x1xf32> to vector<512x64xf32>
    %19 = vector.broadcast %17 : vector<1x64xf32> to vector<512x64xf32>
    %20 = arith.mulf %18, %19 : vector<512x64xf32>
    %21 = arith.addf %16, %20 : vector<512x64xf32>
    %22 = vector.extract_strided_slice %0 {offsets = [2, 0], sizes = [1, 64], strides = [1, 1]} : vector<9x64xf32> to vector<1x64xf32>
    %23 = vector.broadcast %10 : vector<512x1xf32> to vector<512x64xf32>
    %24 = vector.broadcast %22 : vector<1x64xf32> to vector<512x64xf32>
    %25 = arith.mulf %23, %24 : vector<512x64xf32>
    %26 = arith.addf %21, %25 : vector<512x64xf32>
    %27 = vector.extract_strided_slice %4 {offsets = [16, 0], sizes = [496, 1], strides = [1, 1]} : vector<512x1xf32> to vector<496x1xf32>
    %cst_7 = arith.constant 0.000000e+00 : f32
    %28 = vector.broadcast %cst_7 : f32 to vector<16x1xf32>
    %29 = tpu.concatenate %27, %28 in 0 : vector<496x1xf32>, vector<16x1xf32> -> vector<512x1xf32>
    %30 = vector.extract_strided_slice %0 {offsets = [3, 0], sizes = [1, 64], strides = [1, 1]} : vector<9x64xf32> to vector<1x64xf32>
    %31 = vector.broadcast %29 : vector<512x1xf32> to vector<512x64xf32>
    %32 = vector.broadcast %30 : vector<1x64xf32> to vector<512x64xf32>
    %33 = arith.mulf %31, %32 : vector<512x64xf32>
    %34 = arith.addf %26, %33 : vector<512x64xf32>
    %35 = vector.extract_strided_slice %7 {offsets = [16, 0], sizes = [496, 1], strides = [1, 1]} : vector<512x1xf32> to vector<496x1xf32>
    %cst_8 = arith.constant 0.000000e+00 : f32
    %36 = vector.broadcast %cst_8 : f32 to vector<16x1xf32>
    %37 = tpu.concatenate %35, %36 in 0 : vector<496x1xf32>, vector<16x1xf32> -> vector<512x1xf32>
    %38 = vector.extract_strided_slice %0 {offsets = [4, 0], sizes = [1, 64], strides = [1, 1]} : vector<9x64xf32> to vector<1x64xf32>
    %39 = vector.broadcast %37 : vector<512x1xf32> to vector<512x64xf32>
    %40 = vector.broadcast %38 : vector<1x64xf32> to vector<512x64xf32>
    %41 = arith.mulf %39, %40 : vector<512x64xf32>
    %42 = arith.addf %34, %41 : vector<512x64xf32>
    %43 = vector.extract_strided_slice %10 {offsets = [16, 0], sizes = [496, 1], strides = [1, 1]} : vector<512x1xf32> to vector<496x1xf32>
    %cst_9 = arith.constant 0.000000e+00 : f32
    %44 = vector.broadcast %cst_9 : f32 to vector<16x1xf32>
    %45 = tpu.concatenate %43, %44 in 0 : vector<496x1xf32>, vector<16x1xf32> -> vector<512x1xf32>
    %46 = vector.extract_strided_slice %0 {offsets = [5, 0], sizes = [1, 64], strides = [1, 1]} : vector<9x64xf32> to vector<1x64xf32>
    %47 = vector.broadcast %45 : vector<512x1xf32> to vector<512x64xf32>
    %48 = vector.broadcast %46 : vector<1x64xf32> to vector<512x64xf32>
    %49 = arith.mulf %47, %48 : vector<512x64xf32>
    %50 = arith.addf %42, %49 : vector<512x64xf32>
    %51 = vector.extract_strided_slice %4 {offsets = [32, 0], sizes = [480, 1], strides = [1, 1]} : vector<512x1xf32> to vector<480x1xf32>
    %cst_10 = arith.constant 0.000000e+00 : f32
    %52 = vector.broadcast %cst_10 : f32 to vector<32x1xf32>
    %53 = tpu.concatenate %51, %52 in 0 : vector<480x1xf32>, vector<32x1xf32> -> vector<512x1xf32>
    %54 = vector.extract_strided_slice %0 {offsets = [6, 0], sizes = [1, 64], strides = [1, 1]} : vector<9x64xf32> to vector<1x64xf32>
    %55 = vector.broadcast %53 : vector<512x1xf32> to vector<512x64xf32>
    %56 = vector.broadcast %54 : vector<1x64xf32> to vector<512x64xf32>
    %57 = arith.mulf %55, %56 : vector<512x64xf32>
    %58 = arith.addf %50, %57 : vector<512x64xf32>
    %59 = vector.extract_strided_slice %7 {offsets = [32, 0], sizes = [480, 1], strides = [1, 1]} : vector<512x1xf32> to vector<480x1xf32>
    %cst_11 = arith.constant 0.000000e+00 : f32
    %60 = vector.broadcast %cst_11 : f32 to vector<32x1xf32>
    %61 = tpu.concatenate %59, %60 in 0 : vector<480x1xf32>, vector<32x1xf32> -> vector<512x1xf32>
    %62 = vector.extract_strided_slice %0 {offsets = [7, 0], sizes = [1, 64], strides = [1, 1]} : vector<9x64xf32> to vector<1x64xf32>
    %63 = vector.broadcast %61 : vector<512x1xf32> to vector<512x64xf32>
    %64 = vector.broadcast %62 : vector<1x64xf32> to vector<512x64xf32>
    %65 = arith.mulf %63, %64 : vector<512x64xf32>
    %66 = arith.addf %58, %65 : vector<512x64xf32>
    %67 = vector.extract_strided_slice %10 {offsets = [32, 0], sizes = [480, 1], strides = [1, 1]} : vector<512x1xf32> to vector<480x1xf32>
    %cst_12 = arith.constant 0.000000e+00 : f32
    %68 = vector.broadcast %cst_12 : f32 to vector<32x1xf32>
    %69 = tpu.concatenate %67, %68 in 0 : vector<480x1xf32>, vector<32x1xf32> -> vector<512x1xf32>
    %70 = vector.extract_strided_slice %0 {offsets = [8, 0], sizes = [1, 64], strides = [1, 1]} : vector<9x64xf32> to vector<1x64xf32>
    %71 = vector.broadcast %69 : vector<512x1xf32> to vector<512x64xf32>
    %72 = vector.broadcast %70 : vector<1x64xf32> to vector<512x64xf32>
    %73 = arith.mulf %71, %72 : vector<512x64xf32>
    %74 = arith.addf %66, %73 : vector<512x64xf32>
    %75 = vector.broadcast %1 : vector<1x64xf32> to vector<512x64xf32>
    %76 = arith.addf %74, %75 : vector<512x64xf32>
    %cst_13 = arith.constant 0.000000e+00 : f32
    %77 = vector.broadcast %cst_13 : f32 to vector<512x64xf32>
    %78 = arith.maximumf %76, %77 : vector<512x64xf32>
    %79 = vector.extract_strided_slice %78 {offsets = [1, 0], sizes = [511, 64], strides = [1, 1]} : vector<512x64xf32> to vector<511x64xf32>
    %cst_14 = arith.constant 0.000000e+00 : f32
    %80 = vector.broadcast %cst_14 : f32 to vector<1x64xf32>
    %81 = tpu.concatenate %79, %80 in 0 : vector<511x64xf32>, vector<1x64xf32> -> vector<512x64xf32>
    %82 = vector.extract_strided_slice %78 {offsets = [2, 0], sizes = [510, 64], strides = [1, 1]} : vector<512x64xf32> to vector<510x64xf32>
    %cst_15 = arith.constant 0.000000e+00 : f32
    %83 = vector.broadcast %cst_15 : f32 to vector<2x64xf32>
    %84 = tpu.concatenate %82, %83 in 0 : vector<510x64xf32>, vector<2x64xf32> -> vector<512x64xf32>
    %cst_16 = arith.constant 0.000000e+00 : f32
    %85 = vector.broadcast %cst_16 : f32 to vector<512x64xf32>
    %c0_17 = arith.constant 0 : index
    %c0_18 = arith.constant 0 : index
    %86 = vector.load %arg3[%c0_17, %c0_18] : memref<844x64xf32, #tpu.memory_space<vmem>>, vector<64x64xf32>
    %cst_19 = arith.constant dense<0.000000e+00> : vector<512x64xf32>
    %87 = tpu.matmul %78, %86, %cst_19 {dimension_numbers = #tpu.dot_dimension_numbers<[1], [0], [0], [1], [0, 0, 1, 1], [], []>} : vector<512x64xf32>, vector<64x64xf32>, vector<512x64xf32> -> vector<512x64xf32>
    %88 = arith.addf %85, %87 : vector<512x64xf32>
    %c64 = arith.constant 64 : index
    %c0_20 = arith.constant 0 : index
    %89 = vector.load %arg3[%c64, %c0_20] : memref<844x64xf32, #tpu.memory_space<vmem>>, vector<64x64xf32>
    %cst_21 = arith.constant dense<0.000000e+00> : vector<512x64xf32>
    %90 = tpu.matmul %81, %89, %cst_21 {dimension_numbers = #tpu.dot_dimension_numbers<[1], [0], [0], [1], [0, 0, 1, 1], [], []>} : vector<512x64xf32>, vector<64x64xf32>, vector<512x64xf32> -> vector<512x64xf32>
    %91 = arith.addf %88, %90 : vector<512x64xf32>
    %c128 = arith.constant 128 : index
    %c0_22 = arith.constant 0 : index
    %92 = vector.load %arg3[%c128, %c0_22] : memref<844x64xf32, #tpu.memory_space<vmem>>, vector<64x64xf32>
    %cst_23 = arith.constant dense<0.000000e+00> : vector<512x64xf32>
    %93 = tpu.matmul %84, %92, %cst_23 {dimension_numbers = #tpu.dot_dimension_numbers<[1], [0], [0], [1], [0, 0, 1, 1], [], []>} : vector<512x64xf32>, vector<64x64xf32>, vector<512x64xf32> -> vector<512x64xf32>
    %94 = arith.addf %91, %93 : vector<512x64xf32>
    %95 = vector.extract_strided_slice %78 {offsets = [16, 0], sizes = [496, 64], strides = [1, 1]} : vector<512x64xf32> to vector<496x64xf32>
    %cst_24 = arith.constant 0.000000e+00 : f32
    %96 = vector.broadcast %cst_24 : f32 to vector<16x64xf32>
    %97 = tpu.concatenate %95, %96 in 0 : vector<496x64xf32>, vector<16x64xf32> -> vector<512x64xf32>
    %c192 = arith.constant 192 : index
    %c0_25 = arith.constant 0 : index
    %98 = vector.load %arg3[%c192, %c0_25] : memref<844x64xf32, #tpu.memory_space<vmem>>, vector<64x64xf32>
    %cst_26 = arith.constant dense<0.000000e+00> : vector<512x64xf32>
    %99 = tpu.matmul %97, %98, %cst_26 {dimension_numbers = #tpu.dot_dimension_numbers<[1], [0], [0], [1], [0, 0, 1, 1], [], []>} : vector<512x64xf32>, vector<64x64xf32>, vector<512x64xf32> -> vector<512x64xf32>
    %100 = arith.addf %94, %99 : vector<512x64xf32>
    %101 = vector.extract_strided_slice %81 {offsets = [16, 0], sizes = [496, 64], strides = [1, 1]} : vector<512x64xf32> to vector<496x64xf32>
    %cst_27 = arith.constant 0.000000e+00 : f32
    %102 = vector.broadcast %cst_27 : f32 to vector<16x64xf32>
    %103 = tpu.concatenate %101, %102 in 0 : vector<496x64xf32>, vector<16x64xf32> -> vector<512x64xf32>
    %c256 = arith.constant 256 : index
    %c0_28 = arith.constant 0 : index
    %104 = vector.load %arg3[%c256, %c0_28] : memref<844x64xf32, #tpu.memory_space<vmem>>, vector<64x64xf32>
    %cst_29 = arith.constant dense<0.000000e+00> : vector<512x64xf32>
    %105 = tpu.matmul %103, %104, %cst_29 {dimension_numbers = #tpu.dot_dimension_numbers<[1], [0], [0], [1], [0, 0, 1, 1], [], []>} : vector<512x64xf32>, vector<64x64xf32>, vector<512x64xf32> -> vector<512x64xf32>
    %106 = arith.addf %100, %105 : vector<512x64xf32>
    %107 = vector.extract_strided_slice %84 {offsets = [16, 0], sizes = [496, 64], strides = [1, 1]} : vector<512x64xf32> to vector<496x64xf32>
    %cst_30 = arith.constant 0.000000e+00 : f32
    %108 = vector.broadcast %cst_30 : f32 to vector<16x64xf32>
    %109 = tpu.concatenate %107, %108 in 0 : vector<496x64xf32>, vector<16x64xf32> -> vector<512x64xf32>
    %c320 = arith.constant 320 : index
    %c0_31 = arith.constant 0 : index
    %110 = vector.load %arg3[%c320, %c0_31] : memref<844x64xf32, #tpu.memory_space<vmem>>, vector<64x64xf32>
    %cst_32 = arith.constant dense<0.000000e+00> : vector<512x64xf32>
    %111 = tpu.matmul %109, %110, %cst_32 {dimension_numbers = #tpu.dot_dimension_numbers<[1], [0], [0], [1], [0, 0, 1, 1], [], []>} : vector<512x64xf32>, vector<64x64xf32>, vector<512x64xf32> -> vector<512x64xf32>
    %112 = arith.addf %106, %111 : vector<512x64xf32>
    %113 = vector.extract_strided_slice %78 {offsets = [32, 0], sizes = [480, 64], strides = [1, 1]} : vector<512x64xf32> to vector<480x64xf32>
    %cst_33 = arith.constant 0.000000e+00 : f32
    %114 = vector.broadcast %cst_33 : f32 to vector<32x64xf32>
    %115 = tpu.concatenate %113, %114 in 0 : vector<480x64xf32>, vector<32x64xf32> -> vector<512x64xf32>
    %c384 = arith.constant 384 : index
    %c0_34 = arith.constant 0 : index
    %116 = vector.load %arg3[%c384, %c0_34] : memref<844x64xf32, #tpu.memory_space<vmem>>, vector<64x64xf32>
    %cst_35 = arith.constant dense<0.000000e+00> : vector<512x64xf32>
    %117 = tpu.matmul %115, %116, %cst_35 {dimension_numbers = #tpu.dot_dimension_numbers<[1], [0], [0], [1], [0, 0, 1, 1], [], []>} : vector<512x64xf32>, vector<64x64xf32>, vector<512x64xf32> -> vector<512x64xf32>
    %118 = arith.addf %112, %117 : vector<512x64xf32>
    %119 = vector.extract_strided_slice %81 {offsets = [32, 0], sizes = [480, 64], strides = [1, 1]} : vector<512x64xf32> to vector<480x64xf32>
    %cst_36 = arith.constant 0.000000e+00 : f32
    %120 = vector.broadcast %cst_36 : f32 to vector<32x64xf32>
    %121 = tpu.concatenate %119, %120 in 0 : vector<480x64xf32>, vector<32x64xf32> -> vector<512x64xf32>
    %c448 = arith.constant 448 : index
    %c0_37 = arith.constant 0 : index
    %122 = vector.load %arg3[%c448, %c0_37] : memref<844x64xf32, #tpu.memory_space<vmem>>, vector<64x64xf32>
    %cst_38 = arith.constant dense<0.000000e+00> : vector<512x64xf32>
    %123 = tpu.matmul %121, %122, %cst_38 {dimension_numbers = #tpu.dot_dimension_numbers<[1], [0], [0], [1], [0, 0, 1, 1], [], []>} : vector<512x64xf32>, vector<64x64xf32>, vector<512x64xf32> -> vector<512x64xf32>
    %124 = arith.addf %118, %123 : vector<512x64xf32>
    %125 = vector.extract_strided_slice %84 {offsets = [32, 0], sizes = [480, 64], strides = [1, 1]} : vector<512x64xf32> to vector<480x64xf32>
    %cst_39 = arith.constant 0.000000e+00 : f32
    %126 = vector.broadcast %cst_39 : f32 to vector<32x64xf32>
    %127 = tpu.concatenate %125, %126 in 0 : vector<480x64xf32>, vector<32x64xf32> -> vector<512x64xf32>
    %c512 = arith.constant 512 : index
    %c0_40 = arith.constant 0 : index
    %128 = vector.load %arg3[%c512, %c0_40] : memref<844x64xf32, #tpu.memory_space<vmem>>, vector<64x64xf32>
    %cst_41 = arith.constant dense<0.000000e+00> : vector<512x64xf32>
    %129 = tpu.matmul %127, %128, %cst_41 {dimension_numbers = #tpu.dot_dimension_numbers<[1], [0], [0], [1], [0, 0, 1, 1], [], []>} : vector<512x64xf32>, vector<64x64xf32>, vector<512x64xf32> -> vector<512x64xf32>
    %130 = arith.addf %124, %129 : vector<512x64xf32>
    %131 = vector.broadcast %2 : vector<1x64xf32> to vector<512x64xf32>
    %132 = arith.addf %130, %131 : vector<512x64xf32>
    %cst_42 = arith.constant 0.000000e+00 : f32
    %133 = vector.broadcast %cst_42 : f32 to vector<512x64xf32>
    %134 = arith.maximumf %132, %133 : vector<512x64xf32>
    %135 = vector.extract_strided_slice %134 {offsets = [1, 0], sizes = [511, 64], strides = [1, 1]} : vector<512x64xf32> to vector<511x64xf32>
    %cst_43 = arith.constant 0.000000e+00 : f32
    %136 = vector.broadcast %cst_43 : f32 to vector<1x64xf32>
    %137 = tpu.concatenate %135, %136 in 0 : vector<511x64xf32>, vector<1x64xf32> -> vector<512x64xf32>
    %cst_44 = arith.constant 0.000000e+00 : f32
    %138 = vector.broadcast %cst_44 : f32 to vector<512x64xf32>
    %c576 = arith.constant 576 : index
    %c0_45 = arith.constant 0 : index
    %139 = vector.load %arg3[%c576, %c0_45] : memref<844x64xf32, #tpu.memory_space<vmem>>, vector<64x64xf32>
    %cst_46 = arith.constant dense<0.000000e+00> : vector<512x64xf32>
    %140 = tpu.matmul %134, %139, %cst_46 {dimension_numbers = #tpu.dot_dimension_numbers<[1], [0], [0], [1], [0, 0, 1, 1], [], []>} : vector<512x64xf32>, vector<64x64xf32>, vector<512x64xf32> -> vector<512x64xf32>
    %141 = arith.addf %138, %140 : vector<512x64xf32>
    %c640 = arith.constant 640 : index
    %c0_47 = arith.constant 0 : index
    %142 = vector.load %arg3[%c640, %c0_47] : memref<844x64xf32, #tpu.memory_space<vmem>>, vector<64x64xf32>
    %cst_48 = arith.constant dense<0.000000e+00> : vector<512x64xf32>
    %143 = tpu.matmul %137, %142, %cst_48 {dimension_numbers = #tpu.dot_dimension_numbers<[1], [0], [0], [1], [0, 0, 1, 1], [], []>} : vector<512x64xf32>, vector<64x64xf32>, vector<512x64xf32> -> vector<512x64xf32>
    %144 = arith.addf %141, %143 : vector<512x64xf32>
    %145 = vector.extract_strided_slice %134 {offsets = [16, 0], sizes = [496, 64], strides = [1, 1]} : vector<512x64xf32> to vector<496x64xf32>
    %cst_49 = arith.constant 0.000000e+00 : f32
    %146 = vector.broadcast %cst_49 : f32 to vector<16x64xf32>
    %147 = tpu.concatenate %145, %146 in 0 : vector<496x64xf32>, vector<16x64xf32> -> vector<512x64xf32>
    %c704 = arith.constant 704 : index
    %c0_50 = arith.constant 0 : index
    %148 = vector.load %arg3[%c704, %c0_50] : memref<844x64xf32, #tpu.memory_space<vmem>>, vector<64x64xf32>
    %cst_51 = arith.constant dense<0.000000e+00> : vector<512x64xf32>
    %149 = tpu.matmul %147, %148, %cst_51 {dimension_numbers = #tpu.dot_dimension_numbers<[1], [0], [0], [1], [0, 0, 1, 1], [], []>} : vector<512x64xf32>, vector<64x64xf32>, vector<512x64xf32> -> vector<512x64xf32>
    %150 = arith.addf %144, %149 : vector<512x64xf32>
    %151 = vector.extract_strided_slice %137 {offsets = [16, 0], sizes = [496, 64], strides = [1, 1]} : vector<512x64xf32> to vector<496x64xf32>
    %cst_52 = arith.constant 0.000000e+00 : f32
    %152 = vector.broadcast %cst_52 : f32 to vector<16x64xf32>
    %153 = tpu.concatenate %151, %152 in 0 : vector<496x64xf32>, vector<16x64xf32> -> vector<512x64xf32>
    %c768 = arith.constant 768 : index
    %c0_53 = arith.constant 0 : index
    %154 = vector.load %arg3[%c768, %c0_53] : memref<844x64xf32, #tpu.memory_space<vmem>>, vector<64x64xf32>
    %cst_54 = arith.constant dense<0.000000e+00> : vector<512x64xf32>
    %155 = tpu.matmul %153, %154, %cst_54 {dimension_numbers = #tpu.dot_dimension_numbers<[1], [0], [0], [1], [0, 0, 1, 1], [], []>} : vector<512x64xf32>, vector<64x64xf32>, vector<512x64xf32> -> vector<512x64xf32>
    %156 = arith.addf %150, %155 : vector<512x64xf32>
    %157 = vector.broadcast %3 : vector<1x64xf32> to vector<512x64xf32>
    %158 = arith.addf %156, %157 : vector<512x64xf32>
    %cst_55 = arith.constant 0.000000e+00 : f32
    %159 = vector.broadcast %cst_55 : f32 to vector<512x64xf32>
    %160 = arith.maximumf %158, %159 : vector<512x64xf32>
    %c0_56 = arith.constant 0 : index
    %c0_57 = arith.constant 0 : index
    %161 = vector.load %arg4[%c0_56, %c0_57] : memref<2x512xf32, #tpu.memory_space<vmem>>, vector<2x512xf32>
    %cst_58 = arith.constant dense<0.000000e+00> : vector<2x64xf32>
    %162 = tpu.matmul %161, %160, %cst_58 {dimension_numbers = #tpu.dot_dimension_numbers<[1], [0], [0], [1], [0, 0, 1, 1], [], []>} : vector<2x512xf32>, vector<512x64xf32>, vector<2x64xf32> -> vector<2x64xf32>
    %c78 = arith.constant 78 : index
    %c0_59 = arith.constant 0 : index
    %163 = vector.load %arg5[%c78, %c0_59] : memref<142x64xf32, #tpu.memory_space<vmem>>, vector<64x44xf32>
    %c0_60 = arith.constant 0 : index
    %c0_61 = arith.constant 0 : index
    %164 = vector.load %arg5[%c0_60, %c0_61] : memref<142x64xf32, #tpu.memory_space<vmem>>, vector<1x44xf32>
    %cst_62 = arith.constant dense<0.000000e+00> : vector<2x44xf32>
    %165 = tpu.matmul %162, %163, %cst_62 {dimension_numbers = #tpu.dot_dimension_numbers<[1], [0], [0], [1], [0, 0, 1, 1], [], []>} : vector<2x64xf32>, vector<64x44xf32>, vector<2x44xf32> -> vector<2x44xf32>
    %166 = vector.broadcast %164 : vector<1x44xf32> to vector<2x44xf32>
    %167 = arith.addf %165, %166 : vector<2x44xf32>
    %168 = vector.extract_strided_slice %167 {offsets = [0, 0], sizes = [2, 8], strides = [1, 1]} : vector<2x44xf32> to vector<2x8xf32>
    %169 = vector.extract_strided_slice %167 {offsets = [0, 8], sizes = [2, 8], strides = [1, 1]} : vector<2x44xf32> to vector<2x8xf32>
    %170 = vector.extract_strided_slice %167 {offsets = [0, 16], sizes = [2, 28], strides = [1, 1]} : vector<2x44xf32> to vector<2x28xf32>
    %c0_63 = arith.constant 0 : index
    %c0_64 = arith.constant 0 : index
    %171 = vector.load %arg2[%c0_63, %c0_64] : memref<2x8xf32, #tpu.memory_space<vmem>>, vector<2x8xf32>
    %c1 = arith.constant 1 : index
    %c0_65 = arith.constant 0 : index
    %172 = vector.load %arg5[%c1, %c0_65] : memref<142x64xf32, #tpu.memory_space<vmem>>, vector<8x28xf32>
    %c9 = arith.constant 9 : index
    %c0_66 = arith.constant 0 : index
    %173 = vector.load %arg5[%c9, %c0_66] : memref<142x64xf32, #tpu.memory_space<vmem>>, vector<28x8xf32>
    %cst_67 = arith.constant dense<0.000000e+00> : vector<2x28xf32>
    %174 = tpu.matmul %171, %172, %cst_67 {dimension_numbers = #tpu.dot_dimension_numbers<[1], [0], [0], [1], [0, 0, 1, 1], [], []>} : vector<2x8xf32>, vector<8x28xf32>, vector<2x28xf32> -> vector<2x28xf32>
    %175 = arith.mulf %170, %174 : vector<2x28xf32>
    %cst_68 = arith.constant dense<0.000000e+00> : vector<2x8xf32>
    %176 = tpu.matmul %175, %173, %cst_68 {dimension_numbers = #tpu.dot_dimension_numbers<[1], [0], [0], [1], [0, 0, 1, 1], [], []>} : vector<2x28xf32>, vector<28x8xf32>, vector<2x8xf32> -> vector<2x8xf32>
    %cst_69 = arith.constant 5.000000e-01 : f32
    %177 = vector.broadcast %cst_69 : f32 to vector<2x8xf32>
    %178 = arith.mulf %177, %169 : vector<2x8xf32>
    %179 = math.exp %178 : vector<2x8xf32>
    %180 = arith.mulf %179, %171 : vector<2x8xf32>
    %181 = arith.addf %168, %180 : vector<2x8xf32>
    %182 = arith.addf %181, %176 : vector<2x8xf32>
    %c37 = arith.constant 37 : index
    %c0_70 = arith.constant 0 : index
    %183 = vector.load %arg5[%c37, %c0_70] : memref<142x64xf32, #tpu.memory_space<vmem>>, vector<8x32xf32>
    %c46 = arith.constant 46 : index
    %c0_71 = arith.constant 0 : index
    %184 = vector.load %arg5[%c46, %c0_71] : memref<142x64xf32, #tpu.memory_space<vmem>>, vector<32x10xf32>
    %c45 = arith.constant 45 : index
    %c0_72 = arith.constant 0 : index
    %185 = vector.load %arg5[%c45, %c0_72] : memref<142x64xf32, #tpu.memory_space<vmem>>, vector<1x64xf32>
    %cst_73 = arith.constant dense<0.000000e+00> : vector<2x32xf32>
    %186 = tpu.matmul %182, %183, %cst_73 {dimension_numbers = #tpu.dot_dimension_numbers<[1], [0], [0], [1], [0, 0, 1, 1], [], []>} : vector<2x8xf32>, vector<8x32xf32>, vector<2x32xf32> -> vector<2x32xf32>
    %187 = vector.extract_strided_slice %185 {offsets = [0, 0], sizes = [1, 32], strides = [1, 1]} : vector<1x64xf32> to vector<1x32xf32>
    %188 = vector.broadcast %187 : vector<1x32xf32> to vector<2x32xf32>
    %189 = arith.addf %186, %188 : vector<2x32xf32>
    %cst_74 = arith.constant 0.000000e+00 : f32
    %190 = vector.broadcast %cst_74 : f32 to vector<2x32xf32>
    %191 = arith.maximumf %189, %190 : vector<2x32xf32>
    %cst_75 = arith.constant dense<0.000000e+00> : vector<2x10xf32>
    %192 = tpu.matmul %191, %184, %cst_75 {dimension_numbers = #tpu.dot_dimension_numbers<[1], [0], [0], [1], [0, 0, 1, 1], [], []>} : vector<2x32xf32>, vector<32x10xf32>, vector<2x10xf32> -> vector<2x10xf32>
    %193 = vector.extract_strided_slice %185 {offsets = [0, 32], sizes = [1, 10], strides = [1, 1]} : vector<1x64xf32> to vector<1x10xf32>
    %194 = vector.broadcast %193 : vector<1x10xf32> to vector<2x10xf32>
    %195 = arith.addf %192, %194 : vector<2x10xf32>
    %196 = tpu.concatenate %195, %168, %169, %170 in 1 : vector<2x10xf32>, vector<2x8xf32>, vector<2x8xf32>, vector<2x28xf32> -> vector<2x54xf32>
    %c0_76 = arith.constant 0 : index
    %c0_77 = arith.constant 0 : index
    %197 = vector.load %arg6[%c0_76, %c0_77] : memref<2x54xf32, #tpu.memory_space<vmem>>, vector<2x54xf32>
    tpu.vector_store %arg6[%c0_76, %c0_77], %196 {strides = array<i32>} : memref<2x54xf32, #tpu.memory_space<vmem>>, vector<2x54xf32>,
    return
  }
  func.func @transform_0(%arg0: i32) -> (i32, i32) {
    %c0_i32 = arith.constant 0 : i32
    %c0_i32_0 = arith.constant 0 : i32
    %c0_i32_1 = arith.constant 0 : i32
    return %c0_i32, %c0_i32_0 : i32, i32
  }
  func.func @transform_1(%arg0: i32) -> (i32, i32) {
    %c0_i32 = arith.constant 0 : i32
    %c0_i32_0 = arith.constant 0 : i32
    %c0_i32_1 = arith.constant 0 : i32
    return %c0_i32, %c0_i32_0 : i32, i32
  }
  func.func @transform_2(%arg0: i32) -> (i32, i32) {
    %c0_i32 = arith.constant 0 : i32
    %c0_i32_0 = arith.constant 0 : i32
    %c0_i32_1 = arith.constant 0 : i32
    return %c0_i32, %c0_i32_0 : i32, i32
  }
  func.func @transform_3(%arg0: i32) -> (i32, i32) {
    %c0_i32 = arith.constant 0 : i32
    %c0_i32_0 = arith.constant 0 : i32
    %c0_i32_1 = arith.constant 0 : i32
    return %c0_i32, %c0_i32_0 : i32, i32
  }
  func.func @transform_4(%arg0: i32) -> (i32, i32) {
    %c0_i32 = arith.constant 0 : i32
    %c0_i32_0 = arith.constant 0 : i32
    %c0_i32_1 = arith.constant 0 : i32
    return %c0_i32, %c0_i32_0 : i32, i32
  }
  func.func @transform_5(%arg0: i32) -> (i32, i32) {
    %c0_i32 = arith.constant 0 : i32
    %c0_i32_0 = arith.constant 0 : i32
    %c0_i32_1 = arith.constant 0 : i32
    return %c0_i32, %c0_i32_0 : i32, i32
  }
}

</mosaic_0001>

<bundles_post_ra>
// kernel: vae_covariance_forward.1
= control target key start
LH: loop header
LB: loop body
LE: loop exit
PB: predicated region body
PF: predicated region fallthrough
CT: control target
= control target key end

     0   :  { %v8427_v0 = vmov 0   ;;  %vm283_vm0 = vcmask 1045504   ;;  %vm153_vm1 = vcmask 1046528   ;;  %vm2804_vm2 = vcmask 523264   ;;  %s8429_s17 = smov 16   ;;  %s8430_s18 = smov 8   ;;  %s15220_s0 = inlined_call_operand.vmem [shape: f32[512,1], index: 0, kind: input, shape index: {}]   ;;  %s15221_s2 = inlined_call_operand.vmem [shape: f32[844,64], index: 2, kind: input, shape index: {}]   ;;  %s15222_s4 = inlined_call_operand.vmem [shape: f32[142,64], index: 4, kind: input, shape index: {}]   ;;  %s15223_s3 = inlined_call_operand.vmem [shape: f32[2,512], index: 3, kind: input, shape index: {}]   ;;  %s15224_s1 = inlined_call_operand.vmem [shape: f32[2,8], index: 1, kind: input, shape index: {}]   ;;  %s15225_s5 = inlined_call_operand.vmem [shape: f32[2,54], index: 5, kind: output, shape index: {}]  }
   0x1   :  { %8407 = vset.pattern.permute.xlu0 %v8427_v0  ;;  %v25_v1 = vld [vmem:[%s15220_s0] sm:$0xff]  ;;  %8409 = vset.pattern.permute.xlu2 %v8427_v0  ;;  %v26_v2 = vld [vmem:[%s15220_s0 + $0x8] sm:$0xff]  ;;  %v27_v7 = vld [vmem:[%s15220_s0 + $0x10] sm:$0xff]  ;;  %vm7412_vm3 = vcmask 64512   ;;  %vm7447_vm4 = vcmask 1043456   ;;  %s8431_s26 = smov 10  }
   0x2   :  { %414 = vperm.xlu0 %8407, %v25_v1   ;;  %v154_v3 = vrot.slane %v25_v1, 1  ;;  %v284_v4 = vrot.slane %v25_v1, 2  ;;  %8408 = vset.pattern.permute.xlu1 %v8427_v0  ;;  %v285_v5 = vrot.slane %v26_v2, 2  ;;  %v155_v6 = vrot.slane %v26_v2, 1  ;;  %v28_v14 = vld [vmem:[%s15220_s0 + $0x18] sm:$0xff]  ;;  %v29_v16 = vld [vmem:[%s15220_s0 + $0x20] sm:$0xff] }
   0x3   :  { %v287_v10 = vrot.slane %v27_v7, 2  ;;  %v157_v11 = vrot.slane %v27_v7, 1  ;;  %v159_v15 = vrot.slane %v28_v14, 1  ;;  %v161_v18 = vrot.slane %v29_v16, 1  ;;  %v30_v24 = vld [vmem:[%s15220_s0 + $0x28] sm:$0xff]  ;;  %v31_v26 = vld [vmem:[%s15220_s0 + $0x30] sm:$0xff] }
   0x4   :  { %v286_v8 = vsel %vm283_vm0, %v284_v4, %v285_v5  ;;  %v156_v9 = vsel %vm153_vm1, %v154_v3, %v155_v6  ;;  %v289_v19 = vrot.slane %v28_v14, 2  ;;  %v291_v20 = vrot.slane %v29_v16, 2  ;;  %v8501_v34 = vld [vmem:[%s15220_s0 + $0x38] sm:$0xff]  ;;  %v8507_v36 = vld [vmem:[%s15220_s0 + $0x100] sm:$0xff]  ;;  %v58_v38 = vld [vmem:[%s15220_s0 + $0x108] sm:$0xff]  ;;  %s8432_s27 = smov 112  }
   0x5   :  { %1185 = vperm.xlu2 %8409, %v286_v8   ;;  %799 = vperm.xlu1 %8408, %v156_v9   ;;  %v288_v12 = vsel %vm283_vm0, %v285_v5, %v287_v10  ;;  %v158_v13 = vsel %vm153_vm1, %v155_v6, %v157_v11  ;;  %v160_v17 = vsel %vm153_vm1, %v157_v11, %v159_v15  ;;  %v163_v25 = vrot.slane %v30_v24, 1  ;;  %v8516_v39 = vld [vmem:[%s15220_s0 + $0x110] sm:$0xff]  ;;  %v74_v47 = vld [vmem:[%s15220_s0 + $0x188] sm:$0xff]  ;;  %v8535_v48 = vld [vmem:[%s15220_s0 + $0x180] sm:$0xff]  ;;  %s8433_s28 = smov 120   ;;  %s8434_s9 = smov 96  }
   0x6   :  { %v162_v21 = vsel %vm153_vm1, %v159_v15, %v161_v18  ;;  %v292_v22 = vsel %vm283_vm0, %v289_v19, %v291_v20  ;;  %v290_v23 = vsel %vm283_vm0, %v287_v10, %v289_v19  ;;  %v165_v28 = vrot.slane %v31_v26, 1  ;;  %15848 = vst [vmem:[#allocation2_spill] sm:$0xff] %v8507_v36  ;;  %v8541_v51 = vld [vmem:[%s15220_s0 + $0x190] sm:$0xff]  ;;  %v60_v63 = vld [vmem:[%s15220_s0 + $0x118] sm:$0xff]  ;;  %v8584_v8 = vld [vmem:[%s15220_s0 + $0x120] sm:$0xff] }
   0x7   :  { %v164_v27 = vsel %vm153_vm1, %v161_v18, %v163_v25  ;;  %v293_v29 = vrot.slane %v30_v24, 2  ;;  %v295_v30 = vrot.slane %v31_v26, 2  ;;  %v167_v35 = vrot.slane %v8501_v34, 1  ;;  %15849 = vst [vmem:[#allocation3_spill] sm:$0xff] %v8535_v48  ;;  %v76_v6 = vld [vmem:[%s15220_s0 + $0x198] sm:$0xff] }
   0x8   :  { %v166_v31 = vsel %vm153_vm1, %v163_v25, %v165_v28  ;;  %v15227_v40 = vrot.slane %v8507_v36, 1  ;;  %v219_v41 = vrot.slane %v58_v38, 1  ;;  %v221_v42 = vrot.slane %v8516_v39, 1 }
   0x9   :  { %v296_v32 = vsel %vm283_vm0, %v293_v29, %v295_v30  ;;  %v294_v33 = vsel %vm283_vm0, %v291_v20, %v293_v29  ;;  %v168_v37 = vsel %vm153_vm1, %v165_v28, %v167_v35  ;;  %v297_v45 = vrot.slane %v8501_v34, 2  ;;  %v8623_v28 = vld [vmem:[%s15220_s0 + $0x128] sm:$0xff] }
   0xa   :  { %418 = vperm.xlu0 %8407, %v26_v2   ;;  %v222_v43 = vsel %vm153_vm1, %v219_v41, %v221_v42  ;;  %v220_v44 = vsel %vm153_vm1, %v15227_v40, %v219_v41  ;;  %v251_v49 = vrot.slane %v74_v47, 1  ;;  %v15229_v50 = vrot.slane %v8535_v48, 1  ;;  %v8569_v2 = vld [vmem:[%s15220_s0 + $0x40] sm:$0xff] }
   0xb   :  { %v298_v46 = vsel %vm283_vm0, %v295_v30, %v297_v45  ;;  %v15226_v52 = vrot.slane %v8507_v36, 2  ;;  %v349_v53 = vrot.slane %v58_v38, 2  ;;  %v253_v54 = vrot.slane %v8541_v51, 1  ;;  %v2803_v30 = vld [vmem:[%s15221_s2 + $0x78] sm:$0xff]  ;;  %v2800_v41 = vld [vmem:[%s15221_s2 + $0x60] sm:$0xff] }
   0xc   :  { %v252_v55 = vsel %vm153_vm1, %v15229_v50, %v251_v49  ;;  %v351_v58 = vrot.slane %v8516_v39, 2  ;;  %v381_v60 = vrot.slane %v74_v47, 2  ;;  %v15228_v61 = vrot.slane %v8535_v48, 2  ;;  %2942 = vmatpush.msra.mxu0 %v2803_v30  ;;  %8376 = vmatpush.msra.mxu2 %v2803_v30 }
   0xd   :  { %1189 = vperm.xlu2 %8409, %v288_v12   ;;  %803 = vperm.xlu1 %8408, %v158_v13   ;;  %v350_v56 = vsel %vm283_vm0, %v15226_v52, %v349_v53  ;;  %v254_v57 = vsel %vm153_vm1, %v251_v49, %v253_v54  ;;  %v383_v62 = vrot.slane %v8541_v51, 2  ;;  %v169_v3 = vrot.slane %v8569_v2, 1  ;;  %v8593_v13 = vld [vmem:[%s15220_s0 + $0x1a0] sm:$0xff] }
   0xe   :  { %v352_v59 = vsel %vm283_vm0, %v349_v53, %v351_v58  ;;  %v382_v1 = vsel %vm283_vm0, %v15228_v61, %v381_v60  ;;  %v255_v9 = vrot.slane %v76_v6, 1  ;;  %v225_v10 = vrot.slane %v8584_v8, 1  ;;  %8377 = vmatpush.msra.mxu3 %v2803_v30  ;;  %8375 = vmatpush.msra.mxu1 %v2803_v30  ;;  %v8671_v53 = vld [vmem:[%s15220_s0 + $0x130] sm:$0xff] }
   0xf   :  { %v384_v0 = vsel %vm283_vm0, %v381_v60, %v383_v62  ;;  %v170_v5 = vsel %vm153_vm1, %v167_v35, %v169_v3  ;;  %v299_v18 = vrot.slane %v8569_v2, 2  ;;  %v385_v29 = vrot.slane %v76_v6, 2 }
  0x10   :  { %vm7444_vm5 = vcmask 228352   ;;  %vm7519_vm6 = vcmask 261120   ;;  %vm7547_vm7 = vcmask 80896   ;;  %vm7549_vm8 = vcmask 146432  }
  0x11   :  { %vm7551_vm9 = vcmask 211968   ;;  %vm7553_vm10 = vcmask 435200  }
  0x12   :  { %422 = vperm.xlu0 %8407, %v27_v7   ;;  %v223_v7 = vrot.slane %v60_v63, 1 }
  0x14   :  { %v224_v12 = vsel %vm153_vm1, %v221_v42, %v223_v7  ;;  %v226_v15 = vsel %vm153_vm1, %v223_v7, %v225_v10 }
  0x15   :  { %807 = vperm.xlu2 %8409, %v160_v17   ;;  %426 = vperm.xlu1 %8408, %v28_v14   ;;  %v256_v14 = vsel %vm153_vm1, %v253_v54, %v255_v9  ;;  %v353_v17 = vrot.slane %v60_v63, 2  ;;  %v2797_v54 = vld [vmem:[%s15221_s2 + $0x48] sm:$0xff] }
  0x1a   :  { %811 = vperm.xlu0 %8407, %v162_v21   ;;  %v354_v21 = vsel %vm283_vm0, %v351_v58, %v353_v17  ;;  %v2796_v58 = vld [vmem:[%s15221_s2 + $0x40] sm:$0xff] }
  0x1d   :  { %1197 = vperm.xlu2 %8409, %v292_v22   ;;  %1193 = vperm.xlu1 %8408, %v290_v23   ;;  %v300_v22 = vsel %vm283_vm0, %v297_v45, %v299_v18  ;;  %v355_v23 = vrot.slane %v8584_v8, 2  ;;  %v227_v45 = vrot.slane %v8623_v28, 1 }
  0x22   :  { %430 = vperm.xlu0 %8407, %v29_v16   ;;  %v257_v16 = vrot.slane %v8593_v13, 1 }
  0x24   :  { %v258_v20 = vsel %vm153_vm1, %v255_v9, %v257_v16 }
  0x25   :  { %815 = vperm.xlu2 %8409, %v164_v27   ;;  %434 = vperm.xlu1 %8408, %v30_v24   ;;  %v356_v27 = vsel %vm283_vm0, %v353_v17, %v355_v23 }
  0x2a   :  { %819 = vperm.xlu0 %8407, %v166_v31  }
  0x2d   :  { %1205 = vperm.xlu2 %8409, %v296_v32   ;;  %1201 = vperm.xlu1 %8408, %v294_v33   ;;  %v387_v32 = vrot.slane %v8593_v13, 2  ;;  %v2802_v33 = vld [vmem:[%s15221_s2 + $0x70] sm:$0xff] }
  0x2e   :  { %2943 = vmatpush.msra.mxu0 %v2802_v33  ;;  %8379 = vmatpush.msra.mxu2 %v2802_v33 }
  0x2f   :  { %8380 = vmatpush.msra.mxu3 %v2802_v33  ;;  %8378 = vmatpush.msra.mxu1 %v2802_v33 }
  0x32   :  { %438 = vperm.xlu0 %8407, %v31_v26  }
  0x35   :  { %542 = vperm.xlu2 %8409, %v8507_v36   ;;  %823 = vperm.xlu1 %8408, %v168_v37   ;;  %v386_v37 = vsel %vm283_vm0, %v383_v62, %v385_v29 }
  0x3a   :  { %546 = vperm.xlu0 %8407, %v58_v38   ;;  %v2801_v38 = vld [vmem:[%s15221_s2 + $0x68] sm:$0xff] }
  0x3b   :  { %2944 = vmatpush.msra.mxu0 %v2801_v38  ;;  %8382 = vmatpush.msra.mxu2 %v2801_v38 }
  0x3c   :  { %8383 = vmatpush.msra.mxu3 %v2801_v38  ;;  %8381 = vmatpush.msra.mxu1 %v2801_v38 }
  0x3d   :  { %931 = vperm.xlu2 %8409, %v222_v43   ;;  %927 = vperm.xlu1 %8408, %v220_v44   ;;  %v2799_v43 = vld [vmem:[%s15221_s2 + $0x58] sm:$0xff]  ;;  %v8655_v44 = vld [vmem:[%s15221_s2 + $0x340] sm:$0xff] }
  0x3e   :  { %2945 = vmatpush.msra.mxu0 %v2800_v41  ;;  %8385 = vmatpush.msra.mxu2 %v2800_v41  ;;  %v8708_v7 = vperm.slane %v8655_v44, 3  ;;  %v8750_v38 = vperm.slane %v8655_v44, 5 }
  0x3f   :  { %8386 = vmatpush.msra.mxu3 %v2800_v41  ;;  %8384 = vmatpush.msra.mxu1 %v2800_v41  ;;  %v357_v41 = vrot.slane %v8623_v28, 2 }
  0x40   :  { %2946 = vmatpush.msra.mxu0 %v2799_v43  ;;  %8388 = vmatpush.msra.mxu2 %v2799_v43 }
  0x41   :  { %8389 = vmatpush.msra.mxu3 %v2799_v43  ;;  %8387 = vmatpush.msra.mxu1 %v2799_v43  ;;  %v359_v43 = vrot.slane %v8671_v53, 2 }
  0x42   :  { %1209 = vperm.xlu0 %8407, %v298_v46   ;;  %v2798_v46 = vld [vmem:[%s15221_s2 + $0x50] sm:$0xff] }
  0x43   :  { %2947 = vmatpush.msra.mxu0 %v2798_v46  ;;  %8391 = vmatpush.msra.mxu2 %v2798_v46 }
  0x44   :  { %8392 = vmatpush.msra.mxu3 %v2798_v46  ;;  %8390 = vmatpush.msra.mxu1 %v2798_v46 }
  0x45   :  { %610 = vperm.xlu2 %8409, %v74_v47   ;;  %606 = vperm.xlu1 %8408, %v8535_v48   ;;  %v8662_v47 = vperm.slane %v8655_v44, 1 }
  0x46   :  { %2948 = vmatpush.msra.mxu0 %v2797_v54  ;;  %8394 = vmatpush.msra.mxu2 %v2797_v54 }
  0x47   :  { %15850 = vst [vmem:[#allocation4_spill] sm:$0xff] %v8662_v47  ;;  %8395 = vmatpush.msra.mxu3 %v2797_v54  ;;  %8393 = vmatpush.msra.mxu1 %v2797_v54 }
  0x48   :  { %2949 = vmatpush.msra.mxu0 %v2796_v58  ;;  %8397 = vmatpush.msra.mxu2 %v2796_v58 }
  0x49   :  { %8398 = vmatpush.msra.mxu3 %v2796_v58  ;;  %8396 = vmatpush.msra.mxu1 %v2796_v58 }
  0x4a   :  { %991 = vperm.xlu0 %8407, %v252_v55   ;;  %v8677_v55 = vperm.slane %v8655_v44, 0 }
  0x4d   :  { %1313 = vperm.xlu2 %8409, %v350_v56   ;;  %995 = vperm.xlu1 %8408, %v254_v57   ;;  %v228_v56 = vsel %vm153_vm1, %v225_v10, %v227_v45  ;;  %v8686_v57 = vld [vmem:[%s15220_s0 + $0x1a8] sm:$0xff] }
  0x4e   :  { %v259_v9 = vrot.slane %v8686_v57, 1 }
  0x52   :  { %1317 = vperm.xlu0 %8407, %v352_v59   ;;  %v8692_v59 = vperm.slane %v8655_v44, 2 }
  0x55   :  { %550 = vperm.xlu2 %8409, %v8516_v39   ;;  %442 = vperm.xlu1 %8408, %v8501_v34   ;;  %v388_v39 = vsel %vm283_vm0, %v385_v29, %v387_v32  ;;  %v260_v29 = vsel %vm153_vm1, %v257_v16, %v259_v9 }
  0x5a   :  { %554 = vperm.xlu0 %8407, %v60_v63   ;;  %v229_v63 = vrot.slane %v8671_v53, 1 }
  0x5d   :  { %1381 = vperm.xlu2 %8409, %v384_v0   ;;  %1377 = vperm.xlu1 %8408, %v382_v1   ;;  %v8700_v0 = vld [vmem:[%s15220_s0 + $0x48] sm:$0xff] }
  0x5e   :  { %v171_v10 = vrot.slane %v8700_v0, 1 }
  0x5f   :  { %v8572_v4 = vpop.permute.xlu2 %1185 }
  0x62   :  { %614 = vperm.xlu0 %8407, %v8541_v51  }
  0x65   :  { %827 = vperm.xlu2 %8409, %v170_v5   ;;  %618 = vperm.xlu1 %8408, %v76_v6  }
  0x67   :  { %v8587_v11 = vpop.permute.xlu2 %1189 }
  0x6a   :  { %935 = vperm.xlu0 %8407, %v224_v12   ;;  %v1442_v12 = vmul.f32 %v8692_v59, %v8572_v4  ;;  %v8730_v4 = vperm.slane %v8655_v44, 4 }
  0x6d   :  { %999 = vperm.xlu2 %8409, %v256_v14   ;;  %939 = vperm.xlu1 %8408, %v226_v15  }
  0x6f   :  { %v8601_v19 = vpop.permute.xlu2 %807 }
  0x72   :  { %1003 = vperm.xlu0 %8407, %v258_v20  }
  0x74   :  { %v8613_v24 = vpop.permute.xlu0 %414 }
  0x75   :  { %1321 = vperm.xlu2 %8409, %v354_v21   ;;  %1213 = vperm.xlu1 %8408, %v300_v22   ;;  %v670_v5 = vmul.f32 %v8677_v55, %v8613_v24  ;;  %v230_v21 = vsel %vm153_vm1, %v227_v45, %v229_v63  ;;  %v8725_v22 = vld [vmem:[%s15220_s0 + $0x1b0] sm:$0xff]  ;;  %v1443_v24 = vmul.f32 %v8692_v59, %v8587_v11 }
  0x76   :  { %v172_v11 = vsel %vm153_vm1, %v169_v3, %v171_v10  ;;  %v8754_v3 = vperm.slane %v8655_v44, 6  ;;  %v1704_v45 = vmul.f32 %v8730_v4, %v8601_v19 }
  0x77   :  { %v8615_v25 = vpop.permute.xlu2 %1197  ;;  %v800_v26 = vpop.permute.xlu1 %799 }
  0x78   :  { %v1056_v60 = vmul.f32 %v8662_v47, %v800_v26 }
  0x7a   :  { %1325 = vperm.xlu0 %8407, %v356_v27   ;;  %v1120_v14 = vadd.f32 %v1056_v60, %v670_v5 }
  0x7c   :  { %v419_v31 = vpop.permute.xlu0 %418  ;;  %v1506_v30 = vadd.f32 %v1442_v12, %v1120_v14  ;;  %v360_v12 = vsel %vm283_vm0, %v357_v41, %v359_v43  ;;  %v358_v14 = vsel %vm283_vm0, %v355_v23, %v357_v41  ;;  %v389_v23 = vrot.slane %v8686_v57, 2 }
  0x7d   :  { %562 = vperm.xlu2 %8409, %v8623_v28   ;;  %558 = vperm.xlu1 %8408, %v8584_v8   ;;  %v671_v6 = vmul.f32 %v8677_v55, %v419_v31 }
  0x7f   :  { %v8634_v34 = vpop.permute.xlu2 %815  ;;  %v804_v35 = vpop.permute.xlu1 %803 }
  0x80   :  { %v1057_v62 = vmul.f32 %v8662_v47, %v804_v35  ;;  %v261_v35 = vrot.slane %v8725_v22, 1 }
  0x82   :  { %1385 = vperm.xlu0 %8407, %v386_v37   ;;  %v1121_v15 = vadd.f32 %v1057_v62, %v671_v6  ;;  %v262_v28 = vsel %vm153_vm1, %v259_v9, %v261_v35  ;;  %v1833_v62 = vmul.f32 %v8750_v38, %v8615_v25  ;;  %v8781_v9 = vperm.slane %v8655_v44, 7 }
  0x83   :  { %v391_v44 = vrot.slane %v8725_v22, 2 }
  0x84   :  { %v8646_v42 = vpop.permute.xlu0 %422  ;;  %v1507_v31 = vadd.f32 %v1443_v24, %v1121_v15  ;;  %15853 = vst [vmem:[#allocation7_spill] sm:$0xff] %v8781_v9  ;;  %v8786_v15 = vld [vmem:[%s15221_s2 + $0x348] ss:$0 sm:$0xff] }
  0x85   :  { %446 = vperm.xlu2 %8409, %v8569_v2   ;;  %1389 = vperm.xlu1 %8408, %v388_v39   ;;  %v1576_v26 = vmul.f32 %v8708_v7, %v8646_v42 }
  0x87   :  { %v8664_v49 = vpop.permute.xlu2 %1205  ;;  %v8666_v51 = vpop.permute.xlu1 %426  ;;  %v1639_v16 = vadd.f32 %v1576_v26, %v1506_v30  ;;  %v301_v26 = vrot.slane %v8700_v0, 2  ;;  %v2086_v30 = vmul.f32 %v8781_v9, %v8634_v34 }
  0x88   :  { %v1577_v27 = vmul.f32 %v8708_v7, %v8666_v51  ;;  %v673_v50 = vmul.f32 %v8677_v55, %v8666_v51 }
  0x89   :  { %v1767_v5 = vadd.f32 %v1704_v45, %v1639_v16  ;;  %v672_v45 = vmul.f32 %v8677_v55, %v8646_v42  ;;  %v390_v42 = vsel %vm283_vm0, %v387_v32, %v389_v23 }
  0x8a   :  { %622 = vperm.xlu0 %8407, %v8593_v13   ;;  %v1640_v39 = vadd.f32 %v1577_v27, %v1507_v31  ;;  %v2213_v31 = vmul.f32 %v8786_v15, %v8664_v49 }
  0x8c   :  { %v8702_v1 = vpop.permute.xlu0 %811 }
  0x8d   :  { %943 = vperm.xlu2 %8409, %v228_v56   ;;  %626 = vperm.xlu1 %8408, %v8686_v57   ;;  %v1705_v33 = vmul.f32 %v8730_v4, %v8702_v1  ;;  %v302_v57 = vsel %vm283_vm0, %v299_v18, %v301_v26 }
  0x8f   :  { %v8715_v17 = vpop.permute.xlu2 %542  ;;  %v8717_v20 = vpop.permute.xlu1 %1193  ;;  %v1768_v46 = vadd.f32 %v1705_v33, %v1640_v39  ;;  %v8804_v39 = vld [vmem:[%s15221_s2 + $0x349] ss:$0 sm:$0xff] }
  0x90   :  { %15851 = vst [vmem:[#allocation5_spill] sm:$0xff] %v8715_v17  ;;  %v1832_v54 = vmul.f32 %v8750_v38, %v8717_v20  ;;  %v1444_v2 = vmul.f32 %v8692_v59, %v8717_v20 }
  0x92   :  { %947 = vperm.xlu0 %8407, %v230_v21   ;;  %v1896_v21 = vadd.f32 %v1833_v62, %v1768_v46  ;;  %v1895_v24 = vadd.f32 %v1832_v54, %v1767_v5  ;;  %v1058_v62 = vmul.f32 %v8662_v47, %v8601_v19  ;;  %v392_v5 = vsel %vm283_vm0, %v389_v23, %v391_v44 }
  0x94   :  { %v8747_v37 = vpop.permute.xlu0 %430 }
  0x95   :  { %1007 = vperm.xlu2 %8409, %v260_v29   ;;  %831 = vperm.xlu1 %8408, %v172_v11   ;;  %v1960_v58 = vmul.f32 %v8754_v3, %v8747_v37  ;;  %v1578_v19 = vmul.f32 %v8708_v7, %v8747_v37 }
  0x97   :  { %v8761_v56 = vpop.permute.xlu2 %931  ;;  %v8763_v60 = vpop.permute.xlu1 %434  ;;  %v2021_v29 = vadd.f32 %v1960_v58, %v1895_v24 }
  0x98   :  { %15852 = vst [vmem:[#allocation6_spill] sm:$0xff] %v8761_v56  ;;  %v1961_v6 = vmul.f32 %v8754_v3, %v8763_v60 }
  0x99   :  { %v2147_v54 = vadd.f32 %v2086_v30, %v2021_v29  ;;  %v8844_v29 = vld [vmem:[%s15220_s0 + $0x138] sm:$0xff]  ;;  %v1706_v30 = vmul.f32 %v8730_v4, %v8634_v34 }
  0x9a   :  { %1011 = vperm.xlu0 %8407, %v262_v28   ;;  %v2022_v11 = vadd.f32 %v1961_v6, %v1896_v21 }
  0x9c   :  { %v8789_v27 = vpop.permute.xlu0 %819 }
  0x9d   :  { %v2087_v8 = vmul.f32 %v8781_v9, %v8789_v27  ;;  %1333 = vperm.xlu2 %8409, %v360_v12   ;;  %1329 = vperm.xlu1 %8408, %v358_v14   ;;  %v1122_v12 = vadd.f32 %v1058_v62, %v672_v45  ;;  %v8858_v45 = vld [vmem:[%s15220_s0 + $0x1b8] sm:$0xff] }
  0x9f   :  { %v2148_v33 = vadd.f32 %v2087_v8, %v2022_v11  ;;  %v8799_v16 = vpop.permute.xlu2 %610  ;;  %v8806_v41 = vpop.permute.xlu1 %1201  ;;  %v1508_v20 = vadd.f32 %v1444_v2, %v1122_v12 }
  0xa0   :  { %15854 = vst [vmem:[#allocation8_spill] sm:$0xff] %v8799_v16  ;;  %v2212_v28 = vmul.f32 %v8786_v15, %v8806_v41 }
  0xa1   :  { %v2274_v46 = vadd.f32 %v2213_v31, %v2148_v33  ;;  %v1641_v11 = vadd.f32 %v1578_v19, %v1508_v20  ;;  %v1834_v31 = vmul.f32 %v8750_v38, %v8806_v41 }
  0xa2   :  { %1217 = vperm.xlu0 %8407, %v302_v57   ;;  %v2273_v18 = vadd.f32 %v2212_v28, %v2147_v54  ;;  %v231_v57 = vrot.slane %v8844_v29, 1  ;;  %v8866_v54 = vld [vmem:[%s15220_s0 + $0x50] sm:$0xff] }
  0xa3   :  { %v2339_v58 = vadd.f32 %v8804_v39, %v2274_v46  ;;  %v1769_v28 = vadd.f32 %v1706_v30, %v1641_v11  ;;  %v173_v12 = vrot.slane %v8866_v54, 1 }
  0xa4   :  { %v8828_v6 = vpop.permute.xlu0 %438  ;;  %v2338_v14 = vadd.f32 %v8804_v39, %v2273_v18 }
  0xa5   :  { %15855 = vst [vmem:[#allocation9_spill] sm:$0xff] %v8828_v6  ;;  %1397 = vperm.xlu2 %8409, %v392_v5   ;;  %1393 = vperm.xlu1 %8408, %v390_v42   ;;  %v8833_v21 = vmax.f32 %v2339_v58, 0.0  ;;  %v1962_v62 = vmul.f32 %v8754_v3, %v8828_v6  ;;  %v263_v5 = vrot.slane %v8858_v45, 1  ;;  %v1897_v2 = vadd.f32 %v1834_v31, %v1769_v28 }
  0xa6   :  { %v8835_v24 = vmax.f32 %v2338_v14, 0.0  ;;  %v232_v58 = vsel %vm153_vm1, %v229_v63, %v231_v57  ;;  %v174_v11 = vsel %vm153_vm1, %v171_v10, %v173_v12 }
  0xa7   :  { %15856 = vst [vmem:[#allocation10_spill] sm:$0xff] %v8833_v21  ;;  %v8837_v13 = vpop.permute.xlu2 %1313  ;;  %v8839_v32 = vpop.permute.xlu1 %823  ;;  %v2531_v23 = vrot.slane %v8833_v21, 1  ;;  %v2023_v19 = vadd.f32 %v1962_v62, %v1897_v2  ;;  %v264_v20 = vsel %vm153_vm1, %v261_v35, %v263_v5  ;;  %v303_v2 = vrot.slane %v8866_v54, 2 }
  0xa8   :  { %15857 = vst [vmem:[#allocation11_spill] sm:$0xff] %v8835_v24  ;;  %v2530_v8 = vrot.slane %v8835_v24, 1  ;;  %v2088_v14 = vmul.f32 %v8781_v9, %v8839_v32 }
  0xa9   :  { %15858 = vst [vmem:[#allocation12_spill] sm:$0xff] %v8837_v13 }
  0xaa   :  { %15859 = vst [vmem:[#allocation13_spill] sm:$0xff] %v8839_v32  ;;  %566 = vperm.xlu0 %8407, %v8671_v53   ;;  %v2532_v33 = vsel %vm153_vm1, %v2530_v8, %v2531_v23  ;;  %v361_v8 = vrot.slane %v8844_v29, 2  ;;  %v2149_v63 = vadd.f32 %v2088_v14, %v2023_v19 }
  0xab   :  { %7559 = vmatmul.msk.f32.vlgmr.msra.gmra.mxu0 %vm2804_vm2, %v2532_v33  ;;  %v393_v33 = vrot.slane %v8858_v45, 2 }
  0xac   :  { %v8861_v46 = vpop.permute.xlu0 %546  ;;  %v362_v10 = vsel %vm283_vm0, %v359_v43, %v361_v8 }
  0xad   :  { %15860 = vst [vmem:[#allocation14_spill] sm:$0xff] %v8861_v46  ;;  %630 = vperm.xlu2 %8409, %v8725_v22   ;;  %450 = vperm.xlu1 %8408, %v8700_v0   ;;  %v394_v19 = vsel %vm283_vm0, %v391_v44, %v393_v33  ;;  %v8926_v0 = vld [vmem:[%s15220_s0 + $0x140] sm:$0xff] }
  0xae   :  { %v8933_v44 = vld [vmem:[%s15220_s0 + $0x1c0] sm:$0xff] }
  0xaf   :  { %v8873_v18 = vpop.permute.xlu2 %550  ;;  %v8875_v42 = vpop.permute.xlu1 %927  ;;  %v15231_v52 = vrot.slane %v8933_v44, 2 }
  0xb0   :  { %15861 = vst [vmem:[#allocation15_spill] sm:$0xff] %v8873_v18 }
  0xb1   :  { %15862 = vst [vmem:[#allocation16_spill] sm:$0xff] %v8875_v42 }
  0xb2   :  { %951 = vperm.xlu0 %8407, %v232_v58  }
  0xb4   :  { %v8890_v30 = vpop.permute.xlu0 %1209 }
  0xb5   :  { %15863 = vst [vmem:[#allocation17_spill] sm:$0xff] %v8890_v30  ;;  %v2214_v31 = vmul.f32 %v8786_v15, %v8890_v30  ;;  %1015 = vperm.xlu2 %8409, %v264_v20   ;;  %835 = vperm.xlu1 %8408, %v174_v11   ;;  %v304_v20 = vsel %vm283_vm0, %v301_v26, %v303_v2  ;;  %v233_v26 = vrot.slane %v8926_v0, 1 }
  0xb7   :  { %v2275_v28 = vadd.f32 %v2214_v31, %v2149_v63  ;;  %v8895_v62 = vpop.permute.xlu2 %1381  ;;  %v8897_v35 = vpop.permute.xlu1 %606 }
  0xb8   :  { %15864 = vst [vmem:[#allocation18_spill] sm:$0xff] %v8895_v62 }
  0xb9   :  { %15865 = vst [vmem:[#allocation19_spill] sm:$0xff] %v8897_v35  ;;  %v2340_v58 = vadd.f32 %v8804_v39, %v2275_v28 }
  0xba   :  { %1337 = vperm.xlu0 %8407, %v362_v10  }
  0xbb   :  { %v8907_v14 = vmax.f32 %v2340_v58, 0.0  ;;  %v234_v58 = vsel %vm153_vm1, %v231_v57, %v233_v26 }
  0xbc   :  { %v8912_v11 = vpop.permute.xlu0 %991 }
  0xbd   :  { %15866 = vst [vmem:[#allocation20_spill] sm:$0xff] %v8907_v14  ;;  %1401 = vperm.xlu2 %8409, %v394_v19   ;;  %v15232_v53 = vrot.slane %v8907_v14, 1  ;;  %1221 = vperm.xlu1 %8408, %v304_v20  }
  0xbe   :  { %15867 = vst [vmem:[#allocation21_spill] sm:$0xff] %v8912_v11 }
  0xbf   :  { %v8915_v43 = vpop.permute.xlu2 %827  ;;  %v8917_v63 = vpop.permute.xlu1 %995  ;;  %v2534_v22 = vsel %vm153_vm1, %v2531_v23, %v15232_v53  ;;  %v8940_v23 = vld [vmem:[%s15220_s0 + $0x58] sm:$0xff] }
  0xc0   :  { %15868 = vst [vmem:[#allocation22_spill] sm:$0xff] %v8915_v43  ;;  %7560 = vmatmul.msk.f32.gmra.mxu0 %vm2804_vm2, %v2534_v22  ;;  %v175_v19 = vrot.slane %v8940_v23, 1 }
  0xc1   :  { %15869 = vst [vmem:[#allocation23_spill] sm:$0xff] %v8917_v63 }
  0xc2   :  { %570 = vperm.xlu0 %8407, %v8844_v29   ;;  %v15235_v29 = vrot.slane %v8933_v44, 1  ;;  %v176_v22 = vsel %vm153_vm1, %v173_v12, %v175_v19  ;;  %v396_v12 = vsel %vm283_vm0, %v393_v33, %v15231_v52  ;;  %v1445_v33 = vmul.f32 %v8692_v59, %v8615_v25 }
  0xc4   :  { %v8935_v31 = vpop.permute.xlu0 %1317  ;;  %v266_v20 = vsel %vm153_vm1, %v263_v5, %v15235_v29  ;;  %v15234_v5 = vrot.slane %v8940_v23, 2 }
  0xc5   :  { %15870 = vst [vmem:[#allocation24_spill] sm:$0xff] %v8935_v31  ;;  %634 = vperm.xlu2 %8409, %v8858_v45   ;;  %454 = vperm.xlu1 %8408, %v8866_v54   ;;  %v15230_v45 = vrot.slane %v8926_v0, 2 }
  0xc7   :  { %v8945_v28 = vpop.permute.xlu2 %999  ;;  %v8947_v10 = vpop.permute.xlu1 %442 }
  0xc8   :  { %15871 = vst [vmem:[#allocation25_spill] sm:$0xff] %v8945_v28 }
  0xc9   :  { %15872 = vst [vmem:[#allocation26_spill] sm:$0xff] %v8947_v10 }
  0xca   :  { %955 = vperm.xlu0 %8407, %v234_v58   ;;  %v364_v58 = vsel %vm283_vm0, %v361_v8, %v15230_v45 }
  0xcc   :  { %v8956_v54 = vpop.permute.xlu0 %554 }
  0xcd   :  { %15873 = vst [vmem:[#allocation27_spill] sm:$0xff] %v8956_v54  ;;  %1019 = vperm.xlu2 %8409, %v266_v20   ;;  %839 = vperm.xlu1 %8408, %v176_v22   ;;  %v1059_v20 = vmul.f32 %v8662_v47, %v8702_v1  ;;  %v306_v22 = vsel %vm283_vm0, %v303_v2, %v15234_v5  ;;  %v8986_v1 = vld [vmem:[%s15220_s0 + $0x148] sm:$0xff]  ;;  %v9030_v5 = vld [vmem:[%s15220_s0 + $0xb0] sm:$0xff] }
  0xce   :  { %v1579_v2 = vmul.f32 %v8708_v7, %v8763_v60 }
  0xcf   :  { %v8959_v40 = vpop.permute.xlu2 %1321  ;;  %v8961_v57 = vpop.permute.xlu1 %1377  ;;  %v1123_v8 = vadd.f32 %v1059_v20, %v673_v50  ;;  %v1707_v50 = vmul.f32 %v8730_v4, %v8789_v27 }
  0xd0   :  { %15874 = vst [vmem:[#allocation28_spill] sm:$0xff] %v8959_v40 }
  0xd1   :  { %15875 = vst [vmem:[#allocation29_spill] sm:$0xff] %v8961_v57  ;;  %v1509_v51 = vadd.f32 %v1445_v33, %v1123_v8  ;;  %v9010_v33 = vld [vmem:[%s15220_s0 + $0x60] sm:$0xff] }
  0xd2   :  { %1341 = vperm.xlu0 %8407, %v364_v58   ;;  %15882 = vst [vmem:[#allocation36_spill] sm:$0xff] %v9010_v33  ;;  %v15887_v48 = vrot.slane %v9010_v33, 1 }
  0xd4   :  { %v8975_v61 = vpop.permute.xlu0 %614 }
  0xd5   :  { %15876 = vst [vmem:[#allocation30_spill] sm:$0xff] %v8975_v61  ;;  %1405 = vperm.xlu2 %8409, %v396_v12   ;;  %1225 = vperm.xlu1 %8408, %v306_v22   ;;  %v15233_v12 = vrot.slane %v8986_v1, 1  ;;  %v1642_v22 = vadd.f32 %v1579_v2, %v1509_v51  ;;  %v1835_v2 = vmul.f32 %v8750_v38, %v8664_v49 }
  0xd6   :  { %v1963_v51 = vmul.f32 %v8754_v3, %v8947_v10 }
  0xd7   :  { %v8979_v58 = vpop.permute.xlu2 %562  ;;  %v8981_v45 = vpop.permute.xlu1 %618  ;;  %v1770_v52 = vadd.f32 %v1707_v50, %v1642_v22  ;;  %v236_v8 = vsel %vm153_vm1, %v233_v26, %v15233_v12  ;;  %v9019_v50 = vld [vmem:[%s15220_s0 + $0xa8] sm:$0xff]  ;;  %v9024_v26 = vld [vmem:[%s15220_s0 + $0xa0] sm:$0xff] }
  0xd8   :  { %15877 = vst [vmem:[#allocation31_spill] sm:$0xff] %v8979_v58  ;;  %v195_v21 = vrot.slane %v9019_v50, 1 }
  0xd9   :  { %15878 = vst [vmem:[#allocation32_spill] sm:$0xff] %v8981_v45  ;;  %v1898_v22 = vadd.f32 %v1835_v2, %v1770_v52  ;;  %v2089_v2 = vmul.f32 %v8781_v9, %v8915_v43  ;;  %v9053_v52 = vld [vmem:[%s15220_s0 + $0x1c8] sm:$0xff]  ;;  %v15888_v9 = vrot.slane %v9030_v5, 1 }
  0xda   :  { %574 = vperm.xlu0 %8407, %v8926_v0   ;;  %15883 = vst [vmem:[#allocation37_spill] sm:$0xff] %v9024_v26 }
  0xdc   :  { %v8996_v20 = vpop.permute.xlu0 %935 }
  0xdd   :  { %15879 = vst [vmem:[#allocation33_spill] sm:$0xff] %v8996_v20  ;;  %638 = vperm.xlu2 %8409, %v8933_v44   ;;  %458 = vperm.xlu1 %8408, %v8940_v23  }
  0xdf   :  { %v9000_v25 = vpop.permute.xlu2 %446  ;;  %v9002_v53 = vpop.permute.xlu1 %939 }
  0xe0   :  { %15880 = vst [vmem:[#allocation34_spill] sm:$0xff] %v9000_v25 }
  0xe1   :  { %15881 = vst [vmem:[#allocation35_spill] sm:$0xff] %v9002_v53 }
  0xe2   :  { %959 = vperm.xlu0 %8407, %v236_v8   ;;  %v2024_v8 = vadd.f32 %v1963_v51, %v1898_v22  ;;  %v178_v51 = vsel %vm153_vm1, %v175_v19, %v15887_v48  ;;  %v674_v22 = vmul.f32 %v8677_v55, %v8747_v37  ;;  %v198_v48 = vsel %vm153_vm1, %v195_v21, %v15888_v9 }
  0xe3   :  { %v1446_v37 = vmul.f32 %v8692_v59, %v8806_v41  ;;  %v1088_v9 = vmul.f32 %v8662_v47, %v8875_v42  ;;  %v15258_v42 = vrot.slane %v8986_v1, 2 }
  0xe4   :  { %v9032_v29 = vpop.permute.xlu0 %1003  ;;  %v2150_v58 = vadd.f32 %v2089_v2, %v2024_v8  ;;  %v15259_v8 = vrot.slane %v9053_v52, 1 }
  0xe5   :  { %15884 = vst [vmem:[#allocation38_spill] sm:$0xff] %v9032_v29  ;;  %498 = vperm.xlu2 %8409, %v9019_v50   ;;  %494 = vperm.xlu1 %8408, %v9024_v26   ;;  %v15889_v29 = vrot.slane %v9024_v26, 1 }
  0xe7   :  { %v9041_v24 = vpop.permute.xlu2 %943  ;;  %v9043_v36 = vpop.permute.xlu1 %1213  ;;  %v196_v40 = vsel %vm153_vm1, %v15889_v29, %v195_v21  ;;  %v702_v21 = vmul.f32 %v8677_v55, %v8715_v17 }
  0xe8   :  { %15885 = vst [vmem:[#allocation39_spill] sm:$0xff] %v9041_v24  ;;  %v2215_v12 = vmul.f32 %v8786_v15, %v9043_v36  ;;  %v1060_v24 = vmul.f32 %v8662_v47, %v8634_v34  ;;  %v1061_v34 = vmul.f32 %v8662_v47, %v8789_v27 }
  0xe9   :  { %15886 = vst [vmem:[#allocation40_spill] sm:$0xff] %v9043_v36 }
  0xea   :  { %843 = vperm.xlu0 %8407, %v178_v51   ;;  %v2276_v19 = vadd.f32 %v2215_v12, %v2150_v58  ;;  %v1124_v2 = vadd.f32 %v1060_v24, %v674_v22  ;;  %v1580_v51 = vmul.f32 %v8708_v7, %v8828_v6  ;;  %v675_v24 = vmul.f32 %v8677_v55, %v8763_v60 }
  0xeb   :  { %v15893_v6 = vrot.slane %v9010_v33, 2 }
  0xec   :  { %v9068_v36 = vpop.permute.xlu0 %1325  ;;  %v2341_v41 = vadd.f32 %v8804_v39, %v2276_v19  ;;  %v1510_v58 = vadd.f32 %v1446_v37, %v1124_v2  ;;  %v1125_v17 = vadd.f32 %v1061_v34, %v675_v24  ;;  %v1474_v37 = vmul.f32 %v8692_v59, %v8837_v13 }
  0xed   :  { %15890 = vst [vmem:[#allocation41_spill] sm:$0xff] %v9068_v36  ;;  %883 = vperm.xlu2 %8409, %v198_v48   ;;  %879 = vperm.xlu1 %8408, %v196_v40   ;;  %v15892_v48 = vrot.slane %v8933_v44, 1  ;;  %v1152_v40 = vadd.f32 %v1088_v9, %v702_v21  ;;  %v1708_v2 = vmul.f32 %v8730_v4, %v8839_v32  ;;  %v15895_v21 = vrot.slane %v8907_v14, 1 }
  0xee   :  { %v9082_v27 = vmax.f32 %v2341_v41, 0.0  ;;  %v1643_v60 = vadd.f32 %v1580_v51, %v1510_v58  ;;  %v1105_v41 = vmul.f32 %v8662_v47, %v8917_v63  ;;  %v325_v51 = vrot.slane %v9019_v50, 2 }
  0xef   :  { %v9084_v12 = vpop.permute.xlu2 %1007  ;;  %v9086_v22 = vpop.permute.xlu1 %558  ;;  %v268_v19 = vsel %vm153_vm1, %v15892_v48, %v15259_v8  ;;  %v15894_v48 = vrot.slane %v8940_v23, 2  ;;  %v15897_v58 = vrot.slane %v8926_v0, 2  ;;  %v703_v23 = vmul.f32 %v8677_v55, %v8861_v46 }
  0xf0   :  { %15891 = vst [vmem:[#allocation42_spill] sm:$0xff] %v9082_v27  ;;  %v15257_v29 = vrot.slane %v9082_v27, 1  ;;  %v1538_v0 = vadd.f32 %v1474_v37, %v1152_v40  ;;  %v1608_v9 = vmul.f32 %v8708_v7, %v8873_v18  ;;  %v15901_v40 = vrot.slane %v9024_v26, 2 }
  0xf1   :  { %v308_v34 = vsel %vm283_vm0, %v15894_v48, %v15893_v6  ;;  %v1447_v6 = vmul.f32 %v8692_v59, %v8664_v49  ;;  %v1089_v48 = vmul.f32 %v8662_v47, %v8761_v56  ;;  %v1771_v49 = vadd.f32 %v1708_v2, %v1643_v60 }
  0xf2   :  { %1023 = vperm.xlu0 %8407, %v268_v19   ;;  %v9113_v24 = vsel %vm153_vm1, %v15895_v21, %v15257_v29  ;;  %v366_v19 = vsel %vm283_vm0, %v15897_v58, %v15258_v42  ;;  %v719_v21 = vmul.f32 %v8677_v55, %v8799_v16  ;;  %v1836_v58 = vmul.f32 %v8750_v38, %v8890_v30 }
  0xf3   :  { %15896 = vst [vmem:[#allocation43_spill] sm:$0xff] %v9113_v24  ;;  %7561 = vmatmul.msk.f32.gmra.mxu0 %vm2804_vm2, %v9113_v24  ;;  %v1104_v29 = vmul.f32 %v8662_v47, %v8912_v11  ;;  %v1511_v42 = vadd.f32 %v1447_v6, %v1125_v17  ;;  %v326_v37 = vsel %vm283_vm0, %v15901_v40, %v325_v51  ;;  %v15902_v60 = vrot.slane %v9053_v52, 2 }
  0xf4   :  { %v9126_v50 = vpop.permute.xlu0 %1385  ;;  %v1169_v24 = vadd.f32 %v1105_v41, %v719_v21  ;;  %v1153_v2 = vadd.f32 %v1089_v48, %v703_v23  ;;  %v704_v17 = vmul.f32 %v8677_v55, %v8873_v18  ;;  %v1475_v41 = vmul.f32 %v8692_v59, %v8935_v31 }
  0xf5   :  { %15898 = vst [vmem:[#allocation44_spill] sm:$0xff] %v9126_v50  ;;  %1229 = vperm.xlu2 %8409, %v308_v34   ;;  %1345 = vperm.xlu1 %8408, %v366_v19   ;;  %v718_v34 = vmul.f32 %v8677_v55, %v8897_v35  ;;  %v1899_v19 = vadd.f32 %v1836_v58, %v1771_v49  ;;  %v15903_v58 = vrot.slane %v8933_v44, 2 }
  0xf6   :  { %v1491_v6 = vmul.f32 %v8692_v59, %v8895_v62  ;;  %v1490_v21 = vmul.f32 %v8692_v59, %v8961_v57  ;;  %v1671_v40 = vadd.f32 %v1608_v9, %v1538_v0  ;;  %v9159_v23 = vmul.f32 %v8730_v4, %v8915_v43 }
  0xf7   :  { %v9139_v14 = vpop.permute.xlu2 %1333  ;;  %v9141_v63 = vpop.permute.xlu1 %1389  ;;  %v1168_v8 = vadd.f32 %v1104_v29, %v718_v34  ;;  %v1609_v48 = vmul.f32 %v8708_v7, %v8956_v54  ;;  %v398_v49 = vsel %vm283_vm0, %v15903_v58, %v15902_v60  ;;  %v1581_v31 = vmul.f32 %v8708_v7, %v8947_v10 }
  0xf8   :  { %15899 = vst [vmem:[#allocation45_spill] sm:$0xff] %v9139_v14  ;;  %v1624_v29 = vmul.f32 %v8708_v7, %v8975_v61  ;;  %v1555_v9 = vadd.f32 %v1491_v6, %v1169_v24  ;;  %v15904_v0 = vrot.slane %v9030_v5, 2  ;;  %v1539_v57 = vadd.f32 %v1475_v41, %v1153_v2 }
  0xf9   :  { %15900 = vst [vmem:[#allocation46_spill] sm:$0xff] %v9141_v63  ;;  %v1736_v44 = vmul.f32 %v8730_v4, %v8996_v20  ;;  %v1737_v60 = vmul.f32 %v8730_v4, %v9002_v53  ;;  %v1554_v11 = vadd.f32 %v1490_v21, %v1168_v8  ;;  %v720_v24 = vmul.f32 %v8677_v55, %v8975_v61 }
  0xfa   :  { %1265 = vperm.xlu0 %8407, %v326_v37   ;;  %v328_v34 = vsel %vm283_vm0, %v325_v51, %v15904_v0  ;;  %v1090_v37 = vmul.f32 %v8662_v47, %v8996_v20  ;;  %v1108_v6 = vmul.f32 %v8662_v47, %v9084_v12  ;;  %v1106_v2 = vmul.f32 %v8662_v47, %v8945_v28 }
  0xfb   :  { %v1752_v41 = vmul.f32 %v8730_v4, %v8945_v28  ;;  %v1672_v0 = vadd.f32 %v1609_v48, %v1539_v57  ;;  %v1865_v8 = vmul.f32 %v8750_v38, %v9068_v36  ;;  %v9195_v21 = vadd.f32 %v1581_v31, %v1511_v42  ;;  %v15905_v28 = vld [vmem:[#allocation28_spill] sm:$0xff] }
  0xfc   :  { %v9181_v58 = vpop.permute.xlu0 %622  ;;  %v1687_v20 = vadd.f32 %v1624_v29, %v1554_v11  ;;  %v1625_v61 = vmul.f32 %v8708_v7, %v8981_v45  ;;  %v1154_v18 = vadd.f32 %v1090_v37, %v704_v17  ;;  %v1799_v46 = vadd.f32 %v1736_v44, %v1671_v40  ;;  %v15906_v29 = vld [vmem:[#allocation38_spill] sm:$0xff] }
  0xfd   :  { %v722_v51 = vmul.f32 %v8677_v55, %v9181_v58  ;;  %1409 = vperm.xlu2 %8409, %v398_v49   ;;  %1269 = vperm.xlu1 %8408, %v328_v34   ;;  %v1964_v57 = vmul.f32 %v8754_v3, %v9000_v25  ;;  %v1800_v48 = vadd.f32 %v1737_v60, %v1672_v0  ;;  %v9227_v0 = vld [vmem:[%s15220_s0 + $0xb8] sm:$0xff] }
  0xfe   :  { %v1476_v42 = vmul.f32 %v8692_v59, %v15905_v28  ;;  %v1864_v11 = vmul.f32 %v8750_v38, %v15905_v28  ;;  %v1170_v31 = vadd.f32 %v1106_v2, %v720_v24  ;;  %v1107_v34 = vmul.f32 %v8662_v47, %v15906_v29 }
  0xff   :  { %v9199_v35 = vadd.f32 %v1108_v6, %v722_v51  ;;  %v9201_v49 = vpop.permute.xlu2 %1397  ;;  %v9203_v62 = vpop.permute.xlu1 %626  ;;  %v15907_v6 = vld [vmem:[#allocation31_spill] sm:$0xff]  ;;  %v1753_v40 = vmul.f32 %v8730_v4, %v15906_v29  ;;  %v1928_v37 = vadd.f32 %v1865_v8, %v1800_v48  ;;  %v721_v44 = vmul.f32 %v8677_v55, %v8981_v45 }
 0x100   :  { %v707_v51 = vmul.f32 %v8677_v55, %v15907_v6  ;;  %v1993_v17 = vmul.f32 %v8754_v3, %v15907_v6  ;;  %v1688_v60 = vadd.f32 %v1625_v61, %v1555_v9  ;;  %v1992_v24 = vmul.f32 %v8754_v3, %v9086_v22  ;;  %v9242_v61 = vld [vmem:[%s15220_s0 + $0xc0] sm:$0xff] }
 0x101   :  { %v1815_v2 = vadd.f32 %v1752_v41, %v1687_v20  ;;  %v9231_v28 = vmul.f32 %v8677_v55, %v9000_v25  ;;  %v9233_v8 = vadd.f32 %v1476_v42, %v1154_v18  ;;  %v1927_v48 = vadd.f32 %v1864_v11, %v1799_v46  ;;  %v15909_v41 = vld [vmem:[#allocation7_spill] sm:$0xff]  ;;  %v9255_v18 = vld [vmem:[%s15220_s0 + $0x68] sm:$0xff] }
 0x102   :  { %502 = vperm.xlu0 %8407, %v9030_v5   ;;  %v9237_v45 = vadd.f32 %v1964_v57, %v1899_v19  ;;  %v9244_v20 = vadd.f32 %v1107_v34, %v721_v44  ;;  %v199_v46 = vrot.slane %v9227_v0, 1  ;;  %v1816_v19 = vadd.f32 %v1753_v40, %v1688_v60  ;;  %v15910_v57 = vld [vmem:[#allocation39_spill] sm:$0xff] }
 0x103   :  { %v1092_v42 = vmul.f32 %v8662_v47, %v15910_v57  ;;  %v9261_v11 = vmul.f32 %v8730_v4, %v15910_v57  ;;  %v2054_v34 = vadd.f32 %v1993_v17, %v1928_v37  ;;  %v706_v44 = vmul.f32 %v8677_v55, %v9086_v22 }
 0x104   :  { %v9235_v29 = vpop.permute.xlu0 %947  ;;  %v2053_v16 = vadd.f32 %v1992_v24, %v1927_v48  ;;  %v1492_v60 = vmul.f32 %v8692_v59, %v9126_v50  ;;  %v1479_v10 = vmul.f32 %v8692_v59, %v9139_v14  ;;  %v9279_v24 = vld [vmem:[%s15220_s0 + $0x150] sm:$0xff]  ;;  %v1881_v48 = vmul.f32 %v8750_v38, %v9141_v63 }
 0x105   :  { %15908 = vst [vmem:[#allocation47_spill] sm:$0xff] %v9235_v29  ;;  %v1093_v9 = vmul.f32 %v8662_v47, %v9235_v29  ;;  %v2119_v13 = vmul.f32 %v15909_v41, %v9235_v29  ;;  %578 = vperm.xlu2 %8409, %v8986_v1   ;;  %506 = vperm.xlu1 %8408, %v9227_v0   ;;  %v15912_v40 = vrot.slane %v9030_v5, 1  ;;  %v15914_v6 = vrot.slane %v9242_v61, 1 }
 0x106   :  { %v2245_v37 = vmul.f32 %v8786_v15, %v9139_v14  ;;  %v1156_v29 = vadd.f32 %v1092_v42, %v706_v44  ;;  %v1556_v14 = vadd.f32 %v1492_v60, %v1170_v31  ;;  %v15916_v42 = vrot.slane %v9010_v33, 1 }
 0x107   :  { %v1157_v56 = vadd.f32 %v1093_v9, %v707_v51  ;;  %v9266_v26 = vpop.permute.xlu2 %630  ;;  %v9268_v43 = vpop.permute.xlu1 %831  ;;  %v2180_v17 = vadd.f32 %v2119_v13, %v2054_v34  ;;  %v2118_v51 = vmul.f32 %v15909_v41, %v15910_v57  ;;  %v329_v9 = vrot.slane %v9227_v0, 2 }
 0x108   :  { %15911 = vst [vmem:[#allocation7_spill] sm:$0xff] %v9268_v43  ;;  %v200_v25 = vsel %vm153_vm1, %v15912_v40, %v199_v46  ;;  %v1754_v13 = vmul.f32 %v8730_v4, %v9084_v12  ;;  %v1880_v34 = vmul.f32 %v8750_v38, %v9126_v50  ;;  %v2009_v0 = vmul.f32 %v8754_v3, %v9203_v62  ;;  %v9307_v50 = vld [vmem:[%s15220_s0 + $0x1d0] sm:$0xff] }
 0x109   :  { %v9296_v57 = vadd.f32 %v1479_v10, %v1157_v56  ;;  %v202_v40 = vsel %vm153_vm1, %v199_v46, %v15914_v6  ;;  %v2306_v32 = vadd.f32 %v2245_v37, %v2180_v17  ;;  %v2179_v56 = vadd.f32 %v2118_v51, %v2053_v16 }
 0x10a   :  { %462 = vperm.xlu0 %8407, %v9010_v33   ;;  %v15915_v10 = vrot.slane %v9255_v18, 1  ;;  %v1626_v6 = vmul.f32 %v8708_v7, %v9181_v58  ;;  %v1944_v46 = vadd.f32 %v1881_v48, %v1816_v19  ;;  %v723_v30 = vmul.f32 %v8677_v55, %v9203_v62 }
 0x10b   :  { %15913 = vst [vmem:[#allocation39_spill] sm:$0xff] %v9296_v57  ;;  %v1943_v60 = vadd.f32 %v1880_v34, %v1815_v2  ;;  %v2008_v19 = vmul.f32 %v8754_v3, %v9181_v58  ;;  %v1495_v51 = vmul.f32 %v8692_v59, %v9201_v49  ;;  %v2371_v2 = vadd.f32 %v8804_v39, %v2306_v32 }
 0x10c   :  { %v9309_v36 = vpop.permute.xlu0 %1011  ;;  %v180_v44 = vsel %vm153_vm1, %v15916_v42, %v15915_v10  ;;  %v2070_v48 = vadd.f32 %v2009_v0, %v1944_v46  ;;  %v724_v34 = vmul.f32 %v8677_v55, %v9266_v26  ;;  %v1689_v17 = vadd.f32 %v1626_v6, %v1556_v14 }
 0x10d   :  { %v1109_v31 = vmul.f32 %v8662_v47, %v9309_v36  ;;  %887 = vperm.xlu2 %8409, %v200_v25   ;;  %v2135_v16 = vmul.f32 %v15909_v41, %v9309_v36  ;;  %642 = vperm.xlu1 %8408, %v9053_v52   ;;  %v1064_v0 = vmul.f32 %v8662_v47, %v9268_v43  ;;  %v15917_v33 = vrot.slane %v9279_v24, 1 }
 0x10e   :  { %v2090_v32 = vmul.f32 %v15909_v41, %v9268_v43  ;;  %v2134_v54 = vmul.f32 %v15909_v41, %v9084_v12  ;;  %v2069_v14 = vadd.f32 %v2008_v19, %v1943_v60  ;;  %v9361_v43 = vmax.f32 %v2371_v2, 0.0 }
 0x10f   :  { %v1173_v10 = vadd.f32 %v1109_v31, %v723_v30  ;;  %v9331_v42 = vpop.permute.xlu2 %1015  ;;  %v9333_v25 = vpop.permute.xlu1 %1329  ;;  %v2196_v31 = vadd.f32 %v2135_v16, %v2070_v48  ;;  %v15923_v19 = vrot.slane %v9030_v5, 2  ;;  %v1628_v5 = vmul.f32 %v8708_v7, %v9266_v26 }
 0x110   :  { %v1110_v37 = vmul.f32 %v8662_v47, %v9331_v42  ;;  %v1478_v58 = vmul.f32 %v8692_v59, %v9333_v25  ;;  %v2244_v30 = vmul.f32 %v8786_v15, %v9333_v25  ;;  %v15918_v47 = vrot.slane %v8986_v1, 1  ;;  %15919 = vst [vmem:[#allocation48_spill] sm:$0xff] %v9361_v43 }
 0x111   :  { %v9346_v46 = vadd.f32 %v1495_v51, %v1173_v10  ;;  %v2261_v10 = vmul.f32 %v8786_v15, %v9201_v49  ;;  %v330_v48 = vsel %vm283_vm0, %v15923_v19, %v329_v9  ;;  %v2151_v2 = vadd.f32 %v2090_v32, %v9237_v45 }
 0x112   :  { %v1174_v57 = vadd.f32 %v1110_v37, %v724_v34  ;;  %v9350_v53 = vadd.f32 %v1478_v58, %v1156_v29  ;;  %891 = vperm.xlu0 %8407, %v202_v40   ;;  %v2305_v6 = vadd.f32 %v2244_v30, %v2179_v56  ;;  %v238_v51 = vsel %vm153_vm1, %v15918_v47, %v15917_v33 }
 0x113   :  { %v15920_v29 = vrot.slane %v9307_v50, 1  ;;  %v15921_v40 = vrot.slane %v9053_v52, 1  ;;  %v15922_v56 = vrot.slane %v9242_v61, 2  ;;  %v1128_v37 = vadd.f32 %v1064_v0, %v9231_v28 }
 0x114   :  { %v9363_v16 = vpop.permute.xlu0 %1217  ;;  %v2370_v47 = vadd.f32 %v8804_v39, %v2305_v6  ;;  %v2322_v34 = vadd.f32 %v2261_v10, %v2196_v31  ;;  %v1817_v30 = vadd.f32 %v1754_v13, %v1689_v17  ;;  %v2195_v6 = vadd.f32 %v2134_v54, %v2069_v14 }
 0x115   :  { %v270_v12 = vsel %vm153_vm1, %v15921_v40, %v15920_v29  ;;  %v332_v60 = vsel %vm283_vm0, %v329_v9, %v15922_v56  ;;  %v1450_v33 = vmul.f32 %v8692_v59, %v9363_v16  ;;  %847 = vperm.xlu2 %8409, %v180_v44   ;;  %v2216_v58 = vmul.f32 %v8786_v15, %v9363_v16 }
 0x116   :  { %963 = vperm.xlu1 %8408, %v238_v51   ;;  %v9383_v29 = vmax.f32 %v2370_v47, 0.0  ;;  %v15313_v44 = vrot.slane %v9279_v24, 2  ;;  %v15316_v31 = vrot.slane %v9361_v43, 1  ;;  %v2010_v54 = vmul.f32 %v8754_v3, %v9266_v26 }
 0x117   :  { %v9385_v28 = vadd.f32 %v1450_v33, %v1128_v37  ;;  %v1402_v0 = vpop.permute.xlu2 %1401  ;;  %v2277_v9 = vadd.f32 %v2216_v58, %v2151_v2  ;;  %v1394_v32 = vpop.permute.xlu1 %1393  ;;  %v2387_v14 = vadd.f32 %v8804_v39, %v2322_v34  ;;  %v1610_v26 = vmul.f32 %v8708_v7, %v9086_v22 }
 0x118   :  { %15924 = vst [vmem:[#allocation49_spill] sm:$0xff] %v9383_v29  ;;  %v1496_v45 = vmul.f32 %v8692_v59, %v1402_v0  ;;  %v1494_v51 = vmul.f32 %v8692_v59, %v1394_v32  ;;  %v1882_v13 = vmul.f32 %v8750_v38, %v1394_v32  ;;  %v2260_v17 = vmul.f32 %v8786_v15, %v1394_v32 }
 0x119   :  { %v15311_v10 = vrot.slane %v9383_v29, 1  ;;  %v2342_v40 = vadd.f32 %v8804_v39, %v2277_v9  ;;  %v1493_v2 = vmul.f32 %v8692_v59, %v9141_v63  ;;  %v2136_v34 = vmul.f32 %v15909_v41, %v9331_v42 }
 0x11a   :  { %v9400_v56 = vadd.f32 %v1496_v45, %v1174_v57  ;;  %1027 = vperm.xlu0 %8407, %v270_v12   ;;  %v1558_v37 = vadd.f32 %v1494_v51, %v9199_v35  ;;  %v1945_v47 = vadd.f32 %v1882_v13, %v1817_v30  ;;  %v2321_v33 = vadd.f32 %v2260_v17, %v2195_v6 }
 0x11b   :  { %v9408_v19 = vsel %vm153_vm1, %v15311_v10, %v15316_v31  ;;  %v1756_v57 = vmul.f32 %v8730_v4, %v9331_v42  ;;  %v9416_v12 = vmax.f32 %v2342_v40, 0.0  ;;  %v9423_v22 = vmax.f32 %v2387_v14, 0.0 }
 0x11c   :  { %15925 = vst [vmem:[#allocation50_spill] sm:$0xff] %v9408_v19  ;;  %7591 = vmatmul.msk.f32.vlgmr.msra.gmra.mxu2 %vm2804_vm2, %v9408_v19  ;;  %v567_v35 = vpop.permute.xlu0 %566  ;;  %v1691_v58 = vadd.f32 %v1628_v5, %v1558_v37  ;;  %v2071_v30 = vadd.f32 %v2010_v54, %v1945_v47  ;;  %v2386_v6 = vadd.f32 %v8804_v39, %v2321_v33  ;;  %v15928_v32 = vrot.slane %v8986_v1, 2 }
 0x11d   :  { %15926 = vst [vmem:[#allocation51_spill] sm:$0xff] %v9416_v12  ;;  %1277 = vperm.xlu2 %8409, %v332_v60   ;;  %v1612_v9 = vmul.f32 %v8708_v7, %v567_v35  ;;  %v15315_v45 = vrot.slane %v9416_v12, 1  ;;  %v2262_v42 = vmul.f32 %v8786_v15, %v1402_v0  ;;  %v1673_v54 = vadd.f32 %v1610_v26, %v9233_v8 }
 0x11e   :  { %15927 = vst [vmem:[#allocation52_spill] sm:$0xff] %v9423_v22  ;;  %1273 = vperm.xlu1 %8408, %v330_v48   ;;  %v368_v51 = vsel %vm283_vm0, %v15928_v32, %v15313_v44  ;;  %v2197_v5 = vadd.f32 %v2136_v34, %v2071_v30  ;;  %v9433_v13 = vmax.f32 %v2386_v6, 0.0  ;;  %v1819_v60 = vadd.f32 %v1756_v57, %v1691_v58 }
 0x11f   :  { %v635_v17 = vpop.permute.xlu2 %634  ;;  %v1557_v14 = vadd.f32 %v1493_v2, %v9244_v20  ;;  %v9438_v48 = vadd.f32 %v1612_v9, %v9350_v53  ;;  %v9441_v37 = vpop.permute.xlu1 %450  ;;  %v1627_v1 = vmul.f32 %v8708_v7, %v9203_v62  ;;  %v1884_v47 = vmul.f32 %v8750_v38, %v1402_v0  ;;  %v9460_v62 = vld [vmem:[%s15220_s0 + $0xc8] sm:$0xff] }
 0x120   :  { %15929 = vst [vmem:[#allocation53_spill] sm:$0xff] %v9433_v13  ;;  %v1629_v40 = vmul.f32 %v8708_v7, %v635_v17  ;;  %v2323_v33 = vadd.f32 %v2262_v42, %v2197_v5  ;;  %v15314_v34 = vrot.slane %v9255_v18, 2  ;;  %v15930_v8 = vrot.slane %v9082_v27, 1 }
 0x121   :  { %v15312_v20 = vrot.slane %v9433_v13, 1  ;;  %v2627_v26 = vrot.slane %v9423_v22, 1  ;;  %v1866_v0 = vmul.f32 %v8750_v38, %v9333_v25  ;;  %v9469_v58 = vadd.f32 %v1884_v47, %v1819_v60  ;;  %v15936_v60 = vld [vmem:[#allocation36_spill] sm:$0xff] }
 0x122   :  { %v1692_v57 = vadd.f32 %v1629_v40, %v9346_v46  ;;  %v9453_v53 = vsel %vm153_vm1, %v15930_v8, %v15315_v45  ;;  %1349 = vperm.xlu0 %8407, %v368_v51   ;;  %v1755_v46 = vmul.f32 %v8730_v4, %v9309_v36  ;;  %v2388_v2 = vadd.f32 %v8804_v39, %v2323_v33 }
 0x123   :  { %15931 = vst [vmem:[#allocation54_spill] sm:$0xff] %v9453_v53  ;;  %7562 = vmatmul.msk.f32.gmra.mxu0 %vm2804_vm2, %v9453_v53  ;;  %v1801_v30 = vadd.f32 %v9261_v11, %v1673_v54  ;;  %v1772_v6 = vadd.f32 %v9159_v23, %v9195_v21  ;;  %v9477_v9 = vsel %vm153_vm1, %v15312_v20, %v2627_v26  ;;  %v15934_v11 = vld [vmem:[#allocation4_spill] sm:$0xff]  ;;  %v15937_v54 = vrot.slane %v15936_v60, 2 }
 0x124   :  { %15932 = vst [vmem:[#allocation55_spill] sm:$0xff] %v9477_v9  ;;  %v9479_v36 = vpop.permute.xlu0 %951  ;;  %v1690_v25 = vadd.f32 %v1627_v1, %v1557_v14  ;;  %v9481_v32 = vmax.f32 %v2388_v2, 0.0  ;;  %v708_v51 = vmul.f32 %v8677_v55, %v567_v35  ;;  %7607 = vmatmul.msk.f32.vlgmr.msra.gmra.mxu3 %vm2804_vm2, %v9477_v9  ;;  %v15935_v23 = vld [vmem:[#allocation40_spill] sm:$0xff]  ;;  %v1994_v5 = vmul.f32 %v8754_v3, %v567_v35 }
 0x125   :  { %v1094_v42 = vmul.f32 %v15934_v11, %v9479_v36  ;;  %514 = vperm.xlu2 %8409, %v9460_v62   ;;  %v1837_v21 = vmul.f32 %v8750_v38, %v15935_v23  ;;  %v310_v14 = vsel %vm283_vm0, %v15937_v54, %v15314_v34  ;;  %v15323_v40 = vrot.slane %v9307_v50, 2 }
 0x126   :  { %15933 = vst [vmem:[#allocation56_spill] sm:$0xff] %v9481_v32  ;;  %510 = vperm.xlu1 %8408, %v9242_v61   ;;  %v1818_v1 = vadd.f32 %v1755_v46, %v1690_v25  ;;  %v1929_v47 = vadd.f32 %v1866_v0, %v1801_v30  ;;  %v725_v33 = vmul.f32 %v8677_v55, %v635_v17  ;;  %v203_v0 = vrot.slane %v9460_v62, 1 }
 0x127   :  { %v1158_v8 = vadd.f32 %v1094_v42, %v708_v51  ;;  %v1020_v2 = vpop.permute.xlu2 %1019  ;;  %v2120_v10 = vmul.f32 %v15909_v41, %v9479_v36  ;;  %v9504_v44 = vpop.permute.xlu1 %835  ;;  %v1883_v54 = vmul.f32 %v8750_v38, %v9201_v49  ;;  %v679_v46 = vmul.f32 %v8677_v55, %v9441_v37 }
 0x128   :  { %v1111_v35 = vmul.f32 %v15934_v11, %v1020_v2  ;;  %v1757_v20 = vmul.f32 %v8730_v4, %v1020_v2  ;;  %v1065_v30 = vmul.f32 %v15934_v11, %v9504_v44  ;;  %v2055_v25 = vadd.f32 %v1994_v5, %v1929_v47 }
 0x129   :  { %v2011_v51 = vmul.f32 %v8754_v3, %v635_v17  ;;  %v1900_v45 = vadd.f32 %v1837_v21, %v1772_v6  ;;  %v1965_v31 = vmul.f32 %v8754_v3, %v9441_v37  ;;  %v15938_v49 = vrot.slane %v9053_v52, 2  ;;  %v9533_v6 = vld [vmem:[%s15220_s0 + $0xd0] sm:$0xff] }
 0x12a   :  { %v1175_v42 = vadd.f32 %v1111_v35, %v725_v33  ;;  %v1820_v34 = vadd.f32 %v1757_v20, %v1692_v57  ;;  %1233 = vperm.xlu0 %8407, %v310_v14   ;;  %v1129_v60 = vadd.f32 %v1065_v30, %v679_v46  ;;  %v1946_v22 = vadd.f32 %v1883_v54, %v1818_v1  ;;  %v15941_v21 = vld [vmem:[#allocation27_spill] sm:$0xff] }
 0x12b   :  { %v400_v9 = vsel %vm283_vm0, %v15938_v49, %v15323_v40  ;;  %v2181_v19 = vadd.f32 %v2120_v10, %v2055_v25  ;;  %v2137_v5 = vmul.f32 %v15909_v41, %v1020_v2  ;;  %v15939_v17 = vrot.slane %v9481_v32, 1  ;;  %v15942_v1 = vld [vmem:[#allocation35_spill] sm:$0xff] }
 0x12c   :  { %v9528_v20 = vpop.permute.xlu0 %1337  ;;  %v2091_v52 = vmul.f32 %v15909_v41, %v9504_v44  ;;  %v705_v14 = vmul.f32 %v8677_v55, %v15941_v21  ;;  %v1091_v47 = vmul.f32 %v15934_v11, %v15942_v1  ;;  %v2072_v33 = vadd.f32 %v2011_v51, %v1946_v22 }
 0x12d   :  { %v9526_v57 = vsel %vm153_vm1, %v2627_v26, %v15939_v17  ;;  %v1480_v10 = vmul.f32 %v8692_v59, %v9528_v20  ;;  %v2246_v26 = vmul.f32 %v8786_v15, %v9528_v20  ;;  %582 = vperm.xlu2 %8409, %v9279_v24   ;;  %v15943_v2 = vrot.slane %v9242_v61, 1 }
 0x12e   :  { %15940 = vst [vmem:[#allocation4_spill] sm:$0xff] %v9526_v57  ;;  %7608 = vmatmul.msk.f32.gmra.mxu3 %vm2804_vm2, %v9526_v57  ;;  %1413 = vperm.xlu1 %8408, %v400_v9   ;;  %v2026_v54 = vadd.f32 %v1965_v31, %v1900_v45  ;;  %v15327_v49 = vrot.slane %v9533_v6, 1  ;;  %v2198_v17 = vadd.f32 %v2137_v5, %v2072_v33  ;;  %v15944_v45 = vld [vmem:[#allocation41_spill] sm:$0xff]  ;;  %v15967_v27 = vrot.slane %v9533_v6, 2 }
 0x12f   :  { %v204_v35 = vsel %vm153_vm1, %v15943_v2, %v203_v0  ;;  %v9551_v46 = vadd.f32 %v1480_v10, %v1158_v8  ;;  %v2307_v30 = vadd.f32 %v2246_v26, %v2181_v19  ;;  %v1406_v25 = vpop.permute.xlu2 %1405  ;;  %v9557_v22 = vpop.permute.xlu1 %1221  ;;  %v1477_v8 = vmul.f32 %v8692_v59, %v15944_v45 }
 0x130   :  { %v1497_v40 = vmul.f32 %v8692_v59, %v1406_v25  ;;  %v1885_v57 = vmul.f32 %v8750_v38, %v1406_v25  ;;  %v2263_v53 = vmul.f32 %v8786_v15, %v1406_v25  ;;  %v2152_v9 = vadd.f32 %v2091_v52, %v2026_v54 }
 0x131   :  { %v2372_v51 = vadd.f32 %v8804_v39, %v2307_v30  ;;  %v1451_v31 = vmul.f32 %v8692_v59, %v9557_v22  ;;  %v2217_v19 = vmul.f32 %v8786_v15, %v9557_v22  ;;  %v206_v54 = vsel %vm153_vm1, %v203_v0, %v15327_v49 }
 0x132   :  { %v9566_v5 = vadd.f32 %v1497_v40, %v1175_v42  ;;  %v9568_v10 = vadd.f32 %v1885_v57, %v1820_v34  ;;  %v2324_v26 = vadd.f32 %v2263_v53, %v2198_v17  ;;  %895 = vperm.xlu0 %8407, %v204_v35   ;;  %v1155_v30 = vadd.f32 %v1091_v47, %v705_v14  ;;  %v9581_v34 = vld [vmem:[%s15220_s0 + $0x158] sm:$0xff]  ;;  %v15946_v53 = vld [vmem:[#allocation9_spill] sm:$0xff] }
 0x133   :  { %v9570_v33 = vmax.f32 %v2372_v51, 0.0  ;;  %v9572_v52 = vadd.f32 %v1451_v31, %v1129_v60  ;;  %v2278_v2 = vadd.f32 %v2217_v19, %v2152_v9  ;;  %v676_v40 = vmul.f32 %v8677_v55, %v15946_v53  ;;  %v15947_v42 = vld [vmem:[#allocation13_spill] sm:$0xff]  ;;  %v15951_v19 = vld [vmem:[#allocation39_spill] sm:$0xff] }
 0x134   :  { %v2389_v15 = vadd.f32 %v8804_v39, %v2324_v26  ;;  %v571_v25 = vpop.permute.xlu0 %570  ;;  %v1062_v60 = vmul.f32 %v15934_v11, %v15947_v42  ;;  %v1541_v0 = vadd.f32 %v1477_v8, %v1155_v30  ;;  %v333_v14 = vrot.slane %v9460_v62, 2  ;;  %v15949_v9 = vld [vmem:[#allocation17_spill] sm:$0xff]  ;;  %v15952_v53 = vld [vmem:[#allocation31_spill] sm:$0xff] }
 0x135   :  { %15945 = vst [vmem:[#allocation40_spill] sm:$0xff] %v9570_v33  ;;  %v2343_v57 = vadd.f32 %v8804_v39, %v2278_v2  ;;  %v1613_v35 = vmul.f32 %v8708_v7, %v571_v25  ;;  %466 = vperm.xlu2 %8409, %v9255_v18   ;;  %v15328_v17 = vrot.slane %v9570_v33, 1  ;;  %v1448_v51 = vmul.f32 %v8692_v59, %v15949_v9  ;;  %v15953_v62 = vld [vmem:[#allocation47_spill] sm:$0xff] }
 0x136   :  { %v9591_v47 = vmax.f32 %v2389_v15, 0.0  ;;  %899 = vperm.xlu1 %8408, %v206_v54   ;;  %v1611_v8 = vmul.f32 %v8708_v7, %v15952_v53  ;;  %v1739_v30 = vmul.f32 %v8730_v4, %v15953_v62  ;;  %v15954_v42 = vrot.slane %v9361_v43, 1 }
 0x137   :  { %v9596_v31 = vmax.f32 %v2343_v57, 0.0  ;;  %v1676_v26 = vadd.f32 %v1613_v35, %v15951_v19  ;;  %v9599_v39 = vpop.permute.xlu2 %638  ;;  %v455_v15 = vpop.permute.xlu1 %454  ;;  %v1126_v35 = vadd.f32 %v1062_v60, %v676_v40  ;;  %v15956_v2 = vrot.slane %v9242_v61, 2  ;;  %v9644_v61 = vld [vmem:[%s15220_s0 + $0x1d8] sm:$0xff] }
 0x138   :  { %15948 = vst [vmem:[#allocation36_spill] sm:$0xff] %v9591_v47  ;;  %v1630_v54 = vmul.f32 %v8708_v7, %v9599_v39  ;;  %v9613_v57 = vsel %vm153_vm1, %v15954_v42, %v15328_v17  ;;  %v1584_v9 = vmul.f32 %v8708_v7, %v455_v15  ;;  %v1674_v53 = vadd.f32 %v1611_v8, %v1541_v0 }
 0x139   :  { %15950 = vst [vmem:[#allocation9_spill] sm:$0xff] %v9596_v31  ;;  %7592 = vmatmul.msk.f32.gmra.mxu2 %vm2804_vm2, %v9613_v57  ;;  %v15329_v19 = vrot.slane %v9596_v31, 1  ;;  %v15334_v49 = vrot.slane %v9591_v47, 1  ;;  %v334_v42 = vsel %vm283_vm0, %v15956_v2, %v333_v14  ;;  %v15957_v60 = vrot.slane %v9416_v12, 1 }
 0x13a   :  { %15955 = vst [vmem:[#allocation13_spill] sm:$0xff] %v9613_v57  ;;  %v9620_v62 = vadd.f32 %v1630_v54, %v9400_v56  ;;  %646 = vperm.xlu0 %8407, %v9307_v50   ;;  %v1647_v40 = vadd.f32 %v1584_v9, %v9385_v28  ;;  %v15959_v56 = vrot.slane %v9581_v34, 1  ;;  %v15960_v0 = vrot.slane %v9279_v24, 1  ;;  %v9649_v28 = vld [vmem:[%s15220_s0 + $0x70] sm:$0xff]  ;;  %v15961_v9 = vld [vmem:[#allocation34_spill] sm:$0xff] }
 0x13b   :  { %v9633_v17 = vsel %vm153_vm1, %v15957_v60, %v15329_v19  ;;  %v1512_v2 = vadd.f32 %v1448_v51, %v1126_v35  ;;  %v1582_v60 = vmul.f32 %v8708_v7, %v15961_v9  ;;  %v1802_v19 = vadd.f32 %v1739_v30, %v1674_v53  ;;  %v15964_v35 = vld [vmem:[#allocation45_spill] sm:$0xff]  ;;  %v15965_v9 = vld [vmem:[#allocation7_spill] sm:$0xff] }
 0x13c   :  { %15958 = vst [vmem:[#allocation17_spill] sm:$0xff] %v9633_v17  ;;  %v240_v8 = vsel %vm153_vm1, %v15960_v0, %v15959_v56  ;;  %7563 = vmatmul.msk.f32.gmra.mxu0 %vm2804_vm2, %v9633_v17  ;;  %v15962_v56 = vrot.slane %v9481_v32, 1  ;;  %v956_v54 = vpop.permute.xlu0 %955  ;;  %v709_v57 = vmul.f32 %v8677_v55, %v571_v25  ;;  %v1867_v53 = vmul.f32 %v8750_v38, %v15964_v35 }
 0x13d   :  { %v1095_v51 = vmul.f32 %v15934_v11, %v956_v54  ;;  %v1741_v30 = vmul.f32 %v8730_v4, %v956_v54  ;;  %1281 = vperm.xlu2 %8409, %v334_v42   ;;  %v1710_v32 = vmul.f32 %v8730_v4, %v15965_v9  ;;  %v1995_v43 = vmul.f32 %v8754_v3, %v571_v25 }
 0x13e   :  { %v9660_v0 = vsel %vm153_vm1, %v15962_v56, %v15334_v49  ;;  %967 = vperm.xlu1 %8408, %v240_v8   ;;  %v336_v42 = vsel %vm283_vm0, %v333_v14, %v15967_v27  ;;  %v1645_v29 = vadd.f32 %v1582_v60, %v1512_v2  ;;  %v1838_v35 = vmul.f32 %v8750_v38, %v9363_v16 }
 0x13f   :  { %15963 = vst [vmem:[#allocation39_spill] sm:$0xff] %v9660_v0  ;;  %7609 = vmatmul.msk.f32.gmra.mxu3 %vm2804_vm2, %v9660_v0  ;;  %v1159_v17 = vadd.f32 %v1095_v51, %v709_v57  ;;  %v1804_v0 = vadd.f32 %v1741_v30, %v1676_v26  ;;  %v9674_v12 = vpop.permute.xlu2 %498  ;;  %v1930_v9 = vadd.f32 %v1867_v53, %v1802_v19  ;;  %v840_v8 = vpop.permute.xlu1 %839  ;;  %v15968_v27 = vrot.slane %v9644_v61, 1 }
 0x140   :  { %15966 = vst [vmem:[#allocation31_spill] sm:$0xff] %v9674_v12  ;;  %v680_v56 = vmul.f32 %v8677_v55, %v455_v15  ;;  %v2121_v49 = vmul.f32 %v15909_v41, %v956_v54  ;;  %v1066_v25 = vmul.f32 %v15934_v11, %v840_v8  ;;  %v1712_v26 = vmul.f32 %v8730_v4, %v840_v8 }
 0x141   :  { %v1773_v57 = vadd.f32 %v1710_v32, %v1645_v29  ;;  %v1966_v51 = vmul.f32 %v8754_v3, %v455_v15  ;;  %v15969_v14 = vrot.slane %v9307_v50, 1  ;;  %v15970_v19 = vrot.slane %v9649_v28, 1 }
 0x142   :  { %1285 = vperm.xlu0 %8407, %v336_v42   ;;  %v15971_v2 = vrot.slane %v9255_v18, 1  ;;  %v2056_v60 = vadd.f32 %v1995_v43, %v1930_v9  ;;  %v1130_v30 = vadd.f32 %v1066_v25, %v680_v56  ;;  %v1775_v53 = vadd.f32 %v1712_v26, %v1647_v40 }
 0x143   :  { %v272_v16 = vsel %vm153_vm1, %v15969_v14, %v15968_v27  ;;  %v15354_v29 = vrot.slane %v9581_v34, 2  ;;  %v1901_v32 = vadd.f32 %v1838_v35, %v1773_v57  ;;  %v2092_v15 = vmul.f32 %v15909_v41, %v840_v8  ;;  %v9703_v14 = vld [vmem:[%s15221_s2 + $0x348] ss:$0 sm:$0xff] }
 0x144   :  { %v182_v54 = vsel %vm153_vm1, %v15971_v2, %v15970_v19  ;;  %v1342_v42 = vpop.permute.xlu0 %1341  ;;  %v2182_v13 = vadd.f32 %v2121_v49, %v2056_v60  ;;  %v15353_v56 = vrot.slane %v9649_v28, 2  ;;  %v15973_v25 = vrot.slane %v9279_v24, 2 }
 0x145   :  { %v1481_v45 = vmul.f32 %v8692_v59, %v1342_v42  ;;  %v1869_v27 = vmul.f32 %v8750_v38, %v1342_v42  ;;  %v2247_v43 = vmul.f32 %v9703_v14, %v1342_v42  ;;  %1031 = vperm.xlu2 %8409, %v272_v16   ;;  %v2027_v40 = vadd.f32 %v1966_v51, %v1901_v32 }
 0x146   :  { %851 = vperm.xlu1 %8408, %v182_v54   ;;  %v370_v26 = vsel %vm283_vm0, %v15973_v25, %v15354_v29  ;;  %v691_v57 = vmul.f32 %v8677_v55, %v9674_v12  ;;  %v15974_v54 = vrot.slane %v9255_v18, 2  ;;  %v15351_v32 = vrot.slane %v9644_v61, 2 }
 0x147   :  { %v9707_v35 = vadd.f32 %v1481_v45, %v1159_v17  ;;  %v9709_v9 = vadd.f32 %v1869_v27, %v1804_v0  ;;  %v2308_v49 = vadd.f32 %v2247_v43, %v2182_v13  ;;  %v9711_v8 = vpop.permute.xlu2 %883  ;;  %v2153_v51 = vadd.f32 %v2092_v15, %v2027_v40  ;;  %v1226_v45 = vpop.permute.xlu1 %1225  ;;  %v9725_v13 = vld [vmem:[%s15221_s2 + $0x349] ss:$0 sm:$0xff]  ;;  %v9748_v40 = vld [vmem:[%s15220_s0 + $0xd8] sm:$0xff] }
 0x148   :  { %15972 = vst [vmem:[#allocation47_spill] sm:$0xff] %v9711_v8  ;;  %v1077_v16 = vmul.f32 %v15934_v11, %v9711_v8  ;;  %v1452_v0 = vmul.f32 %v8692_v59, %v1226_v45  ;;  %v1840_v24 = vmul.f32 %v8750_v38, %v1226_v45  ;;  %v2218_v19 = vmul.f32 %v9703_v14, %v1226_v45 }
 0x149   :  { %v2373_v17 = vadd.f32 %v9725_v13, %v2308_v49  ;;  %v312_v60 = vsel %vm283_vm0, %v15974_v54, %v15353_v56  ;;  %v1449_v54 = vmul.f32 %v8692_v59, %v15935_v23  ;;  %v15982_v23 = vrot.slane %v9533_v6, 1 }
 0x14a   :  { %v9731_v2 = vadd.f32 %v1077_v16, %v691_v57  ;;  %1353 = vperm.xlu0 %8407, %v370_v26   ;;  %v9741_v42 = vadd.f32 %v1452_v0, %v1130_v30  ;;  %v9743_v27 = vadd.f32 %v1840_v24, %v1775_v53  ;;  %v2279_v43 = vadd.f32 %v2218_v19, %v2153_v51  ;;  %v15976_v26 = vld [vmem:[#allocation26_spill] sm:$0xff] }
 0x14b   :  { %v9739_v15 = vmax.f32 %v2373_v17, 0.0  ;;  %v677_v30 = vmul.f32 %v8677_v55, %v15976_v26  ;;  %v15350_v57 = vrot.slane %v9748_v40, 1  ;;  %v15978_v17 = vrot.slane %v9307_v50, 2  ;;  %v15979_v24 = vld [vmem:[#allocation22_spill] sm:$0xff] }
 0x14c   :  { %v9750_v49 = vpop.permute.xlu0 %574  ;;  %v2344_v18 = vadd.f32 %v9725_v13, %v2279_v43  ;;  %v1063_v19 = vmul.f32 %v15934_v11, %v15979_v24  ;;  %v15980_v43 = vrot.slane %v9570_v33, 1 }
 0x14d   :  { %15975 = vst [vmem:[#allocation34_spill] sm:$0xff] %v9739_v15  ;;  %v1614_v25 = vmul.f32 %v8708_v7, %v9750_v49  ;;  %1237 = vperm.xlu2 %8409, %v312_v60   ;;  %v15349_v53 = vrot.slane %v9739_v15, 1  ;;  %v402_v0 = vsel %vm283_vm0, %v15978_v17, %v15351_v32  ;;  %v208_v26 = vsel %vm153_vm1, %v15982_v23, %v15350_v57 }
 0x14e   :  { %518 = vperm.xlu1 %8408, %v9533_v6   ;;  %v9760_v51 = vmax.f32 %v2344_v18, 0.0  ;;  %v1583_v17 = vmul.f32 %v8708_v7, %v9441_v37  ;;  %v1711_v37 = vmul.f32 %v8730_v4, %v9504_v44 }
 0x14f   :  { %v1677_v16 = vadd.f32 %v1614_v25, %v9551_v46  ;;  %v9763_v45 = vpop.permute.xlu2 %1229  ;;  %v459_v60 = vpop.permute.xlu1 %458  ;;  %v9779_v46 = vsel %vm153_vm1, %v15980_v43, %v15349_v53  ;;  %v1127_v25 = vadd.f32 %v1063_v19, %v677_v30  ;;  %v15983_v43 = vrot.slane %v9596_v31, 1  ;;  %v9803_v30 = vld [vmem:[%s15220_s0 + $0x160] sm:$0xff] }
 0x150   :  { %15977 = vst [vmem:[#allocation45_spill] sm:$0xff] %v9760_v51  ;;  %v1585_v18 = vmul.f32 %v8708_v7, %v459_v60  ;;  %7593 = vmatmul.msk.f32.gmra.mxu2 %vm2804_vm2, %v9779_v46  ;;  %v15352_v50 = vrot.slane %v9760_v51, 1  ;;  %v1967_v29 = vmul.f32 %v8754_v3, %v459_v60 }
 0x151   :  { %15981 = vst [vmem:[#allocation7_spill] sm:$0xff] %v9779_v46 }
 0x152   :  { %1417 = vperm.xlu0 %8407, %v402_v0   ;;  %v1648_v24 = vadd.f32 %v1585_v18, %v9572_v52  ;;  %v9798_v53 = vsel %vm153_vm1, %v15983_v43, %v15352_v50  ;;  %v1513_v0 = vadd.f32 %v1449_v54, %v1127_v25  ;;  %v710_v52 = vmul.f32 %v8677_v55, %v9750_v49 }
 0x153   :  { %15984 = vst [vmem:[#allocation26_spill] sm:$0xff] %v9798_v53  ;;  %7564 = vmatmul.msk.f32.gmra.mxu0 %vm2804_vm2, %v9798_v53  ;;  %v15359_v43 = vrot.slane %v9803_v30, 1  ;;  %v1839_v25 = vmul.f32 %v8750_v38, %v9557_v22  ;;  %v1740_v50 = vmul.f32 %v8730_v4, %v9479_v36  ;;  %v1868_v22 = vmul.f32 %v8750_v38, %v9528_v20 }
 0x154   :  { %v960_v19 = vpop.permute.xlu0 %959  ;;  %v1646_v54 = vadd.f32 %v1583_v17, %v1513_v0  ;;  %v9831_v17 = vld [vmem:[%s15220_s0 + $0x1e0] sm:$0xff]  ;;  %v15362_v0 = vrot.slane %v9748_v40, 2  ;;  %v681_v20 = vmul.f32 %v8677_v55, %v459_v60 }
 0x155   :  { %v1096_v18 = vmul.f32 %v15934_v11, %v960_v19  ;;  %v1742_v23 = vmul.f32 %v8730_v4, %v960_v19  ;;  %903 = vperm.xlu2 %8409, %v208_v26  }
 0x156   :  { %586 = vperm.xlu1 %8408, %v9581_v34   ;;  %v1774_v26 = vadd.f32 %v1711_v37, %v1646_v54 }
 0x157   :  { %v9817_v57 = vadd.f32 %v1096_v18, %v710_v52  ;;  %v9819_v32 = vadd.f32 %v1742_v23, %v1677_v16  ;;  %v9821_v44 = vpop.permute.xlu2 %1409  ;;  %v9825_v56 = vpop.permute.xlu1 %494  ;;  %v15986_v16 = vrot.slane %v9581_v34, 1  ;;  %v9845_v52 = vld [vmem:[%s15220_s0 + $0x78] sm:$0xff]  ;;  %v1803_v18 = vadd.f32 %v1740_v50, %v9438_v48 }
 0x158   :  { %15985 = vst [vmem:[#allocation22_spill] sm:$0xff] %v9825_v56  ;;  %v1902_v37 = vadd.f32 %v1839_v25, %v1774_v26  ;;  %v15987_v48 = vrot.slane %v9533_v6, 2  ;;  %v15372_v50 = vrot.slane %v9803_v30, 2 }
 0x159   :  { %v242_v36 = vsel %vm153_vm1, %v15986_v16, %v15359_v43  ;;  %v1931_v25 = vadd.f32 %v1868_v22, %v1803_v18  ;;  %v2012_v22 = vmul.f32 %v8754_v3, %v9599_v39 }
 0x15a   :  { %470 = vperm.xlu0 %8407, %v9649_v28   ;;  %v2028_v46 = vadd.f32 %v1967_v29, %v1902_v37  ;;  %v338_v60 = vsel %vm283_vm0, %v15987_v48, %v15362_v0  ;;  %v2219_v29 = vmul.f32 %v9703_v14, %v9763_v45  ;;  %v15990_v48 = vrot.slane %v9644_v61, 1 }
 0x15c   :  { %v844_v23 = vpop.permute.xlu0 %843 }
 0x15d   :  { %v1067_v33 = vmul.f32 %v15934_v11, %v844_v23  ;;  %v1713_v16 = vmul.f32 %v8730_v4, %v844_v23  ;;  %v2093_v43 = vmul.f32 %v15909_v41, %v844_v23  ;;  %971 = vperm.xlu2 %8409, %v242_v36   ;;  %v1453_v36 = vmul.f32 %v8692_v59, %v9763_v45 }
 0x15e   :  { %650 = vperm.xlu1 %8408, %v9644_v61   ;;  %v15989_v23 = vrot.slane %v9831_v17, 1 }
 0x15f   :  { %v1131_v26 = vadd.f32 %v1067_v33, %v681_v20  ;;  %v1776_v37 = vadd.f32 %v1713_v16, %v1648_v24  ;;  %v2154_v54 = vadd.f32 %v2093_v43, %v2028_v46  ;;  %v9862_v53 = vpop.permute.xlu2 %578  ;;  %v9870_v18 = vpop.permute.xlu1 %879  ;;  %v1841_v46 = vmul.f32 %v8750_v38, %v9763_v45 }
 0x160   :  { %v1615_v6 = vmul.f32 %v8708_v7, %v9862_v53  ;;  %15988 = vst [vmem:[#allocation57_spill] sm:$0xff] %v9870_v18  ;;  %v274_v33 = vsel %vm153_vm1, %v15990_v48, %v15989_v23  ;;  %v690_v24 = vmul.f32 %v8677_v55, %v9825_v56  ;;  %v1076_v20 = vmul.f32 %v15934_v11, %v9870_v18 }
 0x161   :  { %v2280_v43 = vadd.f32 %v2219_v29, %v2154_v54  ;;  %v1996_v16 = vmul.f32 %v8754_v3, %v9750_v49  ;;  %v9889_v23 = vadd.f32 %v1453_v36, %v1131_v26  ;;  %v15991_v54 = vrot.slane %v9845_v52, 1 }
 0x162   :  { %v9886_v0 = vadd.f32 %v1615_v6, %v9707_v35  ;;  %1289 = vperm.xlu0 %8407, %v338_v60   ;;  %v9892_v48 = vadd.f32 %v1076_v20, %v690_v24  ;;  %v15992_v29 = vrot.slane %v9649_v28, 1  ;;  %v9899_v1 = vadd.f32 %v1841_v46, %v1776_v37 }
 0x163   :  { %v2345_v45 = vadd.f32 %v9725_v13, %v2280_v43  ;;  %v726_v35 = vmul.f32 %v8677_v55, %v9599_v39  ;;  %v2073_v49 = vadd.f32 %v2012_v22, %v9469_v58  ;;  %v2122_v60 = vmul.f32 %v15909_v41, %v960_v19 }
 0x164   :  { %v184_v31 = vsel %vm153_vm1, %v15992_v29, %v15991_v54  ;;  %v1024_v26 = vpop.permute.xlu0 %1023  ;;  %v15371_v36 = vrot.slane %v9845_v52, 2  ;;  %v2057_v37 = vadd.f32 %v1996_v16, %v1931_v25  ;;  %v2264_v39 = vmul.f32 %v9703_v14, %v9821_v44 }
 0x165   :  { %v9906_v6 = vmax.f32 %v2345_v45, 0.0  ;;  %v1112_v24 = vmul.f32 %v15934_v11, %v1024_v26  ;;  %v1758_v43 = vmul.f32 %v8730_v4, %v1024_v26  ;;  %v2138_v20 = vmul.f32 %v15909_v41, %v1024_v26  ;;  %1035 = vperm.xlu2 %8409, %v274_v33  }
 0x166   :  { %855 = vperm.xlu1 %8408, %v184_v31   ;;  %v15994_v58 = vrot.slane %v9581_v34, 2  ;;  %v2183_v33 = vadd.f32 %v2122_v60, %v2057_v37  ;;  %v1498_v25 = vmul.f32 %v8692_v59, %v9821_v44  ;;  %v15996_v31 = vrot.slane %v9649_v28, 2 }
 0x167   :  { %15993 = vst [vmem:[#allocation58_spill] sm:$0xff] %v9906_v6  ;;  %v1176_v22 = vadd.f32 %v1112_v24, %v726_v35  ;;  %v1821_v46 = vadd.f32 %v1758_v43, %v9620_v62  ;;  %v2199_v45 = vadd.f32 %v2138_v20, %v2073_v49  ;;  %v9919_v54 = vpop.permute.xlu2 %887  ;;  %v15366_v29 = vrot.slane %v9906_v6, 1  ;;  %v1346_v16 = vpop.permute.xlu1 %1345 }
 0x168   :  { %v372_v19 = vsel %vm283_vm0, %v15994_v58, %v15372_v50  ;;  %15995 = vst [vmem:[#allocation59_spill] sm:$0xff] %v9919_v54  ;;  %v314_v34 = vsel %vm283_vm0, %v15996_v31, %v15371_v36  ;;  %v1482_v35 = vmul.f32 %v8692_v59, %v1346_v16  ;;  %v1870_v62 = vmul.f32 %v8750_v38, %v1346_v16 }
 0x169   :  { %v2325_v26 = vadd.f32 %v2264_v39, %v2199_v45  ;;  %v2248_v49 = vmul.f32 %v9703_v14, %v1346_v16  ;;  %v1886_v60 = vmul.f32 %v8750_v38, %v9821_v44  ;;  %v15997_v24 = vrot.slane %v9760_v51, 1 }
 0x16a   :  { %1357 = vperm.xlu0 %8407, %v372_v19   ;;  %v15369_v28 = vrot.slane %v9831_v17, 2  ;;  %v9942_v20 = vadd.f32 %v1498_v25, %v1176_v22  ;;  %v9946_v39 = vadd.f32 %v1482_v35, %v9817_v57  ;;  %v9949_v58 = vadd.f32 %v1870_v62, %v9819_v32  ;;  %v9956_v19 = vld [vmem:[%s15220_s0 + $0xe0] sm:$0xff] }
 0x16b   :  { %v9939_v43 = vsel %vm153_vm1, %v15997_v24, %v15366_v29  ;;  %v2390_v37 = vadd.f32 %v9725_v13, %v2325_v26  ;;  %v2309_v44 = vadd.f32 %v2248_v49, %v2183_v33  ;;  %v9960_v22 = vadd.f32 %v1886_v60, %v1821_v46  ;;  %v9997_v24 = vld [vmem:[%s15220_s0 + $0x168] sm:$0xff] }
 0x16c   :  { %15998 = vst [vmem:[#allocation60_spill] sm:$0xff] %v9939_v43  ;;  %7565 = vmatmul.msk.f32.gmra.mxu0 %vm2804_vm2, %v9939_v43  ;;  %v9958_v45 = vpop.permute.xlu0 %1265  ;;  %v15368_v32 = vrot.slane %v9956_v19, 1  ;;  %v16002_v31 = vrot.slane %v9644_v61, 2  ;;  %v16006_v61 = vrot.slane %v9748_v40, 1  ;;  %v16012_v29 = vrot.slane %v9803_v30, 1 }
 0x16d   :  { %15999 = vst [vmem:[#allocation61_spill] sm:$0xff] %v9958_v45  ;;  %v9962_v25 = vmax.f32 %v2390_v37, 0.0  ;;  %v2374_v57 = vadd.f32 %v9725_v13, %v2309_v44  ;;  %1241 = vperm.xlu2 %8409, %v314_v34   ;;  %v16004_v34 = vrot.slane %v9591_v47, 1  ;;  %v16007_v37 = vrot.slane %v9739_v15, 1 }
 0x16e   :  { %522 = vperm.xlu1 %8408, %v9748_v40   ;;  %v404_v46 = vsel %vm283_vm0, %v16002_v31, %v15369_v28  ;;  %v210_v60 = vsel %vm153_vm1, %v16006_v61, %v15368_v32  ;;  %v1078_v31 = vmul.f32 %v15934_v11, %v9919_v54  ;;  %v10032_v32 = vld [vmem:[%s15220_s0 + $0x1e8] sm:$0xff]  ;;  %v16013_v36 = vrot.slane %v9748_v40, 2 }
 0x16f   :  { %16000 = vst [vmem:[#allocation62_spill] sm:$0xff] %v9962_v25  ;;  %v9967_v33 = vmax.f32 %v2374_v57, 0.0  ;;  %v9969_v16 = vpop.permute.xlu2 %847  ;;  %v15365_v26 = vrot.slane %v9962_v25, 1  ;;  %v9977_v35 = vpop.permute.xlu1 %1269 }
 0x170   :  { %16003 = vst [vmem:[#allocation64_spill] sm:$0xff] %v9977_v35  ;;  %v1068_v28 = vmul.f32 %v15934_v11, %v9969_v16  ;;  %v1714_v47 = vmul.f32 %v8730_v4, %v9969_v16 }
 0x171   :  { %16001 = vst [vmem:[#allocation63_spill] sm:$0xff] %v9967_v33  ;;  %v9984_v62 = vsel %vm153_vm1, %v16004_v34, %v15365_v26  ;;  %v15367_v49 = vrot.slane %v9967_v33, 1  ;;  %v15370_v34 = vrot.slane %v9997_v24, 1 }
 0x172   :  { %16005 = vst [vmem:[#allocation65_spill] sm:$0xff] %v9984_v62  ;;  %1421 = vperm.xlu0 %8407, %v404_v46   ;;  %7610 = vmatmul.msk.f32.gmra.mxu3 %vm2804_vm2, %v9984_v62  ;;  %v15391_v62 = vrot.slane %v10032_v32, 1 }
 0x173   :  { %v10004_v44 = vsel %vm153_vm1, %v16007_v37, %v15367_v49  ;;  %v244_v49 = vsel %vm153_vm1, %v16012_v29, %v15370_v34 }
 0x174   :  { %16008 = vst [vmem:[#allocation66_spill] sm:$0xff] %v10004_v44  ;;  %v10006_v57 = vpop.permute.xlu0 %502  ;;  %7594 = vmatmul.msk.f32.gmra.mxu2 %vm2804_vm2, %v10004_v44 }
 0x175   :  { %16009 = vst [vmem:[#allocation67_spill] sm:$0xff] %v10006_v57  ;;  %v692_v46 = vmul.f32 %v8677_v55, %v10006_v57  ;;  %907 = vperm.xlu2 %8409, %v210_v60   ;;  %v15387_v60 = vrot.slane %v9956_v19, 2 }
 0x176   :  { %590 = vperm.xlu1 %8408, %v9803_v30  }
 0x177   :  { %v10016_v61 = vadd.f32 %v1078_v31, %v692_v46  ;;  %v10018_v37 = vpop.permute.xlu2 %1277  ;;  %v10020_v26 = vpop.permute.xlu1 %506  ;;  %v10039_v46 = vld [vmem:[%s15220_s0 + $0x80] sm:$0xff]  ;;  %v340_v50 = vsel %vm283_vm0, %v16013_v36, %v15387_v60  ;;  %v16015_v36 = vrot.slane %v9831_v17, 1  ;;  %v15396_v60 = vrot.slane %v9997_v24, 2 }
 0x178   :  { %16010 = vst [vmem:[#allocation68_spill] sm:$0xff] %v10018_v37 }
 0x179   :  { %16011 = vst [vmem:[#allocation69_spill] sm:$0xff] %v10020_v26 }
 0x17a   :  { %474 = vperm.xlu0 %8407, %v9845_v52  }
 0x17c   :  { %v10034_v31 = vpop.permute.xlu0 %462 }
 0x17d   :  { %v682_v29 = vmul.f32 %v8677_v55, %v10034_v31  ;;  %v1586_v34 = vmul.f32 %v8708_v7, %v10034_v31  ;;  %975 = vperm.xlu2 %8409, %v244_v49   ;;  %v15390_v49 = vrot.slane %v10039_v46, 1 }
 0x17e   :  { %654 = vperm.xlu1 %8408, %v9831_v17  }
 0x17f   :  { %v10056_v44 = vadd.f32 %v1068_v28, %v682_v29  ;;  %v1649_v15 = vadd.f32 %v1586_v34, %v9741_v42  ;;  %v10059_v43 = vpop.permute.xlu2 %514  ;;  %v10062_v51 = vpop.permute.xlu1 %642  ;;  %v276_v28 = vsel %vm153_vm1, %v16015_v36, %v15391_v62  ;;  %v16016_v34 = vrot.slane %v9845_v52, 1 }
 0x180   :  { %v1631_v40 = vmul.f32 %v8708_v7, %v10062_v51  ;;  %v711_v62 = vmul.f32 %v8677_v55, %v9862_v53 }
 0x181   :  { %v10066_v18 = vadd.f32 %v1714_v47, %v1649_v15  ;;  %v186_v29 = vsel %vm153_vm1, %v16016_v34, %v15390_v49  ;;  %v693_v47 = vmul.f32 %v8677_v55, %v10020_v26  ;;  %v16018_v34 = vrot.slane %v9803_v30, 2 }
 0x182   :  { %1293 = vperm.xlu0 %8407, %v340_v50   ;;  %v1694_v42 = vadd.f32 %v1631_v40, %v9566_v5  ;;  %v1465_v50 = vmul.f32 %v8692_v59, %v10018_v37  ;;  %v1599_v5 = vmul.f32 %v8708_v7, %v10059_v43  ;;  %v16019_v30 = vrot.slane %v10039_v46, 2 }
 0x183   :  { %16014 = vst [vmem:[#allocation70_spill] sm:$0xff] %v10066_v18  ;;  %v374_v49 = vsel %vm283_vm0, %v16018_v34, %v15396_v60  ;;  %v16020_v34 = vrot.slane %v9845_v52, 2  ;;  %v15398_v18 = vrot.slane %v10032_v32, 2 }
 0x184   :  { %v10080_v56 = vpop.permute.xlu0 %891 }
 0x185   :  { %16017 = vst [vmem:[#allocation71_spill] sm:$0xff] %v10080_v56  ;;  %v1079_v15 = vmul.f32 %v15934_v11, %v10080_v56  ;;  %1039 = vperm.xlu2 %8409, %v276_v28   ;;  %v316_v60 = vsel %vm283_vm0, %v16020_v34, %v16019_v30 }
 0x186   :  { %859 = vperm.xlu1 %8408, %v186_v29  }
 0x187   :  { %v1143_v40 = vadd.f32 %v1079_v15, %v693_v47  ;;  %v10089_v36 = vpop.permute.xlu2 %582 }
 0x188   :  { %v1616_v28 = vmul.f32 %v8708_v7, %v10089_v36  ;;  %v964_v29 = vpop.permute.xlu1 %963 }
 0x189   :  { %v1529_v8 = vadd.f32 %v1465_v50, %v1143_v40  ;;  %v1097_v47 = vmul.f32 %v15934_v11, %v964_v29  ;;  %v1743_v15 = vmul.f32 %v8730_v4, %v964_v29  ;;  %v10117_v50 = vld [vmem:[%s15220_s0 + $0xe8] sm:$0xff] }
 0x18a   :  { %v10105_v12 = vadd.f32 %v1616_v28, %v9946_v39  ;;  %1361 = vperm.xlu0 %8407, %v374_v49   ;;  %v727_v49 = vmul.f32 %v8677_v55, %v10062_v51 }
 0x18b   :  { %v1161_v63 = vadd.f32 %v1097_v47, %v711_v62  ;;  %v1806_v21 = vadd.f32 %v1743_v15, %v9886_v0  ;;  %v10119_v40 = vadd.f32 %v1599_v5, %v1529_v8  ;;  %v1997_v62 = vmul.f32 %v8754_v3, %v9862_v53 }
 0x18c   :  { %v1028_v39 = vpop.permute.xlu0 %1027  ;;  %v16022_v15 = vrot.slane %v9831_v17, 2  ;;  %v2123_v0 = vmul.f32 %v15909_v41, %v964_v29  ;;  %v1968_v29 = vmul.f32 %v8754_v3, %v10034_v31 }
 0x18d   :  { %v1113_v52 = vmul.f32 %v15934_v11, %v1028_v39  ;;  %v1759_v28 = vmul.f32 %v8730_v4, %v1028_v39  ;;  %1245 = vperm.xlu2 %8409, %v316_v60   ;;  %v2058_v17 = vadd.f32 %v1997_v62, %v9709_v9 }
 0x18e   :  { %526 = vperm.xlu1 %8408, %v9956_v19   ;;  %v406_v30 = vsel %vm283_vm0, %v16022_v15, %v15398_v18  ;;  %v2029_v31 = vadd.f32 %v1968_v29, %v9743_v27  ;;  %v10192_v29 = vld [vmem:[%s15220_s0 + $0x1f0] sm:$0xff] }
 0x18f   :  { %v10129_v47 = vadd.f32 %v1113_v52, %v727_v49  ;;  %v10131_v8 = vadd.f32 %v1759_v28, %v1694_v42  ;;  %v10133_v5 = vpop.permute.xlu2 %466  ;;  %v16025_v42 = vrot.slane %v10117_v50, 1  ;;  %v16026_v49 = vrot.slane %v9956_v19, 1  ;;  %v10157_v28 = vld [vmem:[%s15220_s0 + $0x170] sm:$0xff] }
 0x190   :  { %v1587_v60 = vmul.f32 %v8708_v7, %v10133_v5  ;;  %v10142_v34 = vpop.permute.xlu1 %1273  ;;  %v15399_v9 = vrot.slane %v10157_v28, 1 }
 0x191   :  { %16021 = vst [vmem:[#allocation72_spill] sm:$0xff] %v10131_v8  ;;  %v212_v52 = vsel %vm153_vm1, %v16026_v49, %v16025_v42 }
 0x192   :  { %16023 = vst [vmem:[#allocation73_spill] sm:$0xff] %v10142_v34  ;;  %v10146_v53 = vadd.f32 %v1587_v60, %v9889_v23  ;;  %1425 = vperm.xlu0 %8407, %v406_v30   ;;  %v2184_v23 = vadd.f32 %v2123_v0, %v2058_v17 }
 0x194   :  { %16024 = vst [vmem:[#allocation74_spill] sm:$0xff] %v10146_v53  ;;  %v1350_v15 = vpop.permute.xlu0 %1349 }
 0x195   :  { %v1483_v30 = vmul.f32 %v8692_v59, %v1350_v15  ;;  %v1871_v60 = vmul.f32 %v8750_v38, %v1350_v15  ;;  %v2249_v18 = vmul.f32 %v9703_v14, %v1350_v15  ;;  %911 = vperm.xlu2 %8409, %v212_v52   ;;  %v2094_v52 = vmul.f32 %v15909_v41, %v9969_v16 }
 0x196   :  { %594 = vperm.xlu1 %8408, %v9997_v24   ;;  %v2013_v15 = vmul.f32 %v8754_v3, %v10062_v51  ;;  %v10197_v51 = vld [vmem:[%s15220_s0 + $0x88] sm:$0xff]  ;;  %v1462_v16 = vmul.f32 %v8692_v59, %v9958_v45 }
 0x197   :  { %v10166_v62 = vadd.f32 %v1483_v30, %v1161_v63  ;;  %v10168_v42 = vadd.f32 %v1871_v60, %v1806_v21  ;;  %v2310_v49 = vadd.f32 %v2249_v18, %v2184_v23  ;;  %v10170_v53 = vpop.permute.xlu2 %1281  ;;  %v16027_v63 = vrot.slane %v9997_v24, 1 }
 0x198   :  { %v10173_v0 = vpop.permute.xlu1 %510  ;;  %v2155_v30 = vadd.f32 %v2094_v52, %v2029_v31  ;;  %v2139_v60 = vmul.f32 %v15909_v41, %v1028_v39  ;;  %v2074_v27 = vadd.f32 %v2013_v15, %v9568_v10  ;;  %v16031_v10 = vrot.slane %v10117_v50, 2 }
 0x199   :  { %v2375_v17 = vadd.f32 %v9725_v13, %v2310_v49  ;;  %v246_v21 = vsel %vm153_vm1, %v16027_v63, %v15399_v9  ;;  %v1596_v9 = vmul.f32 %v8708_v7, %v10006_v57  ;;  %v16032_v15 = vrot.slane %v9956_v19, 2 }
 0x19a   :  { %478 = vperm.xlu0 %8407, %v10039_v46   ;;  %v1526_v39 = vadd.f32 %v1462_v16, %v9892_v48  ;;  %v1597_v48 = vmul.f32 %v8708_v7, %v10020_v26  ;;  %v16033_v16 = vrot.slane %v10192_v29, 1 }
 0x19b   :  { %v10186_v18 = vmax.f32 %v2375_v17, 0.0  ;;  %v342_v31 = vsel %vm283_vm0, %v16032_v15, %v16031_v10  ;;  %v16034_v15 = vrot.slane %v10032_v32, 1 }
 0x19c   :  { %v10201_v23 = vpop.permute.xlu0 %1233  ;;  %v1659_v10 = vadd.f32 %v1596_v9, %v1526_v39 }
 0x19d   :  { %16028 = vst [vmem:[#allocation75_spill] sm:$0xff] %v10186_v18  ;;  %v1454_v49 = vmul.f32 %v8692_v59, %v10201_v23  ;;  %v2220_v17 = vmul.f32 %v9703_v14, %v10201_v23  ;;  %979 = vperm.xlu2 %8409, %v246_v21   ;;  %v15403_v63 = vrot.slane %v10186_v18, 1  ;;  %v16029_v21 = vrot.slane %v9967_v33, 1 }
 0x19e   :  { %658 = vperm.xlu1 %8408, %v10032_v32   ;;  %v1724_v33 = vmul.f32 %v8730_v4, %v9919_v54 }
 0x19f   :  { %v10216_v52 = vadd.f32 %v1454_v49, %v10056_v44  ;;  %v2281_v45 = vadd.f32 %v2220_v17, %v2155_v30  ;;  %v10218_v8 = vpop.permute.xlu2 %1031  ;;  %v10225_v57 = vsel %vm153_vm1, %v16029_v21, %v15403_v63  ;;  %v1463_v44 = vmul.f32 %v8692_v59, %v9977_v35 }
 0x1a0   :  { %16030 = vst [vmem:[#allocation76_spill] sm:$0xff] %v10225_v57  ;;  %v10235_v30 = vpop.permute.xlu1 %1413  ;;  %7595 = vmatmul.msk.f32.gmra.mxu2 %vm2804_vm2, %v10225_v57  ;;  %v2200_v49 = vadd.f32 %v2139_v60, %v2074_v27  ;;  %v278_v63 = vsel %vm153_vm1, %v16034_v15, %v16033_v16  ;;  %v16035_v27 = vrot.slane %v10197_v51, 1  ;;  %v1725_v16 = vmul.f32 %v8730_v4, %v10080_v56 }
 0x1a1   :  { %v2346_v17 = vadd.f32 %v9725_v13, %v2281_v45  ;;  %v1499_v21 = vmul.f32 %v8692_v59, %v10235_v30  ;;  %v2265_v19 = vmul.f32 %v9703_v14, %v10235_v30  ;;  %v16036_v45 = vrot.slane %v10039_v46, 1 }
 0x1a2   :  { %1297 = vperm.xlu0 %8407, %v342_v31   ;;  %v1527_v26 = vadd.f32 %v1463_v44, %v9731_v2  ;;  %v1852_v2 = vmul.f32 %v8750_v38, %v10142_v34  ;;  %v16041_v35 = vrot.slane %v9997_v24, 2 }
 0x1a3   :  { %v188_v60 = vsel %vm153_vm1, %v16036_v45, %v16035_v27  ;;  %v10256_v57 = vmax.f32 %v2346_v17, 0.0  ;;  %v10259_v9 = vadd.f32 %v1499_v21, %v10129_v47  ;;  %v2326_v39 = vadd.f32 %v2265_v19, %v2200_v49 }
 0x1a4   :  { %v10267_v15 = vpop.permute.xlu0 %895  ;;  %v694_v17 = vmul.f32 %v8677_v55, %v10173_v0  ;;  %v15419_v49 = vrot.slane %v10197_v51, 2  ;;  %v1787_v21 = vadd.f32 %v1724_v33, %v1659_v10  ;;  %v1660_v19 = vadd.f32 %v1597_v48, %v1527_v26 }
 0x1a5   :  { %16037 = vst [vmem:[#allocation77_spill] sm:$0xff] %v10256_v57  ;;  %v2391_v27 = vadd.f32 %v9725_v13, %v2326_v39  ;;  %v1080_v47 = vmul.f32 %v15934_v11, %v10267_v15  ;;  %1043 = vperm.xlu2 %8409, %v278_v63   ;;  %v15415_v44 = vrot.slane %v10256_v57, 1  ;;  %v16040_v39 = vrot.slane %v10157_v28, 2 }
 0x1a6   :  { %863 = vperm.xlu1 %8408, %v188_v60   ;;  %v695_v33 = vmul.f32 %v8677_v55, %v10059_v43  ;;  %v1466_v10 = vmul.f32 %v8692_v59, %v10170_v53  ;;  %v1980_v26 = vmul.f32 %v8754_v3, %v10173_v0  ;;  %v16042_v60 = vrot.slane %v9906_v6, 1 }
 0x1a7   :  { %v10278_v45 = vmax.f32 %v2391_v27, 0.0  ;;  %v1144_v31 = vadd.f32 %v1080_v47, %v694_v17  ;;  %v10280_v56 = vpop.permute.xlu2 %1237  ;;  %v376_v63 = vsel %vm283_vm0, %v16041_v35, %v16040_v39  ;;  %v1788_v24 = vadd.f32 %v1725_v16, %v1660_v19 }
 0x1a8   :  { %16039 = vst [vmem:[#allocation79_spill] sm:$0xff] %v10280_v56  ;;  %v900_v48 = vpop.permute.xlu1 %899  ;;  %v10298_v17 = vsel %vm153_vm1, %v16042_v60, %v15415_v44  ;;  %v16044_v47 = vrot.slane %v10039_v46, 2  ;;  %v1915_v54 = vadd.f32 %v1852_v2, %v1787_v21  ;;  %v2106_v6 = vmul.f32 %v15909_v41, %v10267_v15  ;;  %v10321_v46 = vld [vmem:[%s15220_s0 + $0xf0] sm:$0xff] }
 0x1a9   :  { %16038 = vst [vmem:[#allocation78_spill] sm:$0xff] %v10278_v45  ;;  %v1081_v35 = vmul.f32 %v15934_v11, %v900_v48  ;;  %v1727_v27 = vmul.f32 %v8730_v4, %v900_v48  ;;  %7566 = vmatmul.msk.f32.gmra.mxu0 %vm2804_vm2, %v10298_v17  ;;  %v15418_v16 = vrot.slane %v10278_v45, 1  ;;  %v10312_v19 = vadd.f32 %v1466_v10, %v1144_v31 }
 0x1aa   :  { %16043 = vst [vmem:[#allocation80_spill] sm:$0xff] %v10298_v17  ;;  %v318_v39 = vsel %vm283_vm0, %v16044_v47, %v15419_v49  ;;  %1365 = vperm.xlu0 %8407, %v376_v63   ;;  %v15422_v17 = vrot.slane %v10192_v29, 2  ;;  %v1853_v21 = vmul.f32 %v8750_v38, %v10018_v37  ;;  %v2041_v2 = vadd.f32 %v1980_v26, %v1915_v54 }
 0x1ab   :  { %v1145_v60 = vadd.f32 %v1081_v35, %v695_v33  ;;  %v10315_v44 = vadd.f32 %v1727_v27, %v10119_v40  ;;  %v16045_v31 = vrot.slane %v9962_v25, 1  ;;  %v1114_v33 = vmul.f32 %v15934_v11, %v10218_v8 }
 0x1ac   :  { %v647_v40 = vpop.permute.xlu0 %646  ;;  %v1916_v54 = vadd.f32 %v1853_v21, %v1788_v24  ;;  %v2167_v26 = vadd.f32 %v2106_v6, %v2041_v2  ;;  %v15426_v27 = vrot.slane %v10321_v46, 1  ;;  %v1760_v47 = vmul.f32 %v8730_v4, %v10218_v8 }
 0x1ad   :  { %v10330_v63 = vsel %vm153_vm1, %v16045_v31, %v15418_v16  ;;  %v728_v10 = vmul.f32 %v8677_v55, %v647_v40  ;;  %v1632_v35 = vmul.f32 %v8708_v7, %v647_v40  ;;  %1249 = vperm.xlu2 %8409, %v318_v39   ;;  %v1981_v6 = vmul.f32 %v8754_v3, %v10059_v43 }
 0x1ae   :  { %16046 = vst [vmem:[#allocation81_spill] sm:$0xff] %v10330_v63  ;;  %7611 = vmatmul.msk.f32.gmra.mxu3 %vm2804_vm2, %v10330_v63  ;;  %530 = vperm.xlu1 %8408, %v10117_v50   ;;  %v16047_v63 = vrot.slane %v10032_v32, 2  ;;  %v712_v39 = vmul.f32 %v8677_v55, %v10089_v36  ;;  %v2232_v21 = vmul.f32 %v9703_v14, %v10170_v53  ;;  %v16049_v43 = vrot.slane %v10117_v50, 1 }
 0x1af   :  { %v10342_v31 = vadd.f32 %v1114_v33, %v728_v10  ;;  %v1695_v16 = vadd.f32 %v1632_v35, %v9942_v20  ;;  %v10345_v49 = vpop.permute.xlu2 %903  ;;  %v2107_v20 = vmul.f32 %v15909_v41, %v900_v48  ;;  %v10374_v48 = vld [vmem:[%s15220_s0 + $0x178] sm:$0xff] }
 0x1b0   :  { %v408_v24 = vsel %vm283_vm0, %v16047_v63, %v15422_v17  ;;  %v968_v2 = vpop.permute.xlu1 %967  ;;  %v2293_v32 = vadd.f32 %v2232_v21, %v2167_v26  ;;  %v214_v63 = vsel %vm153_vm1, %v16049_v43, %v15426_v27  ;;  %v2042_v17 = vadd.f32 %v1981_v6, %v1916_v54 }
 0x1b1   :  { %v1098_v33 = vmul.f32 %v15934_v11, %v968_v2  ;;  %v1744_v10 = vmul.f32 %v8730_v4, %v968_v2  ;;  %v10361_v35 = vadd.f32 %v1760_v47, %v1695_v16  ;;  %v1969_v16 = vmul.f32 %v8754_v3, %v10133_v5 }
 0x1b2   :  { %1429 = vperm.xlu0 %8407, %v408_v24   ;;  %v2168_v47 = vadd.f32 %v2107_v20, %v2042_v17  ;;  %v2358_v6 = vadd.f32 %v9725_v13, %v2293_v32  ;;  %v683_v20 = vmul.f32 %v8677_v55, %v10133_v5 }
 0x1b3   :  { %16048 = vst [vmem:[#allocation82_spill] sm:$0xff] %v10361_v35  ;;  %v1162_v25 = vadd.f32 %v1098_v33, %v712_v39  ;;  %v10369_v37 = vadd.f32 %v1744_v10, %v10105_v12  ;;  %v1998_v12 = vmul.f32 %v8754_v3, %v10089_v36  ;;  %v15427_v39 = vrot.slane %v10374_v48, 1 }
 0x1b4   :  { %v10378_v26 = vpop.permute.xlu0 %1285  ;;  %v2030_v10 = vadd.f32 %v1969_v16, %v9899_v1  ;;  %v2124_v36 = vmul.f32 %v15909_v41, %v968_v2  ;;  %v10410_v1 = vmax.f32 %v2358_v6, 0.0  ;;  %v16052_v2 = vrot.slane %v10157_v28, 1 }
 0x1b5   :  { %16050 = vst [vmem:[#allocation83_spill] sm:$0xff] %v10369_v37  ;;  %v1467_v24 = vmul.f32 %v8692_v59, %v10378_v26  ;;  %v2233_v54 = vmul.f32 %v9703_v14, %v10378_v26  ;;  %915 = vperm.xlu2 %8409, %v214_v63   ;;  %v2059_v5 = vadd.f32 %v1998_v12, %v9949_v58  ;;  %v10426_v58 = vld [vmem:[%s15220_s0 + $0x90] sm:$0xff] }
 0x1b6   :  { %598 = vperm.xlu1 %8408, %v10157_v28   ;;  %16051 = vst [vmem:[#allocation84_spill] sm:$0xff] %v10410_v1  ;;  %v248_v16 = vsel %vm153_vm1, %v16052_v2, %v15427_v39  ;;  %v1455_v12 = vmul.f32 %v8692_v59, %v10280_v56  ;;  %v2014_v6 = vmul.f32 %v8754_v3, %v647_v40  ;;  %v16055_v39 = vrot.slane %v10321_v46, 2 }
 0x1b7   :  { %v10389_v21 = vadd.f32 %v1467_v24, %v1145_v60  ;;  %v2294_v33 = vadd.f32 %v2233_v54, %v2168_v47  ;;  %v10391_v17 = vpop.permute.xlu2 %971  ;;  %v10407_v47 = vld [vmem:[%s15220_s0 + $0x1f8] sm:$0xff]  ;;  %v2221_v54 = vmul.f32 %v9703_v14, %v10280_v56  ;;  %v2185_v24 = vadd.f32 %v2124_v36, %v2059_v5 }
 0x1b8   :  { %v10396_v43 = vpop.permute.xlu1 %851  ;;  %v2075_v40 = vadd.f32 %v2014_v6, %v9960_v22  ;;  %v2140_v22 = vmul.f32 %v15909_v41, %v10218_v8  ;;  %v16060_v6 = vrot.slane %v10407_v47, 1 }
 0x1b9   :  { %v2359_v32 = vadd.f32 %v9725_v13, %v2294_v33  ;;  %v1069_v63 = vmul.f32 %v15934_v11, %v10396_v43  ;;  %v2095_v60 = vmul.f32 %v15909_v41, %v10396_v43 }
 0x1ba   :  { %482 = vperm.xlu0 %8407, %v10197_v51  }
 0x1bb   :  { %v10421_v33 = vmax.f32 %v2359_v32, 0.0  ;;  %v1133_v27 = vadd.f32 %v1069_v63, %v683_v20  ;;  %v2156_v35 = vadd.f32 %v2095_v60, %v2030_v10  ;;  %v1464_v32 = vmul.f32 %v8692_v59, %v10142_v34 }
 0x1bc   :  { %v10431_v2 = vpop.permute.xlu0 %1353 }
 0x1bd   :  { %16053 = vst [vmem:[#allocation85_spill] sm:$0xff] %v10421_v33  ;;  %v2282_v37 = vadd.f32 %v2221_v54, %v2156_v35  ;;  %v1484_v20 = vmul.f32 %v8692_v59, %v10431_v2  ;;  %v2250_v10 = vmul.f32 %v9703_v14, %v10431_v2  ;;  %983 = vperm.xlu2 %8409, %v248_v16   ;;  %v15429_v63 = vrot.slane %v10421_v33, 1 }
 0x1be   :  { %16054 = vst [vmem:[#allocation86_spill] sm:$0xff] %v10431_v2  ;;  %662 = vperm.xlu1 %8408, %v10192_v29   ;;  %v10442_v60 = vadd.f32 %v1455_v12, %v1133_v27  ;;  %v16056_v16 = vrot.slane %v10117_v50, 2  ;;  %v1082_v27 = vmul.f32 %v15934_v11, %v10345_v49  ;;  %v1528_v34 = vadd.f32 %v1464_v32, %v10016_v61 }
 0x1bf   :  { %v2347_v36 = vadd.f32 %v9725_v13, %v2282_v37  ;;  %v10445_v35 = vadd.f32 %v1484_v20, %v1162_v25  ;;  %v2311_v5 = vadd.f32 %v2250_v10, %v2185_v24  ;;  %v10447_v54 = vpop.permute.xlu2 %1035  ;;  %v16057_v25 = vrot.slane %v10410_v1, 1 }
 0x1c0   :  { %v344_v56 = vsel %vm283_vm0, %v16056_v16, %v16055_v39  ;;  %v519_v37 = vpop.permute.xlu1 %518  ;;  %v16061_v10 = vrot.slane %v10192_v29, 1  ;;  %v16062_v16 = vrot.slane %v10426_v58, 1  ;;  %v16065_v61 = vrot.slane %v10256_v57, 1 }
 0x1c1   :  { %v10464_v24 = vsel %vm153_vm1, %v16057_v25, %v15429_v63  ;;  %v10466_v12 = vmax.f32 %v2347_v36, 0.0  ;;  %v2376_v50 = vadd.f32 %v9725_v13, %v2311_v5  ;;  %v696_v39 = vmul.f32 %v8677_v55, %v519_v37 }
 0x1c2   :  { %16058 = vst [vmem:[#allocation87_spill] sm:$0xff] %v10464_v24  ;;  %v1600_v20 = vmul.f32 %v8708_v7, %v519_v37  ;;  %7579 = vmatmul.msk.f32.vlgmr.msra.gmra.mxu1 %vm2804_vm2, %v10464_v24  ;;  %1301 = vperm.xlu0 %8407, %v344_v56   ;;  %v280_v36 = vsel %vm153_vm1, %v16061_v10, %v16060_v6  ;;  %v16063_v5 = vrot.slane %v10197_v51, 1  ;;  %v15440_v63 = vrot.slane %v10374_v48, 2 }
 0x1c3   :  { %16059 = vst [vmem:[#allocation88_spill] sm:$0xff] %v10466_v12  ;;  %v10486_v1 = vmax.f32 %v2376_v50, 0.0  ;;  %v10488_v24 = vadd.f32 %v1082_v27, %v696_v39  ;;  %v15442_v8 = vrot.slane %v10466_v12, 1  ;;  %v1598_v6 = vmul.f32 %v8708_v7, %v10173_v0 }
 0x1c4   :  { %v190_v25 = vsel %vm153_vm1, %v16063_v5, %v16062_v16  ;;  %v1663_v56 = vadd.f32 %v1600_v20, %v10312_v19  ;;  %v1728_v10 = vmul.f32 %v8730_v4, %v10345_v49  ;;  %v10497_v2 = vpop.permute.xlu0 %1417  ;;  %v2201_v16 = vadd.f32 %v2140_v22, %v2075_v40 }
 0x1c5   :  { %16064 = vst [vmem:[#allocation89_spill] sm:$0xff] %v10486_v1  ;;  %v1500_v50 = vmul.f32 %v8692_v59, %v10497_v2  ;;  %v2266_v27 = vmul.f32 %v9703_v14, %v10497_v2  ;;  %1047 = vperm.xlu2 %8409, %v280_v36   ;;  %v10508_v19 = vsel %vm153_vm1, %v16065_v61, %v15442_v8  ;;  %v15439_v32 = vrot.slane %v10486_v1, 1 }
 0x1c6   :  { %16066 = vst [vmem:[#allocation90_spill] sm:$0xff] %v10508_v19  ;;  %v1726_v0 = vmul.f32 %v8730_v4, %v10267_v15  ;;  %867 = vperm.xlu1 %8408, %v190_v25   ;;  %7567 = vmatmul.msk.f32.gmra.mxu0 %vm2804_vm2, %v10508_v19  ;;  %v15436_v40 = vrot.slane %v10426_v58, 2  ;;  %v10516_v14 = vadd.f32 %v1728_v10, %v1663_v56  ;;  %v16067_v15 = vrot.slane %v10157_v28, 2 }
 0x1c7   :  { %v10519_v39 = vadd.f32 %v1500_v50, %v10342_v31  ;;  %v2327_v20 = vadd.f32 %v2266_v27, %v2201_v16  ;;  %v10521_v22 = vpop.permute.xlu2 %1241  ;;  %v1661_v5 = vadd.f32 %v1598_v6, %v1528_v34  ;;  %v16068_v61 = vrot.slane %v10186_v18, 1 }
 0x1c8   :  { %v378_v36 = vsel %vm283_vm0, %v16067_v15, %v15440_v63  ;;  %v587_v25 = vpop.permute.xlu1 %586  ;;  %v1099_v31 = vmul.f32 %v15934_v11, %v10391_v17  ;;  %v16070_v6 = vrot.slane %v10197_v51, 2  ;;  %v1745_v51 = vmul.f32 %v8730_v4, %v10391_v17 }
 0x1c9   :  { %v10533_v56 = vsel %vm153_vm1, %v16068_v61, %v15439_v32  ;;  %v2392_v10 = vadd.f32 %v9725_v13, %v2327_v20  ;;  %v713_v50 = vmul.f32 %v8677_v55, %v587_v25  ;;  %v1617_v28 = vmul.f32 %v8708_v7, %v587_v25  ;;  %v10556_v61 = vld [vmem:[%s15220_s0 + $0xf8] sm:$0xff] }
 0x1ca   :  { %16069 = vst [vmem:[#allocation91_spill] sm:$0xff] %v10533_v56  ;;  %7596 = vmatmul.msk.f32.gmra.mxu2 %vm2804_vm2, %v10533_v56  ;;  %v1789_v34 = vadd.f32 %v1726_v0, %v1661_v5  ;;  %1369 = vperm.xlu0 %8407, %v378_v36   ;;  %v320_v16 = vsel %vm283_vm0, %v16070_v6, %v15436_v40  ;;  %v15437_v20 = vrot.slane %v10407_v47, 2  ;;  %v16113_v57 = vrot.slane %v10556_v61, 2 }
 0x1cb   :  { %v10547_v27 = vmax.f32 %v2392_v10, 0.0  ;;  %v10549_v15 = vadd.f32 %v1099_v31, %v713_v50  ;;  %v1680_v13 = vadd.f32 %v1617_v28, %v10166_v62  ;;  %v1854_v0 = vmul.f32 %v8750_v38, %v10170_v53 }
 0x1cc   :  { %v1982_v36 = vmul.f32 %v8754_v3, %v519_v37  ;;  %v471_v5 = vpop.permute.xlu0 %470  ;;  %v15441_v50 = vrot.slane %v10556_v61, 1  ;;  %v16072_v37 = vrot.slane %v10278_v45, 1  ;;  %v1999_v32 = vmul.f32 %v8754_v3, %v587_v25 }
 0x1cd   :  { %16071 = vst [vmem:[#allocation92_spill] sm:$0xff] %v10547_v27  ;;  %v1588_v31 = vmul.f32 %v8708_v7, %v471_v5  ;;  %1253 = vperm.xlu2 %8409, %v320_v16   ;;  %v15438_v62 = vrot.slane %v10547_v27, 1  ;;  %v1917_v10 = vadd.f32 %v1854_v0, %v1789_v34  ;;  %v10567_v28 = vadd.f32 %v1745_v51, %v1680_v13 }
 0x1ce   :  { %534 = vperm.xlu1 %8408, %v10321_v46   ;;  %v16074_v34 = vrot.slane %v10192_v29, 2  ;;  %v16075_v29 = vrot.slane %v10321_v46, 1  ;;  %v1970_v63 = vmul.f32 %v8754_v3, %v471_v5  ;;  %v684_v8 = vmul.f32 %v8677_v55, %v471_v5 }
 0x1cf   :  { %v10570_v53 = vadd.f32 %v1588_v31, %v10216_v52  ;;  %v10572_v6 = vpop.permute.xlu2 %907  ;;  %v10579_v16 = vsel %vm153_vm1, %v16072_v37, %v15438_v62  ;;  %v2043_v13 = vadd.f32 %v1982_v36, %v1917_v10  ;;  %v1115_v52 = vmul.f32 %v15934_v11, %v10447_v54 }
 0x1d0   :  { %16073 = vst [vmem:[#allocation93_spill] sm:$0xff] %v10579_v16  ;;  %v410_v0 = vsel %vm283_vm0, %v16074_v34, %v15437_v20  ;;  %v651_v51 = vpop.permute.xlu1 %650  ;;  %7612 = vmatmul.msk.f32.gmra.mxu3 %vm2804_vm2, %v10579_v16  ;;  %v2108_v37 = vmul.f32 %v15909_v41, %v10345_v49  ;;  %v216_v36 = vsel %vm153_vm1, %v16075_v29, %v15441_v50 }
 0x1d1   :  { %v729_v31 = vmul.f32 %v8677_v55, %v651_v51  ;;  %v1633_v40 = vmul.f32 %v8708_v7, %v651_v51  ;;  %v1842_v10 = vmul.f32 %v8750_v38, %v10201_v23  ;;  %v1761_v34 = vmul.f32 %v8730_v4, %v10447_v54  ;;  %v10615_v23 = vld [vmem:[%s15221_s2 + $0x348] ss:$0 sm:$0xff] }
 0x1d2   :  { %1433 = vperm.xlu0 %8407, %v410_v0   ;;  %v2169_v0 = vadd.f32 %v2108_v37, %v2043_v13  ;;  %v2060_v50 = vadd.f32 %v1999_v32, %v10168_v42  ;;  %v1887_v42 = vmul.f32 %v8750_v38, %v10235_v30  ;;  %v2125_v32 = vmul.f32 %v15909_v41, %v10391_v17  ;;  %v10660_v17 = vld [vmem:[%s15220_s0 + $0x98] sm:$0xff] }
 0x1d3   :  { %v10603_v20 = vadd.f32 %v1115_v52, %v729_v31  ;;  %v1696_v62 = vadd.f32 %v1633_v40, %v10259_v9  ;;  %v16076_v40 = vld [vmem:[#allocation70_spill] sm:$0xff]  ;;  %v2015_v56 = vmul.f32 %v8754_v3, %v651_v51 }
 0x1d4   :  { %v10607_v49 = vpop.permute.xlu0 %1289  ;;  %v1905_v25 = vadd.f32 %v1842_v10, %v16076_v40 }
 0x1d5   :  { %v1468_v29 = vmul.f32 %v8692_v59, %v10607_v49  ;;  %v2234_v52 = vmul.f32 %v10615_v23, %v10607_v49  ;;  %919 = vperm.xlu2 %8409, %v216_v36   ;;  %v10619_v9 = vadd.f32 %v1761_v34, %v1696_v62  ;;  %v10635_v62 = vld [vmem:[%s15221_s2 + $0x349] ss:$0 sm:$0xff]  ;;  %v16079_v34 = vrot.slane %v10374_v48, 1 }
 0x1d6   :  { %602 = vperm.xlu1 %8408, %v10374_v48   ;;  %v2031_v45 = vadd.f32 %v1970_v63, %v1905_v25  ;;  %v16077_v63 = vld [vmem:[#allocation3_spill] sm:$0xff] }
 0x1d7   :  { %v10624_v13 = vadd.f32 %v1468_v29, %v10488_v24  ;;  %v2295_v31 = vadd.f32 %v2234_v52, %v2169_v0  ;;  %v10626_v37 = vpop.permute.xlu2 %975  ;;  %v16078_v5 = vrot.slane %v16077_v63, 1  ;;  %v2222_v52 = vmul.f32 %v10615_v23, %v10521_v22 }
 0x1d8   :  { %v10630_v16 = vpop.permute.xlu1 %855 }
 0x1d9   :  { %v2360_v36 = vadd.f32 %v10635_v62, %v2295_v31  ;;  %v1070_v24 = vmul.f32 %v15934_v11, %v10630_v16  ;;  %v2096_v10 = vmul.f32 %v15909_v41, %v10630_v16  ;;  %v250_v0 = vsel %vm153_vm1, %v16079_v34, %v16078_v5 }
 0x1da   :  { %486 = vperm.xlu0 %8407, %v10426_v58   ;;  %v1456_v31 = vmul.f32 %v8692_v59, %v10521_v22 }
 0x1db   :  { %v10655_v40 = vmax.f32 %v2360_v36, 0.0  ;;  %v1134_v25 = vadd.f32 %v1070_v24, %v684_v8  ;;  %v2157_v30 = vadd.f32 %v2096_v10, %v2031_v45  ;;  %v2186_v36 = vadd.f32 %v2125_v32, %v2060_v50  ;;  %v16081_v8 = vld [vmem:[#allocation72_spill] sm:$0xff] }
 0x1dc   :  { %v10665_v5 = vpop.permute.xlu0 %1357  ;;  %v1950_v24 = vadd.f32 %v1887_v42, %v16081_v8  ;;  %v16083_v42 = vrot.slane %v10321_v46, 2  ;;  %v1083_v10 = vmul.f32 %v15934_v11, %v10572_v6 }
 0x1dd   :  { %16080 = vst [vmem:[#allocation70_spill] sm:$0xff] %v10655_v40  ;;  %v2283_v34 = vadd.f32 %v2222_v52, %v2157_v30  ;;  %v1485_v29 = vmul.f32 %v8692_v59, %v10665_v5  ;;  %v2251_v45 = vmul.f32 %v10615_v23, %v10665_v5  ;;  %987 = vperm.xlu2 %8409, %v250_v0   ;;  %v16082_v0 = vrot.slane %v10556_v61, 2 }
 0x1de   :  { %666 = vperm.xlu1 %8408, %v10407_v47   ;;  %v10675_v51 = vadd.f32 %v1456_v31, %v1134_v25  ;;  %v2076_v18 = vadd.f32 %v2015_v56, %v1950_v24  ;;  %v16084_v31 = vrot.slane %v10655_v40, 1  ;;  %v2141_v56 = vmul.f32 %v15909_v41, %v10447_v54 }
 0x1df   :  { %v2348_v52 = vadd.f32 %v10635_v62, %v2283_v34  ;;  %v10679_v30 = vadd.f32 %v1485_v29, %v10549_v15  ;;  %v2312_v50 = vadd.f32 %v2251_v45, %v2186_v36  ;;  %v10681_v32 = vpop.permute.xlu2 %1039  ;;  %v346_v8 = vsel %vm283_vm0, %v16083_v42, %v16082_v0 }
 0x1e0   :  { %v523_v25 = vpop.permute.xlu1 %522  ;;  %v16085_v34 = vrot.slane %v10421_v33, 1  ;;  %v16088_v24 = vrot.slane %v10407_v47, 1  ;;  %v16090_v42 = vrot.slane %v10426_v58, 1  ;;  %v1729_v54 = vmul.f32 %v8730_v4, %v10572_v6 }
 0x1e1   :  { %v10697_v29 = vmax.f32 %v2348_v52, 0.0  ;;  %v2377_v36 = vadd.f32 %v10635_v62, %v2312_v50  ;;  %v697_v46 = vmul.f32 %v8677_v55, %v523_v25  ;;  %v1601_v45 = vmul.f32 %v8708_v7, %v523_v25 }
 0x1e2   :  { %v10695_v15 = vsel %vm153_vm1, %v16085_v34, %v16084_v31  ;;  %1305 = vperm.xlu0 %8407, %v346_v8   ;;  %v282_v0 = vsel %vm153_vm1, %v16088_v24, 0.0  ;;  %v16089_v52 = vrot.slane %v10660_v17, 1  ;;  %v2202_v19 = vadd.f32 %v2141_v56, %v2076_v18 }
 0x1e3   :  { %16086 = vst [vmem:[#allocation3_spill] sm:$0xff] %v10695_v15  ;;  %7580 = vmatmul.msk.f32.gmra.mxu1 %vm2804_vm2, %v10695_v15  ;;  %v10714_v31 = vmax.f32 %v2377_v36, 0.0  ;;  %v10716_v34 = vadd.f32 %v1083_v10, %v697_v46  ;;  %v1664_v15 = vadd.f32 %v1601_v45, %v10389_v21  ;;  %v15457_v33 = vrot.slane %v10697_v29, 1 }
 0x1e4   :  { %16087 = vst [vmem:[#allocation72_spill] sm:$0xff] %v10697_v29  ;;  %v192_v50 = vsel %vm153_vm1, %v16090_v42, %v16089_v52  ;;  %v10722_v8 = vpop.permute.xlu0 %1421  ;;  %v16092_v10 = vrot.slane %v10466_v12, 1  ;;  %v15464_v46 = vrot.slane %v10660_v17, 2  ;;  %v16094_v42 = vrot.slane %v16077_v63, 2 }
 0x1e5   :  { %16091 = vst [vmem:[#allocation94_spill] sm:$0xff] %v10714_v31  ;;  %v1501_v24 = vmul.f32 %v8692_v59, %v10722_v8  ;;  %v2267_v52 = vmul.f32 %v10615_v23, %v10722_v8  ;;  %1052 = vperm.xlu2 %8409, %v282_v0   ;;  %v15460_v36 = vrot.slane %v10714_v31, 1  ;;  %v10739_v18 = vadd.f32 %v1729_v54, %v1664_v15 }
 0x1e6   :  { %v10733_v21 = vsel %vm153_vm1, %v16092_v10, %v15457_v33  ;;  %871 = vperm.xlu1 %8408, %v192_v50   ;;  %v16095_v10 = vrot.slane %v10374_v48, 2  ;;  %v1855_v48 = vmul.f32 %v8750_v38, %v10378_v26 }
 0x1e7   :  { %16093 = vst [vmem:[#allocation95_spill] sm:$0xff] %v10733_v21  ;;  %7568 = vmatmul.msk.f32.gmra.mxu0 %vm2804_vm2, %v10733_v21  ;;  %v10742_v45 = vadd.f32 %v1501_v24, %v10603_v20  ;;  %v2328_v56 = vadd.f32 %v2267_v52, %v2202_v19  ;;  %v10744_v0 = vpop.permute.xlu2 %1245  ;;  %v16096_v21 = vrot.slane %v10486_v1, 1  ;;  %v1100_v20 = vmul.f32 %v15934_v11, %v10626_v37 }
 0x1e8   :  { %v380_v50 = vsel %vm283_vm0, %v16095_v10, %v16094_v42  ;;  %v591_v33 = vpop.permute.xlu1 %590  ;;  %v16098_v24 = vrot.slane %v10426_v58, 2  ;;  %v1746_v10 = vmul.f32 %v8730_v4, %v10626_v37  ;;  %v1918_v58 = vadd.f32 %v1855_v48, %v10315_v44 }
 0x1e9   :  { %v10756_v15 = vsel %vm153_vm1, %v16096_v21, %v15460_v36  ;;  %v2393_v19 = vadd.f32 %v10635_v62, %v2328_v56  ;;  %v714_v54 = vmul.f32 %v8677_v55, %v591_v33  ;;  %v1618_v63 = vmul.f32 %v8708_v7, %v591_v33 }
 0x1ea   :  { %16097 = vst [vmem:[#allocation96_spill] sm:$0xff] %v10756_v15  ;;  %7597 = vmatmul.msk.f32.gmra.mxu2 %vm2804_vm2, %v10756_v15  ;;  %1373 = vperm.xlu0 %8407, %v380_v50   ;;  %v322_v52 = vsel %vm283_vm0, %v16098_v24, %v15464_v46  ;;  %v1983_v36 = vmul.f32 %v8754_v3, %v523_v25  ;;  %v16102_v25 = vrot.slane %v10547_v27, 1  ;;  %v16104_v44 = vrot.slane %v10407_v47, 2  ;;  %v16107_v46 = vld [vmem:[#allocation2_spill] sm:$0xff] }
 0x1eb   :  { %v10772_v21 = vmax.f32 %v2393_v19, 0.0  ;;  %v10774_v56 = vadd.f32 %v1100_v20, %v714_v54  ;;  %v1681_v42 = vadd.f32 %v1618_v63, %v10445_v35  ;;  %v1715_v19 = vmul.f32 %v8730_v4, %v10396_v43 }
 0x1ec   :  { %v475_v15 = vpop.permute.xlu0 %474  ;;  %v412_v43 = vsel %vm283_vm0, %v16104_v44, 0.0  ;;  %v2044_v48 = vadd.f32 %v1983_v36, %v1918_v58  ;;  %v2109_v47 = vmul.f32 %v15909_v41, %v10572_v6  ;;  %v1762_v36 = vmul.f32 %v8730_v4, %v10681_v32 }
 0x1ed   :  { %16099 = vst [vmem:[#allocation97_spill] sm:$0xff] %v10772_v21  ;;  %v1589_v26 = vmul.f32 %v8708_v7, %v475_v15  ;;  %1257 = vperm.xlu2 %8409, %v322_v52   ;;  %v15463_v50 = vrot.slane %v10772_v21, 1  ;;  %v10786_v20 = vadd.f32 %v1746_v10, %v1681_v42  ;;  %v16105_v10 = vld [vmem:[#allocation74_spill] sm:$0xff]  ;;  %v16109_v27 = vrot.slane %v10556_v61, 1 }
 0x1ee   :  { %538 = vperm.xlu1 %8408, %v10556_v61   ;;  %v2000_v1 = vmul.f32 %v8754_v3, %v591_v33  ;;  %v1971_v12 = vmul.f32 %v8754_v3, %v475_v15 }
 0x1ef   :  { %16100 = vst [vmem:[#allocation98_spill] sm:$0xff] %v10786_v20  ;;  %v10789_v35 = vadd.f32 %v1589_v26, %v10442_v60  ;;  %v10791_v54 = vpop.permute.xlu2 %911  ;;  %v10798_v63 = vsel %vm153_vm1, %v16102_v25, %v15463_v50  ;;  %v1116_v60 = vmul.f32 %v15934_v11, %v10681_v32  ;;  %v1778_v26 = vadd.f32 %v1715_v19, %v16105_v10  ;;  %v16106_v25 = vld [vmem:[#allocation86_spill] sm:$0xff]  ;;  %v16110_v10 = vld [vmem:[#allocation79_spill] sm:$0xff] }
 0x1f0   :  { %16103 = vst [vmem:[#allocation100_spill] sm:$0xff] %v10798_v63  ;;  %v655_v24 = vpop.permute.xlu1 %654  ;;  %7613 = vmatmul.msk.f32.gmra.mxu3 %vm2804_vm2, %v10798_v63  ;;  %v1872_v50 = vmul.f32 %v8750_v38, %v16106_v25  ;;  %v16108_v63 = vrot.slane %v16107_v46, 1  ;;  %v1843_v25 = vmul.f32 %v8750_v38, %v16110_v10  ;;  %v16112_v10 = vrot.slane %v16107_v46, 2 }
 0x1f1   :  { %16101 = vst [vmem:[#allocation99_spill] sm:$0xff] %v10789_v35  ;;  %v730_v52 = vmul.f32 %v8677_v55, %v655_v24  ;;  %v1634_v42 = vmul.f32 %v8708_v7, %v655_v24  ;;  %v1888_v46 = vmul.f32 %v8750_v38, %v10497_v2 }
 0x1f2   :  { %1438 = vperm.xlu0 %8407, %v412_v43   ;;  %v218_v19 = vsel %vm153_vm1, %v16109_v27, %v16108_v63  ;;  %v2170_v43 = vadd.f32 %v2109_v47, %v2044_v48  ;;  %v16111_v27 = vld [vmem:[#allocation83_spill] sm:$0xff]  ;;  %v348_v20 = vsel %vm283_vm0, %v16113_v57, %v16112_v10  ;;  %v2126_v57 = vmul.f32 %v15909_v41, %v10626_v37 }
 0x1f3   :  { %v10816_v58 = vadd.f32 %v1116_v60, %v730_v52  ;;  %v1697_v44 = vadd.f32 %v1634_v42, %v10519_v39  ;;  %v1935_v63 = vadd.f32 %v1872_v50, %v16111_v27  ;;  %v1906_v42 = vadd.f32 %v1843_v25, %v1778_v26 }
 0x1f4   :  { %v10827_v6 = vpop.permute.xlu0 %1293 }
 0x1f5   :  { %v1469_v60 = vmul.f32 %v8692_v59, %v10827_v6  ;;  %v2235_v39 = vmul.f32 %v10615_v23, %v10827_v6  ;;  %490 = vperm.xlu2 %8409, %v10660_v17   ;;  %v10835_v52 = vadd.f32 %v1762_v36, %v1697_v44  ;;  %v2061_v35 = vadd.f32 %v2000_v1, %v1935_v63  ;;  %v16114_v1 = vld [vmem:[#allocation37_spill] sm:$0xff] }
 0x1f6   :  { %923 = vperm.xlu1 %8408, %v218_v19   ;;  %v685_v36 = vmul.f32 %v8677_v55, %v475_v15  ;;  %v2032_v50 = vadd.f32 %v1971_v12, %v1906_v42  ;;  %v16115_v61 = vrot.slane %v16114_v1, 2  ;;  %v16116_v15 = vrot.slane %v10660_v17, 2 }
 0x1f7   :  { %v10839_v33 = vadd.f32 %v1469_v60, %v10716_v34  ;;  %v2296_v48 = vadd.f32 %v2235_v39, %v2170_v43  ;;  %v10841_v47 = vpop.permute.xlu2 %979  ;;  %v16117_v25 = vrot.slane %v16114_v1, 1  ;;  %v16118_v43 = vrot.slane %v10660_v17, 1 }
 0x1f8   :  { %v10849_v44 = vpop.permute.xlu1 %859  ;;  %v324_v12 = vsel %vm283_vm0, %v16116_v15, %v16115_v61  ;;  %v2223_v39 = vmul.f32 %v10615_v23, %v10744_v0  ;;  %v2016_v63 = vmul.f32 %v8754_v3, %v655_v24  ;;  %v2187_v10 = vadd.f32 %v2126_v57, %v2061_v35 }
 0x1f9   :  { %v2361_v26 = vadd.f32 %v10635_v62, %v2296_v48  ;;  %v1071_v34 = vmul.f32 %v15934_v11, %v10849_v44  ;;  %v2097_v19 = vmul.f32 %v15909_v41, %v10849_v44  ;;  %v194_v60 = vsel %vm153_vm1, %v16118_v43, %v16117_v25 }
 0x1fa   :  { %1309 = vperm.xlu0 %8407, %v348_v20   ;;  %v1457_v20 = vmul.f32 %v8692_v59, %v10744_v0  ;;  %v1084_v35 = vmul.f32 %v15934_v11, %v10791_v54 }
 0x1fb   :  { %v10872_v2 = vmax.f32 %v2361_v26, 0.0  ;;  %v1135_v27 = vadd.f32 %v1071_v34, %v685_v36  ;;  %v2158_v37 = vadd.f32 %v2097_v19, %v2032_v50  ;;  %v16120_v26 = vld [vmem:[#allocation82_spill] sm:$0xff] }
 0x1fc   :  { %v10877_v42 = vpop.permute.xlu0 %1361  ;;  %v1951_v61 = vadd.f32 %v1888_v46, %v16120_v26  ;;  %v16121_v46 = vrot.slane %v10655_v40, 1 }
 0x1fd   :  { %16119 = vst [vmem:[#allocation74_spill] sm:$0xff] %v10872_v2  ;;  %v2284_v48 = vadd.f32 %v2223_v39, %v2158_v37  ;;  %v1486_v17 = vmul.f32 %v8692_v59, %v10877_v42  ;;  %v2252_v1 = vmul.f32 %v10615_v23, %v10877_v42  ;;  %1261 = vperm.xlu2 %8409, %v324_v12   ;;  %v15477_v36 = vrot.slane %v10872_v2, 1 }
 0x1fe   :  { %875 = vperm.xlu1 %8408, %v194_v60   ;;  %v10885_v50 = vadd.f32 %v1457_v20, %v1135_v27  ;;  %v2077_v57 = vadd.f32 %v2016_v63, %v1951_v61  ;;  %v2142_v27 = vmul.f32 %v15909_v41, %v10681_v32  ;;  %v16125_v32 = vrot.slane %v10697_v29, 1 }
 0x1ff   :  { %v2349_v24 = vadd.f32 %v10635_v62, %v2284_v48  ;;  %v10889_v34 = vadd.f32 %v1486_v17, %v10774_v56  ;;  %v2313_v19 = vadd.f32 %v2252_v1, %v2187_v10  ;;  %v10891_v15 = vpop.permute.xlu2 %1043  ;;  %v10900_v25 = vsel %vm153_vm1, %v16121_v46, %v15477_v36 }
 0x200   :  { %v527_v12 = vpop.permute.xlu1 %526  ;;  %16122 = vst [vmem:[#allocation86_spill] sm:$0xff] %v10900_v25  ;;  %7581 = vmatmul.msk.f32.gmra.mxu1 %vm2804_vm2, %v10900_v25  ;;  %v1730_v17 = vmul.f32 %v8730_v4, %v10791_v54  ;;  %v2203_v26 = vadd.f32 %v2142_v27, %v2077_v57  ;;  %v1101_v27 = vmul.f32 %v15934_v11, %v10841_v47 }
 0x201   :  { %v10902_v43 = vmax.f32 %v2349_v24, 0.0  ;;  %v2378_v56 = vadd.f32 %v10635_v62, %v2313_v19  ;;  %v698_v60 = vmul.f32 %v8677_v55, %v527_v12  ;;  %v1602_v39 = vmul.f32 %v8708_v7, %v527_v12 }
 0x203   :  { %16123 = vst [vmem:[#allocation2_spill] sm:$0xff] %v10902_v43  ;;  %v10911_v37 = vmax.f32 %v2378_v56, 0.0  ;;  %v1148_v20 = vadd.f32 %v1084_v35, %v698_v60  ;;  %v1665_v63 = vadd.f32 %v1602_v39, %v10624_v13  ;;  %v15476_v48 = vrot.slane %v10902_v43, 1 }
 0x204   :  { %v10917_v10 = vpop.permute.xlu0 %1425  ;;  %v16127_v60 = vrot.slane %v10714_v31, 1 }
 0x205   :  { %16124 = vst [vmem:[#allocation79_spill] sm:$0xff] %v10911_v37  ;;  %v1502_v1 = vmul.f32 %v8692_v59, %v10917_v10  ;;  %v2268_v61 = vmul.f32 %v10615_v23, %v10917_v10  ;;  %v10928_v13 = vsel %vm153_vm1, %v16125_v32, %v15476_v48  ;;  %v15475_v24 = vrot.slane %v10911_v37, 1 }
 0x206   :  { %16126 = vst [vmem:[#allocation83_spill] sm:$0xff] %v10928_v13  ;;  %7569 = vmatmul.msk.f32.gmra.mxu0 %vm2804_vm2, %v10928_v13  ;;  %v1793_v19 = vadd.f32 %v1730_v17, %v1665_v63  ;;  %v1856_v17 = vmul.f32 %v8750_v38, %v10607_v49  ;;  %v1716_v49 = vmul.f32 %v8730_v4, %v10630_v16 }
 0x207   :  { %v10934_v35 = vadd.f32 %v1502_v1, %v10816_v58  ;;  %v2329_v57 = vadd.f32 %v2268_v61, %v2203_v26  ;;  %v10936_v46 = vpop.permute.xlu2 %1249  ;;  %v10943_v39 = vsel %vm153_vm1, %v16127_v60, %v15475_v24  ;;  %v1747_v60 = vmul.f32 %v8730_v4, %v10841_v47 }
 0x208   :  { %v595_v56 = vpop.permute.xlu1 %594  ;;  %16128 = vst [vmem:[#allocation37_spill] sm:$0xff] %v10943_v39  ;;  %7598 = vmatmul.msk.f32.gmra.mxu2 %vm2804_vm2, %v10943_v39  ;;  %v1919_v39 = vadd.f32 %v1856_v17, %v10516_v14  ;;  %v1117_v14 = vmul.f32 %v15934_v11, %v10891_v15  ;;  %v1873_v17 = vmul.f32 %v8750_v38, %v10665_v5 }
 0x209   :  { %v2394_v32 = vadd.f32 %v10635_v62, %v2329_v57  ;;  %v715_v63 = vmul.f32 %v8677_v55, %v595_v56  ;;  %v1619_v58 = vmul.f32 %v8708_v7, %v595_v56  ;;  %v1984_v57 = vmul.f32 %v8754_v3, %v527_v12 }
 0x20b   :  { %v10954_v1 = vmax.f32 %v2394_v32, 0.0  ;;  %v10956_v26 = vadd.f32 %v1101_v27, %v715_v63  ;;  %v1682_v61 = vadd.f32 %v1619_v58, %v10679_v30  ;;  %v16130_v30 = vrot.slane %v10772_v21, 1 }
 0x20c   :  { %v479_v24 = vpop.permute.xlu0 %478  ;;  %v2045_v58 = vadd.f32 %v1984_v57, %v1919_v39  ;;  %v1763_v39 = vmul.f32 %v8730_v4, %v10891_v15 }
 0x20d   :  { %16129 = vst [vmem:[#allocation82_spill] sm:$0xff] %v10954_v1  ;;  %v1590_v48 = vmul.f32 %v8708_v7, %v479_v24  ;;  %v15482_v36 = vrot.slane %v10954_v1, 1  ;;  %v1810_v32 = vadd.f32 %v1747_v60, %v1682_v61  ;;  %v2110_v61 = vmul.f32 %v15909_v41, %v10791_v54 }
 0x20f   :  { %v1653_v27 = vadd.f32 %v1590_v48, %v10675_v51  ;;  %v10968_v63 = vpop.permute.xlu2 %915  ;;  %v10975_v12 = vsel %vm153_vm1, %v16130_v30, %v15482_v36  ;;  %v1779_v48 = vadd.f32 %v1716_v49, %v10570_v53  ;;  %v1844_v30 = vmul.f32 %v8750_v38, %v10521_v22 }
 0x210   :  { %16131 = vst [vmem:[#allocation101_spill] sm:$0xff] %v10975_v12  ;;  %v659_v31 = vpop.permute.xlu1 %658  ;;  %7614 = vmatmul.msk.f32.gmra.mxu3 %vm2804_vm2, %v10975_v12  ;;  %v2001_v36 = vmul.f32 %v8754_v3, %v595_v56  ;;  %v1972_v53 = vmul.f32 %v8754_v3, %v479_v24  ;;  %v2171_v12 = vadd.f32 %v2110_v61, %v2045_v58 }
 0x211   :  { %v731_v16 = vmul.f32 %v8677_v55, %v659_v31  ;;  %v1635_v51 = vmul.f32 %v8708_v7, %v659_v31  ;;  %v686_v58 = vmul.f32 %v8677_v55, %v479_v24 }
 0x213   :  { %v10990_v60 = vadd.f32 %v1117_v14, %v731_v16  ;;  %v1698_v57 = vadd.f32 %v1635_v51, %v10742_v45  ;;  %v1936_v14 = vadd.f32 %v1873_v17, %v10567_v28  ;;  %v1907_v45 = vadd.f32 %v1844_v30, %v1779_v48 }
 0x214   :  { %v1298_v49 = vpop.permute.xlu0 %1297  ;;  %v1458_v17 = vmul.f32 %v8692_v59, %v10936_v46  ;;  %v2017_v30 = vmul.f32 %v8754_v3, %v659_v31 }
 0x215   :  { %v1470_v5 = vmul.f32 %v8692_v59, %v1298_v49  ;;  %v1858_v54 = vmul.f32 %v8750_v38, %v1298_v49  ;;  %v2236_v21 = vmul.f32 %v10615_v23, %v1298_v49  ;;  %v11000_v25 = vadd.f32 %v1763_v39, %v1698_v57 }
 0x216   :  { %v2062_v40 = vadd.f32 %v2001_v36, %v1936_v14  ;;  %v2033_v61 = vadd.f32 %v1972_v53, %v1907_v45  ;;  %v2224_v36 = vmul.f32 %v10615_v23, %v10936_v46 }
 0x217   :  { %v11003_v16 = vadd.f32 %v1470_v5, %v1148_v20  ;;  %v11005_v22 = vadd.f32 %v1858_v54, %v1793_v19  ;;  %v2297_v56 = vadd.f32 %v2236_v21, %v2171_v12  ;;  %v11007_v51 = vpop.permute.xlu2 %983  ;;  %v1889_v20 = vmul.f32 %v8750_v38, %v10722_v8 }
 0x218   :  { %v864_v13 = vpop.permute.xlu1 %863  ;;  %v2127_v21 = vmul.f32 %v15909_v41, %v10841_v47 }
 0x219   :  { %v2362_v29 = vadd.f32 %v10635_v62, %v2297_v56  ;;  %v1072_v39 = vmul.f32 %v15934_v11, %v864_v13  ;;  %v1718_v57 = vmul.f32 %v8730_v4, %v864_v13  ;;  %v2098_v28 = vmul.f32 %v15909_v41, %v864_v13 }
 0x21a   :  { %v1846_v13 = vmul.f32 %v8750_v38, %v10936_v46  ;;  %v2188_v53 = vadd.f32 %v2127_v21, %v2062_v40 }
 0x21b   :  { %v11020_v24 = vmax.f32 %v2362_v29, 0.0  ;;  %v1136_v19 = vadd.f32 %v1072_v39, %v686_v58  ;;  %v1781_v12 = vadd.f32 %v1718_v57, %v1653_v27  ;;  %v2159_v48 = vadd.f32 %v2098_v28, %v2033_v61 }
 0x21c   :  { %v1366_v8 = vpop.permute.xlu0 %1365  ;;  %v1952_v27 = vadd.f32 %v1889_v20, %v10619_v9  ;;  %v1085_v61 = vmul.f32 %v15934_v11, %v10968_v63  ;;  %v16135_v57 = vrot.slane %v10872_v2, 1 }
 0x21d   :  { %16132 = vst [vmem:[#allocation102_spill] sm:$0xff] %v11020_v24  ;;  %v2285_v49 = vadd.f32 %v2224_v36, %v2159_v48  ;;  %v1487_v47 = vmul.f32 %v8692_v59, %v1366_v8  ;;  %v1875_v5 = vmul.f32 %v8750_v38, %v1366_v8  ;;  %v2253_v29 = vmul.f32 %v10615_v23, %v1366_v8  ;;  %v16138_v36 = vld [vmem:[#allocation5_spill] sm:$0xff] }
 0x21e   :  { %v15496_v54 = vrot.slane %v11020_v24, 1  ;;  %v11032_v14 = vadd.f32 %v1458_v17, %v1136_v19  ;;  %v11034_v45 = vadd.f32 %v1846_v13, %v1781_v12  ;;  %v2078_v9 = vadd.f32 %v2017_v30, %v1952_v27 }
 0x21f   :  { %v2350_v46 = vadd.f32 %v10635_v62, %v2285_v49  ;;  %v11038_v31 = vadd.f32 %v1487_v47, %v10956_v26  ;;  %v11040_v40 = vadd.f32 %v1875_v5, %v1810_v32  ;;  %v2314_v56 = vadd.f32 %v2253_v29, %v2188_v53  ;;  %v11042_v58 = vpop.permute.xlu2 %1047  ;;  %v16142_v53 = vld [vmem:[#allocation6_spill] sm:$0xff] }
 0x220   :  { %16133 = vst [vmem:[#allocation103_spill] sm:$0xff] %v11032_v14  ;;  %v531_v39 = vpop.permute.xlu1 %530  ;;  %v11051_v28 = vsel %vm153_vm1, %v16135_v57, %v15496_v54  ;;  %v11062_v19 = vmul.f32 %v8708_v7, %v16138_v36  ;;  %v2143_v12 = vmul.f32 %v15909_v41, %v10891_v15  ;;  %v11074_v8 = vmul.f32 %v8754_v3, %v16138_v36  ;;  %v16147_v57 = vld [vmem:[#allocation8_spill] sm:$0xff]  ;;  %v16160_v54 = vld [vmem:[#allocation15_spill] sm:$0xff] }
 0x221   :  { %16134 = vst [vmem:[#allocation104_spill] sm:$0xff] %v11034_v45  ;;  %v11053_v20 = vmax.f32 %v2350_v46, 0.0  ;;  %v2379_v26 = vadd.f32 %v10635_v62, %v2314_v56  ;;  %v699_v32 = vmul.f32 %v8677_v55, %v531_v39  ;;  %v1603_v21 = vmul.f32 %v8708_v7, %v531_v39  ;;  %7582 = vmatmul.msk.f32.gmra.mxu1 %vm2804_vm2, %v11051_v28  ;;  %v16212_v45 = vld [vmem:[#allocation61_spill] sm:$0xff] }
 0x222   :  { %16136 = vst [vmem:[#allocation105_spill] sm:$0xff] %v11051_v28  ;;  %v11078_v49 = vmul.f32 %v8730_v4, %v16142_v53  ;;  %v1731_v47 = vmul.f32 %v8730_v4, %v10968_v63  ;;  %v2204_v5 = vadd.f32 %v2143_v12, %v2078_v9  ;;  %v16144_v46 = vrot.slane %v10902_v43, 1  ;;  %v16165_v28 = vld [vmem:[#allocation18_spill] sm:$0xff]  ;;  %v16169_v43 = vld [vmem:[#allocation19_spill] sm:$0xff] }
 0x223   :  { %16137 = vst [vmem:[#allocation106_spill] sm:$0xff] %v11053_v20  ;;  %v11066_v48 = vmax.f32 %v2379_v26, 0.0  ;;  %v11068_v17 = vadd.f32 %v1085_v61, %v699_v32  ;;  %v1666_v13 = vadd.f32 %v1603_v21, %v10839_v33  ;;  %v15495_v30 = vrot.slane %v11053_v20, 1 }
 0x224   :  { %16139 = vst [vmem:[#allocation5_spill] sm:$0xff] %v11062_v19  ;;  %v1430_v15 = vpop.permute.xlu0 %1429  ;;  %v11094_v61 = vmul.f32 %v15909_v41, %v16142_v53  ;;  %v11098_v9 = vmul.f32 %v8708_v7, %v16147_v57  ;;  %v11107_v21 = vmul.f32 %v8754_v3, %v16147_v57  ;;  %v11167_v2 = vmul.f32 %v10615_v23, %v16165_v28 }
 0x225   :  { %16140 = vst [vmem:[#allocation107_spill] sm:$0xff] %v11066_v48  ;;  %v1503_v29 = vmul.f32 %v8692_v59, %v1430_v15  ;;  %v1891_v27 = vmul.f32 %v8750_v38, %v1430_v15  ;;  %v2269_v33 = vmul.f32 %v10615_v23, %v1430_v15  ;;  %v11090_v56 = vsel %vm153_vm1, %v16144_v46, %v15495_v30  ;;  %v16152_v46 = vld [vmem:[#allocation12_spill] sm:$0xff] }
 0x226   :  { %16141 = vst [vmem:[#allocation108_spill] sm:$0xff] %v11074_v8  ;;  %7570 = vmatmul.msk.f32.gmra.mxu0 %vm2804_vm2, %v11090_v56  ;;  %v15499_v26 = vrot.slane %v11066_v48, 1  ;;  %v11103_v32 = vadd.f32 %v1731_v47, %v1666_v13  ;;  %v11119_v30 = vmul.f32 %v8750_v38, %v16152_v46  ;;  %v11123_v13 = vmul.f32 %v10615_v23, %v16152_v46  ;;  %v16155_v47 = vld [vmem:[#allocation14_spill] sm:$0xff] }
 0x227   :  { %16143 = vst [vmem:[#allocation6_spill] sm:$0xff] %v11078_v49  ;;  %v11110_v36 = vadd.f32 %v1503_v29, %v10990_v60  ;;  %v11113_v12 = vadd.f32 %v1891_v27, %v11000_v25  ;;  %v2330_v53 = vadd.f32 %v2269_v33, %v2204_v5  ;;  %v11115_v15 = vpop.permute.xlu2 %1253  ;;  %v11127_v57 = vmul.f32 %v8708_v7, %v16155_v47  ;;  %v16170_v49 = vld [vmem:[#allocation21_spill] sm:$0xff] }
 0x228   :  { %16145 = vst [vmem:[#allocation109_spill] sm:$0xff] %v11090_v56  ;;  %v11129_v60 = vpop.permute.xlu1 %598  ;;  %v16157_v25 = vrot.slane %v10911_v37, 1  ;;  %v11140_v29 = vmul.f32 %v8754_v3, %v16155_v47  ;;  %v1102_v27 = vmul.f32 %v15934_v11, %v11007_v51  ;;  %v11151_v37 = vmul.f32 %v8754_v3, %v16160_v54 }
 0x229   :  { %16146 = vst [vmem:[#allocation110_spill] sm:$0xff] %v11094_v61  ;;  %v2395_v33 = vadd.f32 %v10635_v62, %v2330_v53  ;;  %v716_v46 = vmul.f32 %v8677_v55, %v11129_v60  ;;  %v11163_v53 = vmul.f32 %v8750_v38, %v16165_v28  ;;  %v1857_v54 = vmul.f32 %v8750_v38, %v10827_v6 }
 0x22a   :  { %16148 = vst [vmem:[#allocation8_spill] sm:$0xff] %v11098_v9  ;;  %v11136_v5 = vsel %vm153_vm1, %v16157_v25, %v15499_v26  ;;  %v16162_v25 = vld [vmem:[#allocation16_spill] sm:$0xff]  ;;  %v11185_v61 = vmul.f32 %v8730_v4, %v16170_v49  ;;  %v11189_v28 = vmul.f32 %v15909_v41, %v16170_v49 }
 0x22b   :  { %16149 = vst [vmem:[#allocation111_spill] sm:$0xff] %v11107_v21  ;;  %7599 = vmatmul.msk.f32.gmra.mxu2 %vm2804_vm2, %v11136_v5  ;;  %v11155_v26 = vmul.f32 %v8730_v4, %v16162_v25  ;;  %v11159_v47 = vmul.f32 %v15909_v41, %v16162_v25  ;;  %v11173_v56 = vadd.f32 %v1102_v27, %v716_v46  ;;  %v16171_v27 = vld [vmem:[#allocation23_spill] sm:$0xff] }
 0x22c   :  { %16150 = vst [vmem:[#allocation112_spill] sm:$0xff] %v11110_v36  ;;  %v11181_v25 = vmul.f32 %v8754_v3, %v16169_v43  ;;  %v11191_v6 = vpop.permute.xlu0 %482  ;;  %v11199_v46 = vmul.f32 %v15909_v41, %v16171_v27 }
 0x22d   :  { %16151 = vst [vmem:[#allocation113_spill] sm:$0xff] %v11113_v12 }
 0x22e   :  { %16153 = vst [vmem:[#allocation12_spill] sm:$0xff] %v11119_v30 }
 0x22f   :  { %16154 = vst [vmem:[#allocation114_spill] sm:$0xff] %v11123_v13  ;;  %v16177_v13 = vld [vmem:[#allocation25_spill] sm:$0xff]  ;;  %v11226_v30 = vpop.permute.xlu2 %919 }
 0x230   :  { %16156 = vst [vmem:[#allocation14_spill] sm:$0xff] %v11127_v57  ;;  %v1920_v57 = vadd.f32 %v1857_v54, %v10739_v18  ;;  %v16186_v18 = vld [vmem:[#allocation30_spill] sm:$0xff]  ;;  %v16187_v54 = vld [vmem:[#allocation32_spill] sm:$0xff] }
 0x231   :  { %16158 = vst [vmem:[#allocation115_spill] sm:$0xff] %v11136_v5  ;;  %v11171_v5 = vmax.f32 %v2395_v33, 0.0  ;;  %v11195_v33 = vmul.f32 %v8730_v4, %v16171_v27 }
 0x232   :  { %16159 = vst [vmem:[#allocation116_spill] sm:$0xff] %v11140_v29  ;;  %v16174_v29 = vld [vmem:[#allocation24_spill] sm:$0xff] }
 0x233   :  { %16161 = vst [vmem:[#allocation15_spill] sm:$0xff] %v11151_v37  ;;  %v11177_v37 = vmul.f32 %v8708_v7, %v16169_v43  ;;  %v1985_v43 = vmul.f32 %v8754_v3, %v531_v39  ;;  %v11209_v49 = vmul.f32 %v10615_v23, %v16174_v29 }
 0x234   :  { %16163 = vst [vmem:[#allocation16_spill] sm:$0xff] %v11155_v26  ;;  %v16194_v26 = vld [vmem:[#allocation46_spill] sm:$0xff] }
 0x235   :  { %16164 = vst [vmem:[#allocation117_spill] sm:$0xff] %v11159_v47  ;;  %v16180_v47 = vld [vmem:[#allocation28_spill] sm:$0xff] }
 0x236   :  { %16166 = vst [vmem:[#allocation18_spill] sm:$0xff] %v11163_v53  ;;  %v11205_v53 = vmul.f32 %v8750_v38, %v16174_v29  ;;  %v11221_v39 = vmul.f32 %v10615_v23, %v16180_v47  ;;  %v16182_v29 = vrot.slane %v11171_v5, 1 }
 0x237   :  { %16167 = vst [vmem:[#allocation118_spill] sm:$0xff] %v11167_v2  ;;  %v11213_v2 = vmul.f32 %v15909_v41, %v16177_v13  ;;  %v16183_v13 = vrot.slane %v10954_v1, 1  ;;  %v663_v1 = vpop.permute.xlu1 %662 }
 0x238   :  { %16168 = vst [vmem:[#allocation119_spill] sm:$0xff] %v11171_v5  ;;  %v732_v9 = vmul.f32 %v8677_v55, %v663_v1 }
 0x239   :  { %16172 = vst [vmem:[#allocation19_spill] sm:$0xff] %v11195_v33  ;;  %v16178_v33 = vld [vmem:[#allocation27_spill] sm:$0xff] }
 0x23a   :  { %16173 = vst [vmem:[#allocation21_spill] sm:$0xff] %v11199_v46  ;;  %v11217_v27 = vmul.f32 %v8754_v3, %v16178_v33  ;;  %v16185_v33 = vld [vmem:[#allocation29_spill] sm:$0xff]  ;;  %v2046_v46 = vadd.f32 %v1985_v43, %v1920_v57  ;;  %v16198_v43 = vld [vmem:[#allocation99_spill] sm:$0xff] }
 0x23b   :  { %16175 = vst [vmem:[#allocation23_spill] sm:$0xff] %v11205_v53  ;;  %v1717_v53 = vmul.f32 %v8730_v4, %v10849_v44  ;;  %v11241_v47 = vmul.f32 %v10615_v23, %v16185_v33  ;;  %v11245_v44 = vmul.f32 %v8754_v3, %v16186_v18  ;;  %v16191_v18 = vld [vmem:[#allocation38_spill] sm:$0xff] }
 0x23c   :  { %16176 = vst [vmem:[#allocation24_spill] sm:$0xff] %v11209_v49  ;;  %v11233_v49 = vsel %vm153_vm1, %v16183_v13, %v16182_v29  ;;  %v16189_v29 = vld [vmem:[#allocation33_spill] sm:$0xff]  ;;  %v11262_v8 = vmul.f32 %v15909_v41, %v16191_v18  ;;  %v2111_v18 = vmul.f32 %v15909_v41, %v10968_v63  ;;  %v1845_v63 = vmul.f32 %v8750_v38, %v10744_v0  ;;  %v16208_v0 = vld [vmem:[#allocation98_spill] sm:$0xff] }
 0x23d   :  { %16179 = vst [vmem:[#allocation25_spill] sm:$0xff] %v11217_v27  ;;  %v11237_v27 = vmul.f32 %v8750_v38, %v16185_v33  ;;  %7615 = vmatmul.msk.f32.gmra.mxu3 %vm2804_vm2, %v11233_v49  ;;  %v11255_v13 = vmul.f32 %v15909_v41, %v16189_v29  ;;  %v1118_v33 = vmul.f32 %v15934_v11, %v11042_v58 }
 0x23e   :  { %16181 = vst [vmem:[#allocation27_spill] sm:$0xff] %v11221_v39  ;;  %v11249_v39 = vmul.f32 %v8754_v3, %v16187_v54  ;;  %v16193_v54 = vld [vmem:[#allocation44_spill] sm:$0xff]  ;;  %v1874_v29 = vmul.f32 %v8750_v38, %v10877_v42  ;;  %v1780_v21 = vadd.f32 %v1717_v53, %v16198_v43  ;;  %v2002_v53 = vmul.f32 %v8754_v3, %v11129_v60  ;;  %v11297_v43 = vpop.permute.xlu0 %1301 }
 0x23f   :  { %16184 = vst [vmem:[#allocation28_spill] sm:$0xff] %v11233_v49  ;;  %v11270_v49 = vmul.f32 %v10615_v23, %v16194_v26  ;;  %v16200_v26 = vld [vmem:[#allocation47_spill] sm:$0xff] }
 0x240   :  { %16188 = vst [vmem:[#allocation29_spill] sm:$0xff] %v11249_v39  ;;  %v11266_v39 = vmul.f32 %v10615_v23, %v16193_v54  ;;  %v11293_v42 = vmul.f32 %v15909_v41, %v16200_v26  ;;  %v1937_v19 = vadd.f32 %v1874_v29, %v16208_v0  ;;  %v1908_v36 = vadd.f32 %v1845_v63, %v1780_v21 }
 0x241   :  { %16190 = vst [vmem:[#allocation30_spill] sm:$0xff] %v11255_v13  ;;  %v16196_v13 = vld [vmem:[#allocation31_spill] sm:$0xff]  ;;  %v1620_v29 = vmul.f32 %v8708_v7, %v11129_v60 }
 0x242   :  { %16192 = vst [vmem:[#allocation32_spill] sm:$0xff] %v11262_v8  ;;  %v11276_v57 = vmul.f32 %v8708_v7, %v16196_v13  ;;  %v11281_v8 = vadd.f32 %v1118_v33, %v732_v9  ;;  %v11285_v54 = vmul.f32 %v8754_v3, %v16196_v13  ;;  %v1973_v9 = vmul.f32 %v8754_v3, %v11191_v6  ;;  %v16218_v60 = vld [vmem:[#allocation67_spill] sm:$0xff] }
 0x243   :  { %16195 = vst [vmem:[#allocation33_spill] sm:$0xff] %v11270_v49  ;;  %v11289_v49 = vmul.f32 %v8730_v4, %v16200_v26  ;;  %v2172_v13 = vadd.f32 %v2111_v18, %v2046_v46  ;;  %v2237_v33 = vmul.f32 %v10615_v23, %v11297_v43  ;;  %v16210_v18 = vld [vmem:[#allocation59_spill] sm:$0xff]  ;;  %v2063_v0 = vadd.f32 %v2002_v53, %v1937_v19  ;;  %v16220_v53 = vld [vmem:[#allocation68_spill] sm:$0xff] }
 0x244   :  { %16197 = vst [vmem:[#allocation38_spill] sm:$0xff] %v11276_v57  ;;  %v11324_v12 = vmul.f32 %v15909_v41, %v16210_v18  ;;  %v2034_v21 = vadd.f32 %v1973_v9, %v1908_v36  ;;  %v11353_v19 = vmul.f32 %v8754_v3, %v16218_v60  ;;  %v2128_v36 = vmul.f32 %v15909_v41, %v11007_v51 }
 0x245   :  { %16199 = vst [vmem:[#allocation44_spill] sm:$0xff] %v11285_v54  ;;  %v2225_v9 = vmul.f32 %v10615_v23, %v11115_v15 }
 0x246   :  { %16201 = vst [vmem:[#allocation46_spill] sm:$0xff] %v11289_v49  ;;  %v16203_v49 = vld [vmem:[#allocation22_spill] sm:$0xff] }
 0x247   :  { %16202 = vst [vmem:[#allocation31_spill] sm:$0xff] %v11293_v42  ;;  %v11307_v54 = vmul.f32 %v8708_v7, %v16203_v49  ;;  %v11311_v26 = vmul.f32 %v8754_v3, %v16203_v49  ;;  %v16206_v42 = vld [vmem:[#allocation57_spill] sm:$0xff]  ;;  %v11328_v49 = vmul.f32 %v8750_v38, %v16212_v45 }
 0x248   :  { %v11315_v57 = vmul.f32 %v8730_v4, %v16206_v42  ;;  %v11320_v46 = vmul.f32 %v15909_v41, %v16206_v42  ;;  %16211 = vst [vmem:[#allocation98_spill] sm:$0xff] %v11324_v12  ;;  %v11336_v42 = vpop.permute.xlu1 %867  ;;  %v11357_v12 = vmul.f32 %v10615_v23, %v16220_v53  ;;  %v1636_v53 = vmul.f32 %v8708_v7, %v663_v1 }
 0x249   :  { %16204 = vst [vmem:[#allocation99_spill] sm:$0xff] %v11307_v54  ;;  %v2298_v54 = vadd.f32 %v2237_v33, %v2172_v13  ;;  %v11343_v13 = vpop.permute.xlu2 %987  ;;  %v2099_v33 = vmul.f32 %v15909_v41, %v11336_v42 }
 0x24a   :  { %16205 = vst [vmem:[#allocation47_spill] sm:$0xff] %v11311_v26  ;;  %v11332_v26 = vmul.f32 %v10615_v23, %v16212_v45 }
 0x24b   :  { %16207 = vst [vmem:[#allocation22_spill] sm:$0xff] %v11315_v57  ;;  %v2363_v63 = vadd.f32 %v10635_v62, %v2298_v54  ;;  %v1890_v54 = vmul.f32 %v8750_v38, %v10917_v10 }
 0x24c   :  { %16209 = vst [vmem:[#allocation57_spill] sm:$0xff] %v11320_v46  ;;  %v16215_v46 = vld [vmem:[#allocation64_spill] sm:$0xff] }
 0x24d   :  { %16213 = vst [vmem:[#allocation59_spill] sm:$0xff] %v11328_v49  ;;  %v11340_v18 = vmul.f32 %v8750_v38, %v16215_v46  ;;  %v11349_v45 = vmul.f32 %v10615_v23, %v16215_v46  ;;  %v2160_v46 = vadd.f32 %v2099_v33, %v2034_v21  ;;  %v2018_v49 = vmul.f32 %v8754_v3, %v663_v1 }
 0x24e   :  { %16214 = vst [vmem:[#allocation61_spill] sm:$0xff] %v11332_v26  ;;  %v2189_v26 = vadd.f32 %v2128_v36, %v2063_v0  ;;  %v1748_v33 = vmul.f32 %v8730_v4, %v11007_v51  ;;  %v1953_v0 = vadd.f32 %v1890_v54, %v10835_v52  ;;  %v11412_v54 = vmul.f32 %v8692_v59, %v11115_v15 }
 0x24f   :  { %16216 = vst [vmem:[#allocation64_spill] sm:$0xff] %v11340_v18  ;;  %v11365_v18 = vmax.f32 %v2363_v63, 0.0  ;;  %v2286_v57 = vadd.f32 %v2225_v9, %v2160_v46  ;;  %v16224_v63 = vld [vmem:[#allocation71_spill] sm:$0xff]  ;;  %v16226_v9 = vld [vmem:[#allocation73_spill] sm:$0xff] }
 0x250   :  { %16217 = vst [vmem:[#allocation120_spill] sm:$0xff] %v11349_v45  ;;  %v16222_v45 = vld [vmem:[#allocation69_spill] sm:$0xff]  ;;  %v11378_v21 = vmul.f32 %v15909_v41, %v16224_v63  ;;  %v11389_v46 = vmul.f32 %v10615_v23, %v16226_v9  ;;  %v1764_v63 = vmul.f32 %v8730_v4, %v11042_v58  ;;  %v11393_v51 = vpop.permute.xlu1 %534 }
 0x251   :  { %16219 = vst [vmem:[#allocation67_spill] sm:$0xff] %v11353_v19  ;;  %v11369_v60 = vmul.f32 %v8754_v3, %v16222_v45  ;;  %v1683_v19 = vadd.f32 %v1620_v29, %v10889_v34  ;;  %v15514_v29 = vrot.slane %v11365_v18, 1  ;;  %v2351_v1 = vadd.f32 %v10635_v62, %v2286_v57 }
 0x252   :  { %16221 = vst [vmem:[#allocation68_spill] sm:$0xff] %v11357_v12  ;;  %v1370_v12 = vpop.permute.xlu0 %1369 }
 0x253   :  { %16223 = vst [vmem:[#allocation69_spill] sm:$0xff] %v11369_v60  ;;  %v1488_v10 = vmul.f32 %v8692_v59, %v1370_v12  ;;  %v2254_v14 = vmul.f32 %v10615_v23, %v1370_v12  ;;  %v1876_v34 = vmul.f32 %v8750_v38, %v1370_v12  ;;  %v16228_v12 = vrot.slane %v11020_v24, 1 }
 0x254   :  { %16225 = vst [vmem:[#allocation71_spill] sm:$0xff] %v11378_v21  ;;  %v1811_v21 = vadd.f32 %v1748_v33, %v1683_v19  ;;  %v11403_v57 = vmax.f32 %v2351_v1, 0.0  ;;  %v2144_v19 = vmul.f32 %v15909_v41, %v11042_v58  ;;  %v1591_v1 = vmul.f32 %v8708_v7, %v11191_v6 }
 0x255   :  { %v1552_v45 = vadd.f32 %v1488_v10, %v11173_v56  ;;  %v2315_v36 = vadd.f32 %v2254_v14, %v2189_v26  ;;  %16227 = vst [vmem:[#allocation73_spill] sm:$0xff] %v11389_v46  ;;  %v11400_v52 = vsel %vm153_vm1, %v16228_v12, %v15514_v29  ;;  %v1699_v56 = vadd.f32 %v1636_v53, %v10934_v35  ;;  %v11421_v53 = vpop.permute.xlu2 %1052 }
 0x256   :  { %16229 = vst [vmem:[#allocation121_spill] sm:$0xff] %v11400_v52  ;;  %v2079_v14 = vadd.f32 %v2018_v49, %v1953_v0  ;;  %7583 = vmatmul.msk.f32.gmra.mxu1 %vm2804_vm2, %v11400_v52  ;;  %v1939_v33 = vadd.f32 %v1876_v34, %v1811_v21  ;;  %v11417_v35 = vmul.f32 %v8750_v38, %v11115_v15  ;;  %v11424_v0 = vmul.f32 0.0, %v8708_v7 }
 0x257   :  { %16230 = vst [vmem:[#allocation122_spill] sm:$0xff] %v11403_v57  ;;  %v2380_v26 = vadd.f32 %v10635_v62, %v2315_v36  ;;  %v1685_v10 = vadd.f32 %v11177_v37, %v1552_v45  ;;  %v11430_v36 = vmul.f32 0.0, %v8730_v4  ;;  %v11433_v37 = vmul.f32 0.0, %v8750_v38 }
 0x258   :  { %v11436_v15 = vmul.f32 0.0, %v8754_v3  ;;  %v1827_v45 = vadd.f32 %v1764_v63, %v1699_v56  ;;  %v2205_v12 = vadd.f32 %v2144_v19, %v2079_v14  ;;  %v2065_v29 = vadd.f32 %v11181_v25, %v1939_v33  ;;  %v603_v19 = vpop.permute.xlu1 %602 }
 0x259   :  { %v11419_v49 = vmax.f32 %v2380_v26, 0.0  ;;  %16232 = vst [vmem:[#allocation124_spill] sm:$0xff] %v11433_v37  ;;  %v1813_v26 = vadd.f32 %v11185_v61, %v1685_v10  ;;  %v16233_v52 = vrot.slane %v11403_v57, 1  ;;  %v16234_v24 = vrot.slane %v11053_v20, 1 }
 0x25a   :  { %v1434_v21 = vpop.permute.xlu0 %1433  ;;  %v11451_v46 = vmul.f32 0.0, %v15909_v41  ;;  %v11454_v63 = vmul.f32 0.0, %v10615_v23  ;;  %v1471_v25 = vmul.f32 %v8692_v59, %v11297_v43  ;;  %v1073_v14 = vmul.f32 %v15934_v11, %v11336_v42 }
 0x25b   :  { %16231 = vst [vmem:[#allocation123_spill] sm:$0xff] %v11419_v49  ;;  %v1504_v34 = vmul.f32 %v8692_v59, %v1434_v21  ;;  %v1892_v9 = vmul.f32 %v8750_v38, %v1434_v21  ;;  %v2270_v58 = vmul.f32 %v10615_v23, %v1434_v21  ;;  %v11448_v60 = vsel %vm153_vm1, %v16234_v24, %v16233_v52 }
 0x25c   :  { %16235 = vst [vmem:[#allocation125_spill] sm:$0xff] %v11448_v60  ;;  %7571 = vmatmul.msk.f32.gmra.mxu0 %vm2804_vm2, %v11448_v60  ;;  %v15519_v61 = vrot.slane %v11419_v49, 1  ;;  %v687_v23 = vmul.f32 %v8677_v55, %v11191_v6  ;;  %v1654_v10 = vadd.f32 %v1591_v1, %v10885_v50  ;;  %v1859_v33 = vmul.f32 %v8750_v38, %v11297_v43  ;;  %v16243_v60 = vld [vmem:[#allocation104_spill] sm:$0xff] }
 0x25d   :  { %v1955_v56 = vadd.f32 %v1892_v9, %v1827_v45  ;;  %v1568_v24 = vadd.f32 %v1504_v34, %v11281_v8  ;;  %v2331_v52 = vadd.f32 %v2270_v58, %v2205_v12  ;;  %v1719_v21 = vmul.f32 %v8730_v4, %v11336_v42 }
 0x25e   :  { %v1086_v45 = vmul.f32 %v15934_v11, %v11226_v30  ;;  %v1941_v9 = vadd.f32 %v11237_v27, %v1813_v26  ;;  %v2191_v8 = vadd.f32 %v11189_v28, %v2065_v29  ;;  %v1732_v6 = vmul.f32 %v8730_v4, %v11226_v30 }
 0x25f   :  { %v2396_v58 = vadd.f32 %v10635_v62, %v2331_v52  ;;  %v2112_v50 = vmul.f32 %v15909_v41, %v11226_v30  ;;  %v2081_v43 = vadd.f32 %v11436_v15, %v1955_v56  ;;  %v16236_v42 = vrot.slane %v11066_v48, 1 }
 0x260   :  { %v11489_v27 = vadd.f32 %v1471_v25, %v11068_v17  ;;  %v1137_v28 = vadd.f32 %v1073_v14, %v687_v23  ;;  %v1701_v29 = vadd.f32 %v11424_v0, %v1568_v24  ;;  %v11497_v12 = vadd.f32 %v1859_v33, %v11103_v32  ;;  %v1258_v25 = vpop.permute.xlu2 %1257 }
 0x261   :  { %v11486_v1 = vsel %vm153_vm1, %v16236_v42, %v15519_v61  ;;  %v11492_v34 = vmax.f32 %v2396_v58, 0.0  ;;  %v1103_v26 = vmul.f32 %v15934_v11, %v11343_v13  ;;  %v1782_v56 = vadd.f32 %v1719_v21, %v1654_v10 }
 0x262   :  { %16237 = vst [vmem:[#allocation126_spill] sm:$0xff] %v11486_v1  ;;  %7600 = vmatmul.msk.f32.gmra.mxu2 %vm2804_vm2, %v11486_v1  ;;  %v487_v30 = vpop.permute.xlu0 %486  ;;  %v1604_v17 = vmul.f32 %v8708_v7, %v11393_v51  ;;  %v1749_v14 = vmul.f32 %v8730_v4, %v11343_v13  ;;  %v2067_v24 = vadd.f32 %v11245_v44, %v1941_v9  ;;  %v11521_v9 = vpop.permute.xlu1 %666  ;;  %v16239_v61 = vrot.slane %v11171_v5, 1 }
 0x263   :  { %16238 = vst [vmem:[#allocation127_spill] sm:$0xff] %v11492_v34  ;;  %v2317_v52 = vadd.f32 %v11241_v47, %v2191_v8  ;;  %v15524_v23 = vrot.slane %v11492_v34, 1  ;;  %v2129_v32 = vmul.f32 %v15909_v41, %v11343_v13  ;;  %v700_v33 = vmul.f32 %v8677_v55, %v11393_v51 }
 0x264   :  { %v1986_v10 = vmul.f32 %v8754_v3, %v11393_v51  ;;  %v2207_v21 = vadd.f32 %v11451_v46, %v2081_v43  ;;  %v1829_v58 = vadd.f32 %v11430_v36, %v1701_v29  ;;  %v1621_v42 = vmul.f32 %v8708_v7, %v603_v19 }
 0x265   :  { %v2003_v44 = vmul.f32 %v8754_v3, %v603_v19  ;;  %v11519_v47 = vadd.f32 %v11412_v54, %v1137_v28  ;;  %v11525_v13 = vmul.f32 %v15934_v11, %v11421_v53  ;;  %v11529_v51 = vmul.f32 %v8730_v4, %v11421_v53 }
 0x266   :  { %v1667_v8 = vadd.f32 %v1604_v17, %v11003_v16  ;;  %v11533_v43 = vadd.f32 %v11417_v35, %v1782_v56  ;;  %v2193_v29 = vadd.f32 %v11213_v2, %v2067_v24  ;;  %v2382_v54 = vadd.f32 %v10635_v62, %v2317_v52 }
 0x267   :  { %v11539_v28 = vmul.f32 %v15909_v41, %v11421_v53  ;;  %v11546_v1 = vsel %vm153_vm1, %v16239_v61, %v15524_v23  ;;  %v1150_v48 = vadd.f32 %v1086_v45, %v700_v33  ;;  %v2047_v16 = vadd.f32 %v1986_v10, %v11005_v22 }
 0x268   :  { %16240 = vst [vmem:[#allocation128_spill] sm:$0xff] %v11546_v1  ;;  %v2333_v35 = vadd.f32 %v11454_v63, %v2207_v21  ;;  %v717_v2 = vmul.f32 %v8677_v55, %v603_v19  ;;  %7616 = vmatmul.msk.f32.gmra.mxu3 %vm2804_vm2, %v11546_v1  ;;  %v1957_v53 = vadd.f32 %v11433_v37, %v1829_v58  ;;  %v11562_v19 = vld [vmem:[%s15221_s2 + $0x348] ss:$0 sm:$0xff]  ;;  %v16242_v1 = vld [vmem:[#allocation103_spill] sm:$0xff] }
 0x269   :  { %v1684_v56 = vadd.f32 %v1621_v42, %v11038_v31  ;;  %v2064_v17 = vadd.f32 %v2003_v44, %v11040_v40  ;;  %v1592_v24 = vmul.f32 %v8708_v7, %v487_v30  ;;  %v1460_v45 = vmul.f32 %v8692_v59, %v1258_v25  ;;  %v491_v44 = vpop.permute.xlu2 %490 }
 0x26a   :  { %v1306_v61 = vpop.permute.xlu0 %1305  ;;  %v1974_v22 = vmul.f32 %v8754_v3, %v487_v30  ;;  %v1795_v52 = vadd.f32 %v1732_v6, %v1667_v8  ;;  %v11566_v10 = vadd.f32 %v11266_v39, %v2193_v29  ;;  %v11568_v31 = vmax.f32 %v2382_v54, 0.0  ;;  %v872_v39 = vpop.permute.xlu1 %871 }
 0x26b   :  { %v2238_v33 = vmul.f32 %v11562_v19, %v1306_v61  ;;  %v1848_v40 = vmul.f32 %v8750_v38, %v1258_v25  ;;  %v2226_v21 = vmul.f32 %v11562_v19, %v1258_v25  ;;  %v2398_v58 = vadd.f32 %v10635_v62, %v2333_v35 }
 0x26c   :  { %16241 = vst [vmem:[#allocation129_spill] sm:$0xff] %v11568_v31  ;;  %v1167_v42 = vadd.f32 %v1103_v26, %v717_v2  ;;  %v688_v6 = vmul.f32 %v8677_v55, %v487_v30  ;;  %v2173_v8 = vadd.f32 %v2112_v50, %v2047_v16  ;;  %v11575_v23 = vadd.f32 %v11436_v15, %v1957_v53 }
 0x26d   :  { %v1655_v5 = vadd.f32 %v1592_v24, %v16242_v1  ;;  %v1812_v29 = vadd.f32 %v1749_v14, %v1684_v56  ;;  %v2190_v54 = vadd.f32 %v2129_v32, %v2064_v17  ;;  %v2035_v20 = vadd.f32 %v1974_v22, %v16243_v60  ;;  %v11598_v22 = vld [vmem:[%s15221_s2 + $0x349] ss:$0 sm:$0xff] }
 0x26e   :  { %v1472_v37 = vmul.f32 %v8692_v59, %v1306_v61  ;;  %v2299_v25 = vadd.f32 %v2238_v33, %v2173_v8  ;;  %v1074_v62 = vmul.f32 %v15934_v11, %v872_v39  ;;  %v11582_v26 = vmul.f32 %v8677_v55, %v491_v44 }
 0x26f   :  { %v1593_v50 = vmul.f32 %v8708_v7, %v491_v44  ;;  %v1720_v30 = vmul.f32 %v8730_v4, %v872_v39  ;;  %v2100_v16 = vmul.f32 %v15909_v41, %v872_v39  ;;  %v11587_v1 = vmax.f32 %v2398_v58, 0.0 }
 0x270   :  { %v1975_v14 = vmul.f32 %v8754_v3, %v491_v44  ;;  %v1637_v60 = vmul.f32 %v8708_v7, %v11521_v9  ;;  %v1138_v32 = vadd.f32 %v1074_v62, %v688_v6  ;;  %v2019_v35 = vmul.f32 %v8754_v3, %v11521_v9  ;;  %v16246_v62 = vld [vmem:[#allocation99_spill] sm:$0xff] }
 0x271   :  { %16244 = vst [vmem:[#allocation103_spill] sm:$0xff] %v11587_v1  ;;  %v1860_v2 = vmul.f32 %v8750_v38, %v1306_v61  ;;  %v1783_v53 = vadd.f32 %v1720_v30, %v1655_v5  ;;  %v2161_v56 = vadd.f32 %v2100_v16, %v2035_v20  ;;  %v1536_v24 = vadd.f32 %v1472_v37, %v1150_v48  ;;  %v16245_v5 = vld [vmem:[#allocation112_spill] sm:$0xff]  ;;  %v16248_v16 = vld [vmem:[#allocation47_spill] sm:$0xff]  ;;  %v16250_v1 = vld [vmem:[#allocation5_spill] sm:$0xff] }
 0x272   :  { %v1374_v17 = vpop.permute.xlu0 %1373  ;;  %v2364_v33 = vadd.f32 %v11598_v22, %v2299_v25  ;;  %v1524_v58 = vadd.f32 %v1460_v45, %v1138_v32  ;;  %v11605_v20 = vadd.f32 %v1593_v50, %v11519_v47  ;;  %v733_v48 = vmul.f32 %v8677_v55, %v11521_v9  ;;  %v16247_v25 = vld [vmem:[#allocation113_spill] sm:$0xff]  ;;  %v16249_v47 = vld [vmem:[#allocation22_spill] sm:$0xff] }
 0x273   :  { %v1489_v44 = vmul.f32 %v8692_v59, %v1374_v17  ;;  %v1911_v6 = vadd.f32 %v1848_v40, %v1783_v53  ;;  %v2287_v8 = vadd.f32 %v2226_v21, %v2161_v56  ;;  %v1877_v39 = vmul.f32 %v8750_v38, %v1374_v17  ;;  %v539_v53 = vpop.permute.xlu1 %538 }
 0x274   :  { %v2255_v61 = vmul.f32 %v11562_v19, %v1374_v17  ;;  %v1700_v37 = vadd.f32 %v1637_v60, %v16245_v5  ;;  %v1657_v30 = vadd.f32 %v16246_v62, %v1524_v58  ;;  %v2080_v45 = vadd.f32 %v2019_v35, %v16247_v25  ;;  %v1262_v58 = vpop.permute.xlu2 %1261  ;;  %v16251_v62 = vld [vmem:[#allocation57_spill] sm:$0xff] }
 0x275   :  { %v2037_v32 = vadd.f32 %v16248_v16, %v1911_v6  ;;  %v1940_v40 = vadd.f32 %v1877_v39, %v1812_v29  ;;  %v11614_v56 = vadd.f32 %v1975_v14, %v11533_v43  ;;  %v11616_v17 = vmax.f32 %v2364_v33, 0.0  ;;  %v16253_v39 = vld [vmem:[#allocation111_spill] sm:$0xff]  ;;  %v16254_v33 = vld [vmem:[#allocation61_spill] sm:$0xff] }
 0x276   :  { %v2316_v21 = vadd.f32 %v2255_v61, %v2190_v54  ;;  %v1785_v50 = vadd.f32 %v16249_v47, %v1657_v30  ;;  %v2352_v9 = vadd.f32 %v11598_v22, %v2287_v8  ;;  %v1669_v60 = vadd.f32 %v16250_v1, %v1536_v24  ;;  %v16252_v54 = vld [vmem:[#allocation59_spill] sm:$0xff]  ;;  %v16259_v47 = vld [vmem:[#allocation8_spill] sm:$0xff] }
 0x277   :  { %v1923_v5 = vadd.f32 %v1860_v2, %v1795_v52  ;;  %v2163_v35 = vadd.f32 %v16251_v62, %v2037_v32  ;;  %v1553_v25 = vadd.f32 %v1489_v44, %v1167_v42  ;;  %v1183_v29 = vadd.f32 %v11525_v13, %v733_v48  ;;  %v16255_v13 = vld [vmem:[#allocation67_spill] sm:$0xff]  ;;  %v16257_v48 = vld [vmem:[#allocation16_spill] sm:$0xff] }
 0x278   :  { %v1913_v6 = vadd.f32 %v16252_v54, %v1785_v50  ;;  %v2066_v43 = vadd.f32 %v16253_v39, %v1940_v40  ;;  %v2617_v14 = vrot.slane %v11568_v31, 1  ;;  %v2381_v8 = vadd.f32 %v11598_v22, %v2316_v21  ;;  %v16258_v32 = vld [vmem:[#allocation108_spill] sm:$0xff]  ;;  %v16261_v50 = vld [vmem:[#allocation21_spill] sm:$0xff] }
 0x279   :  { %v11627_v61 = vadd.f32 %v16254_v33, %v2163_v35  ;;  %v1828_v52 = vadd.f32 %v11529_v51, %v1700_v37  ;;  %v2206_v1 = vadd.f32 %v11539_v28, %v2080_v45  ;;  %v11633_v42 = vmul.f32 %v8692_v59, %v1262_v58  ;;  %v16260_v37 = vld [vmem:[#allocation98_spill] sm:$0xff] }
 0x27a   :  { %v1439_v30 = vpop.permute.xlu0 %1438  ;;  %v2039_v2 = vadd.f32 %v16255_v13, %v1913_v6  ;;  %v11636_v24 = vmax.f32 %v2352_v9, 0.0  ;;  %v2581_v44 = vrot.slane %v11616_v17, 1  ;;  %v1797_v16 = vadd.f32 %v16257_v48, %v1669_v60  ;;  %v16264_v6 = vld [vmem:[#allocation73_spill] sm:$0xff]  ;;  %v16265_v13 = vld [vmem:[#allocation12_spill] sm:$0xff]  ;;  %v16267_v48 = vld [vmem:[#allocation19_spill] sm:$0xff] }
 0x27b   :  { %v2049_v40 = vadd.f32 %v16258_v32, %v1923_v5  ;;  %v11642_v21 = vmul.f32 %v8750_v38, %v1262_v58  ;;  %v1686_v51 = vadd.f32 %v16259_v47, %v1553_v25  ;;  %v11646_v28 = vmul.f32 %v11562_v19, %v1262_v58  ;;  %v924_v54 = vpop.permute.xlu1 %923 }
 0x27c   :  { %16256 = vst [vmem:[#allocation104_spill] sm:$0xff] %v11636_v24  ;;  %v2165_v45 = vadd.f32 %v16260_v37, %v2039_v2  ;;  %v2192_v62 = vadd.f32 %v16261_v50, %v2066_v43  ;;  %v16262_v9 = vrot.slane %v11365_v18, 1  ;;  %v11657_v5 = vmax.f32 %v2381_v8, 0.0 }
 0x27d   :  { %v1605_v35 = vmul.f32 %v8708_v7, %v539_v53  ;;  %v1987_v25 = vmul.f32 %v8754_v3, %v539_v53  ;;  %v1893_v58 = vmul.f32 %v8750_v38, %v1439_v30  ;;  %v1505_v43 = vmul.f32 %v8692_v59, %v1439_v30  ;;  %v16266_v7 = vld [vmem:[#allocation117_spill] sm:$0xff] }
 0x27e   :  { %v11655_v60 = vsel %vm153_vm1, %v16262_v9, %v2581_v44  ;;  %16263 = vst [vmem:[#allocation112_spill] sm:$0xff] %v11657_v5  ;;  %v11665_v39 = vadd.f32 %v16264_v6, %v2165_v45  ;;  %v2271_v33 = vmul.f32 %v11562_v19, %v1439_v30  ;;  %v2557_v8 = vrot.slane %v11636_v24, 1 }
 0x27f   :  { %7584 = vmatmul.msk.f32.gmra.mxu1 %vm2804_vm2, %v11655_v60  ;;  %v11671_v2 = vadd.f32 %v16265_v13, %v1797_v16  ;;  %v2175_v3 = vadd.f32 %v16266_v7, %v2049_v40  ;;  %v1814_v32 = vadd.f32 %v16267_v48, %v1686_v51  ;;  %v1087_v47 = vmul.f32 %v15934_v11, %v924_v54  ;;  %v16270_v16 = vld [vmem:[#allocation118_spill] sm:$0xff] }
 0x280   :  { %v701_v37 = vmul.f32 %v8677_v55, %v539_v53  ;;  %v2332_v50 = vadd.f32 %v2271_v33, %v2206_v1  ;;  %v16268_v45 = vrot.slane %v11403_v57, 1  ;;  %v1733_v9 = vmul.f32 %v8730_v4, %v924_v54 }
 0x281   :  { %v2318_v6 = vadd.f32 %v16270_v16, %v2192_v62  ;;  %v1668_v40 = vadd.f32 %v1605_v35, %v11489_v27  ;;  %v1956_v13 = vadd.f32 %v1893_v58, %v1828_v52  ;;  %v2113_v55 = vmul.f32 %v15909_v41, %v924_v54  ;;  %v16271_v52 = vld [vmem:[#allocation114_spill] sm:$0xff] }
 0x282   :  { %v11682_v30 = vsel %vm153_vm1, %v16268_v45, %v2557_v8  ;;  %v1310_v53 = vpop.permute.xlu0 %1309  ;;  %v2048_v1 = vadd.f32 %v1987_v25, %v11497_v12  ;;  %v1569_v51 = vadd.f32 %v1505_v43, %v1183_v29  ;;  %v2615_v33 = vrot.slane %v11657_v5, 1  ;;  %v16274_v29 = vld [vmem:[#allocation18_spill] sm:$0xff] }
 0x283   :  { %16269 = vst [vmem:[#allocation99_spill] sm:$0xff] %v11682_v30  ;;  %7572 = vmatmul.msk.f32.gmra.mxu0 %vm2804_vm2, %v11682_v30  ;;  %v1473_v7 = vmul.f32 %v8692_v59, %v1310_v53  ;;  %v2397_v48 = vadd.f32 %v11598_v22, %v2332_v50  ;;  %v1151_v45 = vadd.f32 %v1087_v47, %v701_v37  ;;  %v16272_v16 = vrot.slane %v11419_v49, 1 }
 0x284   :  { %v1796_v62 = vadd.f32 %v1733_v9, %v1668_v40  ;;  %v1861_v27 = vmul.f32 %v8750_v38, %v1310_v53  ;;  %v2301_v35 = vadd.f32 %v16271_v52, %v2175_v3  ;;  %v2174_v58 = vadd.f32 %v2113_v55, %v2048_v1  ;;  %v876_v38 = vpop.permute.xlu1 %875  ;;  %v3487_v40 = vld [vmem:[%s15221_s2 + $0xb8] sm:$0xff] }
 0x285   :  { %v11699_v54 = vsel %vm153_vm1, %v16272_v16, %v2615_v33  ;;  %v2239_v12 = vmul.f32 %v11562_v19, %v1310_v53  ;;  %v1942_v25 = vadd.f32 %v16274_v29, %v1814_v32  ;;  %v2082_v59 = vadd.f32 %v11436_v15, %v1956_v13  ;;  %v3486_v32 = vld [vmem:[%s15221_s2 + $0xb0] sm:$0xff]  ;;  %v16276_v53 = vld [vmem:[#allocation116_spill] sm:$0xff]  ;;  %3625 = vmatpush.msrb.mxu2 %v3487_v40 }
 0x286   :  { %16273 = vst [vmem:[#allocation113_spill] sm:$0xff] %v11699_v54  ;;  %7601 = vmatmul.msk.f32.gmra.mxu2 %vm2804_vm2, %v11699_v54  ;;  %v1537_v43 = vadd.f32 %v1473_v7, %v1151_v45  ;;  %v1924_v47 = vadd.f32 %v1861_v27, %v1796_v62  ;;  %v2383_v3 = vadd.f32 %v11598_v22, %v2318_v6  ;;  %v11716_v55 = vmax.f32 %v2397_v48, 0.0  ;;  %v3485_v62 = vld [vmem:[%s15221_s2 + $0xa8] sm:$0xff] }
 0x287   :  { %v2300_v37 = vadd.f32 %v2239_v12, %v2174_v58  ;;  %v1075_v50 = vmul.f32 %v15934_v11, %v876_v38  ;;  %v1721_v9 = vmul.f32 %v8730_v4, %v876_v38  ;;  %v1702_v13 = vadd.f32 %v11424_v0, %v1569_v51  ;;  %v16277_v0 = vld [vmem:[#allocation29_spill] sm:$0xff]  ;;  %v16278_v27 = vld [vmem:[#allocation14_spill] sm:$0xff]  ;;  %3626 = vmatpush.msrb.mxu2 %v3486_v32  ;;  %v16287_v32 = vld [vmem:[#allocation24_spill] sm:$0xff] }
 0x288   :  { %16275 = vst [vmem:[#allocation47_spill] sm:$0xff] %v11716_v55  ;;  %v2050_v1 = vadd.f32 %v16276_v53, %v1924_v47  ;;  %v2101_v6 = vmul.f32 %v15909_v41, %v876_v38  ;;  %v2366_v11 = vadd.f32 %v11598_v22, %v2301_v35  ;;  %v2068_v51 = vadd.f32 %v16277_v0, %v1942_v25  ;;  %v16279_v35 = vld [vmem:[#allocation110_spill] sm:$0xff]  ;;  %v16282_v38 = vld [vmem:[#allocation44_spill] sm:$0xff]  ;;  %v16290_v0 = vld [vmem:[#allocation15_spill] sm:$0xff] }
 0x289   :  { %v2365_v4 = vadd.f32 %v11598_v22, %v2300_v37  ;;  %v1139_v7 = vadd.f32 %v1075_v50, %v11582_v26  ;;  %v1784_v45 = vadd.f32 %v1721_v9, %v11605_v20  ;;  %v2208_v48 = vadd.f32 %v11451_v46, %v2082_v59  ;;  %3627 = vmatpush.msrb.mxu2 %v3485_v62  ;;  %v16288_v53 = vld [vmem:[#allocation46_spill] sm:$0xff]  ;;  %v3897_v62 = vld [vmem:[%s15221_s2 + $0xf8] sm:$0xff] }
 0x28a   :  { %v1670_v52 = vadd.f32 %v16278_v27, %v1537_v43  ;;  %v2162_v58 = vadd.f32 %v2101_v6, %v11614_v56  ;;  %v2176_v16 = vadd.f32 %v16279_v35, %v2050_v1  ;;  %v11736_v29 = vmax.f32 %v2383_v3, 0.0  ;;  %v16281_v43 = vld [vmem:[#allocation38_spill] sm:$0xff]  ;;  %v16289_v6 = vld [vmem:[#allocation31_spill] sm:$0xff]  ;;  %v16292_v35 = vld [vmem:[#allocation32_spill] sm:$0xff]  ;;  %3908 = vmatpush.msrb.mxu3 %v3897_v62 }
 0x28b   :  { %v11732_v12 = vmax.f32 %v2365_v4, 0.0  ;;  %v1525_v26 = vadd.f32 %v11633_v42, %v1139_v7  ;;  %v1912_v20 = vadd.f32 %v11642_v21, %v1784_v45  ;;  %v1830_v47 = vadd.f32 %v11430_v36, %v1702_v13  ;;  %v3484_v36 = vld [vmem:[%s15221_s2 + $0xa0] sm:$0xff]  ;;  %v3483_v45 = vld [vmem:[%s15221_s2 + $0x98] sm:$0xff]  ;;  %v16303_v62 = vld [vmem:[#allocation71_spill] sm:$0xff] }
 0x28c   :  { %16280 = vst [vmem:[#allocation22_spill] sm:$0xff] %v11736_v29  ;;  %v2288_v25 = vadd.f32 %v11646_v28, %v2162_v58  ;;  %v2647_v59 = vrot.slane %v11716_v55, 1  ;;  %v11746_v50 = vsel %vm153_vm1, %v2615_v33, %v2617_v14  ;;  %v2334_v21 = vadd.f32 %v11454_v63, %v2208_v48  ;;  %v16284_v28 = vld [vmem:[#allocation6_spill] sm:$0xff]  ;;  %3628 = vmatpush.msrb.mxu2 %v3484_v36  ;;  %v3896_v58 = vld [vmem:[%s15221_s2 + $0xf0] sm:$0xff] }
 0x28d   :  { %v1658_v56 = vadd.f32 %v16281_v43, %v1525_v26  ;;  %v2038_v37 = vadd.f32 %v16282_v38, %v1912_v20  ;;  %16283 = vst [vmem:[#allocation5_spill] sm:$0xff] %v11746_v50  ;;  %v2583_v42 = vrot.slane %v11732_v12, 1  ;;  %v1798_v3 = vadd.f32 %v16284_v28, %v1670_v52  ;;  %v16293_v26 = vld [vmem:[#allocation64_spill] sm:$0xff]  ;;  %v3482_v43 = vld [vmem:[%s15221_s2 + $0x90] sm:$0xff]  ;;  %v3895_v36 = vld [vmem:[%s15221_s2 + $0xe8] sm:$0xff]  ;;  %3909 = vmatpush.msrb.mxu3 %v3896_v58 }
 0x28e   :  { %v2353_v9 = vadd.f32 %v11598_v22, %v2288_v25  ;;  %7602 = vmatmul.msk.f32.gmra.mxu2 %vm2804_vm2, %v11746_v50  ;;  %v16285_v40 = vrot.slane %v11492_v34, 1  ;;  %v2302_v13 = vadd.f32 %v16287_v32, %v2176_v16  ;;  %v2051_v48 = vadd.f32 %v16290_v0, %v11671_v2  ;;  %v16294_v2 = vld [vmem:[#allocation120_spill] sm:$0xff] }
 0x28f   :  { %v1786_v1 = vadd.f32 %v16288_v53, %v1658_v56  ;;  %v2164_v4 = vadd.f32 %v16289_v6, %v2038_v37  ;;  %v11770_v7 = vsel %vm153_vm1, %v2581_v44, %v2583_v42  ;;  %v11780_v27 = vmax.f32 %v2366_v11, 0.0  ;;  %v16295_v56 = vld [vmem:[#allocation124_spill] sm:$0xff]  ;;  %3629 = vmatpush.msrb.mxu2 %v3483_v45  ;;  %v16297_v53 = vld [vmem:[#allocation69_spill] sm:$0xff]  ;;  %3910 = vmatpush.msrb.mxu3 %v3895_v36 }
 0x290   :  { %v11760_v33 = vsel %vm153_vm1, %v16285_v40, %v2647_v59  ;;  %v11782_v52 = vmax.f32 %v2353_v9, 0.0  ;;  %7585 = vmatmul.msk.f32.gmra.mxu1 %vm2804_vm2, %v11770_v7  ;;  %v2384_v44 = vadd.f32 %v11598_v22, %v11566_v10  ;;  %v2194_v16 = vadd.f32 %v16292_v35, %v2068_v51  ;;  %v16296_v9 = vld [vmem:[#allocation23_spill] sm:$0xff] }
 0x291   :  { %16286 = vst [vmem:[#allocation57_spill] sm:$0xff] %v11760_v33  ;;  %7617 = vmatmul.msk.f32.gmra.mxu3 %vm2804_vm2, %v11760_v33  ;;  %v1914_v20 = vadd.f32 %v16293_v26, %v1786_v1  ;;  %v2290_v11 = vadd.f32 %v16294_v2, %v2164_v4  ;;  %v2619_v25 = vrot.slane %v11736_v29, 1  ;;  %v2354_v10 = vadd.f32 %v11598_v22, %v11627_v61  ;;  %v3480_v26 = vld [vmem:[%s15221_s2 + $0x80] sm:$0xff] }
 0x292   :  { %16291 = vst [vmem:[#allocation59_spill] sm:$0xff] %v11782_v52  ;;  %v1958_v38 = vadd.f32 %v16295_v56, %v1830_v47  ;;  %v2399_v37 = vadd.f32 %v11598_v22, %v2334_v21  ;;  %v2559_v51 = vrot.slane %v11782_v52, 1  ;;  %v2209_v28 = vadd.f32 %v11451_v46, %v11575_v23  ;;  %v16298_v47 = vld [vmem:[#allocation30_spill] sm:$0xff]  ;;  %v16299_v21 = vld [vmem:[#allocation103_spill] sm:$0xff]  ;;  %3630 = vmatpush.msrb.mxu2 %v3482_v43 }
 0x293   :  { %v1926_v40 = vadd.f32 %v16296_v9, %v1798_v3  ;;  %v2367_v32 = vadd.f32 %v11598_v22, %v2302_v13  ;;  %v2040_v61 = vadd.f32 %v16297_v53, %v1914_v20  ;;  %v2177_v1 = vadd.f32 %v16298_v47, %v2051_v48  ;;  %v3481_v23 = vld [vmem:[%s15221_s2 + $0x88] sm:$0xff]  ;;  %v16302_v3 = vld [vmem:[#allocation33_spill] sm:$0xff]  ;;  %v16309_v9 = vld [vmem:[#allocation35_spill] sm:$0xff] }
 0x294   :  { %v2649_v6 = vrot.slane %v16299_v21, 1  ;;  %v11816_v4 = vsel %vm153_vm1, %v2557_v8, %v2559_v51  ;;  %v11818_v45 = vmax.f32 %v2384_v44, 0.0  ;;  %v2320_v13 = vadd.f32 %v16302_v3, %v2194_v16  ;;  %v3894_v44 = vld [vmem:[%s15221_s2 + $0xe0] sm:$0xff]  ;;  %3631 = vmatpush.msrb.mxu2 %v3481_v23 }
 0x295   :  { %16300 = vst [vmem:[#allocation111_spill] sm:$0xff] %v11816_v4  ;;  %v2166_v0 = vadd.f32 %v16303_v62, %v2040_v61  ;;  %v11830_v48 = vsel %vm153_vm1, %v2617_v14, %v2619_v25  ;;  %7573 = vmatmul.msk.f32.gmra.mxu0 %vm2804_vm2, %v11816_v4  ;;  %v2585_v8 = vrot.slane %v11780_v27, 1  ;;  %v11838_v58 = vmax.f32 %v2354_v10, 0.0  ;;  %v16307_v20 = vld [vmem:[#allocation25_spill] sm:$0xff]  ;;  %v16308_v10 = vld [vmem:[#allocation68_spill] sm:$0xff]  ;;  %3911 = vmatpush.msrb.mxu3 %v3894_v44 }
 0x296   :  { %16301 = vst [vmem:[#allocation61_spill] sm:$0xff] %v11818_v45  ;;  %v2084_v35 = vadd.f32 %v11436_v15, %v1958_v38  ;;  %v11841_v16 = vmax.f32 %v2399_v37, 0.0  ;;  %7603 = vmatmul.msk.f32.gmra.mxu2 %vm2804_vm2, %v11830_v48  ;;  %v11848_v14 = vsel %vm153_vm1, %v2647_v59, %v2649_v6  ;;  %v2052_v2 = vadd.f32 %v16307_v20, %v1926_v40  ;;  %v2795_v59 = vld [vmem:[%s15221_s2 + $0x38] sm:$0xff]  ;;  %v16312_v20 = vld [vmem:[#allocation41_spill] sm:$0xff] }
 0x297   :  { %16304 = vst [vmem:[#allocation67_spill] sm:$0xff] %v11830_v48  ;;  %v11854_v43 = vmax.f32 %v2367_v32, 0.0  ;;  %v11857_v15 = vadd.f32 %v16308_v10, %v2166_v0  ;;  %v11862_v56 = vsel %vm153_vm1, %v2583_v42, %v2585_v8  ;;  %v3893_v38 = vld [vmem:[%s15221_s2 + $0xd8] sm:$0xff]  ;;  %v2335_v37 = vadd.f32 %v11454_v63, %v2209_v28  ;;  %v2794_v42 = vld [vmem:[%s15221_s2 + $0x30] sm:$0xff]  ;;  %3632 = vmatpush.msrb.mxu2 %v3480_v26  ;;  %v2792_v26 = vld [vmem:[%s15221_s2 + $0x20] sm:$0xff] }
 0x298   :  { %16305 = vst [vmem:[#allocation16_spill] sm:$0xff] %v11841_v16  ;;  %v2355_v36 = vadd.f32 %v11598_v22, %v2290_v11  ;;  %7586 = vmatmul.msk.f32.gmra.mxu1 %vm2804_vm2, %v11862_v56  ;;  %v2117_v40 = vmul.f32 %v15909_v41, %v16309_v9  ;;  %v16310_v32 = vld [vmem:[#allocation27_spill] sm:$0xff]  ;;  %v2385_v61 = vadd.f32 %v11598_v22, %v2320_v13  ;;  %v4180_v28 = vld [vmem:[%s15221_s2 + $0x138] sm:$0xff]  ;;  %v2651_v23 = vrot.slane %v11841_v16, 1  ;;  %v16337_v16 = vld [vmem:[#allocation42_spill] sm:$0xff] }
 0x299   :  { %16306 = vst [vmem:[#allocation108_spill] sm:$0xff] %v11848_v14  ;;  %7618 = vmatmul.msk.f32.gmra.mxu3 %vm2804_vm2, %v11848_v14  ;;  %v2303_v53 = vadd.f32 %v16310_v32, %v2177_v1  ;;  %3279 = vmatpush.msrb.mxu1 %v2795_v59  ;;  %v3892_v11 = vld [vmem:[%s15221_s2 + $0xd0] sm:$0xff]  ;;  %v2210_v47 = vadd.f32 %v11451_v46, %v2084_v35  ;;  %v2561_v41 = vrot.slane %v11838_v58, 1  ;;  %v2793_v1 = vld [vmem:[%s15221_s2 + $0x28] sm:$0xff]  ;;  %v2621_v13 = vrot.slane %v11818_v45, 1 }
 0x29a   :  { %3912 = vmatpush.msrb.mxu3 %v3893_v38  ;;  %4189 = vmatpush.msrb.mxu0 %v4180_v28  ;;  %v2178_v3 = vadd.f32 %v2117_v40, %v2052_v2  ;;  %v2587_v62 = vrot.slane %v11854_v43, 1  ;;  %v3891_v46 = vld [vmem:[%s15221_s2 + $0xc8] sm:$0xff]  ;;  %v11898_v0 = vmax.f32 %v2355_v36, 0.0  ;;  %v2400_v35 = vadd.f32 %v11598_v22, %v2335_v37  ;;  %v3890_v38 = vld [vmem:[%s15221_s2 + $0xc0] sm:$0xff]  ;;  %v2790_v40 = vld [vmem:[%s15221_s2 + $0x10] sm:$0xff] }
 0x29b   :  { %3280 = vmatpush.msrb.mxu1 %v2794_v42  ;;  %v11901_v44 = vsel %vm153_vm1, %v2559_v51, %v2561_v41  ;;  %v2243_v2 = vmul.f32 %v11562_v19, %v16312_v20  ;;  %v11912_v10 = vsel %vm153_vm1, %v2619_v25, %v2621_v13  ;;  %v11916_v51 = vmax.f32 %v2385_v61, 0.0  ;;  %v2791_v42 = vld [vmem:[%s15221_s2 + $0x18] sm:$0xff]  ;;  %v11955_v61 = vpop.f32.mrf.mxu0  ;;  %v16339_v14 = vld [vmem:[#allocation43_spill] sm:$0xff] }
 0x29c   :  { %16311 = vst [vmem:[#allocation8_spill] sm:$0xff] %v11901_v44  ;;  %3913 = vmatpush.msrb.mxu3 %v3892_v11  ;;  %v2368_v59 = vadd.f32 %v11598_v22, %v2303_v53  ;;  %v2336_v37 = vadd.f32 %v11454_v63, %v2210_v47  ;;  %v11928_v19 = vsel %vm153_vm1, %v2649_v6, %v2651_v23  ;;  %v4179_v63 = vld [vmem:[%s15221_s2 + $0x130] sm:$0xff]  ;;  %v11943_v6 = vmax.f32 %v2400_v35, 0.0  ;;  %v2789_v47 = vld [vmem:[%s15221_s2 + $0x8] sm:$0xff] }
 0x29d   :  { %16313 = vst [vmem:[#allocation98_spill] sm:$0xff] %v11912_v10  ;;  %7574 = vmatmul.msk.f32.gmra.mxu0 %vm2804_vm2, %v11901_v44  ;;  %3281 = vmatpush.msrb.mxu1 %v2793_v1  ;;  %v2304_v25 = vadd.f32 %v2243_v2, %v2178_v3  ;;  %v11933_v36 = vsel %vm153_vm1, %v2585_v8, %v2587_v62  ;;  %v2563_v9 = vrot.slane %v11898_v0, 1  ;;  %v4178_v8 = vld [vmem:[%s15221_s2 + $0x128] sm:$0xff]  ;;  %v2623_v32 = vrot.slane %v11916_v51, 1  ;;  %v4177_v3 = vld [vmem:[%s15221_s2 + $0x120] sm:$0xff]  ;;  %v4176_v2 = vld [vmem:[%s15221_s2 + $0x118] sm:$0xff] }
 0x29e   :  { %16314 = vst [vmem:[#allocation21_spill] sm:$0xff] %v11916_v51  ;;  %7604 = vmatmul.msk.f32.gmra.mxu2 %vm2804_vm2, %v11912_v10  ;;  %3914 = vmatpush.msrb.mxu3 %v3891_v46  ;;  %v11953_v53 = vmax.f32 %v2368_v59, 0.0  ;;  %v2401_v11 = vadd.f32 %v11598_v22, %v2336_v37  ;;  %v2356_v28 = vadd.f32 %v11598_v22, %v11665_v39  ;;  %v2653_v46 = vrot.slane %v11943_v6, 1  ;;  %v2788_v39 = vld [vmem:[%s15221_s2] sm:$0xff] }
 0x29f   :  { %16315 = vst [vmem:[#allocation73_spill] sm:$0xff] %v11928_v19  ;;  %3282 = vmatpush.msrb.mxu1 %v2792_v26  ;;  %4190 = vmatpush.msrb.mxu0 %v4179_v63  ;;  %v2369_v1 = vadd.f32 %v11598_v22, %v2304_v25  ;;  %v11969_v35 = vsel %vm153_vm1, %v2561_v41, %v2563_v9  ;;  %v4175_v25 = vld [vmem:[%s15221_s2 + $0x110] sm:$0xff]  ;;  %v4174_v63 = vld [vmem:[%s15221_s2 + $0x108] sm:$0xff] }
 0x2a0   :  { %7587 = vmatmul.msk.f32.gmra.mxu1 %vm2804_vm2, %v11933_v36  ;;  %16316 = vst [vmem:[#allocation12_spill] sm:$0xff] %v11943_v6  ;;  %3915 = vmatpush.msrb.mxu3 %v3890_v38  ;;  %v11975_v26 = vsel %vm153_vm1, %v2621_v13, %v2623_v32  ;;  %v2589_v20 = vrot.slane %v11953_v53, 1  ;;  %v11986_v41 = vsel %vm153_vm1, %v2651_v23, %v2653_v46  ;;  %v11988_v59 = vmax.f32 %v2401_v11, 0.0  ;;  %v4173_v11 = vld [vmem:[%s15221_s2 + $0x100] sm:$0xff] }
 0x2a1   :  { %7619 = vmatmul.msk.f32.gmra.mxu3 %vm2804_vm2, %v11928_v19  ;;  %3283 = vmatpush.msrb.mxu1 %v2791_v42  ;;  %16317 = vst [vmem:[#allocation117_spill] sm:$0xff] %v11969_v35  ;;  %v11990_v13 = vmax.f32 %v2356_v28, 0.0  ;;  %v11997_v37 = vmax.f32 %v2369_v1, 0.0  ;;  %v2357_v23 = vadd.f32 %v11598_v22, %v11857_v15  ;;  %v16322_v28 = vld [vmem:[#allocation53_spill] sm:$0xff] }
 0x2a2   :  { %4191 = vmatpush.msrb.mxu0 %v4178_v8  ;;  %16318 = vst [vmem:[#allocation19_spill] sm:$0xff] %v11975_v26  ;;  %v11995_v38 = vsel %vm153_vm1, %v2587_v62, %v2589_v20  ;;  %v2655_v42 = vrot.slane %v11988_v59, 1 }
 0x2a3   :  { %3284 = vmatpush.msrb.mxu1 %v2790_v40  ;;  %16319 = vst [vmem:[#allocation118_spill] sm:$0xff] %v11986_v41  ;;  %v12009_v62 = vpop.f32.mrf.mxu0  ;;  %v2565_v8 = vrot.slane %v11990_v13, 1  ;;  %v2591_v40 = vrot.slane %v11997_v37, 1  ;;  %v12020_v15 = vmax.f32 %v2357_v23, 0.0 }
 0x2a4   :  { %16320 = vst [vmem:[#allocation114_spill] sm:$0xff] %v11988_v59  ;;  %4192 = vmatpush.msrb.mxu0 %v4177_v3  ;;  %v12032_v3 = vsel %vm153_vm1, %v2653_v46, %v2655_v42 }
 0x2a5   :  { %7575 = vmatmul.msk.f32.gmra.mxu0 %vm2804_vm2, %v11969_v35  ;;  %3285 = vmatpush.msrb.mxu1 %v2789_v47  ;;  %v12018_v22 = vsel %vm153_vm1, %v2563_v9, %v2565_v8  ;;  %v16323_v47 = vrot.slane %v16322_v28, 1  ;;  %16325 = vst [vmem:[#allocation29_spill] sm:$0xff] %v12032_v3  ;;  %v12037_v9 = vsel %vm153_vm1, %v2589_v20, %v2591_v40  ;;  %v12053_v20 = vsel %vm153_vm1, %v2655_v42, 0.0  ;;  %v16333_v42 = vld [vmem:[#allocation84_spill] sm:$0xff] }
 0x2a6   :  { %7605 = vmatmul.msk.f32.gmra.mxu2 %vm2804_vm2, %v11975_v26  ;;  %4193 = vmatpush.msrb.mxu0 %v4176_v2  ;;  %16321 = vst [vmem:[#allocation18_spill] sm:$0xff] %v12018_v22  ;;  %v16334_v19 = vrot.slane %v16333_v42, 1 }
 0x2a7   :  { %3286 = vmatpush.msrb.mxu1 %v2788_v39  ;;  %v12025_v1 = vsel %vm153_vm1, %v2623_v32, %v16323_v47  ;;  %v2567_v32 = vrot.slane %v12020_v15, 1  ;;  %v16326_v39 = vld [vmem:[#allocation11_spill] sm:$0xff]  ;;  %16328 = vst [vmem:[#allocation14_spill] sm:$0xff] %v12053_v20  ;;  %v16329_v47 = vld [vmem:[#allocation49_spill] sm:$0xff] }
 0x2a8   :  { %7588 = vmatmul.msk.f32.gmra.mxu1 %vm2804_vm2, %v11995_v38  ;;  %4194 = vmatpush.msrb.mxu0 %v4175_v25  ;;  %16324 = vst [vmem:[#allocation116_spill] sm:$0xff] %v12025_v1  ;;  %v2659_v2 = vrot.slane %v16326_v39, 2  ;;  %v16327_v25 = vld [vmem:[#allocation10_spill] sm:$0xff] }
 0x2a9   :  { %7620 = vmatmul.msk.f32.gmra.mxu3 %vm2804_vm2, %v11986_v41  ;;  %v2660_v23 = vrot.slane %v16327_v25, 2  ;;  %v12047_v46 = vsel %vm153_vm1, %v2565_v8, %v2567_v32  ;;  %v12065_v8 = vpop.f32.mrf.mxu2 }
 0x2aa   :  { %4195 = vmatpush.msrb.mxu0 %v4174_v63  ;;  %16331 = vst [vmem:[#allocation110_spill] sm:$0xff] %v12065_v8 }
 0x2ab   :  { %v12044_v63 = vpop.f32.mrf.mxu0 }
 0x2ac   :  { %4196 = vmatpush.msrb.mxu0 %v4173_v11  ;;  %v2661_v11 = vsel %vm283_vm0, %v2659_v2, %v2660_v23  ;;  %v16332_v2 = vld [vmem:[#allocation20_spill] sm:$0xff] }
 0x2ad   :  { %7576 = vmatmul.msk.f32.gmra.mxu0 %vm2804_vm2, %v12018_v22  ;;  %v2662_v41 = vrot.slane %v16332_v2, 2 }
 0x2ae   :  { %7606 = vmatmul.msk.f32.gmra.mxu2 %vm2804_vm2, %v12025_v1 }
 0x2b0   :  { %7589 = vmatmul.msk.f32.gmra.mxu1 %vm2804_vm2, %v12037_v9 }
 0x2b1   :  { %7621 = vmatmul.msk.f32.gmra.mxu3 %vm2804_vm2, %v12032_v3  ;;  %v16330_v3 = vrot.slane %v16329_v47, 1 }
 0x2b3   :  { %v12061_v59 = vsel %vm153_vm1, %v2591_v40, %v16330_v3  ;;  %v12068_v6 = vpop.f32.mrf.mxu0  ;;  %v12081_v40 = vpop.f32.mrf.mxu3 }
 0x2b4   :  { %16335 = vst [vmem:[#allocation38_spill] sm:$0xff] %v12081_v40  ;;  %v12085_v3 = vpop.f32.mrf.mxu2 }
 0x2b5   :  { %7577 = vmatmul.msk.f32.gmra.mxu0 %vm2804_vm2, %v12047_v46  ;;  %16336 = vst [vmem:[#allocation44_spill] sm:$0xff] %v12085_v3 }
 0x2b6   :  { %7687 = vmatmul.msk.f32.vlgmr.msrb.gmra.mxu2 %vm2804_vm2, %v2661_v11  ;;  %v12073_v11 = vsel %vm153_vm1, %v2567_v32, %v16334_v19  ;;  %v2664_v19 = vrot.slane %v16337_v16, 2 }
 0x2b8   :  { %7590 = vmatmul.msk.f32.gmra.mxu1 %vm2804_vm2, %v12061_v59 }
 0x2b9   :  { %7622 = vmatmul.msk.f32.gmra.mxu3 %vm2804_vm2, %v12053_v20  ;;  %v2663_v20 = vsel %vm283_vm0, %v2660_v23, %v2662_v41  ;;  %v12091_v23 = vsel %vm283_vm0, %v2662_v41, %v2664_v19 }
 0x2ba   :  { %16338 = vst [vmem:[#allocation6_spill] sm:$0xff] %v12091_v23 }
 0x2bb   :  { %v12088_v32 = vpop.f32.mrf.mxu0  ;;  %v12104_v21 = vpop.f32.mrf.mxu3 }
 0x2bc   :  { %16342 = vst [vmem:[#allocation46_spill] sm:$0xff] %v12104_v21  ;;  %v16346_v21 = vld [vmem:[#allocation9_spill] sm:$0xff] }
 0x2bd   :  { %7578 = vmatmul.msk.f32.gmra.mxu0 %vm2804_vm2, %v12073_v11 }
 0x2be   :  { %7688 = vmatmul.msk.f32.gmra.mxu2 %vm2804_vm2, %v2663_v20  ;;  %v16341_v20 = vld [vmem:[#allocation51_spill] sm:$0xff] }
 0x2bf   :  { %v2666_v40 = vrot.slane %v16341_v20, 2 }
 0x2c0   :  { %7623 = vmatmul.msk.f32.vlgmr.msrb.gmra.mxu1 %vm2804_vm2, %v16326_v39  ;;  %v12101_v39 = vpop.f32.mrf.mxu2 }
 0x2c1   :  { %7751 = vmatmul.msk.f32.vlgmr.msrb.gmra.mxu3 %vm2804_vm2, %v16332_v2  ;;  %16340 = vst [vmem:[#allocation24_spill] sm:$0xff] %v12101_v39  ;;  %v12109_v33 = vsel %vm283_vm0, %v2664_v19, %v2666_v40  ;;  %v12144_v39 = vpop.f32.mrf.mxu1 }
 0x2c2   :  { %16343 = vst [vmem:[#allocation31_spill] sm:$0xff] %v12109_v33 }
 0x2c3   :  { %v12106_v41 = vpop.f32.mrf.mxu0  ;;  %v12122_v55 = vpop.f32.mrf.mxu3 }
 0x2c4   :  { %16347 = vst [vmem:[#allocation32_spill] sm:$0xff] %v12122_v55  ;;  %v16351_v55 = vld [vmem:[#allocation45_spill] sm:$0xff] }
 0x2c5   :  { %7813 = vmatmul.msk.f32.vlgmr.msrb.gmra.mxu0 %vm2804_vm2, %v16339_v14  ;;  %v16344_v14 = vld [vmem:[#allocation54_spill] sm:$0xff] }
 0x2c6   :  { %7689 = vmatmul.msk.f32.gmra.mxu2 %vm2804_vm2, %v12091_v23  ;;  %v2668_v23 = vrot.slane %v16346_v21, 2 }
 0x2c8   :  { %7624 = vmatmul.msk.f32.gmra.mxu1 %vm2804_vm2, %v16327_v25  ;;  %v12119_v25 = vpop.f32.mrf.mxu2  ;;  %v12127_v34 = vsel %vm283_vm0, %v2666_v40, %v2668_v23 }
 0x2c9   :  { %7752 = vmatmul.msk.f32.gmra.mxu3 %vm2804_vm2, %v16337_v16  ;;  %16345 = vst [vmem:[#allocation15_spill] sm:$0xff] %v12119_v25  ;;  %v12164_v8 = vpop.f32.mrf.mxu1 }
 0x2ca   :  { %16348 = vst [vmem:[#allocation64_spill] sm:$0xff] %v12127_v34 }
 0x2cb   :  { %v12124_v19 = vpop.f32.mrf.mxu0  ;;  %v12140_v25 = vpop.f32.mrf.mxu3 }
 0x2cc   :  { %16352 = vst [vmem:[#allocation124_spill] sm:$0xff] %v12140_v25  ;;  %v16356_v25 = vld [vmem:[#allocation58_spill] sm:$0xff] }
 0x2cd   :  { %7814 = vmatmul.msk.f32.gmra.mxu0 %vm2804_vm2, %v16344_v14  ;;  %v16349_v14 = vld [vmem:[#allocation17_spill] sm:$0xff] }
 0x2ce   :  { %7690 = vmatmul.msk.f32.gmra.mxu2 %vm2804_vm2, %v12109_v33  ;;  %v2670_v33 = vrot.slane %v16351_v55, 2 }
 0x2d0   :  { %7625 = vmatmul.msk.f32.gmra.mxu1 %vm2804_vm2, %v16332_v2  ;;  %v12137_v2 = vpop.f32.mrf.mxu2 }
 0x2d1   :  { %7753 = vmatmul.msk.f32.gmra.mxu3 %vm2804_vm2, %v16341_v20  ;;  %16350 = vst [vmem:[#allocation120_spill] sm:$0xff] %v12137_v2  ;;  %v2672_v2 = vrot.slane %v16356_v25, 2  ;;  %v12184_v28 = vpop.f32.mrf.mxu1 }
 0x2d3   :  { %v12142_v40 = vpop.f32.mrf.mxu0  ;;  %v12160_v3 = vpop.f32.mrf.mxu3 }
 0x2d4   :  { %16357 = vst [vmem:[#allocation30_spill] sm:$0xff] %v12160_v3 }
 0x2d5   :  { %7815 = vmatmul.msk.f32.gmra.mxu0 %vm2804_vm2, %v16349_v14  ;;  %v12147_v14 = vsel %vm283_vm0, %v2668_v23, %v2670_v33 }
 0x2d6   :  { %7691 = vmatmul.msk.f32.gmra.mxu2 %vm2804_vm2, %v12127_v34  ;;  %16353 = vst [vmem:[#allocation23_spill] sm:$0xff] %v12147_v14  ;;  %v16354_v34 = vld [vmem:[#allocation26_spill] sm:$0xff] }
 0x2d8   :  { %7626 = vmatmul.msk.f32.gmra.mxu1 %vm2804_vm2, %v16337_v16  ;;  %v12157_v16 = vpop.f32.mrf.mxu2 }
 0x2d9   :  { %7754 = vmatmul.msk.f32.gmra.mxu3 %vm2804_vm2, %v16346_v21  ;;  %16355 = vst [vmem:[#allocation69_spill] sm:$0xff] %v12157_v16  ;;  %v12204_v51 = vpop.f32.mrf.mxu1 }
 0x2db   :  { %v12162_v23 = vpop.f32.mrf.mxu0  ;;  %v12180_v1 = vpop.f32.mrf.mxu3 }
 0x2dc   :  { %16362 = vst [vmem:[#allocation25_spill] sm:$0xff] %v12180_v1 }
 0x2dd   :  { %7816 = vmatmul.msk.f32.gmra.mxu0 %vm2804_vm2, %v16354_v34  ;;  %v12167_v34 = vsel %vm283_vm0, %v2670_v33, %v2672_v2 }
 0x2de   :  { %7692 = vmatmul.msk.f32.gmra.mxu2 %vm2804_vm2, %v12147_v14  ;;  %16358 = vst [vmem:[#allocation33_spill] sm:$0xff] %v12167_v34  ;;  %v16359_v14 = vld [vmem:[#allocation60_spill] sm:$0xff] }
 0x2e0   :  { %7627 = vmatmul.msk.f32.gmra.mxu1 %vm2804_vm2, %v16341_v20  ;;  %v12177_v3 = vpop.f32.mrf.mxu2  ;;  %v16361_v20 = vld [vmem:[#allocation77_spill] sm:$0xff] }
 0x2e1   :  { %7755 = vmatmul.msk.f32.gmra.mxu3 %vm2804_vm2, %v16351_v55  ;;  %16360 = vst [vmem:[#allocation71_spill] sm:$0xff] %v12177_v3  ;;  %v2674_v16 = vrot.slane %v16361_v20, 2  ;;  %v12224_v45 = vpop.f32.mrf.mxu1 }
 0x2e3   :  { %v12182_v33 = vpop.f32.mrf.mxu0  ;;  %v12200_v26 = vpop.f32.mrf.mxu3 }
 0x2e4   :  { %16367 = vst [vmem:[#allocation27_spill] sm:$0xff] %v12200_v26 }
 0x2e5   :  { %7817 = vmatmul.msk.f32.gmra.mxu0 %vm2804_vm2, %v16359_v14  ;;  %v12187_v14 = vsel %vm283_vm0, %v2672_v2, %v2674_v16 }
 0x2e6   :  { %7693 = vmatmul.msk.f32.gmra.mxu2 %vm2804_vm2, %v12167_v34  ;;  %16363 = vst [vmem:[#allocation68_spill] sm:$0xff] %v12187_v14  ;;  %v16364_v34 = vld [vmem:[#allocation80_spill] sm:$0xff] }
 0x2e8   :  { %7628 = vmatmul.msk.f32.gmra.mxu1 %vm2804_vm2, %v16346_v21  ;;  %v12197_v1 = vpop.f32.mrf.mxu2  ;;  %v16366_v21 = vld [vmem:[#allocation88_spill] sm:$0xff] }
 0x2e9   :  { %7756 = vmatmul.msk.f32.gmra.mxu3 %vm2804_vm2, %v16356_v25  ;;  %16365 = vst [vmem:[#allocation35_spill] sm:$0xff] %v12197_v1  ;;  %v2676_v3 = vrot.slane %v16366_v21, 2 }
 0x2eb   :  { %v12202_v2 = vpop.f32.mrf.mxu0  ;;  %v12220_v10 = vpop.f32.mrf.mxu3 }
 0x2ec   :  { %16372 = vst [vmem:[#allocation10_spill] sm:$0xff] %v12220_v10 }
 0x2ed   :  { %7818 = vmatmul.msk.f32.gmra.mxu0 %vm2804_vm2, %v16364_v34  ;;  %v12207_v34 = vsel %vm283_vm0, %v2674_v16, %v2676_v3 }
 0x2ee   :  { %7694 = vmatmul.msk.f32.gmra.mxu2 %vm2804_vm2, %v12187_v14  ;;  %16368 = vst [vmem:[#allocation41_spill] sm:$0xff] %v12207_v34  ;;  %v16369_v14 = vld [vmem:[#allocation90_spill] sm:$0xff] }
 0x2f0   :  { %7629 = vmatmul.msk.f32.gmra.mxu1 %vm2804_vm2, %v16351_v55  ;;  %v12217_v26 = vpop.f32.mrf.mxu2  ;;  %v16371_v55 = vld [vmem:[#allocation72_spill] sm:$0xff] }
 0x2f1   :  { %7757 = vmatmul.msk.f32.gmra.mxu3 %vm2804_vm2, %v16361_v20  ;;  %16370 = vst [vmem:[#allocation11_spill] sm:$0xff] %v12217_v26  ;;  %v2678_v1 = vrot.slane %v16371_v55, 2 }
 0x2f3   :  { %v12222_v16 = vpop.f32.mrf.mxu0  ;;  %v12240_v48 = vpop.f32.mrf.mxu3 }
 0x2f4   :  { %16377 = vst [vmem:[#allocation84_spill] sm:$0xff] %v12240_v48 }
 0x2f5   :  { %7819 = vmatmul.msk.f32.gmra.mxu0 %vm2804_vm2, %v16369_v14  ;;  %v12227_v14 = vsel %vm283_vm0, %v2676_v3, %v2678_v1 }
 0x2f6   :  { %7695 = vmatmul.msk.f32.gmra.mxu2 %vm2804_vm2, %v12207_v34  ;;  %16373 = vst [vmem:[#allocation49_spill] sm:$0xff] %v12227_v14  ;;  %v16374_v34 = vld [vmem:[#allocation95_spill] sm:$0xff] }
 0x2f8   :  { %7630 = vmatmul.msk.f32.gmra.mxu1 %vm2804_vm2, %v16356_v25  ;;  %v12237_v10 = vpop.f32.mrf.mxu2  ;;  %v16376_v25 = vld [vmem:[#allocation2_spill] sm:$0xff] }
 0x2f9   :  { %7758 = vmatmul.msk.f32.gmra.mxu3 %vm2804_vm2, %v16366_v21  ;;  %16375 = vst [vmem:[#allocation20_spill] sm:$0xff] %v12237_v10  ;;  %v2680_v26 = vrot.slane %v16376_v25, 2 }
 0x2fb   :  { %v12242_v3 = vpop.f32.mrf.mxu0  ;;  %v12260_v50 = vpop.f32.mrf.mxu3 }
 0x2fc   :  { %v12244_v29 = vpop.f32.mrf.mxu1  ;;  %16382 = vst [vmem:[#allocation54_spill] sm:$0xff] %v12260_v50 }
 0x2fd   :  { %7820 = vmatmul.msk.f32.gmra.mxu0 %vm2804_vm2, %v16374_v34  ;;  %v12247_v34 = vsel %vm283_vm0, %v2678_v1, %v2680_v26 }
 0x2fe   :  { %7696 = vmatmul.msk.f32.gmra.mxu2 %vm2804_vm2, %v12227_v14  ;;  %16378 = vst [vmem:[#allocation42_spill] sm:$0xff] %v12247_v34  ;;  %v16379_v14 = vld [vmem:[#allocation83_spill] sm:$0xff] }
 0x300   :  { %7631 = vmatmul.msk.f32.gmra.mxu1 %vm2804_vm2, %v16361_v20  ;;  %v16381_v20 = vld [vmem:[#allocation106_spill] sm:$0xff] }
 0x301   :  { %7759 = vmatmul.msk.f32.gmra.mxu3 %vm2804_vm2, %v16371_v55  ;;  %v2682_v10 = vrot.slane %v16381_v20, 2 }
 0x303   :  { %v12262_v1 = vpop.f32.mrf.mxu0  ;;  %v12265_v31 = vsel %vm283_vm0, %v2680_v26, %v2682_v10 }
 0x304   :  { %16383 = vst [vmem:[#allocation130_spill] sm:$0xff] %v12265_v31 }
 0x305   :  { %7821 = vmatmul.msk.f32.gmra.mxu0 %vm2804_vm2, %v16379_v14 }
 0x306   :  { %7697 = vmatmul.msk.f32.gmra.mxu2 %vm2804_vm2, %v12247_v34  ;;  %v16385_v34 = vld [vmem:[#allocation109_spill] sm:$0xff] }
 0x308   :  { %7632 = vmatmul.msk.f32.gmra.mxu1 %vm2804_vm2, %v16366_v21  ;;  %v2684_v21 = vrot.slane %v11403_v57, 2 }
 0x309   :  { %7760 = vmatmul.msk.f32.gmra.mxu3 %vm2804_vm2, %v16376_v25  ;;  %v12257_v48 = vpop.f32.mrf.mxu2 }
 0x30a   :  { %16380 = vst [vmem:[#allocation43_spill] sm:$0xff] %v12257_v48 }
 0x30d   :  { %v12267_v14 = vpop.f32.mrf.mxu1  ;;  %7822 = vmatmul.msk.f32.gmra.mxu0 %vm2804_vm2, %v16385_v34 }
 0x30e   :  { %16384 = vst [vmem:[#allocation131_spill] sm:$0xff] %v12267_v14  ;;  %7698 = vmatmul.msk.f32.gmra.mxu2 %vm2804_vm2, %v12265_v31  ;;  %v12285_v14 = vsel %vm283_vm0, %v2682_v10, %v2684_v21  ;;  %v16390_v31 = vld [vmem:[#allocation125_spill] sm:$0xff] }
 0x30f   :  { %16388 = vst [vmem:[#allocation134_spill] sm:$0xff] %v12285_v14 }
 0x310   :  { %7633 = vmatmul.msk.f32.gmra.mxu1 %vm2804_vm2, %v16371_v55  ;;  %v2686_v55 = vrot.slane %v11636_v24, 2 }
 0x311   :  { %7761 = vmatmul.msk.f32.gmra.mxu3 %vm2804_vm2, %v16381_v20  ;;  %v12277_v50 = vpop.f32.mrf.mxu2 }
 0x312   :  { %16386 = vst [vmem:[#allocation132_spill] sm:$0xff] %v12277_v50  ;;  %v12282_v48 = vpop.f32.mrf.mxu0 }
 0x314   :  { %v12280_v26 = vpop.f32.mrf.mxu3 }
 0x315   :  { %16387 = vst [vmem:[#allocation133_spill] sm:$0xff] %v12280_v26  ;;  %v12287_v34 = vpop.f32.mrf.mxu1  ;;  %7823 = vmatmul.msk.f32.gmra.mxu0 %vm2804_vm2, %v16390_v31 }
 0x316   :  { %16389 = vst [vmem:[#allocation135_spill] sm:$0xff] %v12287_v34  ;;  %7699 = vmatmul.msk.f32.gmra.mxu2 %vm2804_vm2, %v12285_v14  ;;  %v12305_v34 = vsel %vm283_vm0, %v2684_v21, %v2686_v55  ;;  %v2688_v14 = vrot.slane %v11782_v52, 2 }
 0x317   :  { %16393 = vst [vmem:[#allocation138_spill] sm:$0xff] %v12305_v34 }
 0x318   :  { %7634 = vmatmul.msk.f32.gmra.mxu1 %vm2804_vm2, %v16376_v25 }
 0x319   :  { %7762 = vmatmul.msk.f32.gmra.mxu3 %vm2804_vm2, %v11403_v57  ;;  %v12297_v26 = vpop.f32.mrf.mxu2 }
 0x31a   :  { %16391 = vst [vmem:[#allocation136_spill] sm:$0xff] %v12297_v26  ;;  %v12302_v50 = vpop.f32.mrf.mxu0  ;;  %v12325_v26 = vsel %vm283_vm0, %v2686_v55, %v2688_v14 }
 0x31b   :  { %16397 = vst [vmem:[#allocation142_spill] sm:$0xff] %v12325_v26 }
 0x31c   :  { %v12300_v10 = vpop.f32.mrf.mxu3 }
 0x31d   :  { %16392 = vst [vmem:[#allocation137_spill] sm:$0xff] %v12300_v10  ;;  %v12307_v31 = vpop.f32.mrf.mxu1  ;;  %7824 = vmatmul.msk.f32.gmra.mxu0 %vm2804_vm2, %v11682_v30 }
 0x31e   :  { %16394 = vst [vmem:[#allocation139_spill] sm:$0xff] %v12307_v31  ;;  %7700 = vmatmul.msk.f32.gmra.mxu2 %vm2804_vm2, %v12305_v34 }
 0x320   :  { %7635 = vmatmul.msk.f32.gmra.mxu1 %vm2804_vm2, %v16381_v20  ;;  %v2690_v20 = vrot.slane %v11838_v58, 2 }
 0x321   :  { %7763 = vmatmul.msk.f32.gmra.mxu3 %vm2804_vm2, %v11636_v24  ;;  %v12317_v10 = vpop.f32.mrf.mxu2 }
 0x322   :  { %16395 = vst [vmem:[#allocation140_spill] sm:$0xff] %v12317_v10  ;;  %v12322_v25 = vpop.f32.mrf.mxu0  ;;  %v12345_v10 = vsel %vm283_vm0, %v2688_v14, %v2690_v20 }
 0x323   :  { %16401 = vst [vmem:[#allocation146_spill] sm:$0xff] %v12345_v10 }
 0x324   :  { %v12320_v21 = vpop.f32.mrf.mxu3 }
 0x325   :  { %16396 = vst [vmem:[#allocation141_spill] sm:$0xff] %v12320_v21  ;;  %v12327_v30 = vpop.f32.mrf.mxu1  ;;  %7825 = vmatmul.msk.f32.gmra.mxu0 %vm2804_vm2, %v11816_v4 }
 0x326   :  { %16398 = vst [vmem:[#allocation143_spill] sm:$0xff] %v12327_v30  ;;  %7701 = vmatmul.msk.f32.gmra.mxu2 %vm2804_vm2, %v12325_v26  ;;  %v2692_v26 = vrot.slane %v11898_v0, 2 }
 0x328   :  { %7636 = vmatmul.msk.f32.gmra.mxu1 %vm2804_vm2, %v11403_v57 }
 0x329   :  { %7764 = vmatmul.msk.f32.gmra.mxu3 %vm2804_vm2, %v11782_v52  ;;  %v12337_v21 = vpop.f32.mrf.mxu2 }
 0x32a   :  { %16399 = vst [vmem:[#allocation144_spill] sm:$0xff] %v12337_v21  ;;  %v12341_v55 = vpop.f32.mrf.mxu0  ;;  %v12365_v21 = vsel %vm283_vm0, %v2690_v20, %v2692_v26  ;;  %v2694_v20 = vrot.slane %v11990_v13, 2 }
 0x32b   :  { %16405 = vst [vmem:[#allocation150_spill] sm:$0xff] %v12365_v21 }
 0x32c   :  { %v12339_v34 = vpop.f32.mrf.mxu3 }
 0x32d   :  { %16400 = vst [vmem:[#allocation145_spill] sm:$0xff] %v12339_v34  ;;  %v12347_v4 = vpop.f32.mrf.mxu1  ;;  %7826 = vmatmul.msk.f32.gmra.mxu0 %vm2804_vm2, %v11901_v44 }
 0x32e   :  { %16402 = vst [vmem:[#allocation147_spill] sm:$0xff] %v12347_v4  ;;  %7702 = vmatmul.msk.f32.gmra.mxu2 %vm2804_vm2, %v12345_v10 }
 0x330   :  { %7637 = vmatmul.msk.f32.gmra.mxu1 %vm2804_vm2, %v11636_v24 }
 0x331   :  { %7765 = vmatmul.msk.f32.gmra.mxu3 %vm2804_vm2, %v11838_v58  ;;  %v12357_v34 = vpop.f32.mrf.mxu2 }
 0x332   :  { %16403 = vst [vmem:[#allocation148_spill] sm:$0xff] %v12357_v34  ;;  %v12362_v57 = vpop.f32.mrf.mxu0  ;;  %v12383_v34 = vsel %vm283_vm0, %v2692_v26, %v2694_v20  ;;  %v2696_v26 = vrot.slane %v12020_v15, 2 }
 0x333   :  { %16408 = vst [vmem:[#allocation153_spill] sm:$0xff] %v12383_v34 }
 0x334   :  { %v12360_v14 = vpop.f32.mrf.mxu3 }
 0x335   :  { %16404 = vst [vmem:[#allocation149_spill] sm:$0xff] %v12360_v14  ;;  %v12367_v44 = vpop.f32.mrf.mxu1  ;;  %7827 = vmatmul.msk.f32.gmra.mxu0 %vm2804_vm2, %v11969_v35 }
 0x336   :  { %16406 = vst [vmem:[#allocation151_spill] sm:$0xff] %v12367_v44  ;;  %7703 = vmatmul.msk.f32.gmra.mxu2 %vm2804_vm2, %v12365_v21 }
 0x338   :  { %7638 = vmatmul.msk.f32.gmra.mxu1 %vm2804_vm2, %v11782_v52 }
 0x339   :  { %7766 = vmatmul.msk.f32.gmra.mxu3 %vm2804_vm2, %v11898_v0  ;;  %v3634_v14 = vpop.f32.mrf.mxu2 }
 0x33a   :  { %v12379_v24 = vpop.f32.mrf.mxu0 }
 0x33c   :  { %v12377_v10 = vpop.f32.mrf.mxu3 }
 0x33d   :  { %16407 = vst [vmem:[#allocation152_spill] sm:$0xff] %v12377_v10  ;;  %v3288_v35 = vpop.f32.mrf.mxu1  ;;  %7828 = vmatmul.msk.f32.gmra.mxu0 %vm2804_vm2, %v12018_v22  ;;  %v12396_v22 = vsel %vm283_vm0, %v2694_v20, %v2696_v26 }
 0x33e   :  { %7704 = vmatmul.msk.f32.gmra.mxu2 %vm2804_vm2, %v12383_v34  ;;  %v3289_v21 = vadd.f32 %v3288_v35, %v11955_v61 }
 0x340   :  { %v3826_v10 = vadd.f32 %v3634_v14, %v3289_v21  ;;  %7639 = vmatmul.msk.f32.gmra.mxu1 %vm2804_vm2, %v11838_v58 }
 0x341   :  { %7767 = vmatmul.msk.f32.gmra.mxu3 %vm2804_vm2, %v11990_v13  ;;  %v3637_v52 = vpop.f32.mrf.mxu2 }
 0x342   :  { %v4198_v4 = vpop.f32.mrf.mxu0 }
 0x344   :  { %v3917_v44 = vpop.f32.mrf.mxu3 }
 0x345   :  { %v4109_v30 = vadd.f32 %v3917_v44, %v3826_v10  ;;  %v3291_v34 = vpop.f32.mrf.mxu1  ;;  %7829 = vmatmul.msk.f32.gmra.mxu0 %vm2804_vm2, %v12047_v46 }
 0x346   :  { %7705 = vmatmul.msk.f32.gmra.mxu2 %vm2804_vm2, %v12396_v22  ;;  %v3292_v61 = vadd.f32 %v3291_v34, %v12009_v62 }
 0x347   :  { %v12398_v31 = vadd.f32 %v4198_v4, %v4109_v30  ;;  %v2698_v4 = vrot.slane %v16333_v42, 2 }
 0x348   :  { %v3827_v35 = vadd.f32 %v3637_v52, %v3292_v61  ;;  %7640 = vmatmul.msk.f32.gmra.mxu1 %vm2804_vm2, %v11898_v0 }
 0x349   :  { %16409 = vst [vmem:[#allocation154_spill] sm:$0xff] %v12398_v31  ;;  %7768 = vmatmul.msk.f32.gmra.mxu3 %vm2804_vm2, %v12020_v15  ;;  %v3640_v44 = vpop.f32.mrf.mxu2  ;;  %v12411_v14 = vsel %vm283_vm0, %v2696_v26, %v2698_v4  ;;  %v16412_v26 = vld [vmem:[#allocation85_spill] sm:$0xff] }
 0x34a   :  { %v4201_v30 = vpop.f32.mrf.mxu0  ;;  %16410 = vst [vmem:[#allocation155_spill] sm:$0xff] %v12411_v14  ;;  %v2700_v61 = vrot.slane %v16412_v26, 2 }
 0x34c   :  { %v3920_v10 = vpop.f32.mrf.mxu3 }
 0x34d   :  { %v4110_v21 = vadd.f32 %v3920_v10, %v3827_v35  ;;  %v3294_v31 = vpop.f32.mrf.mxu1  ;;  %7830 = vmatmul.msk.f32.gmra.mxu0 %vm2804_vm2, %v12073_v11 }
 0x34e   :  { %7706 = vmatmul.msk.f32.gmra.mxu2 %vm2804_vm2, %v12411_v14  ;;  %v3295_v34 = vadd.f32 %v3294_v31, %v12044_v63  ;;  %v16415_v31 = vld [vmem:[#allocation87_spill] sm:$0xff] }
 0x34f   :  { %v12413_v20 = vadd.f32 %v4201_v30, %v4110_v21  ;;  %v12426_v21 = vsel %vm283_vm0, %v2698_v4, %v2700_v61 }
 0x350   :  { %v3828_v52 = vadd.f32 %v3640_v44, %v3295_v34  ;;  %7641 = vmatmul.msk.f32.gmra.mxu1 %vm2804_vm2, %v11990_v13  ;;  %16413 = vst [vmem:[#allocation85_spill] sm:$0xff] %v12426_v21  ;;  %v16416_v34 = vld [vmem:[#allocation70_spill] sm:$0xff] }
 0x351   :  { %16411 = vst [vmem:[#allocation156_spill] sm:$0xff] %v12413_v20  ;;  %7769 = vmatmul.msk.f32.gmra.mxu3 %vm2804_vm2, %v16333_v42  ;;  %v3643_v62 = vpop.f32.mrf.mxu2 }
 0x352   :  { %v4204_v10 = vpop.f32.mrf.mxu0 }
 0x354   :  { %v3923_v35 = vpop.f32.mrf.mxu3 }
 0x355   :  { %v4111_v30 = vadd.f32 %v3923_v35, %v3828_v52  ;;  %v3297_v14 = vpop.f32.mrf.mxu1  ;;  %7831 = vmatmul.msk.f32.gmra.mxu0 %vm2804_vm2, %v16415_v31  ;;  %v2702_v52 = vrot.slane %v16416_v34, 2 }
 0x356   :  { %7707 = vmatmul.msk.f32.gmra.mxu2 %vm2804_vm2, %v12426_v21  ;;  %v3298_v63 = vadd.f32 %v3297_v14, %v12068_v6  ;;  %v16419_v6 = vld [vmem:[#allocation3_spill] sm:$0xff] }
 0x357   :  { %v12428_v20 = vadd.f32 %v4204_v10, %v4111_v30 }
 0x358   :  { %v3829_v44 = vadd.f32 %v3643_v62, %v3298_v63  ;;  %7642 = vmatmul.msk.f32.gmra.mxu1 %vm2804_vm2, %v12020_v15  ;;  %v16420_v63 = vld [vmem:[#allocation74_spill] sm:$0xff] }
 0x359   :  { %16414 = vst [vmem:[#allocation157_spill] sm:$0xff] %v12428_v20  ;;  %7770 = vmatmul.msk.f32.gmra.mxu3 %vm2804_vm2, %v16412_v26  ;;  %v3646_v4 = vpop.f32.mrf.mxu2  ;;  %v12441_v20 = vsel %vm283_vm0, %v2700_v61, %v2702_v52 }
 0x35a   :  { %v4207_v10 = vpop.f32.mrf.mxu0  ;;  %16417 = vst [vmem:[#allocation70_spill] sm:$0xff] %v12441_v20 }
 0x35c   :  { %v3926_v35 = vpop.f32.mrf.mxu3 }
 0x35d   :  { %v4112_v30 = vadd.f32 %v3926_v35, %v3829_v44  ;;  %v3300_v21 = vpop.f32.mrf.mxu1  ;;  %7832 = vmatmul.msk.f32.gmra.mxu0 %vm2804_vm2, %v16419_v6  ;;  %v2704_v44 = vrot.slane %v16420_v63, 2 }
 0x35e   :  { %7708 = vmatmul.msk.f32.gmra.mxu2 %vm2804_vm2, %v12441_v20  ;;  %v3301_v14 = vadd.f32 %v3300_v21, %v12088_v32  ;;  %v16423_v32 = vld [vmem:[#allocation86_spill] sm:$0xff] }
 0x35f   :  { %v12443_v31 = vadd.f32 %v4207_v10, %v4112_v30 }
 0x360   :  { %v3830_v62 = vadd.f32 %v3646_v4, %v3301_v14  ;;  %7643 = vmatmul.msk.f32.gmra.mxu1 %vm2804_vm2, %v16333_v42  ;;  %v16424_v14 = vld [vmem:[#allocation102_spill] sm:$0xff] }
 0x361   :  { %16418 = vst [vmem:[#allocation158_spill] sm:$0xff] %v12443_v31  ;;  %7771 = vmatmul.msk.f32.gmra.mxu3 %vm2804_vm2, %v16416_v34  ;;  %v3649_v61 = vpop.f32.mrf.mxu2  ;;  %v12456_v31 = vsel %vm283_vm0, %v2702_v52, %v2704_v44 }
 0x362   :  { %v4210_v10 = vpop.f32.mrf.mxu0  ;;  %16421 = vst [vmem:[#allocation74_spill] sm:$0xff] %v12456_v31 }
 0x364   :  { %v3929_v35 = vpop.f32.mrf.mxu3 }
 0x365   :  { %v4113_v30 = vadd.f32 %v3929_v35, %v3830_v62  ;;  %v3303_v20 = vpop.f32.mrf.mxu1  ;;  %7833 = vmatmul.msk.f32.gmra.mxu0 %vm2804_vm2, %v16423_v32  ;;  %v2706_v62 = vrot.slane %v16424_v14, 2 }
 0x366   :  { %7709 = vmatmul.msk.f32.gmra.mxu2 %vm2804_vm2, %v12456_v31  ;;  %v3304_v21 = vadd.f32 %v3303_v20, %v12106_v41  ;;  %v16427_v41 = vld [vmem:[#allocation105_spill] sm:$0xff] }
 0x367   :  { %v12458_v6 = vadd.f32 %v4210_v10, %v4113_v30 }
 0x368   :  { %v3831_v4 = vadd.f32 %v3649_v61, %v3304_v21  ;;  %7644 = vmatmul.msk.f32.gmra.mxu1 %vm2804_vm2, %v16412_v26  ;;  %v2708_v21 = vrot.slane %v11365_v18, 2 }
 0x369   :  { %16422 = vst [vmem:[#allocation159_spill] sm:$0xff] %v12458_v6  ;;  %7772 = vmatmul.msk.f32.gmra.mxu3 %vm2804_vm2, %v16420_v63  ;;  %v3652_v52 = vpop.f32.mrf.mxu2  ;;  %v12471_v6 = vsel %vm283_vm0, %v2704_v44, %v2706_v62 }
 0x36a   :  { %v4213_v10 = vpop.f32.mrf.mxu0  ;;  %16425 = vst [vmem:[#allocation102_spill] sm:$0xff] %v12471_v6 }
 0x36c   :  { %v3932_v35 = vpop.f32.mrf.mxu3 }
 0x36d   :  { %v4114_v30 = vadd.f32 %v3932_v35, %v3831_v4  ;;  %v3306_v31 = vpop.f32.mrf.mxu1  ;;  %7834 = vmatmul.msk.f32.gmra.mxu0 %vm2804_vm2, %v16427_v41 }
 0x36e   :  { %7710 = vmatmul.msk.f32.gmra.mxu2 %vm2804_vm2, %v12471_v6  ;;  %v3307_v20 = vadd.f32 %v3306_v31, %v12124_v19  ;;  %v16430_v19 = vld [vmem:[#allocation121_spill] sm:$0xff] }
 0x36f   :  { %v12473_v32 = vadd.f32 %v4213_v10, %v4114_v30  ;;  %v12486_v30 = vsel %vm283_vm0, %v2706_v62, %v2708_v21 }
 0x370   :  { %v3832_v61 = vadd.f32 %v3652_v52, %v3307_v20  ;;  %7645 = vmatmul.msk.f32.gmra.mxu1 %vm2804_vm2, %v16416_v34  ;;  %16428 = vst [vmem:[#allocation105_spill] sm:$0xff] %v12486_v30  ;;  %v2710_v20 = vrot.slane %v11616_v17, 2 }
 0x371   :  { %16426 = vst [vmem:[#allocation160_spill] sm:$0xff] %v12473_v32  ;;  %7773 = vmatmul.msk.f32.gmra.mxu3 %vm2804_vm2, %v16424_v14  ;;  %v3655_v44 = vpop.f32.mrf.mxu2 }
 0x372   :  { %v4216_v35 = vpop.f32.mrf.mxu0 }
 0x374   :  { %v3935_v4 = vpop.f32.mrf.mxu3 }
 0x375   :  { %v4115_v10 = vadd.f32 %v3935_v4, %v3832_v61  ;;  %v3309_v6 = vpop.f32.mrf.mxu1  ;;  %7835 = vmatmul.msk.f32.gmra.mxu0 %vm2804_vm2, %v16430_v19 }
 0x376   :  { %7711 = vmatmul.msk.f32.gmra.mxu2 %vm2804_vm2, %v12486_v30  ;;  %v3310_v31 = vadd.f32 %v3309_v6, %v12142_v40 }
 0x377   :  { %v12488_v32 = vadd.f32 %v4216_v35, %v4115_v10  ;;  %v12501_v10 = vsel %vm283_vm0, %v2708_v21, %v2710_v20  ;;  %v2712_v21 = vrot.slane %v11732_v12, 2 }
 0x378   :  { %v3833_v52 = vadd.f32 %v3655_v44, %v3310_v31  ;;  %7646 = vmatmul.msk.f32.gmra.mxu1 %vm2804_vm2, %v16420_v63 }
 0x379   :  { %16429 = vst [vmem:[#allocation161_spill] sm:$0xff] %v12488_v32  ;;  %7774 = vmatmul.msk.f32.gmra.mxu3 %vm2804_vm2, %v11365_v18  ;;  %v3658_v62 = vpop.f32.mrf.mxu2 }
 0x37a   :  { %v4219_v4 = vpop.f32.mrf.mxu0 }
 0x37c   :  { %v3938_v61 = vpop.f32.mrf.mxu3 }
 0x37d   :  { %v4116_v35 = vadd.f32 %v3938_v61, %v3833_v52  ;;  %v3312_v30 = vpop.f32.mrf.mxu1  ;;  %7836 = vmatmul.msk.f32.gmra.mxu0 %vm2804_vm2, %v11655_v60 }
 0x37e   :  { %7712 = vmatmul.msk.f32.gmra.mxu2 %vm2804_vm2, %v12501_v10  ;;  %v3313_v40 = vadd.f32 %v3312_v30, %v12162_v23 }
 0x37f   :  { %v12503_v32 = vadd.f32 %v4219_v4, %v4116_v35  ;;  %v12516_v4 = vsel %vm283_vm0, %v2710_v20, %v2712_v21 }
 0x380   :  { %v3834_v6 = vadd.f32 %v3658_v62, %v3313_v40  ;;  %7647 = vmatmul.msk.f32.gmra.mxu1 %vm2804_vm2, %v16424_v14 }
 0x381   :  { %16431 = vst [vmem:[#allocation121_spill] sm:$0xff] %v12503_v32  ;;  %7775 = vmatmul.msk.f32.gmra.mxu3 %vm2804_vm2, %v11616_v17  ;;  %v3661_v44 = vpop.f32.mrf.mxu2 }
 0x382   :  { %v4222_v52 = vpop.f32.mrf.mxu0 }
 0x384   :  { %v3941_v31 = vpop.f32.mrf.mxu3 }
 0x385   :  { %v4117_v61 = vadd.f32 %v3941_v31, %v3834_v6  ;;  %v3315_v32 = vpop.f32.mrf.mxu1  ;;  %7837 = vmatmul.msk.f32.gmra.mxu0 %vm2804_vm2, %v11770_v7  ;;  %v2714_v6 = vrot.slane %v11780_v27, 2 }
 0x386   :  { %7713 = vmatmul.msk.f32.gmra.mxu2 %vm2804_vm2, %v12516_v4  ;;  %v3316_v23 = vadd.f32 %v3315_v32, %v12182_v33 }
 0x387   :  { %v12518_v35 = vadd.f32 %v4222_v52, %v4117_v61  ;;  %v12531_v52 = vsel %vm283_vm0, %v2712_v21, %v2714_v6  ;;  %v2716_v21 = vrot.slane %v11854_v43, 2 }
 0x388   :  { %v3835_v30 = vadd.f32 %v3661_v44, %v3316_v23  ;;  %7648 = vmatmul.msk.f32.gmra.mxu1 %vm2804_vm2, %v11365_v18 }
 0x389   :  { %16432 = vst [vmem:[#allocation162_spill] sm:$0xff] %v12518_v35  ;;  %7776 = vmatmul.msk.f32.gmra.mxu3 %vm2804_vm2, %v11732_v12  ;;  %v3664_v62 = vpop.f32.mrf.mxu2 }
 0x38a   :  { %v4225_v40 = vpop.f32.mrf.mxu0 }
 0x38c   :  { %v3944_v20 = vpop.f32.mrf.mxu3 }
 0x38d   :  { %v4118_v31 = vadd.f32 %v3944_v20, %v3835_v30  ;;  %v3318_v35 = vpop.f32.mrf.mxu1  ;;  %7838 = vmatmul.msk.f32.gmra.mxu0 %vm2804_vm2, %v11862_v56 }
 0x38e   :  { %7714 = vmatmul.msk.f32.gmra.mxu2 %vm2804_vm2, %v12531_v52  ;;  %v3319_v33 = vadd.f32 %v3318_v35, %v12202_v2 }
 0x38f   :  { %v12533_v61 = vadd.f32 %v4225_v40, %v4118_v31  ;;  %v12546_v40 = vsel %vm283_vm0, %v2714_v6, %v2716_v21 }
 0x390   :  { %v3836_v32 = vadd.f32 %v3664_v62, %v3319_v33  ;;  %7649 = vmatmul.msk.f32.gmra.mxu1 %vm2804_vm2, %v11616_v17 }
 0x391   :  { %16433 = vst [vmem:[#allocation163_spill] sm:$0xff] %v12533_v61  ;;  %7777 = vmatmul.msk.f32.gmra.mxu3 %vm2804_vm2, %v11780_v27  ;;  %v3667_v44 = vpop.f32.mrf.mxu2 }
 0x392   :  { %v4228_v30 = vpop.f32.mrf.mxu0 }
 0x394   :  { %v3947_v23 = vpop.f32.mrf.mxu3 }
 0x395   :  { %v4119_v20 = vadd.f32 %v3947_v23, %v3836_v32  ;;  %v3321_v61 = vpop.f32.mrf.mxu1  ;;  %7839 = vmatmul.msk.f32.gmra.mxu0 %vm2804_vm2, %v11933_v36  ;;  %v2718_v32 = vrot.slane %v11953_v53, 2 }
 0x396   :  { %7715 = vmatmul.msk.f32.gmra.mxu2 %vm2804_vm2, %v12546_v40  ;;  %v3322_v2 = vadd.f32 %v3321_v61, %v12222_v16 }
 0x397   :  { %v12548_v31 = vadd.f32 %v4228_v30, %v4119_v20  ;;  %v12561_v30 = vsel %vm283_vm0, %v2716_v21, %v2718_v32  ;;  %v2720_v21 = vrot.slane %v11997_v37, 2 }
 0x398   :  { %v3837_v35 = vadd.f32 %v3667_v44, %v3322_v2  ;;  %7650 = vmatmul.msk.f32.gmra.mxu1 %vm2804_vm2, %v11732_v12 }
 0x399   :  { %16434 = vst [vmem:[#allocation164_spill] sm:$0xff] %v12548_v31  ;;  %7778 = vmatmul.msk.f32.gmra.mxu3 %vm2804_vm2, %v11854_v43  ;;  %v3670_v62 = vpop.f32.mrf.mxu2 }
 0x39a   :  { %v4231_v33 = vpop.f32.mrf.mxu0 }
 0x39c   :  { %v3950_v6 = vpop.f32.mrf.mxu3 }
 0x39d   :  { %v4120_v23 = vadd.f32 %v3950_v6, %v3837_v35  ;;  %v3324_v31 = vpop.f32.mrf.mxu1  ;;  %7840 = vmatmul.msk.f32.gmra.mxu0 %vm2804_vm2, %v11995_v38 }
 0x39e   :  { %7716 = vmatmul.msk.f32.gmra.mxu2 %vm2804_vm2, %v12561_v30  ;;  %v3325_v16 = vadd.f32 %v3324_v31, %v12242_v3 }
 0x39f   :  { %v12563_v20 = vadd.f32 %v4231_v33, %v4120_v23  ;;  %v12576_v33 = vsel %vm283_vm0, %v2718_v32, %v2720_v21 }
 0x3a0   :  { %v3838_v61 = vadd.f32 %v3670_v62, %v3325_v16  ;;  %7651 = vmatmul.msk.f32.gmra.mxu1 %vm2804_vm2, %v11780_v27 }
 0x3a1   :  { %16435 = vst [vmem:[#allocation165_spill] sm:$0xff] %v12563_v20  ;;  %7779 = vmatmul.msk.f32.gmra.mxu3 %vm2804_vm2, %v11953_v53  ;;  %v3673_v44 = vpop.f32.mrf.mxu2 }
 0x3a2   :  { %v4234_v35 = vpop.f32.mrf.mxu0 }
 0x3a4   :  { %v3953_v2 = vpop.f32.mrf.mxu3 }
 0x3a5   :  { %v4121_v6 = vadd.f32 %v3953_v2, %v3838_v61  ;;  %v3327_v20 = vpop.f32.mrf.mxu1  ;;  %7841 = vmatmul.msk.f32.gmra.mxu0 %vm2804_vm2, %v12037_v9  ;;  %v2722_v61 = vrot.slane %v16329_v47, 2 }
 0x3a6   :  { %7717 = vmatmul.msk.f32.gmra.mxu2 %vm2804_vm2, %v12576_v33  ;;  %v3328_v3 = vadd.f32 %v3327_v20, %v12262_v1 }
 0x3a7   :  { %v12578_v23 = vadd.f32 %v4234_v35, %v4121_v6  ;;  %v12591_v35 = vsel %vm283_vm0, %v2720_v21, %v2722_v61 }
 0x3a8   :  { %v3839_v31 = vadd.f32 %v3673_v44, %v3328_v3  ;;  %7652 = vmatmul.msk.f32.gmra.mxu1 %vm2804_vm2, %v11854_v43  ;;  %16437 = vst [vmem:[#allocation167_spill] sm:$0xff] %v12591_v35 }
 0x3a9   :  { %16436 = vst [vmem:[#allocation166_spill] sm:$0xff] %v12578_v23  ;;  %7780 = vmatmul.msk.f32.gmra.mxu3 %vm2804_vm2, %v11997_v37  ;;  %v3676_v62 = vpop.f32.mrf.mxu2 }
 0x3aa   :  { %v4237_v16 = vpop.f32.mrf.mxu0 }
 0x3ac   :  { %v3956_v32 = vpop.f32.mrf.mxu3 }
 0x3ad   :  { %v4122_v2 = vadd.f32 %v3956_v32, %v3839_v31  ;;  %v3330_v23 = vpop.f32.mrf.mxu1  ;;  %7842 = vmatmul.msk.f32.gmra.mxu0 %vm2804_vm2, %v12061_v59  ;;  %v16439_v31 = vld [vmem:[#allocation48_spill] sm:$0xff] }
 0x3ae   :  { %7718 = vmatmul.msk.f32.gmra.mxu2 %vm2804_vm2, %v12591_v35  ;;  %v3331_v1 = vadd.f32 %v3330_v23, %v12282_v48  ;;  %v2724_v32 = vrot.slane %v16439_v31, 2  ;;  %v16442_v48 = vld [vmem:[#allocation50_spill] sm:$0xff] }
 0x3af   :  { %v12593_v6 = vadd.f32 %v4237_v16, %v4122_v2 }
 0x3b0   :  { %v3840_v20 = vadd.f32 %v3676_v62, %v3331_v1  ;;  %7653 = vmatmul.msk.f32.gmra.mxu1 %vm2804_vm2, %v11953_v53  ;;  %v12606_v2 = vsel %vm283_vm0, %v2722_v61, %v2724_v32  ;;  %v16443_v1 = vld [vmem:[#allocation40_spill] sm:$0xff] }
 0x3b1   :  { %16438 = vst [vmem:[#allocation168_spill] sm:$0xff] %v12593_v6  ;;  %7781 = vmatmul.msk.f32.gmra.mxu3 %vm2804_vm2, %v16329_v47  ;;  %v3679_v44 = vpop.f32.mrf.mxu2 }
 0x3b2   :  { %v4240_v3 = vpop.f32.mrf.mxu0  ;;  %16440 = vst [vmem:[#allocation48_spill] sm:$0xff] %v12606_v2 }
 0x3b4   :  { %v3959_v21 = vpop.f32.mrf.mxu3 }
 0x3b5   :  { %v4123_v16 = vadd.f32 %v3959_v21, %v3840_v20  ;;  %v3333_v35 = vpop.f32.mrf.mxu1  ;;  %7843 = vmatmul.msk.f32.gmra.mxu0 %vm2804_vm2, %v16442_v48  ;;  %v2726_v20 = vrot.slane %v16443_v1, 2 }
 0x3b6   :  { %7719 = vmatmul.msk.f32.gmra.mxu2 %vm2804_vm2, %v12606_v2  ;;  %v3334_v23 = vadd.f32 %v3333_v35, %v12302_v50  ;;  %v16446_v50 = vld [vmem:[#allocation13_spill] sm:$0xff] }
 0x3b7   :  { %v12608_v6 = vadd.f32 %v4240_v3, %v4123_v16 }
 0x3b8   :  { %v3841_v62 = vadd.f32 %v3679_v44, %v3334_v23  ;;  %7654 = vmatmul.msk.f32.gmra.mxu1 %vm2804_vm2, %v11997_v37  ;;  %v16447_v23 = vld [vmem:[#allocation34_spill] sm:$0xff] }
 0x3b9   :  { %16441 = vst [vmem:[#allocation169_spill] sm:$0xff] %v12608_v6  ;;  %7782 = vmatmul.msk.f32.gmra.mxu3 %vm2804_vm2, %v16439_v31  ;;  %v3682_v61 = vpop.f32.mrf.mxu2  ;;  %v12621_v6 = vsel %vm283_vm0, %v2724_v32, %v2726_v20 }
 0x3ba   :  { %v4243_v3 = vpop.f32.mrf.mxu0  ;;  %16444 = vst [vmem:[#allocation40_spill] sm:$0xff] %v12621_v6 }
 0x3bc   :  { %v3962_v21 = vpop.f32.mrf.mxu3 }
 0x3bd   :  { %v4124_v16 = vadd.f32 %v3962_v21, %v3841_v62  ;;  %v3336_v2 = vpop.f32.mrf.mxu1  ;;  %7844 = vmatmul.msk.f32.gmra.mxu0 %vm2804_vm2, %v16446_v50  ;;  %v2728_v62 = vrot.slane %v16447_v23, 2 }
 0x3be   :  { %7720 = vmatmul.msk.f32.gmra.mxu2 %vm2804_vm2, %v12621_v6  ;;  %v3337_v35 = vadd.f32 %v3336_v2, %v12322_v25  ;;  %v16450_v25 = vld [vmem:[#allocation7_spill] sm:$0xff] }
 0x3bf   :  { %v12623_v48 = vadd.f32 %v4243_v3, %v4124_v16 }
 0x3c0   :  { %v3842_v44 = vadd.f32 %v3682_v61, %v3337_v35  ;;  %7655 = vmatmul.msk.f32.gmra.mxu1 %vm2804_vm2, %v16329_v47  ;;  %v16451_v35 = vld [vmem:[#allocation63_spill] sm:$0xff] }
 0x3c1   :  { %16445 = vst [vmem:[#allocation170_spill] sm:$0xff] %v12623_v48  ;;  %7783 = vmatmul.msk.f32.gmra.mxu3 %vm2804_vm2, %v16443_v1  ;;  %v3685_v32 = vpop.f32.mrf.mxu2  ;;  %v12636_v48 = vsel %vm283_vm0, %v2726_v20, %v2728_v62 }
 0x3c2   :  { %v4246_v3 = vpop.f32.mrf.mxu0  ;;  %16448 = vst [vmem:[#allocation34_spill] sm:$0xff] %v12636_v48 }
 0x3c4   :  { %v3965_v21 = vpop.f32.mrf.mxu3 }
 0x3c5   :  { %v4125_v16 = vadd.f32 %v3965_v21, %v3842_v44  ;;  %v3339_v6 = vpop.f32.mrf.mxu1  ;;  %7845 = vmatmul.msk.f32.gmra.mxu0 %vm2804_vm2, %v16450_v25  ;;  %v2730_v44 = vrot.slane %v16451_v35, 2 }
 0x3c6   :  { %7721 = vmatmul.msk.f32.gmra.mxu2 %vm2804_vm2, %v12636_v48  ;;  %v3340_v2 = vadd.f32 %v3339_v6, %v12341_v55  ;;  %v16454_v55 = vld [vmem:[#allocation66_spill] sm:$0xff] }
 0x3c7   :  { %v12638_v50 = vadd.f32 %v4246_v3, %v4125_v16 }
 0x3c8   :  { %v3843_v61 = vadd.f32 %v3685_v32, %v3340_v2  ;;  %7656 = vmatmul.msk.f32.gmra.mxu1 %vm2804_vm2, %v16439_v31  ;;  %v16455_v2 = vld [vmem:[#allocation75_spill] sm:$0xff] }
 0x3c9   :  { %16449 = vst [vmem:[#allocation171_spill] sm:$0xff] %v12638_v50  ;;  %7784 = vmatmul.msk.f32.gmra.mxu3 %vm2804_vm2, %v16447_v23  ;;  %v3688_v20 = vpop.f32.mrf.mxu2  ;;  %v12651_v50 = vsel %vm283_vm0, %v2728_v62, %v2730_v44 }
 0x3ca   :  { %v4249_v3 = vpop.f32.mrf.mxu0  ;;  %16452 = vst [vmem:[#allocation63_spill] sm:$0xff] %v12651_v50 }
 0x3cc   :  { %v3968_v21 = vpop.f32.mrf.mxu3 }
 0x3cd   :  { %v4126_v16 = vadd.f32 %v3968_v21, %v3843_v61  ;;  %v3342_v48 = vpop.f32.mrf.mxu1  ;;  %7846 = vmatmul.msk.f32.gmra.mxu0 %vm2804_vm2, %v16454_v55  ;;  %v2732_v61 = vrot.slane %v16455_v2, 2 }
 0x3ce   :  { %7722 = vmatmul.msk.f32.gmra.mxu2 %vm2804_vm2, %v12651_v50  ;;  %v3343_v6 = vadd.f32 %v3342_v48, %v12362_v57  ;;  %v16458_v57 = vld [vmem:[#allocation76_spill] sm:$0xff] }
 0x3cf   :  { %v12653_v25 = vadd.f32 %v4249_v3, %v4126_v16 }
 0x3d0   :  { %v3844_v32 = vadd.f32 %v3688_v20, %v3343_v6  ;;  %7657 = vmatmul.msk.f32.gmra.mxu1 %vm2804_vm2, %v16443_v1  ;;  %v16459_v6 = vld [vmem:[#allocation89_spill] sm:$0xff] }
 0x3d1   :  { %16453 = vst [vmem:[#allocation172_spill] sm:$0xff] %v12653_v25  ;;  %7785 = vmatmul.msk.f32.gmra.mxu3 %vm2804_vm2, %v16451_v35  ;;  %v3691_v62 = vpop.f32.mrf.mxu2  ;;  %v12666_v25 = vsel %vm283_vm0, %v2730_v44, %v2732_v61 }
 0x3d2   :  { %v4252_v3 = vpop.f32.mrf.mxu0  ;;  %16456 = vst [vmem:[#allocation75_spill] sm:$0xff] %v12666_v25 }
 0x3d4   :  { %v3971_v21 = vpop.f32.mrf.mxu3 }
 0x3d5   :  { %v4127_v16 = vadd.f32 %v3971_v21, %v3844_v32  ;;  %v3345_v50 = vpop.f32.mrf.mxu1  ;;  %7847 = vmatmul.msk.f32.gmra.mxu0 %vm2804_vm2, %v16458_v57  ;;  %v2734_v32 = vrot.slane %v16459_v6, 2 }
 0x3d6   :  { %7723 = vmatmul.msk.f32.gmra.mxu2 %vm2804_vm2, %v12666_v25  ;;  %v3346_v48 = vadd.f32 %v3345_v50, %v12379_v24  ;;  %v16462_v24 = vld [vmem:[#allocation91_spill] sm:$0xff] }
 0x3d7   :  { %v12668_v55 = vadd.f32 %v4252_v3, %v4127_v16 }
 0x3d8   :  { %v3845_v20 = vadd.f32 %v3691_v62, %v3346_v48  ;;  %7658 = vmatmul.msk.f32.gmra.mxu1 %vm2804_vm2, %v16447_v23  ;;  %v16463_v48 = vld [vmem:[#allocation94_spill] sm:$0xff] }
 0x3d9   :  { %16457 = vst [vmem:[#allocation173_spill] sm:$0xff] %v12668_v55  ;;  %7786 = vmatmul.msk.f32.gmra.mxu3 %vm2804_vm2, %v16455_v2  ;;  %v3694_v44 = vpop.f32.mrf.mxu2  ;;  %v12681_v55 = vsel %vm283_vm0, %v2732_v61, %v2734_v32 }
 0x3da   :  { %v4255_v3 = vpop.f32.mrf.mxu0  ;;  %16460 = vst [vmem:[#allocation89_spill] sm:$0xff] %v12681_v55 }
 0x3dc   :  { %v3974_v21 = vpop.f32.mrf.mxu3 }
 0x3dd   :  { %v4128_v16 = vadd.f32 %v3974_v21, %v3845_v20  ;;  %v3348_v25 = vpop.f32.mrf.mxu1  ;;  %7848 = vmatmul.msk.f32.gmra.mxu0 %vm2804_vm2, %v16462_v24  ;;  %v2736_v20 = vrot.slane %v16463_v48, 2 }
 0x3de   :  { %7724 = vmatmul.msk.f32.gmra.mxu2 %vm2804_vm2, %v12681_v55  ;;  %v3349_v50 = vadd.f32 %v3348_v25, %v12144_v39  ;;  %v16466_v39 = vld [vmem:[#allocation96_spill] sm:$0xff] }
 0x3df   :  { %v12683_v57 = vadd.f32 %v4255_v3, %v4128_v16 }
 0x3e0   :  { %v3846_v62 = vadd.f32 %v3694_v44, %v3349_v50  ;;  %7659 = vmatmul.msk.f32.gmra.mxu1 %vm2804_vm2, %v16451_v35  ;;  %v16467_v50 = vld [vmem:[#allocation79_spill] sm:$0xff] }
 0x3e1   :  { %16461 = vst [vmem:[#allocation174_spill] sm:$0xff] %v12683_v57  ;;  %7787 = vmatmul.msk.f32.gmra.mxu3 %vm2804_vm2, %v16459_v6  ;;  %v3697_v61 = vpop.f32.mrf.mxu2  ;;  %v12696_v57 = vsel %vm283_vm0, %v2734_v32, %v2736_v20 }
 0x3e2   :  { %v4258_v3 = vpop.f32.mrf.mxu0  ;;  %16464 = vst [vmem:[#allocation94_spill] sm:$0xff] %v12696_v57 }
 0x3e4   :  { %v3977_v21 = vpop.f32.mrf.mxu3 }
 0x3e5   :  { %v4129_v16 = vadd.f32 %v3977_v21, %v3846_v62  ;;  %v3351_v55 = vpop.f32.mrf.mxu1  ;;  %7849 = vmatmul.msk.f32.gmra.mxu0 %vm2804_vm2, %v16466_v39  ;;  %v2738_v62 = vrot.slane %v16467_v50, 2 }
 0x3e6   :  { %7725 = vmatmul.msk.f32.gmra.mxu2 %vm2804_vm2, %v12696_v57  ;;  %v3352_v25 = vadd.f32 %v3351_v55, %v12164_v8  ;;  %v16470_v8 = vld [vmem:[#allocation37_spill] sm:$0xff] }
 0x3e7   :  { %v12698_v24 = vadd.f32 %v4258_v3, %v4129_v16 }
 0x3e8   :  { %v3847_v44 = vadd.f32 %v3697_v61, %v3352_v25  ;;  %7660 = vmatmul.msk.f32.gmra.mxu1 %vm2804_vm2, %v16455_v2  ;;  %v16471_v25 = vld [vmem:[#allocation107_spill] sm:$0xff] }
 0x3e9   :  { %16465 = vst [vmem:[#allocation175_spill] sm:$0xff] %v12698_v24  ;;  %7788 = vmatmul.msk.f32.gmra.mxu3 %vm2804_vm2, %v16463_v48  ;;  %v3700_v32 = vpop.f32.mrf.mxu2  ;;  %v12711_v24 = vsel %vm283_vm0, %v2736_v20, %v2738_v62 }
 0x3ea   :  { %v4261_v3 = vpop.f32.mrf.mxu0  ;;  %16468 = vst [vmem:[#allocation79_spill] sm:$0xff] %v12711_v24 }
 0x3ec   :  { %v3980_v21 = vpop.f32.mrf.mxu3 }
 0x3ed   :  { %v4130_v16 = vadd.f32 %v3980_v21, %v3847_v44  ;;  %v3354_v57 = vpop.f32.mrf.mxu1  ;;  %7850 = vmatmul.msk.f32.gmra.mxu0 %vm2804_vm2, %v16470_v8  ;;  %v2740_v44 = vrot.slane %v16471_v25, 2 }
 0x3ee   :  { %7726 = vmatmul.msk.f32.gmra.mxu2 %vm2804_vm2, %v12711_v24  ;;  %v3355_v55 = vadd.f32 %v3354_v57, %v12184_v28  ;;  %v16474_v28 = vld [vmem:[#allocation115_spill] sm:$0xff] }
 0x3ef   :  { %v12713_v39 = vadd.f32 %v4261_v3, %v4130_v16 }
 0x3f0   :  { %v3848_v61 = vadd.f32 %v3700_v32, %v3355_v55  ;;  %7661 = vmatmul.msk.f32.gmra.mxu1 %vm2804_vm2, %v16459_v6  ;;  %v2742_v55 = vrot.slane %v11419_v49, 2 }
 0x3f1   :  { %16469 = vst [vmem:[#allocation176_spill] sm:$0xff] %v12713_v39  ;;  %7789 = vmatmul.msk.f32.gmra.mxu3 %vm2804_vm2, %v16467_v50  ;;  %v3703_v20 = vpop.f32.mrf.mxu2  ;;  %v12726_v39 = vsel %vm283_vm0, %v2738_v62, %v2740_v44 }
 0x3f2   :  { %v4264_v3 = vpop.f32.mrf.mxu0  ;;  %16472 = vst [vmem:[#allocation107_spill] sm:$0xff] %v12726_v39 }
 0x3f4   :  { %v3983_v21 = vpop.f32.mrf.mxu3 }
 0x3f5   :  { %v4131_v16 = vadd.f32 %v3983_v21, %v3848_v61  ;;  %v3357_v24 = vpop.f32.mrf.mxu1  ;;  %7851 = vmatmul.msk.f32.gmra.mxu0 %vm2804_vm2, %v16474_v28 }
 0x3f6   :  { %7727 = vmatmul.msk.f32.gmra.mxu2 %vm2804_vm2, %v12726_v39  ;;  %v3358_v57 = vadd.f32 %v3357_v24, %v12204_v51  ;;  %v16477_v51 = vld [vmem:[#allocation126_spill] sm:$0xff] }
 0x3f7   :  { %v12728_v8 = vadd.f32 %v4264_v3, %v4131_v16  ;;  %v12741_v16 = vsel %vm283_vm0, %v2740_v44, %v2742_v55 }
 0x3f8   :  { %v3849_v32 = vadd.f32 %v3703_v20, %v3358_v57  ;;  %7662 = vmatmul.msk.f32.gmra.mxu1 %vm2804_vm2, %v16463_v48  ;;  %16475 = vst [vmem:[#allocation115_spill] sm:$0xff] %v12741_v16  ;;  %v2744_v57 = vrot.slane %v11657_v5, 2 }
 0x3f9   :  { %16473 = vst [vmem:[#allocation177_spill] sm:$0xff] %v12728_v8  ;;  %7790 = vmatmul.msk.f32.gmra.mxu3 %vm2804_vm2, %v16471_v25  ;;  %v3706_v62 = vpop.f32.mrf.mxu2 }
 0x3fa   :  { %v4267_v21 = vpop.f32.mrf.mxu0 }
 0x3fc   :  { %v3986_v61 = vpop.f32.mrf.mxu3 }
 0x3fd   :  { %v4132_v3 = vadd.f32 %v3986_v61, %v3849_v32  ;;  %v3360_v39 = vpop.f32.mrf.mxu1  ;;  %7852 = vmatmul.msk.f32.gmra.mxu0 %vm2804_vm2, %v16477_v51 }
 0x3fe   :  { %7728 = vmatmul.msk.f32.gmra.mxu2 %vm2804_vm2, %v12741_v16  ;;  %v3361_v24 = vadd.f32 %v3360_v39, %v12224_v45 }
 0x3ff   :  { %v12743_v8 = vadd.f32 %v4267_v21, %v4132_v3  ;;  %v12756_v3 = vsel %vm283_vm0, %v2742_v55, %v2744_v57 }
 0x400   :  { %v3850_v20 = vadd.f32 %v3706_v62, %v3361_v24  ;;  %7663 = vmatmul.msk.f32.gmra.mxu1 %vm2804_vm2, %v16467_v50  ;;  %16478 = vst [vmem:[#allocation179_spill] sm:$0xff] %v12756_v3 }
 0x401   :  { %16476 = vst [vmem:[#allocation178_spill] sm:$0xff] %v12743_v8  ;;  %7791 = vmatmul.msk.f32.gmra.mxu3 %vm2804_vm2, %v11419_v49  ;;  %v3709_v44 = vpop.f32.mrf.mxu2 }
 0x402   :  { %v4270_v61 = vpop.f32.mrf.mxu0 }
 0x404   :  { %v3989_v32 = vpop.f32.mrf.mxu3 }
 0x405   :  { %v4133_v21 = vadd.f32 %v3989_v32, %v3850_v20  ;;  %v3363_v16 = vpop.f32.mrf.mxu1  ;;  %7853 = vmatmul.msk.f32.gmra.mxu0 %vm2804_vm2, %v11699_v54  ;;  %v4742_v20 = vld [vmem:[%s15221_s2 + $0x1b8] sm:$0xff] }
 0x406   :  { %7729 = vmatmul.msk.f32.gmra.mxu2 %vm2804_vm2, %v12756_v3  ;;  %v3364_v45 = vadd.f32 %v3363_v16, %v12244_v29  ;;  %v5023_v32 = vld [vmem:[%s15221_s2 + $0x1f8] sm:$0xff]  ;;  %v16484_v3 = vld [vmem:[#allocation131_spill] sm:$0xff] }
 0x407   :  { %v12758_v8 = vadd.f32 %v4270_v61, %v4133_v21  ;;  %v16480_v61 = vld [vmem:[#allocation129_spill] sm:$0xff]  ;;  %4751 = vmatpush.msra.mxu2 %v4742_v20  ;;  %5032 = vmatpush.msra.mxu3 %v5023_v32 }
 0x408   :  { %v3851_v39 = vadd.f32 %v3709_v44, %v3364_v45  ;;  %7664 = vmatmul.msk.f32.gmra.mxu1 %vm2804_vm2, %v16471_v25  ;;  %v2746_v29 = vrot.slane %v16480_v61, 2 }
 0x409   :  { %16479 = vst [vmem:[#allocation180_spill] sm:$0xff] %v12758_v8  ;;  %7792 = vmatmul.msk.f32.gmra.mxu3 %vm2804_vm2, %v11657_v5  ;;  %v3712_v62 = vpop.f32.mrf.mxu2  ;;  %v16483_v8 = vld [vmem:[#allocation5_spill] sm:$0xff] }
 0x40a   :  { %v4273_v24 = vpop.f32.mrf.mxu0  ;;  %v12777_v44 = vsel %vm283_vm0, %v2744_v57, %v2746_v29 }
 0x40b   :  { %16481 = vst [vmem:[#allocation181_spill] sm:$0xff] %v12777_v44 }
 0x40c   :  { %v3992_v55 = vpop.f32.mrf.mxu3 }
 0x40d   :  { %v4134_v16 = vadd.f32 %v3992_v55, %v3851_v39  ;;  %v3366_v45 = vpop.f32.mrf.mxu1  ;;  %7854 = vmatmul.msk.f32.gmra.mxu0 %vm2804_vm2, %v16483_v8  ;;  %v4461_v39 = vld [vmem:[%s15221_s2 + $0x178] sm:$0xff] }
 0x40e   :  { %7730 = vmatmul.msk.f32.gmra.mxu2 %vm2804_vm2, %v12777_v44  ;;  %v3367_v54 = vadd.f32 %v3366_v45, %v16484_v3  ;;  %4470 = vmatpush.msra.mxu1 %v4461_v39  ;;  %v5304_v3 = vld [vmem:[%s15221_s2 + $0x238] sm:$0xff]  ;;  %v16489_v39 = vld [vmem:[#allocation135_spill] sm:$0xff] }
 0x40f   :  { %v12779_v21 = vadd.f32 %v4273_v24, %v4134_v16  ;;  %v16485_v24 = vld [vmem:[#allocation22_spill] sm:$0xff]  ;;  %5313 = vmatpush.msra.mxu0 %v5304_v3 }
 0x410   :  { %v3852_v57 = vadd.f32 %v3712_v62, %v3367_v54  ;;  %7665 = vmatmul.msk.f32.gmra.mxu1 %vm2804_vm2, %v11419_v49  ;;  %v2748_v20 = vrot.slane %v16485_v24, 2  ;;  %v16488_v62 = vld [vmem:[#allocation67_spill] sm:$0xff] }
 0x411   :  { %16482 = vst [vmem:[#allocation182_spill] sm:$0xff] %v12779_v21  ;;  %7793 = vmatmul.msk.f32.gmra.mxu3 %vm2804_vm2, %v16480_v61  ;;  %v3715_v55 = vpop.f32.mrf.mxu2 }
 0x412   :  { %v4276_v16 = vpop.f32.mrf.mxu0  ;;  %v12798_v21 = vsel %vm283_vm0, %v2746_v29, %v2748_v20 }
 0x413   :  { %16486 = vst [vmem:[#allocation131_spill] sm:$0xff] %v12798_v21 }
 0x414   :  { %v3995_v32 = vpop.f32.mrf.mxu3 }
 0x415   :  { %v4135_v45 = vadd.f32 %v3995_v32, %v3852_v57  ;;  %v3369_v54 = vpop.f32.mrf.mxu1  ;;  %7855 = vmatmul.msk.f32.gmra.mxu0 %vm2804_vm2, %v16488_v62 }
 0x416   :  { %7731 = vmatmul.msk.f32.gmra.mxu2 %vm2804_vm2, %v12798_v21  ;;  %v3370_v8 = vadd.f32 %v3369_v54, %v16489_v39  ;;  %v16493_v54 = vld [vmem:[#allocation98_spill] sm:$0xff] }
 0x417   :  { %v12800_v44 = vadd.f32 %v4276_v16, %v4135_v45  ;;  %v16490_v16 = vld [vmem:[#allocation61_spill] sm:$0xff] }
 0x418   :  { %v3853_v51 = vadd.f32 %v3715_v55, %v3370_v8  ;;  %7666 = vmatmul.msk.f32.gmra.mxu1 %vm2804_vm2, %v11657_v5  ;;  %v2750_v3 = vrot.slane %v16490_v16, 2  ;;  %v16494_v8 = vld [vmem:[#allocation139_spill] sm:$0xff] }
 0x419   :  { %16487 = vst [vmem:[#allocation183_spill] sm:$0xff] %v12800_v44  ;;  %7794 = vmatmul.msk.f32.gmra.mxu3 %vm2804_vm2, %v16485_v24  ;;  %v3718_v29 = vpop.f32.mrf.mxu2 }
 0x41a   :  { %v4279_v32 = vpop.f32.mrf.mxu0  ;;  %v12813_v44 = vsel %vm283_vm0, %v2748_v20, %v2750_v3  ;;  %v16495_v20 = vld [vmem:[#allocation21_spill] sm:$0xff] }
 0x41b   :  { %16491 = vst [vmem:[#allocation135_spill] sm:$0xff] %v12813_v44 }
 0x41c   :  { %v3998_v57 = vpop.f32.mrf.mxu3 }
 0x41d   :  { %v4136_v45 = vadd.f32 %v3998_v57, %v3853_v51  ;;  %v3372_v21 = vpop.f32.mrf.mxu1  ;;  %7856 = vmatmul.msk.f32.gmra.mxu0 %vm2804_vm2, %v16493_v54  ;;  %v2752_v57 = vrot.slane %v16495_v20, 2 }
 0x41e   :  { %7732 = vmatmul.msk.f32.gmra.mxu2 %vm2804_vm2, %v12813_v44  ;;  %v3373_v55 = vadd.f32 %v3372_v21, %v16494_v8  ;;  %v16498_v21 = vld [vmem:[#allocation19_spill] sm:$0xff] }
 0x41f   :  { %v12815_v62 = vadd.f32 %v4279_v32, %v4136_v45  ;;  %v12828_v54 = vsel %vm283_vm0, %v2750_v3, %v2752_v57 }
 0x420   :  { %v3854_v39 = vadd.f32 %v3718_v29, %v3373_v55  ;;  %7667 = vmatmul.msk.f32.gmra.mxu1 %vm2804_vm2, %v16480_v61  ;;  %16496 = vst [vmem:[#allocation139_spill] sm:$0xff] %v12828_v54  ;;  %v16499_v29 = vld [vmem:[#allocation143_spill] sm:$0xff] }
 0x421   :  { %16492 = vst [vmem:[#allocation184_spill] sm:$0xff] %v12815_v62  ;;  %7795 = vmatmul.msk.f32.gmra.mxu3 %vm2804_vm2, %v16490_v16  ;;  %v3721_v51 = vpop.f32.mrf.mxu2 }
 0x422   :  { %v4282_v45 = vpop.f32.mrf.mxu0 }
 0x424   :  { %v4001_v32 = vpop.f32.mrf.mxu3 }
 0x425   :  { %v4137_v62 = vadd.f32 %v4001_v32, %v3854_v39  ;;  %v3375_v44 = vpop.f32.mrf.mxu1  ;;  %7857 = vmatmul.msk.f32.gmra.mxu0 %vm2804_vm2, %v16498_v21  ;;  %v16500_v32 = vld [vmem:[#allocation53_spill] sm:$0xff] }
 0x426   :  { %7733 = vmatmul.msk.f32.gmra.mxu2 %vm2804_vm2, %v12828_v54  ;;  %v3376_v8 = vadd.f32 %v3375_v44, %v16499_v29  ;;  %v16503_v44 = vld [vmem:[#allocation116_spill] sm:$0xff] }
 0x427   :  { %v12830_v5 = vadd.f32 %v4282_v45, %v4137_v62  ;;  %v2754_v45 = vrot.slane %v16500_v32, 2 }
 0x428   :  { %v3855_v55 = vadd.f32 %v3721_v51, %v3376_v8  ;;  %7668 = vmatmul.msk.f32.gmra.mxu1 %vm2804_vm2, %v16485_v24  ;;  %v16504_v51 = vld [vmem:[#allocation147_spill] sm:$0xff] }
 0x429   :  { %16497 = vst [vmem:[#allocation185_spill] sm:$0xff] %v12830_v5  ;;  %7796 = vmatmul.msk.f32.gmra.mxu3 %vm2804_vm2, %v16495_v20  ;;  %v3724_v3 = vpop.f32.mrf.mxu2  ;;  %v12843_v21 = vsel %vm283_vm0, %v2752_v57, %v2754_v45 }
 0x42a   :  { %v4285_v62 = vpop.f32.mrf.mxu0  ;;  %16501 = vst [vmem:[#allocation143_spill] sm:$0xff] %v12843_v21 }
 0x42c   :  { %v4004_v39 = vpop.f32.mrf.mxu3 }
 0x42d   :  { %v4138_v5 = vadd.f32 %v4004_v39, %v3855_v55  ;;  %v3378_v54 = vpop.f32.mrf.mxu1  ;;  %7858 = vmatmul.msk.f32.gmra.mxu0 %vm2804_vm2, %v16503_v44  ;;  %v16505_v39 = vld [vmem:[#allocation52_spill] sm:$0xff] }
 0x42e   :  { %7734 = vmatmul.msk.f32.gmra.mxu2 %vm2804_vm2, %v12843_v21  ;;  %v3379_v29 = vadd.f32 %v3378_v54, %v16504_v51  ;;  %v16508_v54 = vld [vmem:[#allocation55_spill] sm:$0xff] }
 0x42f   :  { %v12845_v61 = vadd.f32 %v4285_v62, %v4138_v5  ;;  %v2756_v62 = vrot.slane %v16505_v39, 2 }
 0x430   :  { %v3856_v8 = vadd.f32 %v3724_v3, %v3379_v29  ;;  %7669 = vmatmul.msk.f32.gmra.mxu1 %vm2804_vm2, %v16490_v16  ;;  %v16509_v3 = vld [vmem:[#allocation151_spill] sm:$0xff] }
 0x431   :  { %16502 = vst [vmem:[#allocation186_spill] sm:$0xff] %v12845_v61  ;;  %7797 = vmatmul.msk.f32.gmra.mxu3 %vm2804_vm2, %v16500_v32  ;;  %v3727_v57 = vpop.f32.mrf.mxu2  ;;  %v12858_v44 = vsel %vm283_vm0, %v2754_v45, %v2756_v62 }
 0x432   :  { %v4288_v5 = vpop.f32.mrf.mxu0  ;;  %16506 = vst [vmem:[#allocation147_spill] sm:$0xff] %v12858_v44 }
 0x434   :  { %v4007_v55 = vpop.f32.mrf.mxu3 }
 0x435   :  { %v4139_v61 = vadd.f32 %v4007_v55, %v3856_v8  ;;  %v3381_v21 = vpop.f32.mrf.mxu1  ;;  %7859 = vmatmul.msk.f32.gmra.mxu0 %vm2804_vm2, %v16508_v54  ;;  %v16510_v8 = vld [vmem:[#allocation56_spill] sm:$0xff] }
 0x436   :  { %7735 = vmatmul.msk.f32.gmra.mxu2 %vm2804_vm2, %v12858_v44  ;;  %v3382_v51 = vadd.f32 %v3381_v21, %v16509_v3  ;;  %v16513_v21 = vld [vmem:[#allocation4_spill] sm:$0xff] }
 0x437   :  { %v12860_v24 = vadd.f32 %v4288_v5, %v4139_v61  ;;  %v2758_v61 = vrot.slane %v16510_v8, 2 }
 0x438   :  { %v3857_v29 = vadd.f32 %v3727_v57, %v3382_v51  ;;  %7670 = vmatmul.msk.f32.gmra.mxu1 %vm2804_vm2, %v16495_v20  ;;  %v16514_v57 = vld [vmem:[#allocation110_spill] sm:$0xff] }
 0x439   :  { %16507 = vst [vmem:[#allocation187_spill] sm:$0xff] %v12860_v24  ;;  %7798 = vmatmul.msk.f32.gmra.mxu3 %vm2804_vm2, %v16505_v39  ;;  %v3730_v45 = vpop.f32.mrf.mxu2  ;;  %v12873_v54 = vsel %vm283_vm0, %v2756_v62, %v2758_v61 }
 0x43a   :  { %v4291_v5 = vpop.f32.mrf.mxu0  ;;  %16511 = vst [vmem:[#allocation151_spill] sm:$0xff] %v12873_v54 }
 0x43c   :  { %v4010_v55 = vpop.f32.mrf.mxu3 }
 0x43d   :  { %v4140_v24 = vadd.f32 %v4010_v55, %v3857_v29  ;;  %v3384_v44 = vpop.f32.mrf.mxu1  ;;  %7860 = vmatmul.msk.f32.gmra.mxu0 %vm2804_vm2, %v16513_v21  ;;  %v16515_v29 = vld [vmem:[#allocation36_spill] sm:$0xff] }
 0x43e   :  { %7736 = vmatmul.msk.f32.gmra.mxu2 %vm2804_vm2, %v12873_v54  ;;  %v3385_v3 = vadd.f32 %v3384_v44, %v16514_v57  ;;  %v16518_v44 = vld [vmem:[#allocation39_spill] sm:$0xff] }
 0x43f   :  { %v12875_v16 = vadd.f32 %v4291_v5, %v4140_v24  ;;  %v2760_v24 = vrot.slane %v16515_v29, 2 }
 0x440   :  { %v3858_v51 = vadd.f32 %v3730_v45, %v3385_v3  ;;  %7671 = vmatmul.msk.f32.gmra.mxu1 %vm2804_vm2, %v16500_v32  ;;  %v16519_v45 = vld [vmem:[#allocation44_spill] sm:$0xff] }
 0x441   :  { %16512 = vst [vmem:[#allocation188_spill] sm:$0xff] %v12875_v16  ;;  %7799 = vmatmul.msk.f32.gmra.mxu3 %vm2804_vm2, %v16510_v8  ;;  %v3733_v62 = vpop.f32.mrf.mxu2  ;;  %v12888_v21 = vsel %vm283_vm0, %v2758_v61, %v2760_v24 }
 0x442   :  { %v4294_v5 = vpop.f32.mrf.mxu0  ;;  %16516 = vst [vmem:[#allocation110_spill] sm:$0xff] %v12888_v21 }
 0x444   :  { %v4013_v55 = vpop.f32.mrf.mxu3 }
 0x445   :  { %v4141_v16 = vadd.f32 %v4013_v55, %v3858_v51  ;;  %v3387_v54 = vpop.f32.mrf.mxu1  ;;  %7861 = vmatmul.msk.f32.gmra.mxu0 %vm2804_vm2, %v16518_v44  ;;  %v16520_v51 = vld [vmem:[#allocation62_spill] sm:$0xff]  ;;  %v16523_v44 = vld [vmem:[#allocation65_spill] sm:$0xff] }
 0x446   :  { %7737 = vmatmul.msk.f32.gmra.mxu2 %vm2804_vm2, %v12888_v21  ;;  %v3388_v57 = vadd.f32 %v3387_v54, %v16519_v45  ;;  %v5022_v54 = vld [vmem:[%s15221_s2 + $0x1f0] sm:$0xff] }
 0x447   :  { %v12890_v20 = vadd.f32 %v4294_v5, %v4141_v16  ;;  %v2762_v16 = vrot.slane %v16520_v51, 2  ;;  %5033 = vmatpush.msra.mxu3 %v5022_v54 }
 0x448   :  { %v3859_v3 = vadd.f32 %v3733_v62, %v3388_v57  ;;  %7672 = vmatmul.msk.f32.gmra.mxu1 %vm2804_vm2, %v16505_v39  ;;  %v16524_v39 = vld [vmem:[#allocation24_spill] sm:$0xff] }
 0x449   :  { %16517 = vst [vmem:[#allocation189_spill] sm:$0xff] %v12890_v20  ;;  %7800 = vmatmul.msk.f32.gmra.mxu3 %vm2804_vm2, %v16515_v29  ;;  %v3736_v61 = vpop.f32.mrf.mxu2  ;;  %v4741_v20 = vld [vmem:[%s15221_s2 + $0x1b0] sm:$0xff]  ;;  %v12909_v62 = vsel %vm283_vm0, %v2760_v24, %v2762_v16 }
 0x44a   :  { %v4297_v5 = vpop.f32.mrf.mxu0  ;;  %4752 = vmatpush.msra.mxu2 %v4741_v20  ;;  %16521 = vst [vmem:[#allocation44_spill] sm:$0xff] %v12909_v62  ;;  %v4460_v20 = vld [vmem:[%s15221_s2 + $0x170] sm:$0xff] }
 0x44b   :  { %4471 = vmatpush.msra.mxu1 %v4460_v20  ;;  %v16529_v20 = vld [vmem:[#allocation15_spill] sm:$0xff] }
 0x44c   :  { %v4016_v55 = vpop.f32.mrf.mxu3 }
 0x44d   :  { %v4142_v45 = vadd.f32 %v4016_v55, %v3859_v3  ;;  %v3390_v21 = vpop.f32.mrf.mxu1  ;;  %7862 = vmatmul.msk.f32.gmra.mxu0 %vm2804_vm2, %v16523_v44  ;;  %v16525_v55 = vld [vmem:[#allocation78_spill] sm:$0xff] }
 0x44e   :  { %7738 = vmatmul.msk.f32.gmra.mxu2 %vm2804_vm2, %v12909_v62  ;;  %v3391_v32 = vadd.f32 %v3390_v21, %v16524_v39  ;;  %v5303_v39 = vld [vmem:[%s15221_s2 + $0x230] sm:$0xff] }
 0x44f   :  { %v12911_v57 = vadd.f32 %v4297_v5, %v4142_v45  ;;  %v2764_v5 = vrot.slane %v16525_v55, 2  ;;  %5314 = vmatpush.msra.mxu0 %v5303_v39 }
 0x450   :  { %v3860_v24 = vadd.f32 %v3736_v61, %v3391_v32  ;;  %7673 = vmatmul.msk.f32.gmra.mxu1 %vm2804_vm2, %v16510_v8  ;;  %v16528_v61 = vld [vmem:[#allocation81_spill] sm:$0xff] }
 0x451   :  { %16522 = vst [vmem:[#allocation190_spill] sm:$0xff] %v12911_v57  ;;  %7801 = vmatmul.msk.f32.gmra.mxu3 %vm2804_vm2, %v16520_v51  ;;  %v3739_v3 = vpop.f32.mrf.mxu2  ;;  %v12930_v57 = vsel %vm283_vm0, %v2762_v16, %v2764_v5 }
 0x452   :  { %v4300_v45 = vpop.f32.mrf.mxu0  ;;  %16526 = vst [vmem:[#allocation24_spill] sm:$0xff] %v12930_v57 }
 0x454   :  { %v4019_v54 = vpop.f32.mrf.mxu3 }
 0x455   :  { %v4143_v21 = vadd.f32 %v4019_v54, %v3860_v24  ;;  %v3393_v32 = vpop.f32.mrf.mxu1  ;;  %7863 = vmatmul.msk.f32.gmra.mxu0 %vm2804_vm2, %v16528_v61  ;;  %v16530_v24 = vld [vmem:[#allocation92_spill] sm:$0xff] }
 0x456   :  { %7739 = vmatmul.msk.f32.gmra.mxu2 %vm2804_vm2, %v12930_v57  ;;  %v3394_v44 = vadd.f32 %v3393_v32, %v16529_v20  ;;  %v2766_v54 = vrot.slane %v16530_v24, 2  ;;  %v16533_v32 = vld [vmem:[#allocation93_spill] sm:$0xff] }
 0x457   :  { %v12932_v62 = vadd.f32 %v4300_v45, %v4143_v21 }
 0x458   :  { %v3861_v8 = vadd.f32 %v3739_v3, %v3394_v44  ;;  %7674 = vmatmul.msk.f32.gmra.mxu1 %vm2804_vm2, %v16515_v29  ;;  %v16534_v44 = vld [vmem:[#allocation120_spill] sm:$0xff] }
 0x459   :  { %16527 = vst [vmem:[#allocation191_spill] sm:$0xff] %v12932_v62  ;;  %7802 = vmatmul.msk.f32.gmra.mxu3 %vm2804_vm2, %v16525_v55  ;;  %v3742_v16 = vpop.f32.mrf.mxu2  ;;  %v12945_v62 = vsel %vm283_vm0, %v2764_v5, %v2766_v54  ;;  %v16535_v5 = vld [vmem:[#allocation97_spill] sm:$0xff] }
 0x45a   :  { %v4303_v39 = vpop.f32.mrf.mxu0  ;;  %16531 = vst [vmem:[#allocation15_spill] sm:$0xff] %v12945_v62 }
 0x45c   :  { %v4022_v45 = vpop.f32.mrf.mxu3 }
 0x45d   :  { %v4144_v21 = vadd.f32 %v4022_v45, %v3861_v8  ;;  %v3396_v57 = vpop.f32.mrf.mxu1  ;;  %7864 = vmatmul.msk.f32.gmra.mxu0 %vm2804_vm2, %v16533_v32  ;;  %v2768_v45 = vrot.slane %v16535_v5, 2 }
 0x45e   :  { %7740 = vmatmul.msk.f32.gmra.mxu2 %vm2804_vm2, %v12945_v62  ;;  %v3397_v3 = vadd.f32 %v3396_v57, %v16534_v44  ;;  %v16538_v57 = vld [vmem:[#allocation100_spill] sm:$0xff] }
 0x45f   :  { %v12947_v61 = vadd.f32 %v4303_v39, %v4144_v21  ;;  %v12960_v32 = vsel %vm283_vm0, %v2766_v54, %v2768_v45 }
 0x460   :  { %v3862_v20 = vadd.f32 %v3742_v16, %v3397_v3  ;;  %7675 = vmatmul.msk.f32.gmra.mxu1 %vm2804_vm2, %v16520_v51  ;;  %16536 = vst [vmem:[#allocation120_spill] sm:$0xff] %v12960_v32  ;;  %v16539_v16 = vld [vmem:[#allocation69_spill] sm:$0xff] }
 0x461   :  { %16532 = vst [vmem:[#allocation192_spill] sm:$0xff] %v12947_v61  ;;  %7803 = vmatmul.msk.f32.gmra.mxu3 %vm2804_vm2, %v16530_v24  ;;  %v3745_v8 = vpop.f32.mrf.mxu2 }
 0x462   :  { %v4306_v21 = vpop.f32.mrf.mxu0 }
 0x464   :  { %v4025_v39 = vpop.f32.mrf.mxu3 }
 0x465   :  { %v4145_v61 = vadd.f32 %v4025_v39, %v3862_v20  ;;  %v3399_v62 = vpop.f32.mrf.mxu1  ;;  %7865 = vmatmul.msk.f32.gmra.mxu0 %vm2804_vm2, %v16538_v57  ;;  %v16540_v20 = vld [vmem:[#allocation82_spill] sm:$0xff] }
 0x466   :  { %7741 = vmatmul.msk.f32.gmra.mxu2 %vm2804_vm2, %v12960_v32  ;;  %v3400_v44 = vadd.f32 %v3399_v62, %v16539_v16  ;;  %v16543_v62 = vld [vmem:[#allocation101_spill] sm:$0xff] }
 0x467   :  { %v12962_v29 = vadd.f32 %v4306_v21, %v4145_v61  ;;  %v2770_v61 = vrot.slane %v16540_v20, 2 }
 0x468   :  { %v3863_v3 = vadd.f32 %v3745_v8, %v3400_v44  ;;  %7676 = vmatmul.msk.f32.gmra.mxu1 %vm2804_vm2, %v16525_v55  ;;  %v16544_v8 = vld [vmem:[#allocation71_spill] sm:$0xff] }
 0x469   :  { %16537 = vst [vmem:[#allocation193_spill] sm:$0xff] %v12962_v29  ;;  %7804 = vmatmul.msk.f32.gmra.mxu3 %vm2804_vm2, %v16535_v5  ;;  %v3748_v54 = vpop.f32.mrf.mxu2  ;;  %v12975_v57 = vsel %vm283_vm0, %v2768_v45, %v2770_v61 }
 0x46a   :  { %v4309_v21 = vpop.f32.mrf.mxu0  ;;  %16541 = vst [vmem:[#allocation69_spill] sm:$0xff] %v12975_v57 }
 0x46c   :  { %v4028_v39 = vpop.f32.mrf.mxu3 }
 0x46d   :  { %v4146_v29 = vadd.f32 %v4028_v39, %v3863_v3  ;;  %v3402_v32 = vpop.f32.mrf.mxu1  ;;  %7866 = vmatmul.msk.f32.gmra.mxu0 %vm2804_vm2, %v16543_v62  ;;  %v16545_v3 = vld [vmem:[#allocation119_spill] sm:$0xff] }
 0x46e   :  { %7742 = vmatmul.msk.f32.gmra.mxu2 %vm2804_vm2, %v12975_v57  ;;  %v3403_v16 = vadd.f32 %v3402_v32, %v16544_v8  ;;  %v16548_v32 = vld [vmem:[#allocation28_spill] sm:$0xff] }
 0x46f   :  { %v12977_v51 = vadd.f32 %v4309_v21, %v4146_v29  ;;  %v2772_v29 = vrot.slane %v16545_v3, 2 }
 0x470   :  { %v3864_v44 = vadd.f32 %v3748_v54, %v3403_v16  ;;  %7677 = vmatmul.msk.f32.gmra.mxu1 %vm2804_vm2, %v16530_v24  ;;  %v16549_v54 = vld [vmem:[#allocation35_spill] sm:$0xff] }
 0x471   :  { %16542 = vst [vmem:[#allocation194_spill] sm:$0xff] %v12977_v51  ;;  %7805 = vmatmul.msk.f32.gmra.mxu3 %vm2804_vm2, %v16540_v20  ;;  %v3751_v45 = vpop.f32.mrf.mxu2  ;;  %v12990_v62 = vsel %vm283_vm0, %v2770_v61, %v2772_v29 }
 0x472   :  { %v4312_v21 = vpop.f32.mrf.mxu0  ;;  %16546 = vst [vmem:[#allocation71_spill] sm:$0xff] %v12990_v62 }
 0x474   :  { %v4031_v39 = vpop.f32.mrf.mxu3 }
 0x475   :  { %v4147_v51 = vadd.f32 %v4031_v39, %v3864_v44  ;;  %v3405_v57 = vpop.f32.mrf.mxu1  ;;  %7867 = vmatmul.msk.f32.gmra.mxu0 %vm2804_vm2, %v16548_v32  ;;  %v16550_v44 = vld [vmem:[#allocation127_spill] sm:$0xff] }
 0x476   :  { %7743 = vmatmul.msk.f32.gmra.mxu2 %vm2804_vm2, %v12990_v62  ;;  %v3406_v8 = vadd.f32 %v3405_v57, %v16549_v54  ;;  %v16553_v57 = vld [vmem:[#allocation128_spill] sm:$0xff] }
 0x477   :  { %v12992_v55 = vadd.f32 %v4312_v21, %v4147_v51  ;;  %v2774_v51 = vrot.slane %v16550_v44, 2 }
 0x478   :  { %v3865_v16 = vadd.f32 %v3751_v45, %v3406_v8  ;;  %7678 = vmatmul.msk.f32.gmra.mxu1 %vm2804_vm2, %v16535_v5  ;;  %v16554_v45 = vld [vmem:[#allocation11_spill] sm:$0xff] }
 0x479   :  { %16547 = vst [vmem:[#allocation195_spill] sm:$0xff] %v12992_v55  ;;  %7806 = vmatmul.msk.f32.gmra.mxu3 %vm2804_vm2, %v16545_v3  ;;  %v3754_v61 = vpop.f32.mrf.mxu2  ;;  %v13005_v32 = vsel %vm283_vm0, %v2772_v29, %v2774_v51 }
 0x47a   :  { %v4315_v21 = vpop.f32.mrf.mxu0  ;;  %16551 = vst [vmem:[#allocation35_spill] sm:$0xff] %v13005_v32 }
 0x47c   :  { %v4034_v39 = vpop.f32.mrf.mxu3 }
 0x47d   :  { %v4148_v55 = vadd.f32 %v4034_v39, %v3865_v16  ;;  %v3408_v62 = vpop.f32.mrf.mxu1  ;;  %7868 = vmatmul.msk.f32.gmra.mxu0 %vm2804_vm2, %v16553_v57  ;;  %v16555_v16 = vld [vmem:[#allocation47_spill] sm:$0xff] }
 0x47e   :  { %7744 = vmatmul.msk.f32.gmra.mxu2 %vm2804_vm2, %v13005_v32  ;;  %v3409_v54 = vadd.f32 %v3408_v62, %v16554_v45  ;;  %v16558_v62 = vld [vmem:[#allocation57_spill] sm:$0xff] }
 0x47f   :  { %v13007_v24 = vadd.f32 %v4315_v21, %v4148_v55  ;;  %v2776_v55 = vrot.slane %v16555_v16, 2 }
 0x480   :  { %v3866_v8 = vadd.f32 %v3754_v61, %v3409_v54  ;;  %7679 = vmatmul.msk.f32.gmra.mxu1 %vm2804_vm2, %v16540_v20  ;;  %v16559_v61 = vld [vmem:[#allocation20_spill] sm:$0xff]  ;;  %v16564_v20 = vld [vmem:[#allocation43_spill] sm:$0xff] }
 0x481   :  { %16552 = vst [vmem:[#allocation196_spill] sm:$0xff] %v13007_v24  ;;  %7807 = vmatmul.msk.f32.gmra.mxu3 %vm2804_vm2, %v16550_v44  ;;  %v3757_v29 = vpop.f32.mrf.mxu2  ;;  %v13020_v57 = vsel %vm283_vm0, %v2774_v51, %v2776_v55 }
 0x482   :  { %v4318_v21 = vpop.f32.mrf.mxu0  ;;  %16556 = vst [vmem:[#allocation11_spill] sm:$0xff] %v13020_v57 }
 0x484   :  { %v4037_v39 = vpop.f32.mrf.mxu3 }
 0x485   :  { %v4149_v24 = vadd.f32 %v4037_v39, %v3866_v8  ;;  %v3411_v32 = vpop.f32.mrf.mxu1  ;;  %7869 = vmatmul.msk.f32.gmra.mxu0 %vm2804_vm2, %v16558_v62  ;;  %v4740_v39 = vld [vmem:[%s15221_s2 + $0x1a8] sm:$0xff] }
 0x486   :  { %7745 = vmatmul.msk.f32.gmra.mxu2 %vm2804_vm2, %v13020_v57  ;;  %v3412_v45 = vadd.f32 %v3411_v32, %v16559_v61  ;;  %v4739_v32 = vld [vmem:[%s15221_s2 + $0x1a0] sm:$0xff]  ;;  %v16560_v61 = vld [vmem:[#allocation103_spill] sm:$0xff] }
 0x487   :  { %v13022_v5 = vadd.f32 %v4318_v21, %v4149_v24  ;;  %v5021_v21 = vld [vmem:[%s15221_s2 + $0x1e8] sm:$0xff]  ;;  %4753 = vmatpush.msra.mxu2 %v4740_v39  ;;  %v16565_v39 = vld [vmem:[#allocation16_spill] sm:$0xff] }
 0x488   :  { %v3867_v54 = vadd.f32 %v3757_v29, %v3412_v45  ;;  %7680 = vmatmul.msk.f32.gmra.mxu1 %vm2804_vm2, %v16545_v3  ;;  %v2778_v29 = vrot.slane %v16560_v61, 2  ;;  %5034 = vmatpush.msra.mxu3 %v5021_v21  ;;  %v16563_v3 = vld [vmem:[#allocation108_spill] sm:$0xff]  ;;  %v2780_v21 = vrot.slane %v16565_v39, 2 }
 0x489   :  { %16557 = vst [vmem:[#allocation197_spill] sm:$0xff] %v13022_v5  ;;  %7808 = vmatmul.msk.f32.gmra.mxu3 %vm2804_vm2, %v16555_v16  ;;  %v3760_v51 = vpop.f32.mrf.mxu2  ;;  %4754 = vmatpush.msra.mxu2 %v4739_v32  ;;  %v4737_v32 = vld [vmem:[%s15221_s2 + $0x190] sm:$0xff] }
 0x48a   :  { %v4321_v24 = vpop.f32.mrf.mxu0  ;;  %v13044_v5 = vsel %vm283_vm0, %v2776_v55, %v2778_v29  ;;  %v4738_v55 = vld [vmem:[%s15221_s2 + $0x198] sm:$0xff] }
 0x48b   :  { %16561 = vst [vmem:[#allocation20_spill] sm:$0xff] %v13044_v5  ;;  %4755 = vmatpush.msra.mxu2 %v4738_v55  ;;  %v5020_v55 = vld [vmem:[%s15221_s2 + $0x1e0] sm:$0xff] }
 0x48c   :  { %v4040_v8 = vpop.f32.mrf.mxu3  ;;  %5035 = vmatpush.msra.mxu3 %v5020_v55  ;;  %v4458_v55 = vld [vmem:[%s15221_s2 + $0x160] sm:$0xff] }
 0x48d   :  { %v4150_v45 = vadd.f32 %v4040_v8, %v3867_v54  ;;  %v3414_v62 = vpop.f32.mrf.mxu1  ;;  %7870 = vmatmul.msk.f32.gmra.mxu0 %vm2804_vm2, %v16563_v3  ;;  %v4459_v54 = vld [vmem:[%s15221_s2 + $0x168] sm:$0xff]  ;;  %4756 = vmatpush.msra.mxu2 %v4737_v32 }
 0x48e   :  { %7746 = vmatmul.msk.f32.gmra.mxu2 %vm2804_vm2, %v13044_v5  ;;  %v3415_v49 = vadd.f32 %v3414_v62, %v16564_v20  ;;  %4472 = vmatpush.msra.mxu1 %v4459_v54  ;;  %v4735_v54 = vld [vmem:[%s15221_s2 + $0x180] sm:$0xff] }
 0x48f   :  { %v13046_v57 = vadd.f32 %v4321_v24, %v4150_v45  ;;  %v4736_v45 = vld [vmem:[%s15221_s2 + $0x188] sm:$0xff] }
 0x490   :  { %v3868_v8 = vadd.f32 %v3760_v51, %v3415_v49  ;;  %7681 = vmatmul.msk.f32.gmra.mxu1 %vm2804_vm2, %v16550_v44  ;;  %v5302_v49 = vld [vmem:[%s15221_s2 + $0x228] sm:$0xff]  ;;  %v16568_v44 = vld [vmem:[#allocation73_spill] sm:$0xff]  ;;  %4757 = vmatpush.msra.mxu2 %v4736_v45 }
 0x491   :  { %16562 = vst [vmem:[#allocation198_spill] sm:$0xff] %v13046_v57  ;;  %7809 = vmatmul.msk.f32.gmra.mxu3 %vm2804_vm2, %v16560_v61  ;;  %v3763_v24 = vpop.f32.mrf.mxu2  ;;  %5315 = vmatpush.msra.mxu0 %v5302_v49  ;;  %v13080_v57 = vsel %vm283_vm0, %v2778_v29, %v2780_v21  ;;  %v5019_v29 = vld [vmem:[%s15221_s2 + $0x1d8] sm:$0xff] }
 0x492   :  { %v4324_v62 = vpop.f32.mrf.mxu0  ;;  %16566 = vst [vmem:[#allocation43_spill] sm:$0xff] %v13080_v57  ;;  %4758 = vmatpush.msra.mxu2 %v4735_v54  ;;  %5036 = vmatpush.msra.mxu3 %v5019_v29 }
 0x493   :  { %4473 = vmatpush.msra.mxu1 %v4458_v55 }
 0x494   :  { %v4043_v20 = vpop.f32.mrf.mxu3 }
 0x495   :  { %v4151_v51 = vadd.f32 %v4043_v20, %v3868_v8  ;;  %v3417_v3 = vpop.f32.mrf.mxu1  ;;  %7871 = vmatmul.msk.f32.gmra.mxu0 %vm2804_vm2, %v16568_v44  ;;  %v16569_v8 = vld [vmem:[#allocation132_spill] sm:$0xff]  ;;  %v5016_v44 = vld [vmem:[%s15221_s2 + $0x1c0] sm:$0xff] }
 0x496   :  { %7747 = vmatmul.msk.f32.gmra.mxu2 %vm2804_vm2, %v13080_v57  ;;  %v3418_v20 = vadd.f32 %v3417_v3, %v16569_v8  ;;  %v5018_v3 = vld [vmem:[%s15221_s2 + $0x1d0] sm:$0xff]  ;;  %v16573_v57 = vld [vmem:[#allocation118_spill] sm:$0xff] }
 0x497   :  { %v13082_v5 = vadd.f32 %v4324_v62, %v4151_v51  ;;  %v5017_v51 = vld [vmem:[%s15221_s2 + $0x1c8] sm:$0xff]  ;;  %5037 = vmatpush.msra.mxu3 %v5018_v3 }
 0x498   :  { %v3869_v62 = vadd.f32 %v3763_v24, %v3418_v20  ;;  %7682 = vmatmul.msk.f32.gmra.mxu1 %vm2804_vm2, %v16555_v16  ;;  %v16570_v24 = vld [vmem:[#allocation12_spill] sm:$0xff]  ;;  %v16578_v16 = vld [vmem:[#allocation29_spill] sm:$0xff] }
 0x499   :  { %16567 = vst [vmem:[#allocation16_spill] sm:$0xff] %v13082_v5  ;;  %7810 = vmatmul.msk.f32.gmra.mxu3 %vm2804_vm2, %v16565_v39  ;;  %v3766_v32 = vpop.f32.mrf.mxu2  ;;  %v2782_v54 = vrot.slane %v16570_v24, 2 }
 0x49a   :  { %v4327_v49 = vpop.f32.mrf.mxu0  ;;  %5038 = vmatpush.msra.mxu3 %v5017_v51  ;;  %v16575_v51 = vld [vmem:[#allocation114_spill] sm:$0xff] }
 0x49b   :  { %v13107_v20 = vsel %vm283_vm0, %v2780_v21, %v2782_v54  ;;  %v4457_v21 = vld [vmem:[%s15221_s2 + $0x158] sm:$0xff]  ;;  %v2784_v55 = vrot.slane %v16575_v51, 2 }
 0x49c   :  { %v4046_v45 = vpop.f32.mrf.mxu3  ;;  %16571 = vst [vmem:[#allocation132_spill] sm:$0xff] %v13107_v20  ;;  %5039 = vmatpush.msra.mxu3 %v5016_v44  ;;  %4474 = vmatpush.msra.mxu1 %v4457_v21  ;;  %v5300_v44 = vld [vmem:[%s15221_s2 + $0x218] sm:$0xff]  ;;  %v4454_v21 = vld [vmem:[%s15221_s2 + $0x140] sm:$0xff] }
 0x49d   :  { %v4152_v8 = vadd.f32 %v4046_v45, %v3869_v62  ;;  %v3420_v5 = vpop.f32.mrf.mxu1  ;;  %7872 = vmatmul.msk.f32.gmra.mxu0 %vm2804_vm2, %v16573_v57  ;;  %v16574_v62 = vld [vmem:[#allocation136_spill] sm:$0xff] }
 0x49e   :  { %7748 = vmatmul.msk.f32.gmra.mxu2 %vm2804_vm2, %v13107_v20  ;;  %v3421_v45 = vadd.f32 %v3420_v5, %v16574_v62  ;;  %v4456_v5 = vld [vmem:[%s15221_s2 + $0x150] sm:$0xff]  ;;  %v5301_v62 = vld [vmem:[%s15221_s2 + $0x220] sm:$0xff]  ;;  %v13143_v20 = vsel %vm283_vm0, %v2782_v54, %v2784_v55 }
 0x49f   :  { %v13109_v29 = vadd.f32 %v4327_v49, %v4152_v8  ;;  %4475 = vmatpush.msra.mxu1 %v4456_v5  ;;  %5316 = vmatpush.msra.mxu0 %v5301_v62  ;;  %16576 = vst [vmem:[#allocation136_spill] sm:$0xff] %v13143_v20  ;;  %v5299_v54 = vld [vmem:[%s15221_s2 + $0x210] sm:$0xff] }
 0x4a0   :  { %v3870_v49 = vadd.f32 %v3766_v32, %v3421_v45  ;;  %7683 = vmatmul.msk.f32.gmra.mxu1 %vm2804_vm2, %v16560_v61  ;;  %v4455_v32 = vld [vmem:[%s15221_s2 + $0x148] sm:$0xff] }
 0x4a1   :  { %16572 = vst [vmem:[#allocation12_spill] sm:$0xff] %v13109_v29  ;;  %7811 = vmatmul.msk.f32.gmra.mxu3 %vm2804_vm2, %v16570_v24  ;;  %v3769_v3 = vpop.f32.mrf.mxu2  ;;  %4476 = vmatpush.msra.mxu1 %v4455_v32 }
 0x4a2   :  { %v4330_v29 = vpop.f32.mrf.mxu0  ;;  %5317 = vmatpush.msra.mxu0 %v5300_v44 }
 0x4a3   :  { %4477 = vmatpush.msra.mxu1 %v4454_v21  ;;  %v13166_v21 = vsel %vm283_vm0, %v2784_v55, 0.0 }
 0x4a4   :  { %v4049_v8 = vpop.f32.mrf.mxu3  ;;  %5318 = vmatpush.msra.mxu0 %v5299_v54  ;;  %v16583_v54 = vld [vmem:[#allocation144_spill] sm:$0xff] }
 0x4a5   :  { %v4153_v45 = vadd.f32 %v4049_v8, %v3870_v49  ;;  %v3423_v61 = vpop.f32.mrf.mxu1  ;;  %7873 = vmatmul.msk.f32.gmra.mxu0 %vm2804_vm2, %v16578_v16  ;;  %v16579_v49 = vld [vmem:[#allocation140_spill] sm:$0xff] }
 0x4a6   :  { %7749 = vmatmul.msk.f32.gmra.mxu2 %vm2804_vm2, %v13143_v20  ;;  %v3424_v8 = vadd.f32 %v3423_v61, %v16579_v49  ;;  %16580 = vst [vmem:[#allocation140_spill] sm:$0xff] %v13166_v21 }
 0x4a7   :  { %v13145_v57 = vadd.f32 %v4330_v29, %v4153_v45  ;;  %v5298_v29 = vld [vmem:[%s15221_s2 + $0x208] sm:$0xff]  ;;  %v5297_v45 = vld [vmem:[%s15221_s2 + $0x200] sm:$0xff] }
 0x4a8   :  { %v3871_v5 = vadd.f32 %v3769_v3, %v3424_v8  ;;  %7684 = vmatmul.msk.f32.gmra.mxu1 %vm2804_vm2, %v16565_v39  ;;  %5319 = vmatpush.msra.mxu0 %v5298_v29  ;;  %v16582_v8 = vld [vmem:[#allocation14_spill] sm:$0xff] }
 0x4a9   :  { %16577 = vst [vmem:[#allocation114_spill] sm:$0xff] %v13145_v57  ;;  %7812 = vmatmul.msk.f32.gmra.mxu3 %vm2804_vm2, %v16575_v51  ;;  %v3772_v62 = vpop.f32.mrf.mxu2  ;;  %v15721_v57 = vmov 0.0  }
 0x4aa   :  { %v4333_v32 = vpop.f32.mrf.mxu0  ;;  %5320 = vmatpush.msra.mxu0 %v5297_v45 }
 0x4ac   :  { %v4052_v61 = vpop.f32.mrf.mxu3 }
 0x4ad   :  { %v4154_v44 = vadd.f32 %v4052_v61, %v3871_v5  ;;  %v3426_v3 = vpop.f32.mrf.mxu1  ;;  %7874 = vmatmul.msk.f32.gmra.mxu0 %vm2804_vm2, %v16582_v8 }
 0x4ae   :  { %7750 = vmatmul.msk.f32.gmra.mxu2 %vm2804_vm2, %v13166_v21  ;;  %v3427_v29 = vadd.f32 %v3426_v3, %v16583_v54  ;;  %v16586_v3 = vld [vmem:[#allocation148_spill] sm:$0xff] }
 0x4af   :  { %v13168_v49 = vadd.f32 %v4333_v32, %v4154_v44 }
 0x4b0   :  { %v3872_v20 = vadd.f32 %v3772_v62, %v3427_v29  ;;  %7685 = vmatmul.msk.f32.gmra.mxu1 %vm2804_vm2, %v16570_v24 }
 0x4b1   :  { %16581 = vst [vmem:[#allocation199_spill] sm:$0xff] %v13168_v49  ;;  %4102 = vmatmul.f32.gmra.mxu3 %v15721_v57  ;;  %v3775_v55 = vpop.f32.mrf.mxu2  ;;  %v16585_v49 = vld [vmem:[#allocation51_spill] sm:$0xff] }
 0x4b2   :  { %v4336_v61 = vpop.f32.mrf.mxu0 }
 0x4b4   :  { %v4055_v5 = vpop.f32.mrf.mxu3 }
 0x4b5   :  { %v4155_v32 = vadd.f32 %v4055_v5, %v3872_v20  ;;  %v3429_v44 = vpop.f32.mrf.mxu1  ;;  %4383 = vmatmul.f32.gmra.mxu0 %v15721_v57 }
 0x4b6   :  { %7937 = vmatmul.msk.f32.vlgmr.msra.gmra.mxu2 %vm2804_vm2, %v16585_v49  ;;  %v3430_v54 = vadd.f32 %v3429_v44, %v16586_v3  ;;  %v16589_v49 = vld [vmem:[#allocation38_spill] sm:$0xff]  ;;  %v16590_v3 = vld [vmem:[#allocation17_spill] sm:$0xff] }
 0x4b7   :  { %v13178_v45 = vadd.f32 %v4336_v61, %v4155_v32  ;;  %v16588_v32 = vld [vmem:[#allocation9_spill] sm:$0xff] }
 0x4b8   :  { %v3873_v62 = vadd.f32 %v3775_v55, %v3430_v54  ;;  %7686 = vmatmul.msk.f32.gmra.mxu1 %vm2804_vm2, %v16575_v51  ;;  %v16591_v54 = vld [vmem:[#allocation6_spill] sm:$0xff] }
 0x4b9   :  { %16584 = vst [vmem:[#allocation144_spill] sm:$0xff] %v13178_v45  ;;  %4105 = vmatmul.f32.gmra.mxu3 %v15721_v57  ;;  %v3778_v29 = vpop.f32.mrf.mxu2 }
 0x4ba   :  { %v4339_v8 = vpop.f32.mrf.mxu0 }
 0x4bc   :  { %v4058_v21 = vpop.f32.mrf.mxu3 }
 0x4bd   :  { %v4156_v20 = vadd.f32 %v4058_v21, %v3873_v62  ;;  %v3432_v61 = vpop.f32.mrf.mxu1  ;;  %4386 = vmatmul.f32.gmra.mxu0 %v15721_v57  ;;  %v16593_v57 = vld [vmem:[#allocation64_spill] sm:$0xff] }
 0x4be   :  { %7938 = vmatmul.msk.f32.gmra.mxu2 %vm2804_vm2, %v16588_v32  ;;  %v3433_v44 = vadd.f32 %v3432_v61, %v16589_v49  ;;  %v16594_v32 = vld [vmem:[#allocation45_spill] sm:$0xff]  ;;  %v16595_v61 = vld [vmem:[#allocation46_spill] sm:$0xff] }
 0x4bf   :  { %v13187_v5 = vadd.f32 %v4339_v8, %v4156_v20 }
 0x4c0   :  { %v3874_v55 = vadd.f32 %v3778_v29, %v3433_v44  ;;  %7875 = vmatmul.msk.f32.vlgmr.msra.gmra.mxu1 %vm2804_vm2, %v16591_v54  ;;  %v16597_v44 = vld [vmem:[#allocation31_spill] sm:$0xff] }
 0x4c1   :  { %16587 = vst [vmem:[#allocation51_spill] sm:$0xff] %v13187_v5  ;;  %7997 = vmatmul.msk.f32.vlgmr.msra.gmra.mxu3 %vm2804_vm2, %v16590_v3  ;;  %v3781_v45 = vpop.f32.mrf.mxu2  ;;  %v16596_v3 = vld [vmem:[#allocation26_spill] sm:$0xff]  ;;  %v16599_v5 = vld [vmem:[#allocation23_spill] sm:$0xff] }
 0x4c2   :  { %v4342_v21 = vpop.f32.mrf.mxu0 }
 0x4c4   :  { %v4061_v16 = vpop.f32.mrf.mxu3 }
 0x4c5   :  { %v4157_v8 = vadd.f32 %v4061_v16, %v3874_v55  ;;  %v3435_v20 = vpop.f32.mrf.mxu1  ;;  %8057 = vmatmul.msk.f32.vlgmr.msra.gmra.mxu0 %vm2804_vm2, %v16593_v57 }
 0x4c6   :  { %7939 = vmatmul.msk.f32.gmra.mxu2 %vm2804_vm2, %v16594_v32  ;;  %v3436_v49 = vadd.f32 %v3435_v20, %v16595_v61  ;;  %v16600_v32 = vld [vmem:[#allocation58_spill] sm:$0xff]  ;;  %v16601_v20 = vld [vmem:[#allocation32_spill] sm:$0xff] }
 0x4c7   :  { %v13197_v62 = vadd.f32 %v4342_v21, %v4157_v8 }
 0x4c8   :  { %v3875_v29 = vadd.f32 %v3781_v45, %v3436_v49  ;;  %7876 = vmatmul.msk.f32.gmra.mxu1 %vm2804_vm2, %v16597_v44 }
 0x4c9   :  { %16592 = vst [vmem:[#allocation148_spill] sm:$0xff] %v13197_v62  ;;  %7998 = vmatmul.msk.f32.gmra.mxu3 %vm2804_vm2, %v16596_v3  ;;  %v3784_v54 = vpop.f32.mrf.mxu2  ;;  %v16602_v3 = vld [vmem:[#allocation60_spill] sm:$0xff] }
 0x4ca   :  { %v4345_v55 = vpop.f32.mrf.mxu0 }
 0x4cc   :  { %v4064_v16 = vpop.f32.mrf.mxu3 }
 0x4cd   :  { %v4158_v21 = vadd.f32 %v4064_v16, %v3875_v29  ;;  %v3438_v62 = vpop.f32.mrf.mxu1  ;;  %8058 = vmatmul.msk.f32.gmra.mxu0 %vm2804_vm2, %v16599_v5 }
 0x4ce   :  { %7940 = vmatmul.msk.f32.gmra.mxu2 %vm2804_vm2, %v16600_v32  ;;  %v3439_v61 = vadd.f32 %v3438_v62, %v16601_v20  ;;  %v16605_v32 = vld [vmem:[#allocation77_spill] sm:$0xff]  ;;  %v16606_v62 = vld [vmem:[#allocation124_spill] sm:$0xff] }
 0x4cf   :  { %v13208_v8 = vadd.f32 %v4345_v55, %v4158_v21 }
 0x4d0   :  { %v3876_v45 = vadd.f32 %v3784_v54, %v3439_v61  ;;  %7877 = vmatmul.msk.f32.gmra.mxu1 %vm2804_vm2, %v16593_v57 }
 0x4d1   :  { %16598 = vst [vmem:[#allocation9_spill] sm:$0xff] %v13208_v8  ;;  %7999 = vmatmul.msk.f32.gmra.mxu3 %vm2804_vm2, %v16602_v3  ;;  %v3787_v49 = vpop.f32.mrf.mxu2  ;;  %v16604_v8 = vld [vmem:[#allocation33_spill] sm:$0xff]  ;;  %v16607_v3 = vld [vmem:[#allocation80_spill] sm:$0xff] }
 0x4d2   :  { %v4348_v44 = vpop.f32.mrf.mxu0 }
 0x4d4   :  { %v4067_v29 = vpop.f32.mrf.mxu3 }
 0x4d5   :  { %v4159_v16 = vadd.f32 %v4067_v29, %v3876_v45  ;;  %v3441_v21 = vpop.f32.mrf.mxu1  ;;  %8059 = vmatmul.msk.f32.gmra.mxu0 %vm2804_vm2, %v16604_v8 }
 0x4d6   :  { %7941 = vmatmul.msk.f32.gmra.mxu2 %vm2804_vm2, %v16605_v32  ;;  %v3442_v20 = vadd.f32 %v3441_v21, %v16606_v62  ;;  %v16610_v32 = vld [vmem:[#allocation88_spill] sm:$0xff]  ;;  %v16611_v21 = vld [vmem:[#allocation30_spill] sm:$0xff] }
 0x4d7   :  { %v13219_v55 = vadd.f32 %v4348_v44, %v4159_v16 }
 0x4d8   :  { %v3877_v54 = vadd.f32 %v3787_v49, %v3442_v20  ;;  %7878 = vmatmul.msk.f32.gmra.mxu1 %vm2804_vm2, %v16599_v5 }
 0x4d9   :  { %16603 = vst [vmem:[#allocation38_spill] sm:$0xff] %v13219_v55  ;;  %8000 = vmatmul.msk.f32.gmra.mxu3 %vm2804_vm2, %v16607_v3  ;;  %v3790_v57 = vpop.f32.mrf.mxu2  ;;  %v16609_v55 = vld [vmem:[#allocation68_spill] sm:$0xff]  ;;  %v16612_v3 = vld [vmem:[#allocation90_spill] sm:$0xff] }
 0x4da   :  { %v4351_v45 = vpop.f32.mrf.mxu0 }
 0x4dc   :  { %v4070_v61 = vpop.f32.mrf.mxu3 }
 0x4dd   :  { %v4160_v29 = vadd.f32 %v4070_v61, %v3877_v54  ;;  %v3444_v16 = vpop.f32.mrf.mxu1  ;;  %8060 = vmatmul.msk.f32.gmra.mxu0 %vm2804_vm2, %v16609_v55 }
 0x4de   :  { %7942 = vmatmul.msk.f32.gmra.mxu2 %vm2804_vm2, %v16610_v32  ;;  %v3445_v62 = vadd.f32 %v3444_v16, %v16611_v21  ;;  %v16615_v32 = vld [vmem:[#allocation72_spill] sm:$0xff]  ;;  %v16616_v16 = vld [vmem:[#allocation25_spill] sm:$0xff] }
 0x4df   :  { %v13230_v44 = vadd.f32 %v4351_v45, %v4160_v29 }
 0x4e0   :  { %v3878_v49 = vadd.f32 %v3790_v57, %v3445_v62  ;;  %7879 = vmatmul.msk.f32.gmra.mxu1 %vm2804_vm2, %v16604_v8 }
 0x4e1   :  { %16608 = vst [vmem:[#allocation17_spill] sm:$0xff] %v13230_v44  ;;  %8001 = vmatmul.msk.f32.gmra.mxu3 %vm2804_vm2, %v16612_v3  ;;  %v3793_v5 = vpop.f32.mrf.mxu2  ;;  %v16614_v44 = vld [vmem:[#allocation41_spill] sm:$0xff]  ;;  %v16617_v3 = vld [vmem:[#allocation95_spill] sm:$0xff] }
 0x4e2   :  { %v4354_v54 = vpop.f32.mrf.mxu0 }
 0x4e4   :  { %v4073_v20 = vpop.f32.mrf.mxu3 }
 0x4e5   :  { %v4161_v61 = vadd.f32 %v4073_v20, %v3878_v49  ;;  %v3447_v29 = vpop.f32.mrf.mxu1  ;;  %8061 = vmatmul.msk.f32.gmra.mxu0 %vm2804_vm2, %v16614_v44 }
 0x4e6   :  { %7943 = vmatmul.msk.f32.gmra.mxu2 %vm2804_vm2, %v16615_v32  ;;  %v3448_v21 = vadd.f32 %v3447_v29, %v16616_v16  ;;  %v16620_v32 = vld [vmem:[#allocation2_spill] sm:$0xff]  ;;  %v16621_v29 = vld [vmem:[#allocation27_spill] sm:$0xff] }
 0x4e7   :  { %v13241_v45 = vadd.f32 %v4354_v54, %v4161_v61 }
 0x4e8   :  { %v3879_v57 = vadd.f32 %v3793_v5, %v3448_v21  ;;  %7880 = vmatmul.msk.f32.gmra.mxu1 %vm2804_vm2, %v16609_v55 }
 0x4e9   :  { %16613 = vst [vmem:[#allocation6_spill] sm:$0xff] %v13241_v45  ;;  %8002 = vmatmul.msk.f32.gmra.mxu3 %vm2804_vm2, %v16617_v3  ;;  %v3796_v8 = vpop.f32.mrf.mxu2  ;;  %v16619_v45 = vld [vmem:[#allocation49_spill] sm:$0xff]  ;;  %v16622_v3 = vld [vmem:[#allocation83_spill] sm:$0xff] }
 0x4ea   :  { %v4357_v49 = vpop.f32.mrf.mxu0 }
 0x4ec   :  { %v4076_v62 = vpop.f32.mrf.mxu3 }
 0x4ed   :  { %v4162_v20 = vadd.f32 %v4076_v62, %v3879_v57  ;;  %v3450_v61 = vpop.f32.mrf.mxu1  ;;  %8062 = vmatmul.msk.f32.gmra.mxu0 %vm2804_vm2, %v16619_v45 }
 0x4ee   :  { %7944 = vmatmul.msk.f32.gmra.mxu2 %vm2804_vm2, %v16620_v32  ;;  %v3451_v16 = vadd.f32 %v3450_v61, %v16621_v29  ;;  %v16625_v32 = vld [vmem:[#allocation106_spill] sm:$0xff] }
 0x4ef   :  { %v13252_v54 = vadd.f32 %v4357_v49, %v4162_v20  ;;  %v16626_v61 = vld [vmem:[#allocation10_spill] sm:$0xff] }
 0x4f0   :  { %v3880_v5 = vadd.f32 %v3796_v8, %v3451_v16  ;;  %7881 = vmatmul.msk.f32.gmra.mxu1 %vm2804_vm2, %v16614_v44 }
 0x4f1   :  { %16618 = vst [vmem:[#allocation64_spill] sm:$0xff] %v13252_v54  ;;  %8003 = vmatmul.msk.f32.gmra.mxu3 %vm2804_vm2, %v16622_v3  ;;  %v3799_v55 = vpop.f32.mrf.mxu2  ;;  %v16624_v54 = vld [vmem:[#allocation42_spill] sm:$0xff]  ;;  %v16627_v3 = vld [vmem:[#allocation109_spill] sm:$0xff] }
 0x4f2   :  { %v4360_v57 = vpop.f32.mrf.mxu0 }
 0x4f4   :  { %v4079_v21 = vpop.f32.mrf.mxu3 }
 0x4f5   :  { %v4163_v62 = vadd.f32 %v4079_v21, %v3880_v5  ;;  %v3453_v20 = vpop.f32.mrf.mxu1  ;;  %8063 = vmatmul.msk.f32.gmra.mxu0 %vm2804_vm2, %v16624_v54 }
 0x4f6   :  { %7945 = vmatmul.msk.f32.gmra.mxu2 %vm2804_vm2, %v16625_v32  ;;  %v3454_v29 = vadd.f32 %v3453_v20, %v16626_v61  ;;  %v16630_v32 = vld [vmem:[#allocation122_spill] sm:$0xff]  ;;  %v16631_v20 = vld [vmem:[#allocation84_spill] sm:$0xff] }
 0x4f7   :  { %v13263_v49 = vadd.f32 %v4360_v57, %v4163_v62 }
 0x4f8   :  { %v3881_v8 = vadd.f32 %v3799_v55, %v3454_v29  ;;  %7882 = vmatmul.msk.f32.gmra.mxu1 %vm2804_vm2, %v16619_v45 }
 0x4f9   :  { %16623 = vst [vmem:[#allocation45_spill] sm:$0xff] %v13263_v49  ;;  %8004 = vmatmul.msk.f32.gmra.mxu3 %vm2804_vm2, %v16627_v3  ;;  %v3802_v44 = vpop.f32.mrf.mxu2  ;;  %v16629_v49 = vld [vmem:[#allocation130_spill] sm:$0xff]  ;;  %v16632_v3 = vld [vmem:[#allocation125_spill] sm:$0xff] }
 0x4fa   :  { %v4363_v5 = vpop.f32.mrf.mxu0 }
 0x4fc   :  { %v4082_v16 = vpop.f32.mrf.mxu3 }
 0x4fd   :  { %v4164_v21 = vadd.f32 %v4082_v16, %v3881_v8  ;;  %v3456_v62 = vpop.f32.mrf.mxu1  ;;  %8064 = vmatmul.msk.f32.gmra.mxu0 %vm2804_vm2, %v16629_v49 }
 0x4fe   :  { %7946 = vmatmul.msk.f32.gmra.mxu2 %vm2804_vm2, %v16630_v32  ;;  %v3457_v61 = vadd.f32 %v3456_v62, %v16631_v20  ;;  %v16635_v32 = vld [vmem:[#allocation104_spill] sm:$0xff]  ;;  %v16636_v62 = vld [vmem:[#allocation54_spill] sm:$0xff] }
 0x4ff   :  { %v13274_v57 = vadd.f32 %v4363_v5, %v4164_v21 }
 0x500   :  { %v3882_v55 = vadd.f32 %v3802_v44, %v3457_v61  ;;  %7883 = vmatmul.msk.f32.gmra.mxu1 %vm2804_vm2, %v16624_v54 }
 0x501   :  { %16628 = vst [vmem:[#allocation46_spill] sm:$0xff] %v13274_v57  ;;  %8005 = vmatmul.msk.f32.gmra.mxu3 %vm2804_vm2, %v16632_v3  ;;  %v3805_v45 = vpop.f32.mrf.mxu2  ;;  %v16634_v57 = vld [vmem:[#allocation134_spill] sm:$0xff]  ;;  %v16637_v3 = vld [vmem:[#allocation99_spill] sm:$0xff] }
 0x502   :  { %v4366_v8 = vpop.f32.mrf.mxu0 }
 0x504   :  { %v4085_v29 = vpop.f32.mrf.mxu3 }
 0x505   :  { %v4165_v16 = vadd.f32 %v4085_v29, %v3882_v55  ;;  %v3459_v21 = vpop.f32.mrf.mxu1  ;;  %8065 = vmatmul.msk.f32.gmra.mxu0 %vm2804_vm2, %v16634_v57 }
 0x506   :  { %7947 = vmatmul.msk.f32.gmra.mxu2 %vm2804_vm2, %v16635_v32  ;;  %v3460_v20 = vadd.f32 %v3459_v21, %v16636_v62  ;;  %v16640_v32 = vld [vmem:[#allocation59_spill] sm:$0xff]  ;;  %v16641_v21 = vld [vmem:[#allocation133_spill] sm:$0xff] }
 0x507   :  { %v13285_v5 = vadd.f32 %v4366_v8, %v4165_v16 }
 0x508   :  { %v3883_v44 = vadd.f32 %v3805_v45, %v3460_v20  ;;  %7884 = vmatmul.msk.f32.gmra.mxu1 %vm2804_vm2, %v16629_v49 }
 0x509   :  { %16633 = vst [vmem:[#allocation26_spill] sm:$0xff] %v13285_v5  ;;  %8006 = vmatmul.msk.f32.gmra.mxu3 %vm2804_vm2, %v16637_v3  ;;  %v3808_v54 = vpop.f32.mrf.mxu2  ;;  %v16639_v5 = vld [vmem:[#allocation138_spill] sm:$0xff]  ;;  %v16642_v3 = vld [vmem:[#allocation111_spill] sm:$0xff] }
 0x50a   :  { %v4369_v55 = vpop.f32.mrf.mxu0 }
 0x50c   :  { %v4088_v61 = vpop.f32.mrf.mxu3 }
 0x50d   :  { %v4166_v29 = vadd.f32 %v4088_v61, %v3883_v44  ;;  %v3462_v16 = vpop.f32.mrf.mxu1  ;;  %8066 = vmatmul.msk.f32.gmra.mxu0 %vm2804_vm2, %v16639_v5 }
 0x50e   :  { %7948 = vmatmul.msk.f32.gmra.mxu2 %vm2804_vm2, %v16640_v32  ;;  %v3463_v62 = vadd.f32 %v3462_v16, %v16641_v21  ;;  %v16644_v16 = vld [vmem:[#allocation137_spill] sm:$0xff]  ;;  %v16645_v21 = vld [vmem:[#allocation8_spill] sm:$0xff] }
 0x50f   :  { %v13296_v8 = vadd.f32 %v4369_v55, %v4166_v29 }
 0x510   :  { %v3884_v45 = vadd.f32 %v3808_v54, %v3463_v62  ;;  %7885 = vmatmul.msk.f32.gmra.mxu1 %vm2804_vm2, %v16634_v57 }
 0x511   :  { %16638 = vst [vmem:[#allocation31_spill] sm:$0xff] %v13296_v8  ;;  %8007 = vmatmul.msk.f32.gmra.mxu3 %vm2804_vm2, %v16642_v3  ;;  %v3811_v49 = vpop.f32.mrf.mxu2  ;;  %v16643_v8 = vld [vmem:[#allocation142_spill] sm:$0xff] }
 0x512   :  { %v4372_v44 = vpop.f32.mrf.mxu0 }
 0x514   :  { %v4091_v20 = vpop.f32.mrf.mxu3 }
 0x515   :  { %v4167_v61 = vadd.f32 %v4091_v20, %v3884_v45  ;;  %v3465_v29 = vpop.f32.mrf.mxu1  ;;  %8067 = vmatmul.msk.f32.gmra.mxu0 %vm2804_vm2, %v16643_v8 }
 0x516   :  { %7949 = vmatmul.msk.f32.gmra.mxu2 %vm2804_vm2, %v11838_v58  ;;  %v3466_v32 = vadd.f32 %v3465_v29, %v16644_v16  ;;  %v16647_v58 = vld [vmem:[#allocation141_spill] sm:$0xff] }
 0x517   :  { %v13307_v55 = vadd.f32 %v4372_v44, %v4167_v61  ;;  %v16646_v61 = vld [vmem:[#allocation146_spill] sm:$0xff]  ;;  %v16648_v16 = vld [vmem:[#allocation117_spill] sm:$0xff] }
 0x518   :  { %v3885_v54 = vadd.f32 %v3811_v49, %v3466_v32  ;;  %7886 = vmatmul.msk.f32.gmra.mxu1 %vm2804_vm2, %v16639_v5 }
 0x519   :  { %8008 = vmatmul.msk.f32.gmra.mxu3 %vm2804_vm2, %v16645_v21  ;;  %v3814_v57 = vpop.f32.mrf.mxu2 }
 0x51a   :  { %v4375_v3 = vpop.f32.mrf.mxu0 }
 0x51c   :  { %v4094_v62 = vpop.f32.mrf.mxu3 }
 0x51d   :  { %v4168_v45 = vadd.f32 %v4094_v62, %v3885_v54  ;;  %v3468_v44 = vpop.f32.mrf.mxu1  ;;  %8068 = vmatmul.msk.f32.gmra.mxu0 %vm2804_vm2, %v16646_v61 }
 0x51e   :  { %7950 = vmatmul.msk.f32.gmra.mxu2 %vm2804_vm2, %v11898_v0  ;;  %v3469_v29 = vadd.f32 %v3468_v44, %v16647_v58  ;;  %v16650_v0 = vld [vmem:[#allocation145_spill] sm:$0xff]  ;;  %v16651_v58 = vld [vmem:[#allocation18_spill] sm:$0xff] }
 0x51f   :  { %v13318_v20 = vadd.f32 %v4375_v3, %v4168_v45  ;;  %v16649_v45 = vld [vmem:[#allocation150_spill] sm:$0xff] }
 0x520   :  { %v3886_v49 = vadd.f32 %v3814_v57, %v3469_v29  ;;  %7887 = vmatmul.msk.f32.gmra.mxu1 %vm2804_vm2, %v16643_v8 }
 0x521   :  { %8009 = vmatmul.msk.f32.gmra.mxu3 %vm2804_vm2, %v16648_v16  ;;  %v3817_v5 = vpop.f32.mrf.mxu2 }
 0x522   :  { %v4378_v21 = vpop.f32.mrf.mxu0 }
 0x524   :  { %v4097_v32 = vpop.f32.mrf.mxu3 }
 0x525   :  { %v4169_v54 = vadd.f32 %v4097_v32, %v3886_v49  ;;  %v3471_v3 = vpop.f32.mrf.mxu1  ;;  %8069 = vmatmul.msk.f32.gmra.mxu0 %vm2804_vm2, %v16649_v45 }
 0x526   :  { %7951 = vmatmul.msk.f32.gmra.mxu2 %vm2804_vm2, %v11990_v13  ;;  %v3472_v44 = vadd.f32 %v3471_v3, %v16650_v0  ;;  %v16653_v13 = vld [vmem:[#allocation149_spill] sm:$0xff] }
 0x527   :  { %v13329_v62 = vadd.f32 %v4378_v21, %v4169_v54  ;;  %v16652_v54 = vld [vmem:[#allocation153_spill] sm:$0xff] }
 0x528   :  { %v3887_v57 = vadd.f32 %v3817_v5, %v3472_v44  ;;  %7888 = vmatmul.msk.f32.gmra.mxu1 %vm2804_vm2, %v16646_v61 }
 0x529   :  { %8010 = vmatmul.msk.f32.gmra.mxu3 %vm2804_vm2, %v16651_v58  ;;  %v3820_v8 = vpop.f32.mrf.mxu2 }
 0x52a   :  { %v4381_v16 = vpop.f32.mrf.mxu0 }
 0x52c   :  { %v4100_v29 = vpop.f32.mrf.mxu3 }
 0x52d   :  { %v4170_v49 = vadd.f32 %v4100_v29, %v3887_v57  ;;  %v3474_v21 = vpop.f32.mrf.mxu1  ;;  %8070 = vmatmul.msk.f32.gmra.mxu0 %vm2804_vm2, %v16652_v54 }
 0x52e   :  { %7952 = vmatmul.msk.f32.gmra.mxu2 %vm2804_vm2, %v12020_v15  ;;  %v3475_v3 = vadd.f32 %v3474_v21, %v16653_v13  ;;  %v16655_v15 = vld [vmem:[#allocation152_spill] sm:$0xff] }
 0x52f   :  { %v13340_v32 = vadd.f32 %v4381_v16, %v4170_v49 }
 0x530   :  { %v3888_v5 = vadd.f32 %v3820_v8, %v3475_v3  ;;  %7889 = vmatmul.msk.f32.gmra.mxu1 %vm2804_vm2, %v16649_v45 }
 0x531   :  { %8011 = vmatmul.msk.f32.gmra.mxu3 %vm2804_vm2, %v12047_v46  ;;  %v3823_v61 = vpop.f32.mrf.mxu2 }
 0x532   :  { %v4384_v44 = vpop.f32.mrf.mxu0 }
 0x534   :  { %v4103_v0 = vpop.f32.mrf.mxu3 }
 0x535   :  { %v4171_v58 = vadd.f32 %v4103_v0, %v3888_v5  ;;  %v3477_v29 = vpop.f32.mrf.mxu1  ;;  %8071 = vmatmul.msk.f32.gmra.mxu0 %vm2804_vm2, %v12396_v22  ;;  %v16657_v5 = vld [vmem:[#allocation155_spill] sm:$0xff] }
 0x536   :  { %7953 = vmatmul.msk.f32.gmra.mxu2 %vm2804_vm2, %v16333_v42  ;;  %v3478_v16 = vadd.f32 %v3477_v29, %v16655_v15  ;;  %v16658_v42 = vld [vmem:[#allocation154_spill] sm:$0xff] }
 0x537   :  { %v13351_v57 = vadd.f32 %v4384_v44, %v4171_v58 }
 0x538   :  { %v3889_v46 = vadd.f32 %v3823_v61, %v3478_v16  ;;  %7890 = vmatmul.msk.f32.gmra.mxu1 %vm2804_vm2, %v16652_v54 }
 0x539   :  { %16654 = vst [vmem:[#allocation23_spill] sm:$0xff] %v13351_v57  ;;  %8012 = vmatmul.msk.f32.gmra.mxu3 %vm2804_vm2, %v12073_v11  ;;  %v4760_v45 = vpop.f32.mrf.mxu2  ;;  %v16659_v11 = vld [vmem:[#allocation87_spill] sm:$0xff] }
 0x53a   :  { %v4387_v49 = vpop.f32.mrf.mxu0  ;;  %v16736_v57 = vld [vmem:[#allocation19_spill] sm:$0xff] }
 0x53c   :  { %v4106_v8 = vpop.f32.mrf.mxu3 }
 0x53d   :  { %v4172_v21 = vadd.f32 %v4106_v8, %v3889_v46  ;;  %v4479_v3 = vpop.f32.mrf.mxu1  ;;  %8072 = vmatmul.msk.f32.gmra.mxu0 %vm2804_vm2, %v16657_v5  ;;  %v16660_v46 = vld [vmem:[#allocation85_spill] sm:$0xff] }
 0x53e   :  { %7954 = vmatmul.msk.f32.gmra.mxu2 %vm2804_vm2, %v16412_v26  ;;  %v4671_v0 = vadd.f32 %v4479_v3, %v16658_v42  ;;  %v16661_v26 = vld [vmem:[#allocation156_spill] sm:$0xff] }
 0x53f   :  { %v13362_v13 = vadd.f32 %v4387_v49, %v4172_v21  ;;  %v16662_v49 = vld [vmem:[#allocation3_spill] sm:$0xff] }
 0x540   :  { %v4952_v61 = vadd.f32 %v4760_v45, %v4671_v0  ;;  %7891 = vmatmul.msk.f32.gmra.mxu1 %vm2804_vm2, %v12396_v22 }
 0x541   :  { %16656 = vst [vmem:[#allocation58_spill] sm:$0xff] %v13362_v13  ;;  %8013 = vmatmul.msk.f32.gmra.mxu3 %vm2804_vm2, %v16659_v11  ;;  %v4763_v54 = vpop.f32.mrf.mxu2 }
 0x542   :  { %v5322_v58 = vpop.f32.mrf.mxu0 }
 0x544   :  { %v5041_v44 = vpop.f32.mrf.mxu3 }
 0x545   :  { %v5233_v29 = vadd.f32 %v5041_v44, %v4952_v61  ;;  %v4482_v16 = vpop.f32.mrf.mxu1  ;;  %8073 = vmatmul.msk.f32.gmra.mxu0 %vm2804_vm2, %v16660_v46  ;;  %v16663_v61 = vld [vmem:[#allocation70_spill] sm:$0xff] }
 0x546   :  { %7955 = vmatmul.msk.f32.gmra.mxu2 %vm2804_vm2, %v16416_v34  ;;  %v4672_v8 = vadd.f32 %v4482_v16, %v16661_v26  ;;  %v16664_v34 = vld [vmem:[#allocation157_spill] sm:$0xff] }
 0x547   :  { %v5514_v15 = vadd.f32 %v5322_v58, %v5233_v29  ;;  %v16665_v58 = vld [vmem:[#allocation86_spill] sm:$0xff] }
 0x548   :  { %v4953_v45 = vadd.f32 %v4763_v54, %v4672_v8  ;;  %7892 = vmatmul.msk.f32.gmra.mxu1 %vm2804_vm2, %v16657_v5 }
 0x549   :  { %8014 = vmatmul.msk.f32.gmra.mxu3 %vm2804_vm2, %v16662_v49  ;;  %v4766_v22 = vpop.f32.mrf.mxu2 }
 0x54a   :  { %v5325_v3 = vpop.f32.mrf.mxu0 }
 0x54c   :  { %v5044_v21 = vpop.f32.mrf.mxu3 }
 0x54d   :  { %v5234_v42 = vadd.f32 %v5044_v21, %v4953_v45  ;;  %v4485_v11 = vpop.f32.mrf.mxu1  ;;  %8074 = vmatmul.msk.f32.gmra.mxu0 %vm2804_vm2, %v16663_v61  ;;  %v16666_v45 = vld [vmem:[#allocation74_spill] sm:$0xff] }
 0x54e   :  { %7956 = vmatmul.msk.f32.gmra.mxu2 %vm2804_vm2, %v16420_v63  ;;  %v4673_v44 = vadd.f32 %v4485_v11, %v16664_v34  ;;  %v16667_v63 = vld [vmem:[#allocation158_spill] sm:$0xff] }
 0x54f   :  { %v5515_v0 = vadd.f32 %v5325_v3, %v5234_v42 }
 0x550   :  { %v4954_v54 = vadd.f32 %v4766_v22, %v4673_v44  ;;  %7893 = vmatmul.msk.f32.gmra.mxu1 %vm2804_vm2, %v16660_v46 }
 0x551   :  { %8015 = vmatmul.msk.f32.gmra.mxu3 %vm2804_vm2, %v16665_v58  ;;  %v4769_v5 = vpop.f32.mrf.mxu2  ;;  %v16668_v58 = vld [vmem:[#allocation102_spill] sm:$0xff] }
 0x552   :  { %v5328_v16 = vpop.f32.mrf.mxu0 }
 0x554   :  { %v5047_v29 = vpop.f32.mrf.mxu3 }
 0x555   :  { %v5235_v26 = vadd.f32 %v5047_v29, %v4954_v54  ;;  %v4488_v49 = vpop.f32.mrf.mxu1  ;;  %8075 = vmatmul.msk.f32.gmra.mxu0 %vm2804_vm2, %v16666_v45 }
 0x556   :  { %7957 = vmatmul.msk.f32.gmra.mxu2 %vm2804_vm2, %v16424_v14  ;;  %v4674_v21 = vadd.f32 %v4488_v49, %v16667_v63  ;;  %v16669_v14 = vld [vmem:[#allocation159_spill] sm:$0xff]  ;;  %v16670_v63 = vld [vmem:[#allocation105_spill] sm:$0xff] }
 0x557   :  { %v5516_v8 = vadd.f32 %v5328_v16, %v5235_v26 }
 0x558   :  { %v4955_v22 = vadd.f32 %v4769_v5, %v4674_v21  ;;  %7894 = vmatmul.msk.f32.gmra.mxu1 %vm2804_vm2, %v16663_v61 }
 0x559   :  { %8016 = vmatmul.msk.f32.gmra.mxu3 %vm2804_vm2, %v16427_v41  ;;  %v4772_v46 = vpop.f32.mrf.mxu2 }
 0x55a   :  { %v5331_v42 = vpop.f32.mrf.mxu0 }
 0x55c   :  { %v5050_v3 = vpop.f32.mrf.mxu3 }
 0x55d   :  { %v5236_v11 = vadd.f32 %v5050_v3, %v4955_v22  ;;  %v4491_v44 = vpop.f32.mrf.mxu1  ;;  %8076 = vmatmul.msk.f32.gmra.mxu0 %vm2804_vm2, %v16668_v58 }
 0x55e   :  { %7958 = vmatmul.msk.f32.gmra.mxu2 %vm2804_vm2, %v11365_v18  ;;  %v4675_v54 = vadd.f32 %v4491_v44, %v16669_v14  ;;  %v13414_v18 = vld [vmem:[%s15221_s2 + $0x34a] ss:$0 sm:$0xff] }
 0x55f   :  { %v5517_v34 = vadd.f32 %v5331_v42, %v5236_v11  ;;  %v13427_v3 = vadd.f32 %v13414_v18, %v5514_v15 }
 0x560   :  { %v4956_v41 = vadd.f32 %v4772_v46, %v4675_v54  ;;  %7895 = vmatmul.msk.f32.gmra.mxu1 %vm2804_vm2, %v16666_v45  ;;  %v13422_v45 = vadd.f32 %v13414_v18, %v5515_v0  ;;  %v16672_v0 = vld [vmem:[#allocation161_spill] sm:$0xff] }
 0x561   :  { %8017 = vmatmul.msk.f32.gmra.mxu3 %vm2804_vm2, %v16430_v19  ;;  %v4775_v61 = vpop.f32.mrf.mxu2  ;;  %v16671_v19 = vld [vmem:[#allocation160_spill] sm:$0xff] }
 0x562   :  { %v5334_v29 = vpop.f32.mrf.mxu0 }
 0x564   :  { %v5053_v5 = vpop.f32.mrf.mxu3 }
 0x565   :  { %v5237_v16 = vadd.f32 %v5053_v5, %v4956_v41  ;;  %v4494_v49 = vpop.f32.mrf.mxu1  ;;  %8077 = vmatmul.msk.f32.gmra.mxu0 %vm2804_vm2, %v16670_v63  ;;  %v5581_v41 = vadd.f32 %v13414_v18, %v5516_v8  ;;  %v16673_v8 = vld [vmem:[#allocation121_spill] sm:$0xff] }
 0x566   :  { %7959 = vmatmul.msk.f32.gmra.mxu2 %vm2804_vm2, %v11616_v17  ;;  %v4676_v21 = vadd.f32 %v4494_v49, %v16671_v19  ;;  %v15723_v17 = vmax.f32 %v13422_v45, 0.0 }
 0x567   :  { %v5518_v26 = vadd.f32 %v5334_v29, %v5237_v16  ;;  %v13445_v19 = vmax.f32 %v5581_v41, 0.0 }
 0x568   :  { %v4957_v22 = vadd.f32 %v4775_v61, %v4676_v21  ;;  %7896 = vmatmul.msk.f32.gmra.mxu1 %vm2804_vm2, %v16668_v58  ;;  %v5772_v15 = vrot.slane %v15723_v17, 1 }
 0x569   :  { %8018 = vmatmul.msk.f32.gmra.mxu3 %vm2804_vm2, %v11655_v60  ;;  %v4778_v46 = vpop.f32.mrf.mxu2  ;;  %v15724_v60 = vmax.f32 %v13427_v3, 0.0 }
 0x56a   :  { %v5337_v11 = vpop.f32.mrf.mxu0 }
 0x56b   :  { %v5771_v29 = vrot.slane %v15724_v60, 1 }
 0x56c   :  { %v5056_v42 = vpop.f32.mrf.mxu3 }
 0x56d   :  { %v5238_v44 = vadd.f32 %v5056_v42, %v4957_v22  ;;  %v4497_v54 = vpop.f32.mrf.mxu1  ;;  %8078 = vmatmul.msk.f32.gmra.mxu0 %vm2804_vm2, %v12501_v10  ;;  %v5582_v42 = vadd.f32 %v13414_v18, %v5517_v34 }
 0x56e   :  { %7960 = vmatmul.msk.f32.gmra.mxu2 %vm2804_vm2, %v11732_v12  ;;  %v4677_v58 = vadd.f32 %v4497_v54, %v16672_v0 }
 0x56f   :  { %v5519_v14 = vadd.f32 %v5337_v11, %v5238_v44  ;;  %v13461_v41 = vmax.f32 %v5582_v42, 0.0 }
 0x570   :  { %v4958_v61 = vadd.f32 %v4778_v46, %v4677_v58  ;;  %7897 = vmatmul.msk.f32.gmra.mxu1 %vm2804_vm2, %v16670_v63  ;;  %v5774_v46 = vrot.slane %v13445_v19, 1 }
 0x571   :  { %8019 = vmatmul.msk.f32.gmra.mxu3 %vm2804_vm2, %v11770_v7  ;;  %v4781_v5 = vpop.f32.mrf.mxu2  ;;  %v13448_v7 = vsel %vm153_vm1, %v5771_v29, %v5772_v15 }
 0x572   :  { %v5340_v12 = vpop.f32.mrf.mxu0 }
 0x574   :  { %v5059_v16 = vpop.f32.mrf.mxu3 }
 0x575   :  { %v5239_v49 = vadd.f32 %v5059_v16, %v4958_v61  ;;  %v4500_v22 = vpop.f32.mrf.mxu1  ;;  %8079 = vmatmul.msk.f32.gmra.mxu0 %vm2804_vm2, %v12516_v4  ;;  %v5583_v16 = vadd.f32 %v13414_v18, %v5518_v26 }
 0x576   :  { %7961 = vmatmul.msk.f32.gmra.mxu2 %vm2804_vm2, %v11780_v27  ;;  %v4678_v63 = vadd.f32 %v4500_v22, %v16673_v8  ;;  %v13464_v27 = vsel %vm153_vm1, %v5772_v15, %v5774_v46 }
 0x577   :  { %v5520_v21 = vadd.f32 %v5340_v12, %v5239_v49 }
 0x578   :  { %v4959_v11 = vadd.f32 %v4781_v5, %v4678_v63  ;;  %7898 = vmatmul.msk.f32.gmra.mxu1 %vm2804_vm2, %v12501_v10  ;;  %v5776_v10 = vrot.slane %v13461_v41, 1 }
 0x579   :  { %8020 = vmatmul.msk.f32.gmra.mxu3 %vm2804_vm2, %v11862_v56  ;;  %v4784_v44 = vpop.f32.mrf.mxu2  ;;  %v16674_v56 = vld [vmem:[#allocation162_spill] sm:$0xff] }
 0x57a   :  { %v5343_v0 = vpop.f32.mrf.mxu0  ;;  %v13478_v8 = vsel %vm153_vm1, %v5774_v46, %v5776_v10 }
 0x57c   :  { %v5062_v54 = vpop.f32.mrf.mxu3 }
 0x57d   :  { %v5240_v58 = vadd.f32 %v5062_v54, %v4959_v11  ;;  %v4503_v29 = vpop.f32.mrf.mxu1  ;;  %8080 = vmatmul.msk.f32.gmra.mxu0 %vm2804_vm2, %v12531_v52  ;;  %v5584_v11 = vadd.f32 %v13414_v18, %v5519_v14 }
 0x57e   :  { %7962 = vmatmul.msk.f32.gmra.mxu2 %vm2804_vm2, %v11854_v43  ;;  %v4679_v34 = vadd.f32 %v4503_v29, %v16674_v56 }
 0x57f   :  { %v5521_v61 = vadd.f32 %v5343_v0, %v5240_v58 }
 0x580   :  { %v4960_v5 = vadd.f32 %v4784_v44, %v4679_v34  ;;  %7899 = vmatmul.msk.f32.gmra.mxu1 %vm2804_vm2, %v12516_v4  ;;  %v16675_v4 = vld [vmem:[#allocation163_spill] sm:$0xff] }
 0x581   :  { %8021 = vmatmul.msk.f32.gmra.mxu3 %vm2804_vm2, %v11933_v36  ;;  %v4787_v15 = vpop.f32.mrf.mxu2  ;;  %v13482_v36 = vmax.f32 %v5583_v16, 0.0 }
 0x582   :  { %v5346_v49 = vpop.f32.mrf.mxu0 }
 0x583   :  { %v5778_v0 = vrot.slane %v13482_v36, 1 }
 0x584   :  { %v5065_v12 = vpop.f32.mrf.mxu3 }
 0x585   :  { %v5241_v22 = vadd.f32 %v5065_v12, %v4960_v5  ;;  %v4506_v63 = vpop.f32.mrf.mxu1  ;;  %8081 = vmatmul.msk.f32.gmra.mxu0 %vm2804_vm2, %v12546_v40  ;;  %v13494_v29 = vsel %vm153_vm1, %v5776_v10, %v5778_v0  ;;  %v5585_v5 = vadd.f32 %v13414_v18, %v5520_v21 }
 0x586   :  { %7963 = vmatmul.msk.f32.gmra.mxu2 %vm2804_vm2, %v11953_v53  ;;  %v4680_v42 = vadd.f32 %v4506_v63, %v16675_v4 }
 0x587   :  { %v5522_v43 = vadd.f32 %v5346_v49, %v5241_v22 }
 0x588   :  { %v4961_v26 = vadd.f32 %v4787_v15, %v4680_v42  ;;  %7900 = vmatmul.msk.f32.gmra.mxu1 %vm2804_vm2, %v12531_v52  ;;  %v16676_v52 = vld [vmem:[#allocation164_spill] sm:$0xff] }
 0x589   :  { %8022 = vmatmul.msk.f32.gmra.mxu3 %vm2804_vm2, %v11995_v38  ;;  %v4790_v46 = vpop.f32.mrf.mxu2  ;;  %v13498_v38 = vmax.f32 %v5584_v11, 0.0 }
 0x58a   :  { %v5349_v54 = vpop.f32.mrf.mxu0 }
 0x58b   :  { %v5780_v12 = vrot.slane %v13498_v38, 1 }
 0x58c   :  { %v5068_v44 = vpop.f32.mrf.mxu3 }
 0x58d   :  { %v5242_v58 = vadd.f32 %v5068_v44, %v4961_v26  ;;  %v4509_v56 = vpop.f32.mrf.mxu1  ;;  %8082 = vmatmul.msk.f32.gmra.mxu0 %vm2804_vm2, %v12561_v30  ;;  %v13510_v22 = vsel %vm153_vm1, %v5778_v0, %v5780_v12  ;;  %v5586_v26 = vadd.f32 %v13414_v18, %v5521_v61 }
 0x58e   :  { %7964 = vmatmul.msk.f32.gmra.mxu2 %vm2804_vm2, %v11997_v37  ;;  %v4681_v14 = vadd.f32 %v4509_v56, %v16676_v52  ;;  %v16678_v56 = vld [vmem:[#allocation167_spill] sm:$0xff]  ;;  %v16680_v52 = vld [vmem:[#allocation50_spill] sm:$0xff] }
 0x58f   :  { %v5523_v53 = vadd.f32 %v5349_v54, %v5242_v58 }
 0x590   :  { %v4962_v34 = vadd.f32 %v4790_v46, %v4681_v14  ;;  %7901 = vmatmul.msk.f32.gmra.mxu1 %vm2804_vm2, %v12546_v40  ;;  %v16677_v40 = vld [vmem:[#allocation165_spill] sm:$0xff] }
 0x591   :  { %8023 = vmatmul.msk.f32.gmra.mxu3 %vm2804_vm2, %v12037_v9  ;;  %v4793_v10 = vpop.f32.mrf.mxu2  ;;  %v13514_v9 = vmax.f32 %v5585_v5, 0.0 }
 0x592   :  { %v5352_v16 = vpop.f32.mrf.mxu0 }
 0x593   :  { %v5782_v44 = vrot.slane %v13514_v9, 1 }
 0x594   :  { %v5071_v15 = vpop.f32.mrf.mxu3 }
 0x595   :  { %v5243_v49 = vadd.f32 %v5071_v15, %v4962_v34  ;;  %v4512_v63 = vpop.f32.mrf.mxu1  ;;  %8083 = vmatmul.msk.f32.gmra.mxu0 %vm2804_vm2, %v12576_v33  ;;  %v13526_v0 = vsel %vm153_vm1, %v5780_v12, %v5782_v44 }
 0x596   :  { %7965 = vmatmul.msk.f32.gmra.mxu2 %vm2804_vm2, %v16329_v47  ;;  %v4682_v21 = vadd.f32 %v4512_v63, %v16677_v40  ;;  %v16681_v40 = vld [vmem:[#allocation48_spill] sm:$0xff] }
 0x597   :  { %v5524_v37 = vadd.f32 %v5352_v16, %v5243_v49 }
 0x598   :  { %v4963_v4 = vadd.f32 %v4793_v10, %v4682_v21  ;;  %7902 = vmatmul.msk.f32.gmra.mxu1 %vm2804_vm2, %v12561_v30  ;;  %v16679_v30 = vld [vmem:[#allocation166_spill] sm:$0xff]  ;;  %v5587_v10 = vadd.f32 %v13414_v18, %v5522_v43 }
 0x599   :  { %8024 = vmatmul.msk.f32.gmra.mxu3 %vm2804_vm2, %v12061_v59  ;;  %v4796_v42 = vpop.f32.mrf.mxu2  ;;  %v13530_v59 = vmax.f32 %v5586_v26, 0.0 }
 0x59a   :  { %v5355_v11 = vpop.f32.mrf.mxu0  ;;  %v13546_v21 = vmax.f32 %v5587_v10, 0.0 }
 0x59b   :  { %v5784_v16 = vrot.slane %v13530_v59, 1 }
 0x59c   :  { %v5074_v46 = vpop.f32.mrf.mxu3 }
 0x59d   :  { %v5244_v54 = vadd.f32 %v5074_v46, %v4963_v4  ;;  %v4515_v58 = vpop.f32.mrf.mxu1  ;;  %8084 = vmatmul.msk.f32.gmra.mxu0 %vm2804_vm2, %v16678_v56  ;;  %v13542_v49 = vsel %vm153_vm1, %v5782_v44, %v5784_v16  ;;  %v16683_v4 = vld [vmem:[#allocation13_spill] sm:$0xff]  ;;  %v5588_v46 = vadd.f32 %v13414_v18, %v5523_v53 }
 0x59e   :  { %7966 = vmatmul.msk.f32.gmra.mxu2 %vm2804_vm2, %v16439_v31  ;;  %v4683_v61 = vadd.f32 %v4515_v58, %v16679_v30 }
 0x59f   :  { %v5525_v47 = vadd.f32 %v5355_v11, %v5244_v54  ;;  %v5786_v54 = vrot.slane %v13546_v21, 1 }
 0x5a0   :  { %v4964_v14 = vadd.f32 %v4796_v42, %v4683_v61  ;;  %7903 = vmatmul.msk.f32.gmra.mxu1 %vm2804_vm2, %v12576_v33  ;;  %v16682_v33 = vld [vmem:[#allocation168_spill] sm:$0xff] }
 0x5a1   :  { %8025 = vmatmul.msk.f32.gmra.mxu3 %vm2804_vm2, %v16680_v52  ;;  %v4799_v34 = vpop.f32.mrf.mxu2  ;;  %v13558_v30 = vsel %vm153_vm1, %v5784_v16, %v5786_v54  ;;  %v16684_v52 = vld [vmem:[#allocation40_spill] sm:$0xff] }
 0x5a2   :  { %v5358_v15 = vpop.f32.mrf.mxu0 }
 0x5a4   :  { %v5077_v5 = vpop.f32.mrf.mxu3 }
 0x5a5   :  { %v5245_v12 = vadd.f32 %v5077_v5, %v4964_v14  ;;  %v4518_v63 = vpop.f32.mrf.mxu1  ;;  %8085 = vmatmul.msk.f32.gmra.mxu0 %vm2804_vm2, %v16681_v40  ;;  %v13562_v14 = vmax.f32 %v5588_v46, 0.0  ;;  %v16689_v46 = vld [vmem:[#allocation66_spill] sm:$0xff] }
 0x5a6   :  { %7967 = vmatmul.msk.f32.gmra.mxu2 %vm2804_vm2, %v16443_v1  ;;  %v4684_v43 = vadd.f32 %v4518_v63, %v16682_v33 }
 0x5a7   :  { %v5526_v31 = vadd.f32 %v5358_v15, %v5245_v12  ;;  %v5589_v15 = vadd.f32 %v13414_v18, %v5524_v37  ;;  %v5788_v63 = vrot.slane %v13562_v14, 1 }
 0x5a8   :  { %v4965_v42 = vadd.f32 %v4799_v34, %v4684_v43  ;;  %7904 = vmatmul.msk.f32.gmra.mxu1 %vm2804_vm2, %v16678_v56  ;;  %v16685_v56 = vld [vmem:[#allocation169_spill] sm:$0xff]  ;;  %v16686_v34 = vld [vmem:[#allocation7_spill] sm:$0xff] }
 0x5a9   :  { %8026 = vmatmul.msk.f32.gmra.mxu3 %vm2804_vm2, %v16683_v4  ;;  %v4802_v26 = vpop.f32.mrf.mxu2  ;;  %v13574_v43 = vsel %vm153_vm1, %v5786_v54, %v5788_v63  ;;  %v5590_v54 = vadd.f32 %v13414_v18, %v5525_v47 }
 0x5aa   :  { %v5361_v44 = vpop.f32.mrf.mxu0 }
 0x5ac   :  { %v5080_v11 = vpop.f32.mrf.mxu3 }
 0x5ad   :  { %v5246_v58 = vadd.f32 %v5080_v11, %v4965_v42  ;;  %v4521_v61 = vpop.f32.mrf.mxu1  ;;  %8086 = vmatmul.msk.f32.gmra.mxu0 %vm2804_vm2, %v16684_v52  ;;  %v16687_v42 = vld [vmem:[#allocation34_spill] sm:$0xff] }
 0x5ae   :  { %7968 = vmatmul.msk.f32.gmra.mxu2 %vm2804_vm2, %v16447_v23  ;;  %v4685_v53 = vadd.f32 %v4521_v61, %v16685_v56 }
 0x5af   :  { %v5527_v1 = vadd.f32 %v5361_v44, %v5246_v58 }
 0x5b0   :  { %v4966_v10 = vadd.f32 %v4802_v26, %v4685_v53  ;;  %7905 = vmatmul.msk.f32.gmra.mxu1 %vm2804_vm2, %v16681_v40  ;;  %v13578_v26 = vmax.f32 %v5589_v15, 0.0  ;;  %v16688_v40 = vld [vmem:[#allocation170_spill] sm:$0xff]  ;;  %v16690_v15 = vld [vmem:[#allocation63_spill] sm:$0xff] }
 0x5b1   :  { %8027 = vmatmul.msk.f32.gmra.mxu3 %vm2804_vm2, %v16686_v34  ;;  %v4805_v5 = vpop.f32.mrf.mxu2 }
 0x5b2   :  { %v5364_v12 = vpop.f32.mrf.mxu0  ;;  %v5790_v56 = vrot.slane %v13578_v26, 1 }
 0x5b4   :  { %v5083_v16 = vpop.f32.mrf.mxu3  ;;  %v13590_v34 = vsel %vm153_vm1, %v5788_v63, %v5790_v56 }
 0x5b5   :  { %v5247_v33 = vadd.f32 %v5083_v16, %v4966_v10  ;;  %v4524_v4 = vpop.f32.mrf.mxu1  ;;  %8087 = vmatmul.msk.f32.gmra.mxu0 %vm2804_vm2, %v16687_v42  ;;  %v16692_v16 = vld [vmem:[#allocation76_spill] sm:$0xff] }
 0x5b6   :  { %7969 = vmatmul.msk.f32.gmra.mxu2 %vm2804_vm2, %v16451_v35  ;;  %v4686_v37 = vadd.f32 %v4524_v4, %v16688_v40 }
 0x5b7   :  { %v5528_v23 = vadd.f32 %v5364_v12, %v5247_v33  ;;  %v5591_v33 = vadd.f32 %v13414_v18, %v5526_v31 }
 0x5b8   :  { %v4967_v11 = vadd.f32 %v4805_v5, %v4686_v37  ;;  %7906 = vmatmul.msk.f32.gmra.mxu1 %vm2804_vm2, %v16684_v52  ;;  %v13594_v5 = vmax.f32 %v5590_v54, 0.0  ;;  %v16691_v52 = vld [vmem:[#allocation171_spill] sm:$0xff] }
 0x5b9   :  { %8028 = vmatmul.msk.f32.gmra.mxu3 %vm2804_vm2, %v16689_v46  ;;  %v4808_v44 = vpop.f32.mrf.mxu2 }
 0x5ba   :  { %v5367_v61 = vpop.f32.mrf.mxu0  ;;  %v5792_v37 = vrot.slane %v13594_v5, 1 }
 0x5bc   :  { %v5086_v58 = vpop.f32.mrf.mxu3 }
 0x5bd   :  { %v5248_v53 = vadd.f32 %v5086_v58, %v4967_v11  ;;  %v4527_v10 = vpop.f32.mrf.mxu1  ;;  %8088 = vmatmul.msk.f32.gmra.mxu0 %vm2804_vm2, %v16690_v15  ;;  %v13606_v11 = vsel %vm153_vm1, %v5790_v56, %v5792_v37  ;;  %v16693_v58 = vld [vmem:[#allocation75_spill] sm:$0xff] }
 0x5be   :  { %7970 = vmatmul.msk.f32.gmra.mxu2 %vm2804_vm2, %v16455_v2  ;;  %v4687_v47 = vadd.f32 %v4527_v10, %v16691_v52  ;;  %v5592_v10 = vadd.f32 %v13414_v18, %v5527_v1 }
 0x5bf   :  { %v5529_v35 = vadd.f32 %v5367_v61, %v5248_v53  ;;  %v16695_v61 = vld [vmem:[#allocation91_spill] sm:$0xff] }
 0x5c0   :  { %v4968_v12 = vadd.f32 %v4808_v44, %v4687_v47  ;;  %7907 = vmatmul.msk.f32.gmra.mxu1 %vm2804_vm2, %v16687_v42  ;;  %v13610_v44 = vmax.f32 %v5591_v33, 0.0  ;;  %v16694_v42 = vld [vmem:[#allocation172_spill] sm:$0xff] }
 0x5c1   :  { %8029 = vmatmul.msk.f32.gmra.mxu3 %vm2804_vm2, %v16692_v16  ;;  %v4811_v63 = vpop.f32.mrf.mxu2 }
 0x5c2   :  { %v5370_v40 = vpop.f32.mrf.mxu0  ;;  %v5794_v16 = vrot.slane %v13610_v44, 1 }
 0x5c4   :  { %v5089_v4 = vpop.f32.mrf.mxu3  ;;  %v13622_v33 = vsel %vm153_vm1, %v5792_v37, %v5794_v16 }
 0x5c5   :  { %v5249_v46 = vadd.f32 %v5089_v4, %v4968_v12  ;;  %v4530_v54 = vpop.f32.mrf.mxu1  ;;  %8089 = vmatmul.msk.f32.gmra.mxu0 %vm2804_vm2, %v16693_v58 }
 0x5c6   :  { %7971 = vmatmul.msk.f32.gmra.mxu2 %vm2804_vm2, %v16459_v6  ;;  %v4688_v31 = vadd.f32 %v4530_v54, %v16694_v42  ;;  %v5593_v42 = vadd.f32 %v13414_v18, %v5528_v23 }
 0x5c7   :  { %v5530_v2 = vadd.f32 %v5370_v40, %v5249_v46  ;;  %v16696_v40 = vld [vmem:[#allocation89_spill] sm:$0xff]  ;;  %v16698_v46 = vld [vmem:[#allocation96_spill] sm:$0xff] }
 0x5c8   :  { %v4969_v53 = vadd.f32 %v4811_v63, %v4688_v31  ;;  %7908 = vmatmul.msk.f32.gmra.mxu1 %vm2804_vm2, %v16690_v15  ;;  %v13626_v63 = vmax.f32 %v5592_v10, 0.0  ;;  %v16697_v15 = vld [vmem:[#allocation173_spill] sm:$0xff] }
 0x5c9   :  { %8030 = vmatmul.msk.f32.gmra.mxu3 %vm2804_vm2, %v16695_v61  ;;  %v4814_v56 = vpop.f32.mrf.mxu2 }
 0x5ca   :  { %v5373_v47 = vpop.f32.mrf.mxu0 }
 0x5cc   :  { %v5092_v52 = vpop.f32.mrf.mxu3 }
 0x5cd   :  { %v5250_v12 = vadd.f32 %v5092_v52, %v4969_v53  ;;  %v4533_v4 = vpop.f32.mrf.mxu1  ;;  %8090 = vmatmul.msk.f32.gmra.mxu0 %vm2804_vm2, %v16696_v40  ;;  %v5796_v53 = vrot.slane %v13626_v63, 1 }
 0x5ce   :  { %7972 = vmatmul.msk.f32.gmra.mxu2 %vm2804_vm2, %v16463_v48  ;;  %v4689_v1 = vadd.f32 %v4533_v4, %v16697_v15  ;;  %v16701_v4 = vld [vmem:[#allocation37_spill] sm:$0xff] }
 0x5cf   :  { %v5531_v6 = vadd.f32 %v5373_v47, %v5250_v12  ;;  %v13638_v52 = vsel %vm153_vm1, %v5794_v16, %v5796_v53  ;;  %v16699_v12 = vld [vmem:[#allocation94_spill] sm:$0xff] }
 0x5d0   :  { %v4970_v54 = vadd.f32 %v4814_v56, %v4689_v1  ;;  %7909 = vmatmul.msk.f32.gmra.mxu1 %vm2804_vm2, %v16693_v58  ;;  %v13642_v56 = vmax.f32 %v5593_v42, 0.0  ;;  %v16700_v58 = vld [vmem:[#allocation174_spill] sm:$0xff]  ;;  %v5594_v1 = vadd.f32 %v13414_v18, %v5529_v35 }
 0x5d1   :  { %8031 = vmatmul.msk.f32.gmra.mxu3 %vm2804_vm2, %v16698_v46  ;;  %v4817_v37 = vpop.f32.mrf.mxu2 }
 0x5d2   :  { %v5376_v61 = vpop.f32.mrf.mxu0  ;;  %v5798_v42 = vrot.slane %v13642_v56, 1 }
 0x5d4   :  { %v5095_v31 = vpop.f32.mrf.mxu3 }
 0x5d5   :  { %v5251_v10 = vadd.f32 %v5095_v31, %v4970_v54  ;;  %v4536_v47 = vpop.f32.mrf.mxu1  ;;  %8091 = vmatmul.msk.f32.gmra.mxu0 %vm2804_vm2, %v16699_v12 }
 0x5d6   :  { %7973 = vmatmul.msk.f32.gmra.mxu2 %vm2804_vm2, %v16467_v50  ;;  %v4690_v23 = vadd.f32 %v4536_v47, %v16700_v58  ;;  %v16702_v47 = vld [vmem:[#allocation79_spill] sm:$0xff] }
 0x5d7   :  { %v5532_v48 = vadd.f32 %v5376_v61, %v5251_v10  ;;  %v13654_v61 = vsel %vm153_vm1, %v5796_v53, %v5798_v42 }
 0x5d8   :  { %v4971_v15 = vadd.f32 %v4817_v37, %v4690_v23  ;;  %7910 = vmatmul.msk.f32.gmra.mxu1 %vm2804_vm2, %v16696_v40  ;;  %v13658_v37 = vmax.f32 %v5594_v1, 0.0  ;;  %v16703_v40 = vld [vmem:[#allocation175_spill] sm:$0xff]  ;;  %v5595_v23 = vadd.f32 %v13414_v18, %v5530_v2 }
 0x5d9   :  { %8032 = vmatmul.msk.f32.gmra.mxu3 %vm2804_vm2, %v16701_v4  ;;  %v4820_v16 = vpop.f32.mrf.mxu2 }
 0x5da   :  { %v5379_v54 = vpop.f32.mrf.mxu0  ;;  %v5800_v1 = vrot.slane %v13658_v37, 1 }
 0x5dc   :  { %v5098_v46 = vpop.f32.mrf.mxu3 }
 0x5dd   :  { %v5252_v31 = vadd.f32 %v5098_v46, %v4971_v15  ;;  %v4539_v10 = vpop.f32.mrf.mxu1  ;;  %8092 = vmatmul.msk.f32.gmra.mxu0 %vm2804_vm2, %v16702_v47 }
 0x5de   :  { %7974 = vmatmul.msk.f32.gmra.mxu2 %vm2804_vm2, %v16471_v25  ;;  %v4691_v35 = vadd.f32 %v4539_v10, %v16703_v40  ;;  %v16704_v10 = vld [vmem:[#allocation107_spill] sm:$0xff]  ;;  %v16708_v40 = vld [vmem:[#allocation126_spill] sm:$0xff] }
 0x5df   :  { %v5533_v50 = vadd.f32 %v5379_v54, %v5252_v31  ;;  %v13670_v54 = vsel %vm153_vm1, %v5798_v42, %v5800_v1 }
 0x5e0   :  { %v4972_v58 = vadd.f32 %v4820_v16, %v4691_v35  ;;  %7911 = vmatmul.msk.f32.gmra.mxu1 %vm2804_vm2, %v16699_v12  ;;  %v16706_v16 = vld [vmem:[#allocation123_spill] sm:$0xff]  ;;  %v16707_v12 = vld [vmem:[#allocation176_spill] sm:$0xff] }
 0x5e1   :  { %8033 = vmatmul.msk.f32.gmra.mxu3 %vm2804_vm2, %v16474_v28  ;;  %v4823_v53 = vpop.f32.mrf.mxu2  ;;  %v13674_v28 = vmax.f32 %v5595_v23, 0.0 }
 0x5e2   :  { %v5382_v15 = vpop.f32.mrf.mxu0 }
 0x5e3   :  { %16705 = vst [vmem:[#allocation32_spill] sm:$0xff] %v13674_v28  ;;  %v5802_v23 = vrot.slane %v13674_v28, 1 }
 0x5e4   :  { %v5101_v4 = vpop.f32.mrf.mxu3 }
 0x5e5   :  { %v5253_v46 = vadd.f32 %v5101_v4, %v4972_v58  ;;  %v4542_v31 = vpop.f32.mrf.mxu1  ;;  %8093 = vmatmul.msk.f32.gmra.mxu0 %vm2804_vm2, %v16704_v10  ;;  %v5596_v58 = vadd.f32 %v13414_v18, %v5531_v6  ;;  %v13686_v17 = vsel %vm153_vm1, %v5800_v1, %v5802_v23 }
 0x5e6   :  { %7975 = vmatmul.msk.f32.gmra.mxu2 %vm2804_vm2, %v16706_v16  ;;  %v4692_v2 = vadd.f32 %v4542_v31, %v16707_v12  ;;  %v16709_v12 = vld [vmem:[#allocation115_spill] sm:$0xff] }
 0x5e7   :  { %v5534_v25 = vadd.f32 %v5382_v15, %v5253_v46 }
 0x5e8   :  { %v4973_v35 = vadd.f32 %v4823_v53, %v4692_v2  ;;  %7912 = vmatmul.msk.f32.gmra.mxu1 %vm2804_vm2, %v16702_v47  ;;  %v13690_v53 = vmax.f32 %v5596_v58, 0.0  ;;  %v16711_v2 = vld [vmem:[#allocation112_spill] sm:$0xff]  ;;  %v16712_v47 = vld [vmem:[#allocation177_spill] sm:$0xff] }
 0x5e9   :  { %8034 = vmatmul.msk.f32.gmra.mxu3 %vm2804_vm2, %v16708_v40  ;;  %v4826_v42 = vpop.f32.mrf.mxu2  ;;  %v16713_v40 = vld [vmem:[#allocation113_spill] sm:$0xff] }
 0x5ea   :  { %v5385_v15 = vpop.f32.mrf.mxu0  ;;  %16710 = vst [vmem:[#allocation60_spill] sm:$0xff] %v13690_v53  ;;  %v5804_v58 = vrot.slane %v13690_v53, 1 }
 0x5ec   :  { %v5104_v4 = vpop.f32.mrf.mxu3  ;;  %v13702_v13 = vsel %vm153_vm1, %v5802_v23, %v5804_v58 }
 0x5ed   :  { %v5254_v46 = vadd.f32 %v5104_v4, %v4973_v35  ;;  %v4545_v31 = vpop.f32.mrf.mxu1  ;;  %8094 = vmatmul.msk.f32.gmra.mxu0 %vm2804_vm2, %v16709_v12  ;;  %v5597_v35 = vadd.f32 %v13414_v18, %v5532_v48  ;;  %16714 = vst [vmem:[#allocation33_spill] sm:$0xff] %v13702_v13  ;;  %v16718_v48 = vld [vmem:[#allocation178_spill] sm:$0xff] }
 0x5ee   :  { %7976 = vmatmul.msk.f32.gmra.mxu2 %vm2804_vm2, %v16711_v2  ;;  %v4693_v6 = vadd.f32 %v4545_v31, %v16712_v47  ;;  %v16715_v47 = vld [vmem:[#allocation179_spill] sm:$0xff] }
 0x5ef   :  { %v5535_v16 = vadd.f32 %v5385_v15, %v5254_v46 }
 0x5f0   :  { %v4974_v60 = vadd.f32 %v4826_v42, %v4693_v6  ;;  %7913 = vmatmul.msk.f32.gmra.mxu1 %vm2804_vm2, %v16704_v10  ;;  %v13708_v42 = vmax.f32 %v5597_v35, 0.0  ;;  %v16717_v10 = vld [vmem:[#allocation129_spill] sm:$0xff] }
 0x5f1   :  { %8035 = vmatmul.msk.f32.gmra.mxu3 %vm2804_vm2, %v16713_v40  ;;  %v4829_v1 = vpop.f32.mrf.mxu2  ;;  %v16719_v40 = vld [vmem:[#allocation5_spill] sm:$0xff] }
 0x5f2   :  { %v5388_v15 = vpop.f32.mrf.mxu0  ;;  %16716 = vst [vmem:[#allocation77_spill] sm:$0xff] %v13708_v42  ;;  %v5806_v35 = vrot.slane %v13708_v42, 1 }
 0x5f4   :  { %v5107_v4 = vpop.f32.mrf.mxu3  ;;  %v13720_v13 = vsel %vm153_vm1, %v5804_v58, %v5806_v35  ;;  %v5599_v58 = vadd.f32 %v13414_v18, %v5534_v25  ;;  %v16730_v25 = vld [vmem:[#allocation182_spill] sm:$0xff] }
 0x5f5   :  { %v5255_v46 = vadd.f32 %v5107_v4, %v4974_v60  ;;  %v4548_v31 = vpop.f32.mrf.mxu1  ;;  %8095 = vmatmul.msk.f32.gmra.mxu0 %vm2804_vm2, %v16715_v47  ;;  %v5598_v4 = vadd.f32 %v13414_v18, %v5533_v50  ;;  %16720 = vst [vmem:[#allocation124_spill] sm:$0xff] %v13720_v13  ;;  %v16724_v50 = vld [vmem:[#allocation180_spill] sm:$0xff] }
 0x5f6   :  { %7977 = vmatmul.msk.f32.gmra.mxu2 %vm2804_vm2, %v16717_v10  ;;  %v4694_v6 = vadd.f32 %v4548_v31, %v16718_v48  ;;  %v16721_v48 = vld [vmem:[#allocation181_spill] sm:$0xff] }
 0x5f7   :  { %v13704_v2 = vadd.f32 %v5388_v15, %v5255_v46 }
 0x5f8   :  { %v4975_v60 = vadd.f32 %v4829_v1, %v4694_v6  ;;  %7914 = vmatmul.msk.f32.gmra.mxu1 %vm2804_vm2, %v16709_v12  ;;  %v13726_v1 = vmax.f32 %v5598_v4, 0.0  ;;  %v16723_v12 = vld [vmem:[#allocation22_spill] sm:$0xff] }
 0x5f9   :  { %8036 = vmatmul.msk.f32.gmra.mxu3 %vm2804_vm2, %v16719_v40  ;;  %v4832_v23 = vpop.f32.mrf.mxu2  ;;  %v16725_v40 = vld [vmem:[#allocation67_spill] sm:$0xff] }
 0x5fa   :  { %v5391_v46 = vpop.f32.mrf.mxu0  ;;  %16722 = vst [vmem:[#allocation80_spill] sm:$0xff] %v13726_v1  ;;  %v5808_v4 = vrot.slane %v13726_v1, 1  ;;  %v16734_v1 = vld [vmem:[#allocation21_spill] sm:$0xff] }
 0x5fc   :  { %v5110_v15 = vpop.f32.mrf.mxu3  ;;  %v13738_v13 = vsel %vm153_vm1, %v5806_v35, %v5808_v4  ;;  %v5600_v35 = vadd.f32 %v13414_v18, %v5535_v16 }
 0x5fd   :  { %v5256_v53 = vadd.f32 %v5110_v15, %v4975_v60  ;;  %v4551_v31 = vpop.f32.mrf.mxu1  ;;  %8096 = vmatmul.msk.f32.gmra.mxu0 %vm2804_vm2, %v16721_v48  ;;  %16726 = vst [vmem:[#allocation68_spill] sm:$0xff] %v13738_v13  ;;  %v16735_v13 = vld [vmem:[#allocation183_spill] sm:$0xff] }
 0x5fe   :  { %7978 = vmatmul.msk.f32.gmra.mxu2 %vm2804_vm2, %v16723_v12  ;;  %v4695_v6 = vadd.f32 %v4551_v31, %v16724_v50  ;;  %v16727_v50 = vld [vmem:[#allocation131_spill] sm:$0xff] }
 0x5ff   :  { %v13722_v10 = vadd.f32 %v5391_v46, %v5256_v53 }
 0x600   :  { %v4976_v60 = vadd.f32 %v4832_v23, %v4695_v6  ;;  %7915 = vmatmul.msk.f32.gmra.mxu1 %vm2804_vm2, %v16715_v47  ;;  %v13744_v23 = vmax.f32 %v5599_v58, 0.0  ;;  %v16729_v47 = vld [vmem:[#allocation61_spill] sm:$0xff]  ;;  %v5907_v58 = vld [vmem:[%s15221_s2 + $0x278] sm:$0xff] }
 0x601   :  { %8037 = vmatmul.msk.f32.gmra.mxu3 %vm2804_vm2, %v16725_v40  ;;  %v4835_v53 = vpop.f32.mrf.mxu2  ;;  %v16731_v40 = vld [vmem:[#allocation98_spill] sm:$0xff]  ;;  %6390 = vmatpush.msrb.mxu2 %v5907_v58 }
 0x602   :  { %v5394_v46 = vpop.f32.mrf.mxu0  ;;  %16728 = vst [vmem:[#allocation88_spill] sm:$0xff] %v13744_v23 }
 0x604   :  { %v5113_v15 = vpop.f32.mrf.mxu3 }
 0x605   :  { %v5257_v42 = vadd.f32 %v5113_v15, %v4976_v60  ;;  %v4554_v31 = vpop.f32.mrf.mxu1  ;;  %8097 = vmatmul.msk.f32.gmra.mxu0 %vm2804_vm2, %v16727_v50 }
 0x606   :  { %7979 = vmatmul.msk.f32.gmra.mxu2 %vm2804_vm2, %v16729_v47  ;;  %v4696_v6 = vadd.f32 %v4554_v31, %v16730_v25  ;;  %v6598_v31 = vld [vmem:[%s15221_s2 + $0x2f8] sm:$0xff]  ;;  %v5810_v47 = vrot.slane %v13744_v23, 1 }
 0x607   :  { %v13740_v12 = vadd.f32 %v5394_v46, %v5257_v42  ;;  %6607 = vmatpush.msrb.mxu3 %v6598_v31  ;;  %v16738_v31 = vld [vmem:[#allocation139_spill] sm:$0xff]  ;;  %v16742_v23 = vld [vmem:[#allocation116_spill] sm:$0xff] }
 0x608   :  { %v4977_v60 = vadd.f32 %v4835_v53, %v4696_v6  ;;  %7916 = vmatmul.msk.f32.gmra.mxu1 %vm2804_vm2, %v16721_v48  ;;  %v13762_v48 = vsel %vm153_vm1, %v5808_v4, %v5810_v47  ;;  %v16732_v6 = vld [vmem:[#allocation135_spill] sm:$0xff] }
 0x609   :  { %8038 = vmatmul.msk.f32.gmra.mxu3 %vm2804_vm2, %v16731_v40  ;;  %v4838_v42 = vpop.f32.mrf.mxu2  ;;  %v13766_v40 = vmax.f32 %v5600_v35, 0.0  ;;  %v5601_v35 = vadd.f32 %v13414_v18, %v13704_v2 }
 0x60a   :  { %v5397_v46 = vpop.f32.mrf.mxu0 }
 0x60b   :  { %16733 = vst [vmem:[#allocation30_spill] sm:$0xff] %v13766_v40  ;;  %v13789_v2 = vmax.f32 %v5601_v35, 0.0 }
 0x60c   :  { %v5116_v15 = vpop.f32.mrf.mxu3 }
 0x60d   :  { %v5258_v25 = vadd.f32 %v5116_v15, %v4977_v60  ;;  %v4557_v16 = vpop.f32.mrf.mxu1  ;;  %8098 = vmatmul.msk.f32.gmra.mxu0 %vm2804_vm2, %v16732_v6  ;;  %v5915_v15 = vld [vmem:[%s15221_s2 + $0x2b8] sm:$0xff]  ;;  %16739 = vst [vmem:[#allocation41_spill] sm:$0xff] %v13789_v2  ;;  %v5814_v35 = vrot.slane %v13789_v2, 1 }
 0x60e   :  { %7980 = vmatmul.msk.f32.gmra.mxu2 %vm2804_vm2, %v16734_v1  ;;  %v4697_v28 = vadd.f32 %v4557_v16, %v16735_v13  ;;  %6053 = vmatpush.msrb.mxu1 %v5915_v15  ;;  %v6879_v13 = vld [vmem:[%s15221_s2 + $0x338] sm:$0xff] }
 0x60f   :  { %v5539_v53 = vadd.f32 %v5397_v46, %v5258_v25  ;;  %6888 = vmatpush.msrb.mxu0 %v6879_v13  ;;  %v16740_v25 = vld [vmem:[#allocation53_spill] sm:$0xff]  ;;  %v16741_v16 = vld [vmem:[#allocation184_spill] sm:$0xff] }
 0x610   :  { %v4978_v60 = vadd.f32 %v4838_v42, %v4697_v28  ;;  %7917 = vmatmul.msk.f32.gmra.mxu1 %vm2804_vm2, %v16727_v50 }
 0x611   :  { %8039 = vmatmul.msk.f32.gmra.mxu3 %vm2804_vm2, %v16736_v57  ;;  %v4841_v4 = vpop.f32.mrf.mxu2  ;;  %v5812_v57 = vrot.slane %v13766_v40, 1  ;;  %v16744_v40 = vld [vmem:[#allocation143_spill] sm:$0xff] }
 0x612   :  { %v5400_v58 = vpop.f32.mrf.mxu0 }
 0x613   :  { %v13785_v1 = vsel %vm153_vm1, %v5810_v47, %v5812_v57 }
 0x614   :  { %v5119_v46 = vpop.f32.mrf.mxu3  ;;  %16737 = vst [vmem:[#allocation90_spill] sm:$0xff] %v13785_v1 }
 0x615   :  { %v5259_v28 = vadd.f32 %v5119_v46, %v4978_v60  ;;  %v4560_v42 = vpop.f32.mrf.mxu1  ;;  %8099 = vmatmul.msk.f32.gmra.mxu0 %vm2804_vm2, %v16738_v31  ;;  %v5602_v46 = vadd.f32 %v13414_v18, %v13722_v10 }
 0x616   :  { %7981 = vmatmul.msk.f32.gmra.mxu2 %vm2804_vm2, %v16740_v25  ;;  %v4698_v15 = vadd.f32 %v4560_v42, %v16741_v16  ;;  %v13802_v25 = vsel %vm153_vm1, %v5812_v57, %v5814_v35 }
 0x617   :  { %v5540_v50 = vadd.f32 %v5400_v58, %v5259_v28  ;;  %16743 = vst [vmem:[#allocation72_spill] sm:$0xff] %v13802_v25  ;;  %v16750_v25 = vld [vmem:[#allocation147_spill] sm:$0xff] }
 0x618   :  { %v4979_v60 = vadd.f32 %v4841_v4, %v4698_v15  ;;  %7918 = vmatmul.msk.f32.gmra.mxu1 %vm2804_vm2, %v16732_v6  ;;  %v16746_v6 = vld [vmem:[#allocation52_spill] sm:$0xff]  ;;  %v16747_v4 = vld [vmem:[#allocation185_spill] sm:$0xff]  ;;  %v16748_v15 = vld [vmem:[#allocation55_spill] sm:$0xff] }
 0x619   :  { %8040 = vmatmul.msk.f32.gmra.mxu3 %vm2804_vm2, %v16742_v23  ;;  %v4844_v47 = vpop.f32.mrf.mxu2  ;;  %v13806_v23 = vmax.f32 %v5602_v46, 0.0 }
 0x61a   :  { %v5403_v13 = vpop.f32.mrf.mxu0 }
 0x61b   :  { %16745 = vst [vmem:[#allocation25_spill] sm:$0xff] %v13806_v23  ;;  %v5816_v46 = vrot.slane %v13806_v23, 1 }
 0x61c   :  { %v5122_v58 = vpop.f32.mrf.mxu3 }
 0x61d   :  { %v5260_v28 = vadd.f32 %v5122_v58, %v4979_v60  ;;  %v4563_v16 = vpop.f32.mrf.mxu1  ;;  %8100 = vmatmul.msk.f32.gmra.mxu0 %vm2804_vm2, %v16744_v40  ;;  %v5603_v60 = vadd.f32 %v13414_v18, %v13740_v12 }
 0x61e   :  { %7982 = vmatmul.msk.f32.gmra.mxu2 %vm2804_vm2, %v16746_v6  ;;  %v4699_v10 = vadd.f32 %v4563_v16, %v16747_v4  ;;  %v13819_v6 = vsel %vm153_vm1, %v5814_v35, %v5816_v46  ;;  %v5604_v35 = vadd.f32 %v13414_v18, %v5539_v53 }
 0x61f   :  { %v5541_v42 = vadd.f32 %v5403_v13, %v5260_v28  ;;  %16749 = vst [vmem:[#allocation95_spill] sm:$0xff] %v13819_v6 }
 0x620   :  { %v4980_v2 = vadd.f32 %v4844_v47, %v4699_v10  ;;  %7919 = vmatmul.msk.f32.gmra.mxu1 %vm2804_vm2, %v16738_v31  ;;  %v13823_v47 = vmax.f32 %v5603_v60, 0.0  ;;  %v16752_v31 = vld [vmem:[#allocation56_spill] sm:$0xff]  ;;  %v16753_v10 = vld [vmem:[#allocation186_spill] sm:$0xff] }
 0x621   :  { %8041 = vmatmul.msk.f32.gmra.mxu3 %vm2804_vm2, %v16748_v15  ;;  %v4847_v57 = vpop.f32.mrf.mxu2  ;;  %v16754_v15 = vld [vmem:[#allocation4_spill] sm:$0xff] }
 0x622   :  { %v5406_v13 = vpop.f32.mrf.mxu0  ;;  %16751 = vst [vmem:[#allocation49_spill] sm:$0xff] %v13823_v47  ;;  %v5818_v60 = vrot.slane %v13823_v47, 1 }
 0x624   :  { %v5125_v58 = vpop.f32.mrf.mxu3  ;;  %v13835_v6 = vsel %vm153_vm1, %v5816_v46, %v5818_v60  ;;  %v5605_v46 = vadd.f32 %v13414_v18, %v5540_v50  ;;  %v16765_v50 = vld [vmem:[#allocation188_spill] sm:$0xff] }
 0x625   :  { %v5261_v28 = vadd.f32 %v5125_v58, %v4980_v2  ;;  %v4566_v4 = vpop.f32.mrf.mxu1  ;;  %8101 = vmatmul.msk.f32.gmra.mxu0 %vm2804_vm2, %v16750_v25  ;;  %16755 = vst [vmem:[#allocation2_spill] sm:$0xff] %v13835_v6 }
 0x626   :  { %7983 = vmatmul.msk.f32.gmra.mxu2 %vm2804_vm2, %v16752_v31  ;;  %v4700_v12 = vadd.f32 %v4566_v4, %v16753_v10  ;;  %v16756_v10 = vld [vmem:[#allocation151_spill] sm:$0xff] }
 0x627   :  { %v5542_v16 = vadd.f32 %v5406_v13, %v5261_v28 }
 0x628   :  { %v4981_v23 = vadd.f32 %v4847_v57, %v4700_v12  ;;  %7920 = vmatmul.msk.f32.gmra.mxu1 %vm2804_vm2, %v16744_v40  ;;  %v13839_v57 = vmax.f32 %v5604_v35, 0.0  ;;  %v16758_v12 = vld [vmem:[#allocation36_spill] sm:$0xff]  ;;  %v16759_v40 = vld [vmem:[#allocation187_spill] sm:$0xff] }
 0x629   :  { %8042 = vmatmul.msk.f32.gmra.mxu3 %vm2804_vm2, %v16754_v15  ;;  %v4850_v2 = vpop.f32.mrf.mxu2  ;;  %v16760_v15 = vld [vmem:[#allocation39_spill] sm:$0xff] }
 0x62a   :  { %v5409_v13 = vpop.f32.mrf.mxu0  ;;  %16757 = vst [vmem:[#allocation27_spill] sm:$0xff] %v13839_v57  ;;  %v5820_v35 = vrot.slane %v13839_v57, 1 }
 0x62c   :  { %v5128_v58 = vpop.f32.mrf.mxu3  ;;  %v13851_v6 = vsel %vm153_vm1, %v5818_v60, %v5820_v35 }
 0x62d   :  { %v5262_v28 = vadd.f32 %v5128_v58, %v4981_v23  ;;  %v4569_v4 = vpop.f32.mrf.mxu1  ;;  %8102 = vmatmul.msk.f32.gmra.mxu0 %vm2804_vm2, %v16756_v10  ;;  %16761 = vst [vmem:[#allocation83_spill] sm:$0xff] %v13851_v6 }
 0x62e   :  { %7984 = vmatmul.msk.f32.gmra.mxu2 %vm2804_vm2, %v16758_v12  ;;  %v4701_v53 = vadd.f32 %v4569_v4, %v16759_v40  ;;  %v16762_v40 = vld [vmem:[#allocation110_spill] sm:$0xff] }
 0x62f   :  { %v5543_v31 = vadd.f32 %v5409_v13, %v5262_v28 }
 0x630   :  { %v4982_v47 = vadd.f32 %v4850_v2, %v4701_v53  ;;  %7921 = vmatmul.msk.f32.gmra.mxu1 %vm2804_vm2, %v16750_v25  ;;  %v13857_v2 = vmax.f32 %v5605_v46, 0.0  ;;  %v16764_v25 = vld [vmem:[#allocation62_spill] sm:$0xff] }
 0x631   :  { %8043 = vmatmul.msk.f32.gmra.mxu3 %vm2804_vm2, %v16760_v15  ;;  %v4853_v23 = vpop.f32.mrf.mxu2  ;;  %v16766_v15 = vld [vmem:[#allocation65_spill] sm:$0xff] }
 0x632   :  { %v5412_v13 = vpop.f32.mrf.mxu0  ;;  %16763 = vst [vmem:[#allocation42_spill] sm:$0xff] %v13857_v2  ;;  %v5822_v46 = vrot.slane %v13857_v2, 1 }
 0x634   :  { %v5131_v58 = vpop.f32.mrf.mxu3  ;;  %v13869_v6 = vsel %vm153_vm1, %v5820_v35, %v5822_v46  ;;  %v5607_v35 = vadd.f32 %v13414_v18, %v5542_v16  ;;  %v16777_v16 = vld [vmem:[#allocation190_spill] sm:$0xff] }
 0x635   :  { %v5263_v28 = vadd.f32 %v5131_v58, %v4982_v47  ;;  %v4572_v4 = vpop.f32.mrf.mxu1  ;;  %8103 = vmatmul.msk.f32.gmra.mxu0 %vm2804_vm2, %v16762_v40  ;;  %v5606_v58 = vadd.f32 %v13414_v18, %v5541_v42  ;;  %16767 = vst [vmem:[#allocation106_spill] sm:$0xff] %v13869_v6  ;;  %v16771_v42 = vld [vmem:[#allocation189_spill] sm:$0xff] }
 0x636   :  { %7985 = vmatmul.msk.f32.gmra.mxu2 %vm2804_vm2, %v16764_v25  ;;  %v4702_v53 = vadd.f32 %v4572_v4, %v16765_v50  ;;  %v16768_v50 = vld [vmem:[#allocation44_spill] sm:$0xff] }
 0x637   :  { %v13853_v12 = vadd.f32 %v5412_v13, %v5263_v28 }
 0x638   :  { %v4983_v47 = vadd.f32 %v4853_v23, %v4702_v53  ;;  %7922 = vmatmul.msk.f32.gmra.mxu1 %vm2804_vm2, %v16756_v10  ;;  %v13875_v23 = vmax.f32 %v5606_v58, 0.0  ;;  %v16770_v10 = vld [vmem:[#allocation78_spill] sm:$0xff] }
 0x639   :  { %8044 = vmatmul.msk.f32.gmra.mxu3 %vm2804_vm2, %v16766_v15  ;;  %v4856_v60 = vpop.f32.mrf.mxu2  ;;  %v16772_v15 = vld [vmem:[#allocation81_spill] sm:$0xff] }
 0x63a   :  { %v5415_v28 = vpop.f32.mrf.mxu0  ;;  %16769 = vst [vmem:[#allocation10_spill] sm:$0xff] %v13875_v23  ;;  %v5824_v58 = vrot.slane %v13875_v23, 1  ;;  %v16782_v23 = vld [vmem:[#allocation97_spill] sm:$0xff] }
 0x63c   :  { %v5134_v13 = vpop.f32.mrf.mxu3  ;;  %v13887_v6 = vsel %vm153_vm1, %v5822_v46, %v5824_v58  ;;  %v5608_v46 = vadd.f32 %v13414_v18, %v5543_v31 }
 0x63d   :  { %v5264_v57 = vadd.f32 %v5134_v13, %v4983_v47  ;;  %v4575_v4 = vpop.f32.mrf.mxu1  ;;  %8104 = vmatmul.msk.f32.gmra.mxu0 %vm2804_vm2, %v16768_v50  ;;  %16773 = vst [vmem:[#allocation109_spill] sm:$0xff] %v13887_v6  ;;  %v16783_v6 = vld [vmem:[#allocation191_spill] sm:$0xff] }
 0x63e   :  { %7986 = vmatmul.msk.f32.gmra.mxu2 %vm2804_vm2, %v16770_v10  ;;  %v4703_v53 = vadd.f32 %v4575_v4, %v16771_v42  ;;  %v16774_v42 = vld [vmem:[#allocation24_spill] sm:$0xff] }
 0x63f   :  { %v13871_v25 = vadd.f32 %v5415_v28, %v5264_v57 }
 0x640   :  { %v4984_v47 = vadd.f32 %v4856_v60, %v4703_v53  ;;  %7923 = vmatmul.msk.f32.gmra.mxu1 %vm2804_vm2, %v16762_v40  ;;  %v13893_v60 = vmax.f32 %v5607_v35, 0.0  ;;  %v16776_v40 = vld [vmem:[#allocation92_spill] sm:$0xff]  ;;  %v5906_v35 = vld [vmem:[%s15221_s2 + $0x270] sm:$0xff] }
 0x641   :  { %8045 = vmatmul.msk.f32.gmra.mxu3 %vm2804_vm2, %v16772_v15  ;;  %v4859_v57 = vpop.f32.mrf.mxu2  ;;  %v16778_v15 = vld [vmem:[#allocation93_spill] sm:$0xff]  ;;  %6391 = vmatpush.msrb.mxu2 %v5906_v35 }
 0x642   :  { %v5418_v28 = vpop.f32.mrf.mxu0  ;;  %16775 = vst [vmem:[#allocation130_spill] sm:$0xff] %v13893_v60 }
 0x644   :  { %v5137_v13 = vpop.f32.mrf.mxu3 }
 0x645   :  { %v5265_v2 = vadd.f32 %v5137_v13, %v4984_v47  ;;  %v4578_v4 = vpop.f32.mrf.mxu1  ;;  %8105 = vmatmul.msk.f32.gmra.mxu0 %vm2804_vm2, %v16774_v42 }
 0x646   :  { %7987 = vmatmul.msk.f32.gmra.mxu2 %vm2804_vm2, %v16776_v40  ;;  %v4704_v53 = vadd.f32 %v4578_v4, %v16777_v16  ;;  %v6597_v4 = vld [vmem:[%s15221_s2 + $0x2f0] sm:$0xff]  ;;  %v5826_v40 = vrot.slane %v13893_v60, 1  ;;  %v16784_v60 = vld [vmem:[#allocation100_spill] sm:$0xff] }
 0x647   :  { %v13889_v10 = vadd.f32 %v5418_v28, %v5265_v2  ;;  %6608 = vmatpush.msrb.mxu3 %v6597_v4  ;;  %v16785_v4 = vld [vmem:[#allocation120_spill] sm:$0xff] }
 0x648   :  { %v4985_v47 = vadd.f32 %v4859_v57, %v4704_v53  ;;  %7924 = vmatmul.msk.f32.gmra.mxu1 %vm2804_vm2, %v16768_v50  ;;  %v13911_v50 = vsel %vm153_vm1, %v5824_v58, %v5826_v40  ;;  %v16780_v53 = vld [vmem:[#allocation15_spill] sm:$0xff] }
 0x649   :  { %8046 = vmatmul.msk.f32.gmra.mxu3 %vm2804_vm2, %v16778_v15  ;;  %v4862_v2 = vpop.f32.mrf.mxu2  ;;  %16779 = vst [vmem:[#allocation122_spill] sm:$0xff] %v13911_v50  ;;  %v13917_v15 = vmax.f32 %v5608_v46, 0.0  ;;  %v5609_v46 = vadd.f32 %v13414_v18, %v13853_v12  ;;  %v16789_v50 = vld [vmem:[#allocation101_spill] sm:$0xff] }
 0x64a   :  { %v5421_v28 = vpop.f32.mrf.mxu0 }
 0x64b   :  { %16781 = vst [vmem:[#allocation84_spill] sm:$0xff] %v13917_v15  ;;  %v13940_v12 = vmax.f32 %v5609_v46, 0.0 }
 0x64c   :  { %v5140_v13 = vpop.f32.mrf.mxu3 }
 0x64d   :  { %v5266_v16 = vadd.f32 %v5140_v13, %v4985_v47  ;;  %v4581_v31 = vpop.f32.mrf.mxu1  ;;  %8106 = vmatmul.msk.f32.gmra.mxu0 %vm2804_vm2, %v16780_v53  ;;  %v5914_v13 = vld [vmem:[%s15221_s2 + $0x2b0] sm:$0xff]  ;;  %16786 = vst [vmem:[#allocation125_spill] sm:$0xff] %v13940_v12  ;;  %v5830_v46 = vrot.slane %v13940_v12, 1  ;;  %v16800_v12 = vld [vmem:[#allocation194_spill] sm:$0xff] }
 0x64e   :  { %7988 = vmatmul.msk.f32.gmra.mxu2 %vm2804_vm2, %v16782_v23  ;;  %v4705_v1 = vadd.f32 %v4581_v31, %v16783_v6  ;;  %6054 = vmatpush.msrb.mxu1 %v5914_v13  ;;  %v6878_v6 = vld [vmem:[%s15221_s2 + $0x330] sm:$0xff]  ;;  %v16788_v31 = vld [vmem:[#allocation192_spill] sm:$0xff] }
 0x64f   :  { %v13913_v57 = vadd.f32 %v5421_v28, %v5266_v16  ;;  %6889 = vmatpush.msrb.mxu0 %v6878_v6  ;;  %v16787_v16 = vld [vmem:[#allocation82_spill] sm:$0xff] }
 0x650   :  { %v4986_v47 = vadd.f32 %v4862_v2, %v4705_v1  ;;  %7925 = vmatmul.msk.f32.gmra.mxu1 %vm2804_vm2, %v16774_v42  ;;  %v5828_v1 = vrot.slane %v13917_v15, 1  ;;  %v16791_v15 = vld [vmem:[#allocation69_spill] sm:$0xff] }
 0x651   :  { %8047 = vmatmul.msk.f32.gmra.mxu3 %vm2804_vm2, %v16784_v60  ;;  %v4865_v58 = vpop.f32.mrf.mxu2 }
 0x652   :  { %v5424_v35 = vpop.f32.mrf.mxu0  ;;  %v13936_v42 = vsel %vm153_vm1, %v5826_v40, %v5828_v1 }
 0x654   :  { %v5143_v28 = vpop.f32.mrf.mxu3 }
 0x655   :  { %v5267_v23 = vadd.f32 %v5143_v28, %v4986_v47  ;;  %v4584_v2 = vpop.f32.mrf.mxu1  ;;  %8107 = vmatmul.msk.f32.gmra.mxu0 %vm2804_vm2, %v16785_v4  ;;  %v5610_v28 = vadd.f32 %v13414_v18, %v13871_v25  ;;  %v16795_v25 = vld [vmem:[#allocation28_spill] sm:$0xff] }
 0x656   :  { %7989 = vmatmul.msk.f32.gmra.mxu2 %vm2804_vm2, %v16787_v16  ;;  %v4706_v13 = vadd.f32 %v4584_v2, %v16788_v31  ;;  %v13953_v16 = vsel %vm153_vm1, %v5828_v1, %v5830_v46 }
 0x657   :  { %v5548_v60 = vadd.f32 %v5424_v35, %v5267_v23  ;;  %16790 = vst [vmem:[#allocation134_spill] sm:$0xff] %v13953_v16  ;;  %v16801_v16 = vld [vmem:[#allocation128_spill] sm:$0xff] }
 0x658   :  { %v4987_v47 = vadd.f32 %v4865_v58, %v4706_v13  ;;  %7926 = vmatmul.msk.f32.gmra.mxu1 %vm2804_vm2, %v16780_v53  ;;  %v16793_v53 = vld [vmem:[#allocation119_spill] sm:$0xff]  ;;  %v16794_v58 = vld [vmem:[#allocation193_spill] sm:$0xff] }
 0x659   :  { %8048 = vmatmul.msk.f32.gmra.mxu3 %vm2804_vm2, %v16789_v50  ;;  %v4868_v40 = vpop.f32.mrf.mxu2  ;;  %v13957_v50 = vmax.f32 %v5610_v28, 0.0 }
 0x65a   :  { %v5427_v6 = vpop.f32.mrf.mxu0 }
 0x65b   :  { %16792 = vst [vmem:[#allocation104_spill] sm:$0xff] %v13957_v50 }
 0x65c   :  { %v5146_v35 = vpop.f32.mrf.mxu3 }
 0x65d   :  { %v5268_v23 = vadd.f32 %v5146_v35, %v4987_v47  ;;  %v4587_v31 = vpop.f32.mrf.mxu1  ;;  %8108 = vmatmul.msk.f32.gmra.mxu0 %vm2804_vm2, %v16791_v15  ;;  %v13969_v47 = vld [vmem:[%s15221_s2 + $0x34a] ss:$0 sm:$0xff] }
 0x65e   :  { %7990 = vmatmul.msk.f32.gmra.mxu2 %vm2804_vm2, %v16793_v53  ;;  %v4707_v18 = vadd.f32 %v4587_v31, %v16794_v58  ;;  %v5611_v28 = vadd.f32 %v13969_v47, %v13889_v10 }
 0x65f   :  { %v5549_v2 = vadd.f32 %v5427_v6, %v5268_v23  ;;  %v5832_v23 = vrot.slane %v13957_v50, 1 }
 0x660   :  { %v4988_v13 = vadd.f32 %v4868_v40, %v4707_v18  ;;  %7927 = vmatmul.msk.f32.gmra.mxu1 %vm2804_vm2, %v16785_v4  ;;  %v16797_v4 = vld [vmem:[#allocation71_spill] sm:$0xff]  ;;  %v13979_v18 = vmax.f32 %v5611_v28, 0.0 }
 0x661   :  { %8049 = vmatmul.msk.f32.gmra.mxu3 %vm2804_vm2, %v16795_v25  ;;  %v4871_v1 = vpop.f32.mrf.mxu2  ;;  %v13975_v53 = vsel %vm153_vm1, %v5830_v46, %v5832_v23  ;;  %v16799_v25 = vld [vmem:[#allocation127_spill] sm:$0xff] }
 0x662   :  { %v5430_v6 = vpop.f32.mrf.mxu0  ;;  %16796 = vst [vmem:[#allocation54_spill] sm:$0xff] %v13975_v53  ;;  %v5834_v28 = vrot.slane %v13979_v18, 1  ;;  %v16803_v53 = vld [vmem:[#allocation35_spill] sm:$0xff] }
 0x663   :  { %16798 = vst [vmem:[#allocation99_spill] sm:$0xff] %v13979_v18 }
 0x664   :  { %v5149_v35 = vpop.f32.mrf.mxu3 }
 0x665   :  { %v5269_v31 = vadd.f32 %v5149_v35, %v4988_v13  ;;  %v4590_v58 = vpop.f32.mrf.mxu1  ;;  %8109 = vmatmul.msk.f32.gmra.mxu0 %vm2804_vm2, %v16797_v4  ;;  %v5612_v13 = vadd.f32 %v13969_v47, %v13913_v57 }
 0x666   :  { %7991 = vmatmul.msk.f32.gmra.mxu2 %vm2804_vm2, %v16799_v25  ;;  %v4708_v10 = vadd.f32 %v4590_v58, %v16800_v12  ;;  %v13992_v25 = vsel %vm153_vm1, %v5832_v23, %v5834_v28  ;;  %v5613_v23 = vadd.f32 %v13969_v47, %v5548_v60  ;;  %v16812_v60 = vld [vmem:[#allocation196_spill] sm:$0xff] }
 0x667   :  { %v5550_v40 = vadd.f32 %v5430_v6, %v5269_v31  ;;  %16802 = vst [vmem:[#allocation138_spill] sm:$0xff] %v13992_v25 }
 0x668   :  { %v4989_v50 = vadd.f32 %v4871_v1, %v4708_v10  ;;  %7928 = vmatmul.msk.f32.gmra.mxu1 %vm2804_vm2, %v16791_v15  ;;  %v16805_v15 = vld [vmem:[#allocation47_spill] sm:$0xff]  ;;  %v16807_v10 = vld [vmem:[#allocation57_spill] sm:$0xff] }
 0x669   :  { %8050 = vmatmul.msk.f32.gmra.mxu3 %vm2804_vm2, %v16801_v16  ;;  %v4874_v46 = vpop.f32.mrf.mxu2  ;;  %v13996_v16 = vmax.f32 %v5612_v13, 0.0  ;;  %v16806_v1 = vld [vmem:[#allocation195_spill] sm:$0xff] }
 0x66a   :  { %v5433_v6 = vpop.f32.mrf.mxu0 }
 0x66b   :  { %16804 = vst [vmem:[#allocation59_spill] sm:$0xff] %v13996_v16  ;;  %v5836_v13 = vrot.slane %v13996_v16, 1 }
 0x66c   :  { %v5152_v35 = vpop.f32.mrf.mxu3 }
 0x66d   :  { %v5270_v31 = vadd.f32 %v5152_v35, %v4989_v50  ;;  %v4593_v58 = vpop.f32.mrf.mxu1  ;;  %8110 = vmatmul.msk.f32.gmra.mxu0 %vm2804_vm2, %v16803_v53  ;;  %v14008_v25 = vsel %vm153_vm1, %v5834_v28, %v5836_v13 }
 0x66e   :  { %7992 = vmatmul.msk.f32.gmra.mxu2 %vm2804_vm2, %v16805_v15  ;;  %v4709_v57 = vadd.f32 %v4593_v58, %v16806_v1  ;;  %16808 = vst [vmem:[#allocation133_spill] sm:$0xff] %v14008_v25  ;;  %v16809_v1 = vld [vmem:[#allocation11_spill] sm:$0xff] }
 0x66f   :  { %v5551_v12 = vadd.f32 %v5433_v6, %v5270_v31 }
 0x670   :  { %v4990_v18 = vadd.f32 %v4874_v46, %v4709_v57  ;;  %7929 = vmatmul.msk.f32.gmra.mxu1 %vm2804_vm2, %v16797_v4  ;;  %v14014_v46 = vmax.f32 %v5613_v23, 0.0  ;;  %v16811_v4 = vld [vmem:[#allocation103_spill] sm:$0xff] }
 0x671   :  { %8051 = vmatmul.msk.f32.gmra.mxu3 %vm2804_vm2, %v16807_v10  ;;  %v4877_v50 = vpop.f32.mrf.mxu2  ;;  %v16813_v10 = vld [vmem:[#allocation108_spill] sm:$0xff] }
 0x672   :  { %v5436_v6 = vpop.f32.mrf.mxu0  ;;  %16810 = vst [vmem:[#allocation111_spill] sm:$0xff] %v14014_v46  ;;  %v5838_v23 = vrot.slane %v14014_v46, 1 }
 0x674   :  { %v5155_v35 = vpop.f32.mrf.mxu3  ;;  %v14026_v25 = vsel %vm153_vm1, %v5836_v13, %v5838_v23  ;;  %v5615_v13 = vadd.f32 %v13969_v47, %v5550_v40  ;;  %v16820_v40 = vld [vmem:[#allocation198_spill] sm:$0xff] }
 0x675   :  { %v5271_v31 = vadd.f32 %v5155_v35, %v4990_v18  ;;  %v4596_v58 = vpop.f32.mrf.mxu1  ;;  %8111 = vmatmul.msk.f32.gmra.mxu0 %vm2804_vm2, %v16809_v1  ;;  %v5614_v35 = vadd.f32 %v13969_v47, %v5549_v2  ;;  %v16816_v2 = vld [vmem:[#allocation197_spill] sm:$0xff] }
 0x676   :  { %7993 = vmatmul.msk.f32.gmra.mxu2 %vm2804_vm2, %v16811_v4  ;;  %v4710_v57 = vadd.f32 %v4596_v58, %v16812_v60  ;;  %v16814_v60 = vld [vmem:[#allocation20_spill] sm:$0xff] }
 0x677   :  { %v14010_v15 = vadd.f32 %v5436_v6, %v5271_v31 }
 0x678   :  { %v4991_v18 = vadd.f32 %v4877_v50, %v4710_v57  ;;  %7930 = vmatmul.msk.f32.gmra.mxu1 %vm2804_vm2, %v16803_v53  ;;  %v14032_v50 = vmax.f32 %v5614_v35, 0.0  ;;  %v16817_v57 = vld [vmem:[#allocation73_spill] sm:$0xff] }
 0x679   :  { %8052 = vmatmul.msk.f32.gmra.mxu3 %vm2804_vm2, %v16813_v10  ;;  %v4880_v28 = vpop.f32.mrf.mxu2 }
 0x67a   :  { %v5439_v31 = vpop.f32.mrf.mxu0  ;;  %16815 = vst [vmem:[#allocation142_spill] sm:$0xff] %v14032_v50  ;;  %v5840_v35 = vrot.slane %v14032_v50, 1  ;;  %v16825_v50 = vld [vmem:[#allocation16_spill] sm:$0xff] }
 0x67c   :  { %v5158_v6 = vpop.f32.mrf.mxu3  ;;  %v14044_v46 = vsel %vm153_vm1, %v5838_v23, %v5840_v35 }
 0x67d   :  { %v5272_v16 = vadd.f32 %v5158_v6, %v4991_v18  ;;  %v4599_v58 = vpop.f32.mrf.mxu1  ;;  %8112 = vmatmul.msk.f32.gmra.mxu0 %vm2804_vm2, %v16814_v60 }
 0x67e   :  { %7994 = vmatmul.msk.f32.gmra.mxu2 %vm2804_vm2, %v16565_v39  ;;  %v4711_v53 = vadd.f32 %v4599_v58, %v16816_v2  ;;  %v16818_v2 = vld [vmem:[#allocation43_spill] sm:$0xff] }
 0x67f   :  { %v14028_v4 = vadd.f32 %v5439_v31, %v5272_v16 }
 0x680   :  { %v4992_v10 = vadd.f32 %v4880_v28, %v4711_v53  ;;  %7931 = vmatmul.msk.f32.gmra.mxu1 %vm2804_vm2, %v16809_v1  ;;  %v14050_v28 = vmax.f32 %v5615_v13, 0.0  ;;  %v16821_v53 = vld [vmem:[#allocation118_spill] sm:$0xff] }
 0x681   :  { %8053 = vmatmul.msk.f32.gmra.mxu3 %vm2804_vm2, %v16817_v57  ;;  %v4883_v16 = vpop.f32.mrf.mxu2  ;;  %v5905_v13 = vld [vmem:[%s15221_s2 + $0x268] sm:$0xff] }
 0x682   :  { %v5442_v6 = vpop.f32.mrf.mxu0  ;;  %16819 = vst [vmem:[#allocation137_spill] sm:$0xff] %v14050_v28  ;;  %6392 = vmatpush.msrb.mxu2 %v5905_v13 }
 0x684   :  { %v5161_v18 = vpop.f32.mrf.mxu3 }
 0x685   :  { %v5273_v31 = vadd.f32 %v5161_v18, %v4992_v10  ;;  %v4602_v58 = vpop.f32.mrf.mxu1  ;;  %8113 = vmatmul.msk.f32.gmra.mxu0 %vm2804_vm2, %v16818_v2  ;;  %v5616_v10 = vadd.f32 %v13969_v47, %v5551_v12 }
 0x686   :  { %7995 = vmatmul.msk.f32.gmra.mxu2 %vm2804_vm2, %v16570_v24  ;;  %v4712_v1 = vadd.f32 %v4602_v58, %v16820_v40  ;;  %v6596_v24 = vld [vmem:[%s15221_s2 + $0x2e8] sm:$0xff] }
 0x687   :  { %v14046_v39 = vadd.f32 %v5442_v6, %v5273_v31  ;;  %v5842_v31 = vrot.slane %v14050_v28, 1  ;;  %6609 = vmatpush.msrb.mxu3 %v6596_v24  ;;  %v5902_v24 = vld [vmem:[%s15221_s2 + $0x250] sm:$0xff] }
 0x688   :  { %v4993_v57 = vadd.f32 %v4883_v16, %v4712_v1  ;;  %7932 = vmatmul.msk.f32.gmra.mxu1 %vm2804_vm2, %v16814_v60  ;;  %v5904_v16 = vld [vmem:[%s15221_s2 + $0x260] sm:$0xff]  ;;  %v16823_v1 = vld [vmem:[#allocation132_spill] sm:$0xff] }
 0x689   :  { %8054 = vmatmul.msk.f32.gmra.mxu3 %vm2804_vm2, %v16821_v53  ;;  %v4886_v23 = vpop.f32.mrf.mxu2  ;;  %v14071_v12 = vsel %vm153_vm1, %v5840_v35, %v5842_v31  ;;  %6393 = vmatpush.msrb.mxu2 %v5904_v16  ;;  %v14077_v53 = vmax.f32 %v5616_v10, 0.0  ;;  %v5903_v35 = vld [vmem:[%s15221_s2 + $0x258] sm:$0xff]  ;;  %v5913_v10 = vld [vmem:[%s15221_s2 + $0x2a8] sm:$0xff] }
 0x68a   :  { %v5445_v6 = vpop.f32.mrf.mxu0  ;;  %16822 = vst [vmem:[#allocation8_spill] sm:$0xff] %v14071_v12  ;;  %6055 = vmatpush.msrb.mxu1 %v5913_v10  ;;  %v16828_v10 = vld [vmem:[#allocation136_spill] sm:$0xff] }
 0x68b   :  { %16824 = vst [vmem:[#allocation146_spill] sm:$0xff] %v14077_v53  ;;  %6394 = vmatpush.msrb.mxu2 %v5903_v35 }
 0x68c   :  { %v5164_v18 = vpop.f32.mrf.mxu3 }
 0x68d   :  { %v5274_v60 = vadd.f32 %v5164_v18, %v4993_v57  ;;  %v4605_v40 = vpop.f32.mrf.mxu1  ;;  %8114 = vmatmul.msk.f32.gmra.mxu0 %vm2804_vm2, %v16823_v1  ;;  %v16826_v57 = vld [vmem:[#allocation29_spill] sm:$0xff]  ;;  %6395 = vmatpush.msrb.mxu2 %v5902_v24  ;;  %v16831_v24 = vld [vmem:[#allocation12_spill] sm:$0xff] }
 0x68e   :  { %7996 = vmatmul.msk.f32.gmra.mxu2 %vm2804_vm2, %v16575_v51  ;;  %v4713_v28 = vadd.f32 %v4605_v40, %v16825_v50  ;;  %v5617_v51 = vadd.f32 %v13969_v47, %v14010_v15  ;;  %v6595_v15 = vld [vmem:[%s15221_s2 + $0x2e0] sm:$0xff] }
 0x68f   :  { %v14073_v58 = vadd.f32 %v5445_v6, %v5274_v60  ;;  %v5900_v60 = vld [vmem:[%s15221_s2 + $0x240] sm:$0xff]  ;;  %6610 = vmatpush.msrb.mxu3 %v6595_v15 }
 0x690   :  { %v4994_v18 = vadd.f32 %v4886_v23, %v4713_v28  ;;  %7933 = vmatmul.msk.f32.gmra.mxu1 %vm2804_vm2, %v16818_v2  ;;  %v5901_v2 = vld [vmem:[%s15221_s2 + $0x248] sm:$0xff]  ;;  %v5844_v23 = vrot.slane %v14077_v53, 1 }
 0x691   :  { %8055 = vmatmul.msk.f32.gmra.mxu3 %vm2804_vm2, %v16826_v57  ;;  %v4889_v6 = vpop.f32.mrf.mxu2  ;;  %v6877_v28 = vld [vmem:[%s15221_s2 + $0x328] sm:$0xff]  ;;  %6396 = vmatpush.msrb.mxu2 %v5901_v2 }
 0x692   :  { %v5448_v13 = vpop.f32.mrf.mxu0  ;;  %6890 = vmatpush.msrb.mxu0 %v6877_v28  ;;  %v14111_v40 = vsel %vm153_vm1, %v5842_v31, %v5844_v23  ;;  %v16832_v53 = vld [vmem:[#allocation14_spill] sm:$0xff]  ;;  %v6594_v31 = vld [vmem:[%s15221_s2 + $0x2d8] sm:$0xff] }
 0x693   :  { %16827 = vst [vmem:[#allocation141_spill] sm:$0xff] %v14111_v40  ;;  %6397 = vmatpush.msrb.mxu2 %v5900_v60  ;;  %6611 = vmatpush.msrb.mxu3 %v6594_v31  ;;  %v6592_v60 = vld [vmem:[%s15221_s2 + $0x2c8] sm:$0xff]  ;;  %v16833_v31 = vld [vmem:[#allocation140_spill] sm:$0xff]  ;;  %v6591_v40 = vld [vmem:[%s15221_s2 + $0x2c0] sm:$0xff] }
 0x694   :  { %v5167_v50 = vpop.f32.mrf.mxu3 }
 0x695   :  { %v5275_v16 = vadd.f32 %v5167_v50, %v4994_v18  ;;  %v4608_v35 = vpop.f32.mrf.mxu1  ;;  %8115 = vmatmul.msk.f32.gmra.mxu0 %vm2804_vm2, %v16828_v10  ;;  %v14117_v18 = vmax.f32 %v5617_v51, 0.0  ;;  %v16830_v50 = vmov 0.0   ;;  %v5618_v51 = vadd.f32 %v13969_v47, %v14028_v4 }
 0x696   :  { %4939 = vmatmul.f32.gmra.mxu2 %v16830_v50  ;;  %v4714_v28 = vadd.f32 %v4608_v35, %v16831_v24 }
 0x697   :  { %v14113_v57 = vadd.f32 %v5448_v13, %v5275_v16  ;;  %16829 = vst [vmem:[#allocation117_spill] sm:$0xff] %v14117_v18  ;;  %v14150_v12 = vmax.f32 %v5618_v51, 0.0  ;;  %v5619_v51 = vadd.f32 %v13969_v47, %v14046_v39  ;;  %v6875_v39 = vld [vmem:[%s15221_s2 + $0x318] sm:$0xff] }
 0x698   :  { %v4995_v13 = vadd.f32 %v4889_v6, %v4714_v28  ;;  %7934 = vmatmul.msk.f32.gmra.mxu1 %vm2804_vm2, %v16823_v1  ;;  %v5912_v6 = vld [vmem:[%s15221_s2 + $0x2a0] sm:$0xff]  ;;  %v5846_v1 = vrot.slane %v14117_v18, 1 }
 0x699   :  { %8056 = vmatmul.msk.f32.gmra.mxu3 %vm2804_vm2, %v16832_v53  ;;  %v4892_v2 = vpop.f32.mrf.mxu2  ;;  %v6593_v53 = vld [vmem:[%s15221_s2 + $0x2d0] sm:$0xff]  ;;  %6056 = vmatpush.msrb.mxu1 %v5912_v6  ;;  %16834 = vst [vmem:[#allocation150_spill] sm:$0xff] %v14150_v12 }
 0x69a   :  { %v5451_v15 = vpop.f32.mrf.mxu0  ;;  %6612 = vmatpush.msrb.mxu3 %v6593_v53  ;;  %v14141_v4 = vsel %vm153_vm1, %v5844_v23, %v5846_v1  ;;  %v5911_v23 = vld [vmem:[%s15221_s2 + $0x298] sm:$0xff] }
 0x69b   :  { %6057 = vmatpush.msrb.mxu1 %v5911_v23 }
 0x69c   :  { %v5170_v16 = vpop.f32.mrf.mxu3  ;;  %6613 = vmatpush.msrb.mxu3 %v6592_v60 }
 0x69d   :  { %v5276_v35 = vadd.f32 %v5170_v16, %v4995_v13  ;;  %v4611_v28 = vpop.f32.mrf.mxu1  ;;  %8116 = vmatmul.msk.f32.gmra.mxu0 %vm2804_vm2, %v16833_v31  ;;  %v16835_v13 = vld [vmem:[#allocation114_spill] sm:$0xff] }
 0x69e   :  { %4942 = vmatmul.f32.gmra.mxu2 %v16830_v50  ;;  %v4715_v16 = vadd.f32 %v4611_v28, %v16835_v13  ;;  %6614 = vmatpush.msrb.mxu3 %v6591_v40  ;;  %v6876_v28 = vld [vmem:[%s15221_s2 + $0x320] sm:$0xff]  ;;  %v5848_v40 = vrot.slane %v14150_v12, 1 }
 0x69f   :  { %v14143_v24 = vadd.f32 %v5451_v15, %v5276_v35  ;;  %v5910_v35 = vld [vmem:[%s15221_s2 + $0x290] sm:$0xff]  ;;  %6891 = vmatpush.msrb.mxu0 %v6876_v28  ;;  %v5908_v13 = vld [vmem:[%s15221_s2 + $0x280] sm:$0xff] }
 0x6a0   :  { %v4996_v15 = vadd.f32 %v4892_v2, %v4715_v16  ;;  %7935 = vmatmul.msk.f32.gmra.mxu1 %vm2804_vm2, %v16828_v10  ;;  %v5909_v10 = vld [vmem:[%s15221_s2 + $0x288] sm:$0xff]  ;;  %v14179_v16 = vsel %vm153_vm1, %v5846_v1, %v5848_v40  ;;  %v6874_v1 = vld [vmem:[%s15221_s2 + $0x310] sm:$0xff] }
 0x6a1   :  { %5220 = vmatmul.f32.gmra.mxu3 %v16830_v50  ;;  %v4895_v53 = vpop.f32.mrf.mxu2  ;;  %6058 = vmatpush.msrb.mxu1 %v5910_v35 }
 0x6a2   :  { %v5454_v6 = vpop.f32.mrf.mxu0  ;;  %6892 = vmatpush.msrb.mxu0 %v6875_v39  ;;  %v6872_v39 = vld [vmem:[%s15221_s2 + $0x300] sm:$0xff] }
 0x6a3   :  { %6059 = vmatpush.msrb.mxu1 %v5909_v10 }
 0x6a4   :  { %v5173_v60 = vpop.f32.mrf.mxu3  ;;  %6893 = vmatpush.msrb.mxu0 %v6874_v1 }
 0x6a5   :  { %v5277_v2 = vadd.f32 %v5173_v60, %v4996_v15  ;;  %v4614_v18 = vpop.f32.mrf.mxu1  ;;  %5501 = vmatmul.f32.gmra.mxu0 %v16830_v50  ;;  %v14184_v15 = vmax.f32 %v5619_v51, 0.0  ;;  %v16837_v60 = vld [vmem:[#allocation199_spill] sm:$0xff]  ;;  %6060 = vmatpush.msrb.mxu1 %v5908_v13  ;;  %v6873_v51 = vld [vmem:[%s15221_s2 + $0x308] sm:$0xff] }
 0x6a6   :  { %4945 = vmatmul.f32.gmra.mxu2 %v16830_v50  ;;  %v4716_v35 = vadd.f32 %v4614_v18, %v16837_v60  ;;  %v5620_v18 = vadd.f32 %v13969_v47, %v14073_v58  ;;  %6894 = vmatpush.msrb.mxu0 %v6873_v51  ;;  %v16840_v58 = vld [vmem:[#allocation144_spill] sm:$0xff] }
 0x6a7   :  { %v14181_v23 = vadd.f32 %v5454_v6, %v5277_v2  ;;  %16836 = vst [vmem:[#allocation145_spill] sm:$0xff] %v14184_v15 }
 0x6a8   :  { %v4997_v6 = vadd.f32 %v4895_v53, %v4716_v35  ;;  %7936 = vmatmul.msk.f32.gmra.mxu1 %vm2804_vm2, %v16833_v31  ;;  %v5850_v53 = vrot.slane %v14184_v15, 1  ;;  %6895 = vmatpush.msrb.mxu0 %v6872_v39  ;;  %v14207_v1 = vmax.f32 %v5620_v18, 0.0 }
 0x6a9   :  { %5223 = vmatmul.f32.gmra.mxu3 %v16830_v50  ;;  %v4898_v28 = vpop.f32.mrf.mxu2 }
 0x6aa   :  { %v5457_v2 = vpop.f32.mrf.mxu0  ;;  %v14204_v31 = vsel %vm153_vm1, %v5848_v40, %v5850_v53  ;;  %16839 = vst [vmem:[#allocation153_spill] sm:$0xff] %v14207_v1  ;;  %v5621_v40 = vadd.f32 %v13969_v47, %v14113_v57  ;;  %v5852_v39 = vrot.slane %v14207_v1, 1 }
 0x6ab   :  { %16838 = vst [vmem:[#allocation18_spill] sm:$0xff] %v14204_v31 }
 0x6ac   :  { %v5176_v10 = vpop.f32.mrf.mxu3  ;;  %v14217_v18 = vsel %vm153_vm1, %v5850_v53, %v5852_v39  ;;  %v5622_v53 = vadd.f32 %v13969_v47, %v14143_v24 }
 0x6ad   :  { %v5278_v13 = vadd.f32 %v5176_v10, %v4997_v6  ;;  %v4617_v35 = vpop.f32.mrf.mxu1  ;;  %5504 = vmatmul.f32.gmra.mxu0 %v16830_v50 }
 0x6ae   :  { %4948 = vmatmul.f32.gmra.mxu2 %v16830_v50  ;;  %v4717_v51 = vadd.f32 %v4617_v35, %v16840_v58  ;;  %v14220_v35 = vmax.f32 %v5621_v40, 0.0  ;;  %v16842_v58 = vld [vmem:[#allocation51_spill] sm:$0xff] }
 0x6af   :  { %v5559_v60 = vadd.f32 %v5457_v2, %v5278_v13 }
 0x6b0   :  { %v4998_v12 = vadd.f32 %v4898_v28, %v4717_v51  ;;  %4664 = vmatmul.f32.gmra.mxu1 %v16830_v50  ;;  %v16841_v28 = vmax.f32 %v13427_v3, 0.0  ;;  %v5854_v40 = vrot.slane %v14220_v35, 1 }
 0x6b1   :  { %5226 = vmatmul.f32.gmra.mxu3 %v16830_v50  ;;  %v4901_v6 = vpop.f32.mrf.mxu2 }
 0x6b2   :  { %v5460_v2 = vpop.f32.mrf.mxu0  ;;  %v14232_v3 = vsel %vm153_vm1, %v5852_v39, %v5854_v40 }
 0x6b4   :  { %v5179_v10 = vpop.f32.mrf.mxu3 }
 0x6b5   :  { %v5279_v13 = vadd.f32 %v5179_v10, %v4998_v12  ;;  %v4620_v31 = vpop.f32.mrf.mxu1  ;;  %5507 = vmatmul.f32.gmra.mxu0 %v16830_v50 }
 0x6b6   :  { %8181 = vmatmul.msk.f32.vlgmr.msrb.gmra.mxu2 %vm2804_vm2, %v16841_v28  ;;  %v4718_v57 = vadd.f32 %v4620_v31, %v16842_v58  ;;  %v14235_v31 = vmax.f32 %v5622_v53, 0.0  ;;  %v16844_v58 = vld [vmem:[#allocation148_spill] sm:$0xff] }
 0x6b7   :  { %v5560_v15 = vadd.f32 %v5460_v2, %v5279_v13 }
 0x6b8   :  { %v4999_v51 = vadd.f32 %v4901_v6, %v4718_v57  ;;  %4667 = vmatmul.f32.gmra.mxu1 %v16830_v50  ;;  %v16843_v6 = vmax.f32 %v13422_v45, 0.0 }
 0x6b9   :  { %5229 = vmatmul.f32.gmra.mxu3 %v16830_v50  ;;  %v4904_v12 = vpop.f32.mrf.mxu2 }
 0x6ba   :  { %v5463_v2 = vpop.f32.mrf.mxu0 }
 0x6bc   :  { %v5182_v10 = vpop.f32.mrf.mxu3 }
 0x6bd   :  { %v5280_v13 = vadd.f32 %v5182_v10, %v4999_v51  ;;  %v4623_v1 = vpop.f32.mrf.mxu1  ;;  %5510 = vmatmul.f32.gmra.mxu0 %v16830_v50  ;;  %v5623_v51 = vadd.f32 %v13969_v47, %v14181_v23  ;;  %v16887_v50 = vld [vmem:[#allocation68_spill] sm:$0xff] }
 0x6be   :  { %8182 = vmatmul.msk.f32.gmra.mxu2 %vm2804_vm2, %v16843_v6  ;;  %v4719_v24 = vadd.f32 %v4623_v1, %v16844_v58 }
 0x6bf   :  { %v5561_v28 = vadd.f32 %v5463_v2, %v5280_v13  ;;  %v5856_v2 = vrot.slane %v14235_v31, 1 }
 0x6c0   :  { %v5000_v57 = vadd.f32 %v4904_v12, %v4719_v24  ;;  %8117 = vmatmul.msk.f32.vlgmr.msrb.gmra.mxu1 %vm2804_vm2, %v13448_v7  ;;  %v14253_v12 = vmax.f32 %v5623_v51, 0.0  ;;  %v16845_v7 = vld [vmem:[#allocation9_spill] sm:$0xff]  ;;  %v5624_v24 = vadd.f32 %v13969_v47, %v5559_v60 }
 0x6c1   :  { %8245 = vmatmul.msk.f32.vlgmr.msrb.gmra.mxu3 %vm2804_vm2, %v13445_v19  ;;  %v4907_v39 = vpop.f32.mrf.mxu2  ;;  %v14249_v13 = vsel %vm153_vm1, %v5854_v40, %v5856_v2 }
 0x6c2   :  { %v5466_v53 = vpop.f32.mrf.mxu0  ;;  %v5858_v51 = vrot.slane %v14253_v12, 1 }
 0x6c4   :  { %v5185_v10 = vpop.f32.mrf.mxu3 }
 0x6c5   :  { %v5281_v45 = vadd.f32 %v5185_v10, %v5000_v57  ;;  %v4626_v6 = vpop.f32.mrf.mxu1  ;;  %8307 = vmatmul.msk.f32.vlgmr.msrb.gmra.mxu0 %vm2804_vm2, %v13478_v8 }
 0x6c6   :  { %8183 = vmatmul.msk.f32.gmra.mxu2 %vm2804_vm2, %v13445_v19  ;;  %v4720_v23 = vadd.f32 %v4626_v6, %v16845_v7 }
 0x6c7   :  { %v5562_v1 = vadd.f32 %v5466_v53, %v5281_v45  ;;  %v14265_v45 = vsel %vm153_vm1, %v5856_v2, %v5858_v51 }
 0x6c8   :  { %v5001_v58 = vadd.f32 %v4907_v39, %v4720_v23  ;;  %8118 = vmatmul.msk.f32.gmra.mxu1 %vm2804_vm2, %v13464_v27  ;;  %v14269_v39 = vmax.f32 %v5624_v24, 0.0  ;;  %v16846_v27 = vld [vmem:[#allocation38_spill] sm:$0xff]  ;;  %v5625_v23 = vadd.f32 %v13969_v47, %v5560_v15 }
 0x6c9   :  { %8246 = vmatmul.msk.f32.gmra.mxu3 %vm2804_vm2, %v13461_v41  ;;  %v4910_v40 = vpop.f32.mrf.mxu2 }
 0x6ca   :  { %v5469_v10 = vpop.f32.mrf.mxu0  ;;  %v5860_v24 = vrot.slane %v14269_v39, 1 }
 0x6cc   :  { %v5188_v57 = vpop.f32.mrf.mxu3 }
 0x6cd   :  { %v5282_v53 = vadd.f32 %v5188_v57, %v5001_v58  ;;  %v4629_v6 = vpop.f32.mrf.mxu1  ;;  %8308 = vmatmul.msk.f32.gmra.mxu0 %vm2804_vm2, %v13494_v29 }
 0x6ce   :  { %8184 = vmatmul.msk.f32.gmra.mxu2 %vm2804_vm2, %v13461_v41  ;;  %v4721_v60 = vadd.f32 %v4629_v6, %v16846_v27 }
 0x6cf   :  { %v5563_v19 = vadd.f32 %v5469_v10, %v5282_v53  ;;  %v14281_v53 = vsel %vm153_vm1, %v5858_v51, %v5860_v24 }
 0x6d0   :  { %v5002_v7 = vadd.f32 %v4910_v40, %v4721_v60  ;;  %8119 = vmatmul.msk.f32.gmra.mxu1 %vm2804_vm2, %v13478_v8  ;;  %v14285_v40 = vmax.f32 %v5625_v23, 0.0  ;;  %v16847_v8 = vld [vmem:[#allocation17_spill] sm:$0xff]  ;;  %v5626_v60 = vadd.f32 %v13969_v47, %v5561_v28 }
 0x6d1   :  { %8247 = vmatmul.msk.f32.gmra.mxu3 %vm2804_vm2, %v13482_v36  ;;  %v4913_v2 = vpop.f32.mrf.mxu2 }
 0x6d2   :  { %v5472_v57 = vpop.f32.mrf.mxu0  ;;  %v5862_v23 = vrot.slane %v14285_v40, 1 }
 0x6d4   :  { %v5191_v58 = vpop.f32.mrf.mxu3 }
 0x6d5   :  { %v5283_v10 = vadd.f32 %v5191_v58, %v5002_v7  ;;  %v4632_v6 = vpop.f32.mrf.mxu1  ;;  %8309 = vmatmul.msk.f32.gmra.mxu0 %vm2804_vm2, %v13510_v22 }
 0x6d6   :  { %8185 = vmatmul.msk.f32.gmra.mxu2 %vm2804_vm2, %v13482_v36  ;;  %v4722_v15 = vadd.f32 %v4632_v6, %v16847_v8 }
 0x6d7   :  { %v5564_v41 = vadd.f32 %v5472_v57, %v5283_v10  ;;  %v14297_v10 = vsel %vm153_vm1, %v5860_v24, %v5862_v23 }
 0x6d8   :  { %v5003_v27 = vadd.f32 %v4913_v2, %v4722_v15  ;;  %8120 = vmatmul.msk.f32.gmra.mxu1 %vm2804_vm2, %v13494_v29  ;;  %v14301_v2 = vmax.f32 %v5626_v60, 0.0  ;;  %v16849_v29 = vld [vmem:[#allocation6_spill] sm:$0xff]  ;;  %v5627_v15 = vadd.f32 %v13969_v47, %v5562_v1 }
 0x6d9   :  { %8248 = vmatmul.msk.f32.gmra.mxu3 %vm2804_vm2, %v13498_v38  ;;  %v4916_v51 = vpop.f32.mrf.mxu2 }
 0x6da   :  { %v5475_v58 = vpop.f32.mrf.mxu0  ;;  %16848 = vst [vmem:[#allocation149_spill] sm:$0xff] %v14301_v2  ;;  %v5864_v60 = vrot.slane %v14301_v2, 1 }
 0x6dc   :  { %v5194_v7 = vpop.f32.mrf.mxu3 }
 0x6dd   :  { %v5284_v57 = vadd.f32 %v5194_v7, %v5003_v27  ;;  %v4635_v6 = vpop.f32.mrf.mxu1  ;;  %8310 = vmatmul.msk.f32.gmra.mxu0 %vm2804_vm2, %v13526_v0 }
 0x6de   :  { %8186 = vmatmul.msk.f32.gmra.mxu2 %vm2804_vm2, %v13498_v38  ;;  %v4723_v28 = vadd.f32 %v4635_v6, %v16849_v29 }
 0x6df   :  { %v5565_v36 = vadd.f32 %v5475_v58, %v5284_v57  ;;  %v14313_v57 = vsel %vm153_vm1, %v5862_v23, %v5864_v60 }
 0x6e0   :  { %v5004_v8 = vadd.f32 %v4916_v51, %v4723_v28  ;;  %8121 = vmatmul.msk.f32.gmra.mxu1 %vm2804_vm2, %v13510_v22  ;;  %16850 = vst [vmem:[#allocation152_spill] sm:$0xff] %v14313_v57  ;;  %v14317_v51 = vmax.f32 %v5627_v15, 0.0  ;;  %v16852_v22 = vld [vmem:[#allocation64_spill] sm:$0xff]  ;;  %v5628_v28 = vadd.f32 %v13969_v47, %v5563_v19 }
 0x6e1   :  { %8249 = vmatmul.msk.f32.gmra.mxu3 %vm2804_vm2, %v13514_v9  ;;  %v4919_v24 = vpop.f32.mrf.mxu2 }
 0x6e2   :  { %v5478_v7 = vpop.f32.mrf.mxu0  ;;  %16851 = vst [vmem:[#allocation155_spill] sm:$0xff] %v14317_v51  ;;  %v5866_v15 = vrot.slane %v14317_v51, 1 }
 0x6e4   :  { %v5197_v27 = vpop.f32.mrf.mxu3 }
 0x6e5   :  { %v5285_v58 = vadd.f32 %v5197_v27, %v5004_v8  ;;  %v4638_v6 = vpop.f32.mrf.mxu1  ;;  %8311 = vmatmul.msk.f32.gmra.mxu0 %vm2804_vm2, %v13542_v49 }
 0x6e6   :  { %8187 = vmatmul.msk.f32.gmra.mxu2 %vm2804_vm2, %v13514_v9  ;;  %v4724_v1 = vadd.f32 %v4638_v6, %v16852_v22 }
 0x6e7   :  { %v5566_v38 = vadd.f32 %v5478_v7, %v5285_v58  ;;  %v14329_v58 = vsel %vm153_vm1, %v5864_v60, %v5866_v15 }
 0x6e8   :  { %v5005_v29 = vadd.f32 %v4919_v24, %v4724_v1  ;;  %8122 = vmatmul.msk.f32.gmra.mxu1 %vm2804_vm2, %v13526_v0  ;;  %16853 = vst [vmem:[#allocation154_spill] sm:$0xff] %v14329_v58  ;;  %v14333_v24 = vmax.f32 %v5628_v28, 0.0  ;;  %v16855_v0 = vld [vmem:[#allocation45_spill] sm:$0xff]  ;;  %v5629_v1 = vadd.f32 %v13969_v47, %v5564_v41 }
 0x6e9   :  { %8250 = vmatmul.msk.f32.gmra.mxu3 %vm2804_vm2, %v13530_v59  ;;  %v4922_v23 = vpop.f32.mrf.mxu2 }
 0x6ea   :  { %v5481_v27 = vpop.f32.mrf.mxu0  ;;  %16854 = vst [vmem:[#allocation87_spill] sm:$0xff] %v14333_v24  ;;  %v5868_v28 = vrot.slane %v14333_v24, 1 }
 0x6ec   :  { %v5200_v8 = vpop.f32.mrf.mxu3 }
 0x6ed   :  { %v5286_v7 = vadd.f32 %v5200_v8, %v5005_v29  ;;  %v4641_v6 = vpop.f32.mrf.mxu1  ;;  %8312 = vmatmul.msk.f32.gmra.mxu0 %vm2804_vm2, %v13558_v30 }
 0x6ee   :  { %8188 = vmatmul.msk.f32.gmra.mxu2 %vm2804_vm2, %v13530_v59  ;;  %v4725_v19 = vadd.f32 %v4641_v6, %v16855_v0 }
 0x6ef   :  { %v5567_v9 = vadd.f32 %v5481_v27, %v5286_v7  ;;  %v14345_v7 = vsel %vm153_vm1, %v5866_v15, %v5868_v28 }
 0x6f0   :  { %v5006_v22 = vadd.f32 %v4922_v23, %v4725_v19  ;;  %8123 = vmatmul.msk.f32.gmra.mxu1 %vm2804_vm2, %v13542_v49  ;;  %16856 = vst [vmem:[#allocation85_spill] sm:$0xff] %v14345_v7  ;;  %v14349_v23 = vmax.f32 %v5629_v1, 0.0  ;;  %v16858_v49 = vld [vmem:[#allocation46_spill] sm:$0xff]  ;;  %v5630_v19 = vadd.f32 %v13969_v47, %v5565_v36 }
 0x6f1   :  { %8251 = vmatmul.msk.f32.gmra.mxu3 %vm2804_vm2, %v13546_v21  ;;  %v4925_v60 = vpop.f32.mrf.mxu2 }
 0x6f2   :  { %v5484_v8 = vpop.f32.mrf.mxu0  ;;  %16857 = vst [vmem:[#allocation156_spill] sm:$0xff] %v14349_v23  ;;  %v5870_v1 = vrot.slane %v14349_v23, 1  ;;  %v16921_v23 = vld [vmem:[#allocation133_spill] sm:$0xff] }
 0x6f4   :  { %v5203_v29 = vpop.f32.mrf.mxu3 }
 0x6f5   :  { %v5287_v27 = vadd.f32 %v5203_v29, %v5006_v22  ;;  %v4644_v6 = vpop.f32.mrf.mxu1  ;;  %8313 = vmatmul.msk.f32.gmra.mxu0 %vm2804_vm2, %v13574_v43 }
 0x6f6   :  { %8189 = vmatmul.msk.f32.gmra.mxu2 %vm2804_vm2, %v13546_v21  ;;  %v4726_v41 = vadd.f32 %v4644_v6, %v16858_v49 }
 0x6f7   :  { %v5568_v59 = vadd.f32 %v5484_v8, %v5287_v27  ;;  %v14361_v27 = vsel %vm153_vm1, %v5868_v28, %v5870_v1 }
 0x6f8   :  { %v5007_v0 = vadd.f32 %v4925_v60, %v4726_v41  ;;  %8124 = vmatmul.msk.f32.gmra.mxu1 %vm2804_vm2, %v13558_v30  ;;  %16859 = vst [vmem:[#allocation3_spill] sm:$0xff] %v14361_v27  ;;  %v14365_v60 = vmax.f32 %v5630_v19, 0.0  ;;  %v16861_v30 = vld [vmem:[#allocation26_spill] sm:$0xff]  ;;  %v5631_v41 = vadd.f32 %v13969_v47, %v5566_v38 }
 0x6f9   :  { %8252 = vmatmul.msk.f32.gmra.mxu3 %vm2804_vm2, %v13562_v14  ;;  %v4928_v15 = vpop.f32.mrf.mxu2 }
 0x6fa   :  { %v5487_v29 = vpop.f32.mrf.mxu0  ;;  %16860 = vst [vmem:[#allocation70_spill] sm:$0xff] %v14365_v60  ;;  %v5872_v19 = vrot.slane %v14365_v60, 1 }
 0x6fc   :  { %v5206_v22 = vpop.f32.mrf.mxu3 }
 0x6fd   :  { %v5288_v8 = vadd.f32 %v5206_v22, %v5007_v0  ;;  %v4647_v6 = vpop.f32.mrf.mxu1  ;;  %8314 = vmatmul.msk.f32.gmra.mxu0 %vm2804_vm2, %v13590_v34 }
 0x6fe   :  { %8190 = vmatmul.msk.f32.gmra.mxu2 %vm2804_vm2, %v13562_v14  ;;  %v4727_v36 = vadd.f32 %v4647_v6, %v16861_v30 }
 0x6ff   :  { %v5569_v21 = vadd.f32 %v5487_v29, %v5288_v8  ;;  %v14377_v8 = vsel %vm153_vm1, %v5870_v1, %v5872_v19 }
 0x700   :  { %v5008_v49 = vadd.f32 %v4928_v15, %v4727_v36  ;;  %8125 = vmatmul.msk.f32.gmra.mxu1 %vm2804_vm2, %v13574_v43  ;;  %16862 = vst [vmem:[#allocation157_spill] sm:$0xff] %v14377_v8  ;;  %v14381_v15 = vmax.f32 %v5631_v41, 0.0  ;;  %v16864_v43 = vld [vmem:[#allocation31_spill] sm:$0xff]  ;;  %v5632_v36 = vadd.f32 %v13969_v47, %v5567_v9 }
 0x701   :  { %8253 = vmatmul.msk.f32.gmra.mxu3 %vm2804_vm2, %v13578_v26  ;;  %v4931_v28 = vpop.f32.mrf.mxu2 }
 0x702   :  { %v5490_v22 = vpop.f32.mrf.mxu0  ;;  %16863 = vst [vmem:[#allocation86_spill] sm:$0xff] %v14381_v15  ;;  %v5874_v41 = vrot.slane %v14381_v15, 1 }
 0x704   :  { %v5209_v0 = vpop.f32.mrf.mxu3 }
 0x705   :  { %v5289_v29 = vadd.f32 %v5209_v0, %v5008_v49  ;;  %v4650_v6 = vpop.f32.mrf.mxu1  ;;  %8315 = vmatmul.msk.f32.gmra.mxu0 %vm2804_vm2, %v13606_v11 }
 0x706   :  { %8191 = vmatmul.msk.f32.gmra.mxu2 %vm2804_vm2, %v13578_v26  ;;  %v4728_v38 = vadd.f32 %v4650_v6, %v16864_v43  ;;  %v5633_v43 = vadd.f32 %v13969_v47, %v5568_v59 }
 0x707   :  { %v5570_v14 = vadd.f32 %v5490_v22, %v5289_v29  ;;  %v14393_v29 = vsel %vm153_vm1, %v5872_v19, %v5874_v41 }
 0x708   :  { %v5009_v30 = vadd.f32 %v4931_v28, %v4728_v38  ;;  %8126 = vmatmul.msk.f32.gmra.mxu1 %vm2804_vm2, %v13590_v34  ;;  %16865 = vst [vmem:[#allocation74_spill] sm:$0xff] %v14393_v29  ;;  %v14397_v28 = vmax.f32 %v5632_v36, 0.0 }
 0x709   :  { %8254 = vmatmul.msk.f32.gmra.mxu3 %vm2804_vm2, %v13594_v5  ;;  %v4934_v1 = vpop.f32.mrf.mxu2 }
 0x70a   :  { %v5493_v0 = vpop.f32.mrf.mxu0  ;;  %16866 = vst [vmem:[#allocation158_spill] sm:$0xff] %v14397_v28  ;;  %v5876_v36 = vrot.slane %v14397_v28, 1  ;;  %v16919_v28 = vld [vmem:[#allocation138_spill] sm:$0xff] }
 0x70c   :  { %v5212_v49 = vpop.f32.mrf.mxu3 }
 0x70d   :  { %v5290_v22 = vadd.f32 %v5212_v49, %v5009_v30  ;;  %v4653_v6 = vpop.f32.mrf.mxu1  ;;  %8316 = vmatmul.msk.f32.gmra.mxu0 %vm2804_vm2, %v13622_v33 }
 0x70e   :  { %8192 = vmatmul.msk.f32.gmra.mxu2 %vm2804_vm2, %v13594_v5  ;;  %v4729_v34 = vadd.f32 %v4653_v6, %v13307_v55 }
 0x70f   :  { %v5571_v26 = vadd.f32 %v5493_v0, %v5290_v22  ;;  %v14409_v0 = vsel %vm153_vm1, %v5874_v41, %v5876_v36  ;;  %v5634_v22 = vadd.f32 %v13969_v47, %v5569_v21 }
 0x710   :  { %v5010_v9 = vadd.f32 %v4934_v1, %v4729_v34  ;;  %8127 = vmatmul.msk.f32.gmra.mxu1 %vm2804_vm2, %v13606_v11  ;;  %16867 = vst [vmem:[#allocation102_spill] sm:$0xff] %v14409_v0  ;;  %v14413_v1 = vmax.f32 %v5633_v43, 0.0  ;;  %v16920_v0 = vld [vmem:[#allocation99_spill] sm:$0xff] }
 0x711   :  { %8255 = vmatmul.msk.f32.gmra.mxu3 %vm2804_vm2, %v13610_v44  ;;  %v4937_v19 = vpop.f32.mrf.mxu2 }
 0x712   :  { %v5496_v30 = vpop.f32.mrf.mxu0  ;;  %16868 = vst [vmem:[#allocation159_spill] sm:$0xff] %v14413_v1 }
 0x714   :  { %v5215_v38 = vpop.f32.mrf.mxu3 }
 0x715   :  { %v5291_v49 = vadd.f32 %v5215_v38, %v5010_v9  ;;  %v4656_v55 = vpop.f32.mrf.mxu1  ;;  %8317 = vmatmul.msk.f32.gmra.mxu0 %vm2804_vm2, %v13638_v52  ;;  %v5878_v9 = vrot.slane %v14413_v1, 1 }
 0x716   :  { %8193 = vmatmul.msk.f32.gmra.mxu2 %vm2804_vm2, %v13610_v44  ;;  %v4730_v11 = vadd.f32 %v4656_v55, %v13318_v20 }
 0x717   :  { %v5572_v5 = vadd.f32 %v5496_v30, %v5291_v49  ;;  %v14425_v38 = vsel %vm153_vm1, %v5876_v36, %v5878_v9  ;;  %v5635_v36 = vadd.f32 %v13969_v47, %v5570_v14 }
 0x718   :  { %v5011_v59 = vadd.f32 %v4937_v19, %v4730_v11  ;;  %8128 = vmatmul.msk.f32.gmra.mxu1 %vm2804_vm2, %v13622_v33  ;;  %16869 = vst [vmem:[#allocation105_spill] sm:$0xff] %v14425_v38  ;;  %v14429_v19 = vmax.f32 %v5634_v22, 0.0 }
 0x719   :  { %8256 = vmatmul.msk.f32.gmra.mxu3 %vm2804_vm2, %v13626_v63  ;;  %v4940_v41 = vpop.f32.mrf.mxu2 }
 0x71a   :  { %v5499_v34 = vpop.f32.mrf.mxu0  ;;  %16870 = vst [vmem:[#allocation160_spill] sm:$0xff] %v14429_v19  ;;  %v5880_v11 = vrot.slane %v14429_v19, 1  ;;  %v16917_v19 = vld [vmem:[#allocation54_spill] sm:$0xff] }
 0x71c   :  { %v5218_v6 = vpop.f32.mrf.mxu3  ;;  %v14441_v22 = vsel %vm153_vm1, %v5878_v9, %v5880_v11 }
 0x71d   :  { %v5292_v43 = vadd.f32 %v5218_v6, %v5011_v59  ;;  %v4659_v20 = vpop.f32.mrf.mxu1  ;;  %8318 = vmatmul.msk.f32.gmra.mxu0 %vm2804_vm2, %v13654_v61  ;;  %16871 = vst [vmem:[#allocation161_spill] sm:$0xff] %v14441_v22  ;;  %v16918_v22 = vld [vmem:[#allocation104_spill] sm:$0xff] }
 0x71e   :  { %8194 = vmatmul.msk.f32.gmra.mxu2 %vm2804_vm2, %v13626_v63  ;;  %v4731_v33 = vadd.f32 %v4659_v20, %v13329_v62 }
 0x71f   :  { %v5573_v44 = vadd.f32 %v5499_v34, %v5292_v43  ;;  %v5636_v34 = vadd.f32 %v13969_v47, %v5571_v26 }
 0x720   :  { %v5012_v21 = vadd.f32 %v4940_v41, %v4731_v33  ;;  %8129 = vmatmul.msk.f32.gmra.mxu1 %vm2804_vm2, %v13638_v52  ;;  %v14445_v41 = vmax.f32 %v5635_v36, 0.0  ;;  %v16876_v36 = vld [vmem:[#allocation32_spill] sm:$0xff] }
 0x721   :  { %8257 = vmatmul.msk.f32.gmra.mxu3 %vm2804_vm2, %v13642_v56  ;;  %v4943_v30 = vpop.f32.mrf.mxu2 }
 0x722   :  { %v5502_v55 = vpop.f32.mrf.mxu0  ;;  %16872 = vst [vmem:[#allocation121_spill] sm:$0xff] %v14445_v41  ;;  %v5882_v20 = vrot.slane %v14445_v41, 1 }
 0x724   :  { %v5221_v49 = vpop.f32.mrf.mxu3 }
 0x725   :  { %v5293_v59 = vadd.f32 %v5221_v49, %v5012_v21  ;;  %v4662_v62 = vpop.f32.mrf.mxu1  ;;  %8319 = vmatmul.msk.f32.gmra.mxu0 %vm2804_vm2, %v13670_v54  ;;  %v14457_v21 = vsel %vm153_vm1, %v5880_v11, %v5882_v20  ;;  %v5637_v11 = vadd.f32 %v13969_v47, %v5572_v5 }
 0x726   :  { %8195 = vmatmul.msk.f32.gmra.mxu2 %vm2804_vm2, %v13642_v56  ;;  %v4732_v52 = vadd.f32 %v4662_v62, %v13340_v32  ;;  %16873 = vst [vmem:[#allocation162_spill] sm:$0xff] %v14457_v21 }
 0x727   :  { %v5574_v63 = vadd.f32 %v5502_v55, %v5293_v59 }
 0x728   :  { %v5013_v14 = vadd.f32 %v4943_v30, %v4732_v52  ;;  %8130 = vmatmul.msk.f32.gmra.mxu1 %vm2804_vm2, %v13654_v61  ;;  %v14461_v30 = vmax.f32 %v5636_v34, 0.0  ;;  %v16875_v61 = vld [vmem:[#allocation23_spill] sm:$0xff] }
 0x729   :  { %8258 = vmatmul.msk.f32.gmra.mxu3 %vm2804_vm2, %v13658_v37  ;;  %v4946_v6 = vpop.f32.mrf.mxu2 }
 0x72a   :  { %v5505_v43 = vpop.f32.mrf.mxu0  ;;  %16874 = vst [vmem:[#allocation163_spill] sm:$0xff] %v14461_v30  ;;  %v5884_v52 = vrot.slane %v14461_v30, 1  ;;  %v16915_v30 = vld [vmem:[#allocation134_spill] sm:$0xff] }
 0x72c   :  { %v5224_v9 = vpop.f32.mrf.mxu3  ;;  %v14473_v34 = vsel %vm153_vm1, %v5882_v20, %v5884_v52 }
 0x72d   :  { %v5294_v33 = vadd.f32 %v5224_v9, %v5013_v14  ;;  %v4665_v32 = vpop.f32.mrf.mxu1  ;;  %8320 = vmatmul.msk.f32.gmra.mxu0 %vm2804_vm2, %v13686_v17  ;;  %16877 = vst [vmem:[#allocation164_spill] sm:$0xff] %v14473_v34  ;;  %v16916_v34 = vld [vmem:[#allocation125_spill] sm:$0xff] }
 0x72e   :  { %8196 = vmatmul.msk.f32.gmra.mxu2 %vm2804_vm2, %v13658_v37  ;;  %v4733_v26 = vadd.f32 %v4665_v32, %v16875_v61  ;;  %v5638_v61 = vadd.f32 %v13969_v47, %v5573_v44 }
 0x72f   :  { %v5575_v56 = vadd.f32 %v5505_v43, %v5294_v33  ;;  %v16878_v43 = vld [vmem:[#allocation33_spill] sm:$0xff]  ;;  %v16881_v33 = vld [vmem:[#allocation60_spill] sm:$0xff] }
 0x730   :  { %v5014_v49 = vadd.f32 %v4946_v6, %v4733_v26  ;;  %8131 = vmatmul.msk.f32.gmra.mxu1 %vm2804_vm2, %v13670_v54  ;;  %v14477_v6 = vmax.f32 %v5637_v11, 0.0  ;;  %v16880_v54 = vld [vmem:[#allocation58_spill] sm:$0xff] }
 0x731   :  { %8259 = vmatmul.msk.f32.gmra.mxu3 %vm2804_vm2, %v16876_v36  ;;  %v4949_v55 = vpop.f32.mrf.mxu2 }
 0x732   :  { %v5508_v62 = vpop.f32.mrf.mxu0  ;;  %16879 = vst [vmem:[#allocation165_spill] sm:$0xff] %v14477_v6  ;;  %v5886_v11 = vrot.slane %v14477_v6, 1 }
 0x734   :  { %v5227_v59 = vpop.f32.mrf.mxu3 }
 0x735   :  { %v5295_v14 = vadd.f32 %v5227_v59, %v5014_v49  ;;  %v4668_v9 = vpop.f32.mrf.mxu1  ;;  %8321 = vmatmul.msk.f32.gmra.mxu0 %vm2804_vm2, %v16878_v43 }
 0x736   :  { %8197 = vmatmul.msk.f32.gmra.mxu2 %vm2804_vm2, %v16876_v36  ;;  %v4734_v5 = vadd.f32 %v4668_v9, %v16880_v54  ;;  %v16883_v9 = vld [vmem:[#allocation124_spill] sm:$0xff] }
 0x737   :  { %v5576_v37 = vadd.f32 %v5508_v62, %v5295_v14  ;;  %v14489_v62 = vsel %vm153_vm1, %v5884_v52, %v5886_v11  ;;  %v5639_v52 = vadd.f32 %v13969_v47, %v5574_v63  ;;  %v16889_v63 = vld [vmem:[#allocation80_spill] sm:$0xff] }
 0x738   :  { %v5015_v32 = vadd.f32 %v4949_v55, %v4734_v5  ;;  %8132 = vmatmul.msk.f32.gmra.mxu1 %vm2804_vm2, %v13686_v17  ;;  %16882 = vst [vmem:[#allocation167_spill] sm:$0xff] %v14489_v62  ;;  %v14493_v55 = vmax.f32 %v5638_v61, 0.0  ;;  %v16885_v17 = vld [vmem:[#allocation77_spill] sm:$0xff] }
 0x739   :  { %8260 = vmatmul.msk.f32.gmra.mxu3 %vm2804_vm2, %v16881_v33  ;;  %v6399_v20 = vpop.f32.mrf.mxu2 }
 0x73a   :  { %v5511_v49 = vpop.f32.mrf.mxu0  ;;  %16884 = vst [vmem:[#allocation166_spill] sm:$0xff] %v14493_v55 }
 0x73c   :  { %v5230_v26 = vpop.f32.mrf.mxu3 }
 0x73d   :  { %v5296_v59 = vadd.f32 %v5230_v26, %v5015_v32  ;;  %v6062_v14 = vpop.f32.mrf.mxu1  ;;  %8322 = vmatmul.msk.f32.gmra.mxu0 %vm2804_vm2, %v16883_v9  ;;  %v5888_v26 = vrot.slane %v14493_v55, 1 }
 0x73e   :  { %8198 = vmatmul.msk.f32.gmra.mxu2 %vm2804_vm2, %v16881_v33  ;;  %v6400_v44 = vadd.f32 %v6399_v20, %v6062_v14  ;;  %v14510_v20 = vmax.f32 %v5639_v52, 0.0  ;;  %v5640_v14 = vadd.f32 %v13969_v47, %v5575_v56  ;;  %v16892_v47 = vld [vmem:[#allocation88_spill] sm:$0xff] }
 0x73f   :  { %v5577_v36 = vadd.f32 %v5511_v49, %v5296_v59  ;;  %v14504_v61 = vsel %vm153_vm1, %v5886_v11, %v5888_v26 }
 0x740   :  { %8133 = vmatmul.msk.f32.gmra.mxu1 %vm2804_vm2, %v16878_v43  ;;  %16886 = vst [vmem:[#allocation50_spill] sm:$0xff] %v14504_v61  ;;  %v16914_v61 = vld [vmem:[#allocation84_spill] sm:$0xff] }
 0x741   :  { %8261 = vmatmul.msk.f32.gmra.mxu3 %vm2804_vm2, %v16885_v17  ;;  %v6402_v54 = vpop.f32.mrf.mxu2  ;;  %16888 = vst [vmem:[#allocation48_spill] sm:$0xff] %v14510_v20 }
 0x742   :  { %v6897_v32 = vpop.f32.mrf.mxu0 }
 0x744   :  { %v6616_v5 = vpop.f32.mrf.mxu3 }
 0x745   :  { %v6808_v49 = vadd.f32 %v6616_v5, %v6400_v44  ;;  %v6065_v33 = vpop.f32.mrf.mxu1  ;;  %8323 = vmatmul.msk.f32.gmra.mxu0 %vm2804_vm2, %v16887_v50 }
 0x746   :  { %8199 = vmatmul.msk.f32.gmra.mxu2 %vm2804_vm2, %v16885_v17  ;;  %v6403_v43 = vadd.f32 %v6402_v54, %v6065_v33  ;;  %v14527_v54 = vmax.f32 %v5640_v14, 0.0 }
 0x747   :  { %v14506_v59 = vadd.f32 %v6897_v32, %v6808_v49  ;;  %v5890_v32 = vrot.slane %v14510_v20, 1 }
 0x748   :  { %8134 = vmatmul.msk.f32.gmra.mxu1 %vm2804_vm2, %v16883_v9  ;;  %16891 = vst [vmem:[#allocation13_spill] sm:$0xff] %v14527_v54  ;;  %v5892_v14 = vrot.slane %v14527_v54, 1 }
 0x749   :  { %8262 = vmatmul.msk.f32.gmra.mxu3 %vm2804_vm2, %v16889_v63  ;;  %v6405_v11 = vpop.f32.mrf.mxu2  ;;  %v14521_v52 = vsel %vm153_vm1, %v5888_v26, %v5890_v32  ;;  %v8425_v26 = vld [vmem:[%s15221_s2 + $0x34a] ss:$0 sm:$0xff] }
 0x74a   :  { %v6900_v5 = vpop.f32.mrf.mxu0  ;;  %16890 = vst [vmem:[#allocation168_spill] sm:$0xff] %v14521_v52  ;;  %v5641_v33 = vadd.f32 %v8425_v26, %v5576_v37  ;;  %v16896_v37 = vld [vmem:[#allocation30_spill] sm:$0xff]  ;;  %v16898_v52 = vld [vmem:[#allocation72_spill] sm:$0xff] }
 0x74c   :  { %v6619_v44 = vpop.f32.mrf.mxu3 }
 0x74d   :  { %v6809_v49 = vadd.f32 %v6619_v44, %v6403_v43  ;;  %v6068_v17 = vpop.f32.mrf.mxu1  ;;  %8324 = vmatmul.msk.f32.gmra.mxu0 %vm2804_vm2, %v13762_v48 }
 0x74e   :  { %8200 = vmatmul.msk.f32.gmra.mxu2 %vm2804_vm2, %v16889_v63  ;;  %v6406_v56 = vadd.f32 %v6405_v11, %v6068_v17  ;;  %v14540_v63 = vsel %vm153_vm1, %v5890_v32, %v5892_v14  ;;  %v16894_v17 = vld [vmem:[#allocation90_spill] sm:$0xff] }
 0x74f   :  { %v14523_v55 = vadd.f32 %v6900_v5, %v6809_v49  ;;  %16893 = vst [vmem:[#allocation40_spill] sm:$0xff] %v14540_v63 }
 0x750   :  { %8135 = vmatmul.msk.f32.gmra.mxu1 %vm2804_vm2, %v16887_v50  ;;  %v14546_v50 = vmax.f32 %v5641_v33, 0.0 }
 0x751   :  { %8263 = vmatmul.msk.f32.gmra.mxu3 %vm2804_vm2, %v16892_v47  ;;  %v6408_v9 = vpop.f32.mrf.mxu2 }
 0x752   :  { %v6903_v44 = vpop.f32.mrf.mxu0  ;;  %16895 = vst [vmem:[#allocation169_spill] sm:$0xff] %v14546_v50 }
 0x754   :  { %v6622_v43 = vpop.f32.mrf.mxu3 }
 0x755   :  { %v6810_v5 = vadd.f32 %v6622_v43, %v6406_v56  ;;  %v6071_v11 = vpop.f32.mrf.mxu1  ;;  %8325 = vmatmul.msk.f32.gmra.mxu0 %vm2804_vm2, %v16894_v17  ;;  %v5642_v56 = vadd.f32 %v8425_v26, %v5577_v36 }
 0x756   :  { %8201 = vmatmul.msk.f32.gmra.mxu2 %vm2804_vm2, %v16892_v47  ;;  %v6409_v20 = vadd.f32 %v6408_v9, %v6071_v11 }
 0x757   :  { %v14542_v49 = vadd.f32 %v6903_v44, %v6810_v5  ;;  %v5894_v5 = vrot.slane %v14546_v50, 1  ;;  %v14562_v9 = vmax.f32 %v5642_v56, 0.0  ;;  %v16909_v50 = vld [vmem:[#allocation42_spill] sm:$0xff] }
 0x758   :  { %8136 = vmatmul.msk.f32.gmra.mxu1 %vm2804_vm2, %v13762_v48  ;;  %v16900_v48 = vld [vmem:[#allocation41_spill] sm:$0xff] }
 0x759   :  { %8264 = vmatmul.msk.f32.gmra.mxu3 %vm2804_vm2, %v16896_v37  ;;  %v6411_v32 = vpop.f32.mrf.mxu2  ;;  %v14556_v33 = vsel %vm153_vm1, %v5892_v14, %v5894_v5  ;;  %16899 = vst [vmem:[#allocation34_spill] sm:$0xff] %v14562_v9  ;;  %v15804_v14 = vrot.slane %v14562_v9, 1 }
 0x75a   :  { %v6906_v44 = vpop.f32.mrf.mxu0  ;;  %16897 = vst [vmem:[#allocation7_spill] sm:$0xff] %v14556_v33 }
 0x75b   :  { %v14574_v56 = vsel %vm153_vm1, %v5894_v5, %v15804_v14  ;;  %v16904_v14 = vld [vmem:[#allocation2_spill] sm:$0xff] }
 0x75c   :  { %v6625_v43 = vpop.f32.mrf.mxu3  ;;  %16901 = vst [vmem:[#allocation170_spill] sm:$0xff] %v14574_v56 }
 0x75d   :  { %v6811_v54 = vadd.f32 %v6625_v43, %v6409_v20  ;;  %v6074_v47 = vpop.f32.mrf.mxu1  ;;  %8326 = vmatmul.msk.f32.gmra.mxu0 %vm2804_vm2, %v16898_v52 }
 0x75e   :  { %8202 = vmatmul.msk.f32.gmra.mxu2 %vm2804_vm2, %v16896_v37  ;;  %v6412_v36 = vadd.f32 %v6411_v32, %v6074_v47 }
 0x75f   :  { %v14558_v63 = vadd.f32 %v6906_v44, %v6811_v54  ;;  %v16902_v44 = vld [vmem:[#allocation95_spill] sm:$0xff] }
 0x760   :  { %8137 = vmatmul.msk.f32.gmra.mxu1 %vm2804_vm2, %v16894_v17  ;;  %v16903_v17 = vld [vmem:[#allocation25_spill] sm:$0xff] }
 0x761   :  { %8265 = vmatmul.msk.f32.gmra.mxu3 %vm2804_vm2, %v16900_v48  ;;  %v6414_v20 = vpop.f32.mrf.mxu2 }
 0x762   :  { %v6909_v54 = vpop.f32.mrf.mxu0 }
 0x764   :  { %v6628_v26 = vpop.f32.mrf.mxu3 }
 0x765   :  { %v6812_v11 = vadd.f32 %v6628_v26, %v6412_v36  ;;  %v6077_v37 = vpop.f32.mrf.mxu1  ;;  %8327 = vmatmul.msk.f32.gmra.mxu0 %vm2804_vm2, %v16902_v44 }
 0x766   :  { %8203 = vmatmul.msk.f32.gmra.mxu2 %vm2804_vm2, %v16900_v48  ;;  %v6415_v32 = vadd.f32 %v6414_v20, %v6077_v37  ;;  %v16905_v48 = vld [vmem:[#allocation49_spill] sm:$0xff] }
 0x767   :  { %v14576_v43 = vadd.f32 %v6909_v54, %v6812_v11 }
 0x768   :  { %8138 = vmatmul.msk.f32.gmra.mxu1 %vm2804_vm2, %v16898_v52 }
 0x769   :  { %8266 = vmatmul.msk.f32.gmra.mxu3 %vm2804_vm2, %v16903_v17  ;;  %v6417_v47 = vpop.f32.mrf.mxu2 }
 0x76a   :  { %v6912_v5 = vpop.f32.mrf.mxu0 }
 0x76c   :  { %v6631_v36 = vpop.f32.mrf.mxu3 }
 0x76d   :  { %v6813_v26 = vadd.f32 %v6631_v36, %v6415_v32  ;;  %v6080_v11 = vpop.f32.mrf.mxu1  ;;  %8328 = vmatmul.msk.f32.gmra.mxu0 %vm2804_vm2, %v16904_v14 }
 0x76e   :  { %8204 = vmatmul.msk.f32.gmra.mxu2 %vm2804_vm2, %v16903_v17  ;;  %v6418_v20 = vadd.f32 %v6417_v47, %v6080_v11  ;;  %v16907_v17 = vld [vmem:[#allocation27_spill] sm:$0xff] }
 0x76f   :  { %v14586_v54 = vadd.f32 %v6912_v5, %v6813_v26  ;;  %v16906_v26 = vld [vmem:[#allocation83_spill] sm:$0xff] }
 0x770   :  { %8139 = vmatmul.msk.f32.gmra.mxu1 %vm2804_vm2, %v16902_v44 }
 0x771   :  { %8267 = vmatmul.msk.f32.gmra.mxu3 %vm2804_vm2, %v16905_v48  ;;  %v6420_v52 = vpop.f32.mrf.mxu2 }
 0x772   :  { %v6915_v9 = vpop.f32.mrf.mxu0 }
 0x774   :  { %v6634_v37 = vpop.f32.mrf.mxu3 }
 0x775   :  { %v6814_v32 = vadd.f32 %v6634_v37, %v6418_v20  ;;  %v6083_v5 = vpop.f32.mrf.mxu1  ;;  %8329 = vmatmul.msk.f32.gmra.mxu0 %vm2804_vm2, %v16906_v26 }
 0x776   :  { %8205 = vmatmul.msk.f32.gmra.mxu2 %vm2804_vm2, %v16905_v48  ;;  %v6421_v47 = vadd.f32 %v6420_v52, %v6083_v5 }
 0x777   :  { %v14596_v36 = vadd.f32 %v6915_v9, %v6814_v32  ;;  %v16908_v32 = vld [vmem:[#allocation106_spill] sm:$0xff] }
 0x778   :  { %8140 = vmatmul.msk.f32.gmra.mxu1 %vm2804_vm2, %v16904_v14 }
 0x779   :  { %8268 = vmatmul.msk.f32.gmra.mxu3 %vm2804_vm2, %v16907_v17  ;;  %v6423_v44 = vpop.f32.mrf.mxu2 }
 0x77a   :  { %v6918_v56 = vpop.f32.mrf.mxu0 }
 0x77c   :  { %v6637_v11 = vpop.f32.mrf.mxu3 }
 0x77d   :  { %v6815_v20 = vadd.f32 %v6637_v11, %v6421_v47  ;;  %v6086_v37 = vpop.f32.mrf.mxu1  ;;  %8330 = vmatmul.msk.f32.gmra.mxu0 %vm2804_vm2, %v16908_v32 }
 0x77e   :  { %8206 = vmatmul.msk.f32.gmra.mxu2 %vm2804_vm2, %v16907_v17  ;;  %v6424_v48 = vadd.f32 %v6423_v44, %v6086_v37  ;;  %v16911_v17 = vld [vmem:[#allocation10_spill] sm:$0xff] }
 0x77f   :  { %v14606_v9 = vadd.f32 %v6918_v56, %v6815_v20  ;;  %v16910_v20 = vld [vmem:[#allocation109_spill] sm:$0xff] }
 0x780   :  { %8141 = vmatmul.msk.f32.gmra.mxu1 %vm2804_vm2, %v16906_v26 }
 0x781   :  { %8269 = vmatmul.msk.f32.gmra.mxu3 %vm2804_vm2, %v16909_v50  ;;  %v14616_v14 = vpop.f32.mrf.mxu2 }
 0x782   :  { %v6921_v5 = vpop.f32.mrf.mxu0 }
 0x784   :  { %v6640_v52 = vpop.f32.mrf.mxu3 }
 0x785   :  { %v6816_v56 = vadd.f32 %v6640_v52, %v6424_v48  ;;  %v14620_v11 = vpop.f32.mrf.mxu1  ;;  %8331 = vmatmul.msk.f32.gmra.mxu0 %vm2804_vm2, %v16910_v20  ;;  %v16912_v52 = vld [vmem:[#allocation122_spill] sm:$0xff] }
 0x786   :  { %8207 = vmatmul.msk.f32.gmra.mxu2 %vm2804_vm2, %v16909_v50 }
 0x787   :  { %v14618_v47 = vadd.f32 %v6921_v5, %v6816_v56  ;;  %v16913_v5 = vld [vmem:[#allocation130_spill] sm:$0xff] }
 0x788   :  { %8142 = vmatmul.msk.f32.gmra.mxu1 %vm2804_vm2, %v16908_v32 }
 0x789   :  { %8270 = vmatmul.msk.f32.gmra.mxu3 %vm2804_vm2, %v16911_v17  ;;  %v6429_v26 = vpop.f32.mrf.mxu2 }
 0x78a   :  { %v14632_v37 = vpop.f32.mrf.mxu0 }
 0x78c   :  { %v14630_v44 = vpop.f32.mrf.mxu3 }
 0x78d   :  { %v6092_v48 = vpop.f32.mrf.mxu1  ;;  %8332 = vmatmul.msk.f32.gmra.mxu0 %vm2804_vm2, %v16912_v52 }
 0x78e   :  { %8208 = vmatmul.msk.f32.gmra.mxu2 %vm2804_vm2, %v16911_v17 }
 0x790   :  { %8143 = vmatmul.msk.f32.gmra.mxu1 %vm2804_vm2, %v16910_v20 }
 0x791   :  { %8271 = vmatmul.msk.f32.gmra.mxu3 %vm2804_vm2, %v16913_v5  ;;  %v6432_v50 = vpop.f32.mrf.mxu2 }
 0x792   :  { %v14642_v56 = vpop.f32.mrf.mxu0 }
 0x794   :  { %v6646_v32 = vpop.f32.mrf.mxu3 }
 0x795   :  { %v6095_v33 = vpop.f32.mrf.mxu1  ;;  %8333 = vmatmul.msk.f32.gmra.mxu0 %vm2804_vm2, %v13936_v42 }
 0x796   :  { %8209 = vmatmul.msk.f32.gmra.mxu2 %vm2804_vm2, %v16913_v5 }
 0x798   :  { %8144 = vmatmul.msk.f32.gmra.mxu1 %vm2804_vm2, %v16912_v52 }
 0x799   :  { %8272 = vmatmul.msk.f32.gmra.mxu3 %vm2804_vm2, %v16914_v61  ;;  %v6435_v17 = vpop.f32.mrf.mxu2 }
 0x79a   :  { %v6930_v20 = vpop.f32.mrf.mxu0 }
 0x79c   :  { %v6649_v6 = vpop.f32.mrf.mxu3 }
 0x79d   :  { %v6098_v62 = vpop.f32.mrf.mxu1  ;;  %8334 = vmatmul.msk.f32.gmra.mxu0 %vm2804_vm2, %v16915_v30 }
 0x79e   :  { %8210 = vmatmul.msk.f32.gmra.mxu2 %vm2804_vm2, %v16914_v61  ;;  %v6436_v27 = vadd.f32 %v6435_v17, %v6098_v62  ;;  %v16924_v17 = vld [vmem:[#allocation142_spill] sm:$0xff] }
 0x7a0   :  { %8145 = vmatmul.msk.f32.gmra.mxu1 %vm2804_vm2, %v13936_v42 }
 0x7a1   :  { %8273 = vmatmul.msk.f32.gmra.mxu3 %vm2804_vm2, %v16916_v34  ;;  %v6438_v5 = vpop.f32.mrf.mxu2 }
 0x7a2   :  { %v6933_v21 = vpop.f32.mrf.mxu0 }
 0x7a4   :  { %v6652_v41 = vpop.f32.mrf.mxu3 }
 0x7a5   :  { %v6101_v52 = vpop.f32.mrf.mxu1  ;;  %8335 = vmatmul.msk.f32.gmra.mxu0 %vm2804_vm2, %v16917_v19  ;;  %v6820_v58 = vadd.f32 %v6652_v41, %v6436_v27  ;;  %v16923_v27 = vld [vmem:[#allocation111_spill] sm:$0xff] }
 0x7a6   :  { %8211 = vmatmul.msk.f32.gmra.mxu2 %vm2804_vm2, %v16916_v34  ;;  %v6439_v60 = vadd.f32 %v6438_v5, %v6101_v52  ;;  %v6430_v5 = vadd.f32 %v6429_v26, %v6092_v48 }
 0x7a8   :  { %8146 = vmatmul.msk.f32.gmra.mxu1 %vm2804_vm2, %v16915_v30 }
 0x7a9   :  { %8274 = vmatmul.msk.f32.gmra.mxu3 %vm2804_vm2, %v16918_v22  ;;  %v6441_v61 = vpop.f32.mrf.mxu2 }
 0x7aa   :  { %v6936_v38 = vpop.f32.mrf.mxu0 }
 0x7ac   :  { %v6655_v1 = vpop.f32.mrf.mxu3 }
 0x7ad   :  { %v6104_v42 = vpop.f32.mrf.mxu1  ;;  %8336 = vmatmul.msk.f32.gmra.mxu0 %vm2804_vm2, %v16919_v28  ;;  %v6821_v51 = vadd.f32 %v6655_v1, %v6439_v60  ;;  %v6818_v60 = vadd.f32 %v6646_v32, %v6430_v5 }
 0x7ae   :  { %8212 = vmatmul.msk.f32.gmra.mxu2 %vm2804_vm2, %v16918_v22  ;;  %v6442_v30 = vadd.f32 %v6441_v61, %v6104_v42  ;;  %v16922_v22 = vld [vmem:[#allocation59_spill] sm:$0xff] }
 0x7af   :  { %v7102_v62 = vadd.f32 %v6936_v38, %v6821_v51 }
 0x7b0   :  { %8147 = vmatmul.msk.f32.gmra.mxu1 %vm2804_vm2, %v16917_v19  ;;  %v6433_v19 = vadd.f32 %v6432_v50, %v6095_v33 }
 0x7b1   :  { %8275 = vmatmul.msk.f32.gmra.mxu3 %vm2804_vm2, %v16920_v0  ;;  %v6444_v34 = vpop.f32.mrf.mxu2 }
 0x7b2   :  { %v6939_v29 = vpop.f32.mrf.mxu0 }
 0x7b4   :  { %v6658_v15 = vpop.f32.mrf.mxu3 }
 0x7b5   :  { %v6107_v8 = vpop.f32.mrf.mxu1  ;;  %8337 = vmatmul.msk.f32.gmra.mxu0 %vm2804_vm2, %v16921_v23  ;;  %v6822_v24 = vadd.f32 %v6658_v15, %v6442_v30  ;;  %v6819_v15 = vadd.f32 %v6649_v6, %v6433_v19 }
 0x7b6   :  { %8213 = vmatmul.msk.f32.gmra.mxu2 %vm2804_vm2, %v16920_v0  ;;  %v6445_v7 = vadd.f32 %v6444_v34, %v6107_v8  ;;  %v14687_v0 = vld [vmem:[%s15221_s2 + $0x34b] ss:$0 sm:$0xff]  ;;  %v6427_v8 = vadd.f32 %v14616_v14, %v14620_v11 }
 0x7b7   :  { %v7103_v2 = vadd.f32 %v6939_v29, %v6822_v24  ;;  %v7101_v24 = vadd.f32 %v6933_v21, %v6820_v58  ;;  %v7100_v51 = vadd.f32 %v6930_v20, %v6819_v15  ;;  %v7167_v38 = vadd.f32 %v14687_v0, %v7102_v62  ;;  %v16925_v62 = vld [vmem:[#allocation8_spill] sm:$0xff] }
 0x7b8   :  { %8148 = vmatmul.msk.f32.gmra.mxu1 %vm2804_vm2, %v16919_v28  ;;  %v7162_v5 = vadd.f32 %v14687_v0, %v14618_v47  ;;  %v7160_v47 = vadd.f32 %v14687_v0, %v14596_v36  ;;  %v7158_v36 = vadd.f32 %v14687_v0, %v14576_v43  ;;  %v7156_v43 = vadd.f32 %v14687_v0, %v14542_v49 }
 0x7b9   :  { %8276 = vmatmul.msk.f32.gmra.mxu3 %vm2804_vm2, %v16922_v22  ;;  %v6447_v61 = vpop.f32.mrf.mxu2  ;;  %v7166_v21 = vadd.f32 %v14687_v0, %v7101_v24  ;;  %v7231_v32 = vmax.f32 %v7167_v38, 0.0  ;;  %v7159_v24 = vadd.f32 %v14687_v0, %v14586_v54  ;;  %v7157_v38 = vadd.f32 %v14687_v0, %v14558_v63 }
 0x7ba   :  { %v6942_v42 = vpop.f32.mrf.mxu0  ;;  %v7222_v63 = vmax.f32 %v7158_v36, 0.0  ;;  %v7154_v49 = vadd.f32 %v14687_v0, %v14506_v59  ;;  %v16933_v36 = vld [vmem:[#allocation153_spill] sm:$0xff] }
 0x7bb   :  { %v7223_v54 = vmax.f32 %v7159_v24, 0.0 }
 0x7bc   :  { %v6661_v52 = vpop.f32.mrf.mxu3  ;;  %v7218_v59 = vmax.f32 %v7154_v49, 0.0 }
 0x7bd   :  { %v6823_v57 = vadd.f32 %v6661_v52, %v6445_v7  ;;  %v6110_v33 = vpop.f32.mrf.mxu1  ;;  %8338 = vmatmul.msk.f32.gmra.mxu0 %vm2804_vm2, %v14026_v25  ;;  %v7168_v7 = vadd.f32 %v14687_v0, %v7103_v2  ;;  %v7099_v2 = vadd.f32 %v14642_v56, %v6818_v60 }
 0x7be   :  { %8214 = vmatmul.msk.f32.gmra.mxu2 %vm2804_vm2, %v16922_v22  ;;  %v6448_v1 = vadd.f32 %v6447_v61, %v6110_v33  ;;  %v16926_v33 = vld [vmem:[#allocation137_spill] sm:$0xff] }
 0x7bf   :  { %v7104_v28 = vadd.f32 %v6942_v42, %v6823_v57  ;;  %v6817_v57 = vadd.f32 %v14630_v44, %v6427_v8  ;;  %v7232_v26 = vmax.f32 %v7168_v7, 0.0  ;;  %v7164_v56 = vadd.f32 %v14687_v0, %v7099_v2 }
 0x7c0   :  { %8149 = vmatmul.msk.f32.gmra.mxu1 %vm2804_vm2, %v16921_v23  ;;  %v7165_v23 = vadd.f32 %v14687_v0, %v7100_v51  ;;  %v7161_v8 = vadd.f32 %v14687_v0, %v14606_v9  ;;  %v7226_v9 = vmax.f32 %v7162_v5, 0.0  ;;  %v7224_v51 = vmax.f32 %v7160_v47, 0.0  ;;  %v16930_v5 = vld [vmem:[#allocation150_spill] sm:$0xff] }
 0x7c1   :  { %8277 = vmatmul.msk.f32.gmra.mxu3 %vm2804_vm2, %v16923_v27  ;;  %v7169_v29 = vadd.f32 %v14687_v0, %v7104_v28  ;;  %v6450_v6 = vpop.f32.mrf.mxu2  ;;  %v7098_v48 = vadd.f32 %v14632_v37, %v6817_v57  ;;  %v7230_v37 = vmax.f32 %v7166_v21, 0.0  ;;  %v7228_v42 = vmax.f32 %v7164_v56, 0.0 }
 0x7c2   :  { %v6945_v58 = vpop.f32.mrf.mxu0  ;;  %v7229_v22 = vmax.f32 %v7165_v23, 0.0  ;;  %v7155_v2 = vadd.f32 %v14687_v0, %v14523_v55  ;;  %v16929_v55 = vld [vmem:[#allocation117_spill] sm:$0xff] }
 0x7c3   :  { %v7233_v41 = vmax.f32 %v7169_v29, 0.0  ;;  %v7163_v34 = vadd.f32 %v14687_v0, %v7098_v48 }
 0x7c4   :  { %v6664_v14 = vpop.f32.mrf.mxu3 }
 0x7c5   :  { %7293 = vmatpush.msra.mxu1 %v7233_v41  ;;  %v6824_v11 = vadd.f32 %v6664_v14, %v6448_v1  ;;  %v6113_v44 = vpop.f32.mrf.mxu1  ;;  %8339 = vmatmul.msk.f32.gmra.mxu0 %vm2804_vm2, %v14044_v46  ;;  %v7227_v28 = vmax.f32 %v7163_v34, 0.0  ;;  %v16928_v14 = vld [vmem:[#allocation146_spill] sm:$0xff] }
 0x7c6   :  { %8215 = vmatmul.msk.f32.gmra.mxu2 %vm2804_vm2, %v16923_v27  ;;  %v6451_v20 = vadd.f32 %v6450_v6, %v6113_v44  ;;  %v7225_v27 = vmax.f32 %v7161_v8, 0.0  ;;  %v16927_v6 = vld [vmem:[#allocation141_spill] sm:$0xff]  ;;  %v7220_v44 = vmax.f32 %v7156_v43, 0.0 }
 0x7c7   :  { %v14707_v50 = vadd.f32 %v6945_v58, %v6824_v11  ;;  %7294 = vmatpush.msra.mxu1 %v7232_v26  ;;  %v7221_v11 = vmax.f32 %v7157_v38, 0.0 }
 0x7c8   :  { %8150 = vmatmul.msk.f32.gmra.mxu1 %vm2804_vm2, %v14026_v25 }
 0x7c9   :  { %8278 = vmatmul.msk.f32.gmra.mxu3 %vm2804_vm2, %v16924_v17  ;;  %7295 = vmatpush.msra.mxu1 %v7231_v32  ;;  %v6453_v30 = vpop.f32.mrf.mxu2 }
 0x7ca   :  { %v6948_v61 = vpop.f32.mrf.mxu0 }
 0x7cb   :  { %7296 = vmatpush.msra.mxu1 %v7230_v37 }
 0x7cc   :  { %v6667_v19 = vpop.f32.mrf.mxu3 }
 0x7cd   :  { %7297 = vmatpush.msra.mxu1 %v7229_v22  ;;  %v6825_v52 = vadd.f32 %v6667_v19, %v6451_v20  ;;  %v6116_v25 = vpop.f32.mrf.mxu1  ;;  %8340 = vmatmul.msk.f32.gmra.mxu0 %vm2804_vm2, %v16925_v62 }
 0x7ce   :  { %8216 = vmatmul.msk.f32.gmra.mxu2 %vm2804_vm2, %v16924_v17  ;;  %v6454_v60 = vadd.f32 %v6453_v30, %v6116_v25  ;;  %v7219_v17 = vmax.f32 %v7155_v2, 0.0 }
 0x7cf   :  { %v14723_v15 = vadd.f32 %v6948_v61, %v6825_v52  ;;  %7298 = vmatpush.msra.mxu1 %v7228_v42 }
 0x7d0   :  { %8151 = vmatmul.msk.f32.gmra.mxu1 %vm2804_vm2, %v14044_v46 }
 0x7d1   :  { %8279 = vmatmul.msk.f32.gmra.mxu3 %vm2804_vm2, %v16926_v33  ;;  %7299 = vmatpush.msra.mxu1 %v7227_v28  ;;  %v6456_v7 = vpop.f32.mrf.mxu2 }
 0x7d2   :  { %v6951_v1 = vpop.f32.mrf.mxu0 }
 0x7d3   :  { %7300 = vmatpush.msra.mxu1 %v7226_v9 }
 0x7d4   :  { %v6670_v29 = vpop.f32.mrf.mxu3 }
 0x7d5   :  { %7301 = vmatpush.msra.mxu1 %v7225_v27  ;;  %v6826_v57 = vadd.f32 %v6670_v29, %v6454_v60  ;;  %v6119_v46 = vpop.f32.mrf.mxu1  ;;  %8341 = vmatmul.msk.f32.gmra.mxu0 %vm2804_vm2, %v16927_v6  ;;  %v16932_v60 = vld [vmem:[#allocation145_spill] sm:$0xff] }
 0x7d6   :  { %8217 = vmatmul.msk.f32.gmra.mxu2 %vm2804_vm2, %v16926_v33  ;;  %v6457_v58 = vadd.f32 %v6456_v7, %v6119_v46  ;;  %v16931_v33 = vld [vmem:[#allocation18_spill] sm:$0xff] }
 0x7d7   :  { %v14741_v41 = vadd.f32 %v6951_v1, %v6826_v57  ;;  %7302 = vmatpush.msra.mxu1 %v7224_v51 }
 0x7d8   :  { %8152 = vmatmul.msk.f32.gmra.mxu1 %vm2804_vm2, %v16925_v62 }
 0x7d9   :  { %8280 = vmatmul.msk.f32.gmra.mxu3 %vm2804_vm2, %v16928_v14  ;;  %7303 = vmatpush.msra.mxu1 %v7223_v54  ;;  %v6459_v21 = vpop.f32.mrf.mxu2 }
 0x7da   :  { %v6954_v48 = vpop.f32.mrf.mxu0 }
 0x7db   :  { %7304 = vmatpush.msra.mxu1 %v7222_v63 }
 0x7dc   :  { %v6673_v26 = vpop.f32.mrf.mxu3 }
 0x7dd   :  { %7305 = vmatpush.msra.mxu1 %v7221_v11  ;;  %v6827_v23 = vadd.f32 %v6673_v26, %v6457_v58  ;;  %v6122_v56 = vpop.f32.mrf.mxu1  ;;  %8342 = vmatmul.msk.f32.gmra.mxu0 %vm2804_vm2, %v14141_v4 }
 0x7de   :  { %8218 = vmatmul.msk.f32.gmra.mxu2 %vm2804_vm2, %v16928_v14  ;;  %v6460_v20 = vadd.f32 %v6459_v21, %v6122_v56 }
 0x7df   :  { %v14757_v32 = vadd.f32 %v6954_v48, %v6827_v23  ;;  %7306 = vmatpush.msra.mxu1 %v7220_v44 }
 0x7e0   :  { %8153 = vmatmul.msk.f32.gmra.mxu1 %vm2804_vm2, %v16927_v6 }
 0x7e1   :  { %8281 = vmatmul.msk.f32.gmra.mxu3 %vm2804_vm2, %v16929_v55  ;;  %7307 = vmatpush.msra.mxu1 %v7219_v17  ;;  %v6462_v37 = vpop.f32.mrf.mxu2 }
 0x7e2   :  { %v6957_v30 = vpop.f32.mrf.mxu0 }
 0x7e3   :  { %7308 = vmatpush.msra.mxu1 %v7218_v59  ;;  %v16934_v59 = vld [vmem:[#allocation152_spill] sm:$0xff] }
 0x7e4   :  { %v6676_v34 = vpop.f32.mrf.mxu3 }
 0x7e5   :  { %v6828_v22 = vadd.f32 %v6676_v34, %v6460_v20  ;;  %v6125_v61 = vpop.f32.mrf.mxu1  ;;  %8343 = vmatmul.msk.f32.gmra.mxu0 %vm2804_vm2, %v14179_v16 }
 0x7e6   :  { %8219 = vmatmul.msk.f32.gmra.mxu2 %vm2804_vm2, %v16929_v55  ;;  %v6463_v52 = vadd.f32 %v6462_v37, %v6125_v61  ;;  %v16935_v37 = vld [vmem:[#allocation149_spill] sm:$0xff]  ;;  %v16937_v61 = vld [vmem:[#allocation155_spill] sm:$0xff] }
 0x7e7   :  { %v14767_v19 = vadd.f32 %v6957_v30, %v6828_v22  ;;  %v16936_v22 = vld [vmem:[#allocation154_spill] sm:$0xff] }
 0x7e8   :  { %8154 = vmatmul.msk.f32.gmra.mxu1 %vm2804_vm2, %v14141_v4 }
 0x7e9   :  { %8282 = vmatmul.msk.f32.gmra.mxu3 %vm2804_vm2, %v16930_v5  ;;  %v6465_v42 = vpop.f32.mrf.mxu2 }
 0x7ea   :  { %v6960_v25 = vpop.f32.mrf.mxu0 }
 0x7ec   :  { %v6679_v8 = vpop.f32.mrf.mxu3 }
 0x7ed   :  { %v6829_v62 = vadd.f32 %v6679_v8, %v6463_v52  ;;  %v6128_v47 = vpop.f32.mrf.mxu1  ;;  %8344 = vmatmul.msk.f32.gmra.mxu0 %vm2804_vm2, %v16931_v33 }
 0x7ee   :  { %8220 = vmatmul.msk.f32.gmra.mxu2 %vm2804_vm2, %v16930_v5  ;;  %v6466_v9 = vadd.f32 %v6465_v42, %v6128_v47  ;;  %v16939_v47 = vld [vmem:[#allocation87_spill] sm:$0xff] }
 0x7ef   :  { %v14777_v28 = vadd.f32 %v6960_v25, %v6829_v62  ;;  %v16938_v25 = vld [vmem:[#allocation85_spill] sm:$0xff] }
 0x7f0   :  { %8155 = vmatmul.msk.f32.gmra.mxu1 %vm2804_vm2, %v14179_v16 }
 0x7f1   :  { %8283 = vmatmul.msk.f32.gmra.mxu3 %vm2804_vm2, %v16932_v60  ;;  %v6468_v4 = vpop.f32.mrf.mxu2 }
 0x7f2   :  { %v6963_v7 = vpop.f32.mrf.mxu0 }
 0x7f4   :  { %v6682_v24 = vpop.f32.mrf.mxu3 }
 0x7f5   :  { %v6830_v27 = vadd.f32 %v6682_v24, %v6466_v9  ;;  %v6131_v1 = vpop.f32.mrf.mxu1  ;;  %8345 = vmatmul.msk.f32.gmra.mxu0 %vm2804_vm2, %v14217_v18 }
 0x7f6   :  { %8221 = vmatmul.msk.f32.gmra.mxu2 %vm2804_vm2, %v16932_v60  ;;  %v6469_v57 = vadd.f32 %v6468_v4, %v6131_v1 }
 0x7f7   :  { %v14787_v29 = vadd.f32 %v6963_v7, %v6830_v27 }
 0x7f8   :  { %8156 = vmatmul.msk.f32.gmra.mxu1 %vm2804_vm2, %v16931_v33 }
 0x7f9   :  { %8284 = vmatmul.msk.f32.gmra.mxu3 %vm2804_vm2, %v16933_v36  ;;  %v6471_v16 = vpop.f32.mrf.mxu2 }
 0x7fa   :  { %v6966_v38 = vpop.f32.mrf.mxu0 }
 0x7fc   :  { %v6685_v51 = vpop.f32.mrf.mxu3 }
 0x7fd   :  { %v6831_v46 = vadd.f32 %v6685_v51, %v6469_v57  ;;  %v6134_v54 = vpop.f32.mrf.mxu1  ;;  %8346 = vmatmul.msk.f32.gmra.mxu0 %vm2804_vm2, %v14232_v3 }
 0x7fe   :  { %8222 = vmatmul.msk.f32.gmra.mxu2 %vm2804_vm2, %v16933_v36  ;;  %v6472_v43 = vadd.f32 %v6471_v16, %v6134_v54 }
 0x7ff   :  { %v14797_v6 = vadd.f32 %v6966_v38, %v6831_v46 }
 0x800   :  { %8157 = vmatmul.msk.f32.gmra.mxu1 %vm2804_vm2, %v14217_v18 }
 0x801   :  { %8285 = vmatmul.msk.f32.gmra.mxu3 %vm2804_vm2, %v14220_v35  ;;  %v14807_v14 = vpop.f32.mrf.mxu2 }
 0x802   :  { %v6969_v63 = vpop.f32.mrf.mxu0 }
 0x804   :  { %v6688_v58 = vpop.f32.mrf.mxu3 }
 0x805   :  { %v6832_v2 = vadd.f32 %v6688_v58, %v6472_v43  ;;  %v14811_v11 = vpop.f32.mrf.mxu1  ;;  %8347 = vmatmul.msk.f32.gmra.mxu0 %vm2804_vm2, %v14249_v13  ;;  %v16940_v58 = vld [vmem:[#allocation3_spill] sm:$0xff] }
 0x806   :  { %8223 = vmatmul.msk.f32.gmra.mxu2 %vm2804_vm2, %v14220_v35  ;;  %v6475_v51 = vadd.f32 %v14807_v14, %v14811_v11 }
 0x807   :  { %v14809_v21 = vadd.f32 %v6969_v63, %v6832_v2 }
 0x808   :  { %8158 = vmatmul.msk.f32.gmra.mxu1 %vm2804_vm2, %v14232_v3 }
 0x809   :  { %8286 = vmatmul.msk.f32.gmra.mxu3 %vm2804_vm2, %v14235_v31  ;;  %v6477_v18 = vpop.f32.mrf.mxu2 }
 0x80a   :  { %v14823_v48 = vpop.f32.mrf.mxu0 }
 0x80c   :  { %v14821_v26 = vpop.f32.mrf.mxu3 }
 0x80d   :  { %v6140_v49 = vpop.f32.mrf.mxu1  ;;  %8348 = vmatmul.msk.f32.gmra.mxu0 %vm2804_vm2, %v14265_v45  ;;  %v6833_v11 = vadd.f32 %v14821_v26, %v6475_v51 }
 0x80e   :  { %8224 = vmatmul.msk.f32.gmra.mxu2 %vm2804_vm2, %v14235_v31  ;;  %v6478_v7 = vadd.f32 %v6477_v18, %v6140_v49  ;;  %v16941_v49 = vld [vmem:[#allocation156_spill] sm:$0xff] }
 0x810   :  { %8159 = vmatmul.msk.f32.gmra.mxu1 %vm2804_vm2, %v14249_v13 }
 0x811   :  { %8287 = vmatmul.msk.f32.gmra.mxu3 %vm2804_vm2, %v14253_v12  ;;  %v6480_v35 = vpop.f32.mrf.mxu2 }
 0x812   :  { %v14833_v23 = vpop.f32.mrf.mxu0 }
 0x814   :  { %v6694_v3 = vpop.f32.mrf.mxu3 }
 0x815   :  { %v6143_v44 = vpop.f32.mrf.mxu1  ;;  %8349 = vmatmul.msk.f32.gmra.mxu0 %vm2804_vm2, %v14281_v53  ;;  %v6834_v63 = vadd.f32 %v6694_v3, %v6478_v7  ;;  %v7175_v7 = vadd.f32 %v14687_v0, %v14777_v28 }
 0x816   :  { %8225 = vmatmul.msk.f32.gmra.mxu2 %vm2804_vm2, %v14253_v12  ;;  %v6481_v9 = vadd.f32 %v6480_v35, %v6143_v44 }
 0x817   :  { %v7239_v28 = vmax.f32 %v7175_v7, 0.0 }
 0x818   :  { %8160 = vmatmul.msk.f32.gmra.mxu1 %vm2804_vm2, %v14265_v45 }
 0x819   :  { %8288 = vmatmul.msk.f32.gmra.mxu3 %vm2804_vm2, %v14269_v39  ;;  %v6483_v31 = vpop.f32.mrf.mxu2 }
 0x81a   :  { %v6978_v13 = vpop.f32.mrf.mxu0 }
 0x81c   :  { %v6697_v56 = vpop.f32.mrf.mxu3 }
 0x81d   :  { %v6146_v17 = vpop.f32.mrf.mxu1  ;;  %8350 = vmatmul.msk.f32.gmra.mxu0 %vm2804_vm2, %v14297_v10  ;;  %v6835_v38 = vadd.f32 %v6697_v56, %v6481_v9 }
 0x81e   :  { %8226 = vmatmul.msk.f32.gmra.mxu2 %vm2804_vm2, %v14269_v39  ;;  %v6484_v62 = vadd.f32 %v6483_v31, %v6146_v17 }
 0x81f   :  { %v7116_v44 = vadd.f32 %v6978_v13, %v6835_v38  ;;  %v16942_v13 = vld [vmem:[#allocation157_spill] sm:$0xff]  ;;  %v7173_v38 = vadd.f32 %v14687_v0, %v14757_v32 }
 0x820   :  { %8161 = vmatmul.msk.f32.gmra.mxu1 %vm2804_vm2, %v14281_v53 }
 0x821   :  { %8289 = vmatmul.msk.f32.gmra.mxu3 %vm2804_vm2, %v14285_v40  ;;  %v6486_v12 = vpop.f32.mrf.mxu2 }
 0x822   :  { %v6981_v20 = vpop.f32.mrf.mxu0 }
 0x824   :  { %v6700_v55 = vpop.f32.mrf.mxu3 }
 0x825   :  { %v6149_v45 = vpop.f32.mrf.mxu1  ;;  %8351 = vmatmul.msk.f32.gmra.mxu0 %vm2804_vm2, %v16934_v59  ;;  %v6836_v36 = vadd.f32 %v6700_v55, %v6484_v62  ;;  %v7115_v55 = vadd.f32 %v14833_v23, %v6834_v63  ;;  %v7177_v62 = vadd.f32 %v14687_v0, %v14797_v6 }
 0x826   :  { %8227 = vmatmul.msk.f32.gmra.mxu2 %vm2804_vm2, %v14285_v40  ;;  %v6487_v42 = vadd.f32 %v6486_v12, %v6149_v45 }
 0x827   :  { %v7117_v2 = vadd.f32 %v6981_v20, %v6836_v36  ;;  %v7180_v23 = vadd.f32 %v14687_v0, %v7115_v55 }
 0x828   :  { %8162 = vmatmul.msk.f32.gmra.mxu1 %vm2804_vm2, %v14297_v10 }
 0x829   :  { %8290 = vmatmul.msk.f32.gmra.mxu3 %vm2804_vm2, %v16935_v37  ;;  %v6489_v39 = vpop.f32.mrf.mxu2  ;;  %v7182_v20 = vadd.f32 %v14687_v0, %v7117_v2  ;;  %v7171_v2 = vadd.f32 %v14687_v0, %v14723_v15  ;;  %v16949_v15 = vld [vmem:[#allocation159_spill] sm:$0xff] }
 0x82a   :  { %v6984_v30 = vpop.f32.mrf.mxu0 }
 0x82c   :  { %v6703_v34 = vpop.f32.mrf.mxu3 }
 0x82d   :  { %v6152_v53 = vpop.f32.mrf.mxu1  ;;  %8352 = vmatmul.msk.f32.gmra.mxu0 %vm2804_vm2, %v16936_v22  ;;  %v6837_v4 = vadd.f32 %v6703_v34, %v6487_v42  ;;  %v7178_v42 = vadd.f32 %v14687_v0, %v14809_v21  ;;  %v7176_v21 = vadd.f32 %v14687_v0, %v14787_v29  ;;  %v7174_v29 = vadd.f32 %v14687_v0, %v14767_v19 }
 0x82e   :  { %8228 = vmatmul.msk.f32.gmra.mxu2 %vm2804_vm2, %v16935_v37  ;;  %v6490_v10 = vadd.f32 %v6489_v39, %v6152_v53  ;;  %v7114_v37 = vadd.f32 %v14823_v48, %v6833_v11  ;;  %v7181_v39 = vadd.f32 %v14687_v0, %v7116_v44  ;;  %v16943_v53 = vld [vmem:[#allocation70_spill] sm:$0xff]  ;;  %v7246_v48 = vmax.f32 %v7182_v20, 0.0 }
 0x82f   :  { %v7118_v46 = vadd.f32 %v6984_v30, %v6837_v4  ;;  %v16945_v4 = vld [vmem:[#allocation86_spill] sm:$0xff]  ;;  %v7242_v6 = vmax.f32 %v7178_v42, 0.0  ;;  %v7240_v51 = vmax.f32 %v7176_v21, 0.0  ;;  %v7172_v19 = vadd.f32 %v14687_v0, %v14741_v41  ;;  %v16955_v21 = vld [vmem:[#allocation163_spill] sm:$0xff] }
 0x830   :  { %8163 = vmatmul.msk.f32.gmra.mxu1 %vm2804_vm2, %v16934_v59  ;;  %v7238_v32 = vmax.f32 %v7174_v29, 0.0  ;;  %v7170_v41 = vadd.f32 %v14687_v0, %v14707_v50  ;;  %v16957_v29 = vld [vmem:[#allocation165_spill] sm:$0xff] }
 0x831   :  { %8291 = vmatmul.msk.f32.gmra.mxu3 %vm2804_vm2, %v16937_v61  ;;  %v6492_v40 = vpop.f32.mrf.mxu2  ;;  %v7183_v3 = vadd.f32 %v14687_v0, %v7118_v46  ;;  %v7236_v44 = vmax.f32 %v7172_v19, 0.0 }
 0x832   :  { %v6987_v52 = vpop.f32.mrf.mxu0  ;;  %v7234_v50 = vmax.f32 %v7170_v41, 0.0 }
 0x833   :  { %v7247_v30 = vmax.f32 %v7183_v3, 0.0 }
 0x834   :  { %v6706_v5 = vpop.f32.mrf.mxu3 }
 0x835   :  { %v6155_v8 = vpop.f32.mrf.mxu1  ;;  %8353 = vmatmul.msk.f32.gmra.mxu0 %vm2804_vm2, %v16938_v25  ;;  %v6838_v33 = vadd.f32 %v6706_v5, %v6490_v10  ;;  %v7245_v5 = vmax.f32 %v7181_v39, 0.0 }
 0x836   :  { %8229 = vmatmul.msk.f32.gmra.mxu2 %vm2804_vm2, %v16937_v61  ;;  %v6493_v60 = vadd.f32 %v6492_v40, %v6155_v8  ;;  %v7179_v61 = vadd.f32 %v14687_v0, %v7114_v37 }
 0x837   :  { %v7119_v57 = vadd.f32 %v6987_v52, %v6838_v33 }
 0x838   :  { %8164 = vmatmul.msk.f32.gmra.mxu1 %vm2804_vm2, %v16936_v22  ;;  %v7243_v9 = vmax.f32 %v7179_v61, 0.0 }
 0x839   :  { %8292 = vmatmul.msk.f32.gmra.mxu3 %vm2804_vm2, %v16939_v47  ;;  %v6495_v24 = vpop.f32.mrf.mxu2  ;;  %v7184_v18 = vadd.f32 %v14687_v0, %v7119_v57 }
 0x83a   :  { %v6990_v1 = vpop.f32.mrf.mxu0 }
 0x83b   :  { %v7248_v59 = vmax.f32 %v7184_v18, 0.0 }
 0x83c   :  { %v6709_v27 = vpop.f32.mrf.mxu3 }
 0x83d   :  { %v6839_v16 = vadd.f32 %v6709_v27, %v6493_v60  ;;  %v6158_v43 = vpop.f32.mrf.mxu1  ;;  %8354 = vmatmul.msk.f32.gmra.mxu0 %vm2804_vm2, %v16940_v58  ;;  %v16944_v60 = vld [vmem:[#allocation74_spill] sm:$0xff] }
 0x83e   :  { %8230 = vmatmul.msk.f32.gmra.mxu2 %vm2804_vm2, %v16939_v47  ;;  %v6496_v14 = vadd.f32 %v6495_v24, %v6158_v43  ;;  %v16946_v43 = vld [vmem:[#allocation102_spill] sm:$0xff] }
 0x83f   :  { %v7120_v54 = vadd.f32 %v6990_v1, %v6839_v16  ;;  %v7241_v1 = vmax.f32 %v7177_v62, 0.0 }
 0x840   :  { %8165 = vmatmul.msk.f32.gmra.mxu1 %vm2804_vm2, %v16938_v25  ;;  %v7244_v25 = vmax.f32 %v7180_v23, 0.0 }
 0x841   :  { %8293 = vmatmul.msk.f32.gmra.mxu3 %vm2804_vm2, %v16941_v49  ;;  %v7185_v35 = vadd.f32 %v14687_v0, %v7120_v54  ;;  %v6498_v56 = vpop.f32.mrf.mxu2 }
 0x842   :  { %v6993_v12 = vpop.f32.mrf.mxu0 }
 0x843   :  { %v7249_v31 = vmax.f32 %v7185_v35, 0.0 }
 0x844   :  { %v6712_v17 = vpop.f32.mrf.mxu3 }
 0x845   :  { %7313 = vmatpush.msra.mxu2 %v7249_v31  ;;  %v6840_v45 = vadd.f32 %v6712_v17, %v6496_v14  ;;  %v6161_v26 = vpop.f32.mrf.mxu1  ;;  %8355 = vmatmul.msk.f32.gmra.mxu0 %vm2804_vm2, %v16942_v13  ;;  %v7235_v17 = vmax.f32 %v7171_v2, 0.0  ;;  %v16960_v2 = vld [vmem:[#allocation168_spill] sm:$0xff] }
 0x846   :  { %8231 = vmatmul.msk.f32.gmra.mxu2 %vm2804_vm2, %v16941_v49  ;;  %v6499_v22 = vadd.f32 %v6498_v56, %v6161_v26  ;;  %v7237_v49 = vmax.f32 %v7173_v38, 0.0  ;;  %v16948_v56 = vld [vmem:[#allocation105_spill] sm:$0xff] }
 0x847   :  { %v14893_v34 = vadd.f32 %v6993_v12, %v6840_v45  ;;  %7314 = vmatpush.msra.mxu2 %v7248_v59  ;;  %v16950_v26 = vld [vmem:[#allocation161_spill] sm:$0xff] }
 0x848   :  { %8166 = vmatmul.msk.f32.gmra.mxu1 %vm2804_vm2, %v16940_v58  ;;  %v16947_v58 = vld [vmem:[#allocation158_spill] sm:$0xff] }
 0x849   :  { %8294 = vmatmul.msk.f32.gmra.mxu3 %vm2804_vm2, %v16943_v53  ;;  %7315 = vmatpush.msra.mxu2 %v7247_v30  ;;  %v6501_v40 = vpop.f32.mrf.mxu2 }
 0x84a   :  { %v6996_v10 = vpop.f32.mrf.mxu0 }
 0x84b   :  { %7316 = vmatpush.msra.mxu2 %v7246_v48 }
 0x84c   :  { %v6715_v52 = vpop.f32.mrf.mxu3 }
 0x84d   :  { %7317 = vmatpush.msra.mxu2 %v7245_v5  ;;  %v6841_v8 = vadd.f32 %v6715_v52, %v6499_v22  ;;  %v6164_v33 = vpop.f32.mrf.mxu1  ;;  %8356 = vmatmul.msk.f32.gmra.mxu0 %vm2804_vm2, %v16944_v60  ;;  %v16952_v5 = vld [vmem:[#allocation162_spill] sm:$0xff]  ;;  %v16953_v52 = vld [vmem:[#allocation121_spill] sm:$0xff] }
 0x84e   :  { %8232 = vmatmul.msk.f32.gmra.mxu2 %vm2804_vm2, %v16943_v53  ;;  %v6502_v24 = vadd.f32 %v6501_v40, %v6164_v33 }
 0x84f   :  { %v14909_v47 = vadd.f32 %v6996_v10, %v6841_v8  ;;  %7318 = vmatpush.msra.mxu2 %v7244_v25 }
 0x850   :  { %8167 = vmatmul.msk.f32.gmra.mxu1 %vm2804_vm2, %v16942_v13  ;;  %v16951_v13 = vld [vmem:[#allocation160_spill] sm:$0xff] }
 0x851   :  { %8295 = vmatmul.msk.f32.gmra.mxu3 %vm2804_vm2, %v16945_v4  ;;  %7319 = vmatpush.msra.mxu2 %v7243_v9  ;;  %v6504_v27 = vpop.f32.mrf.mxu2  ;;  %v16954_v9 = vld [vmem:[#allocation164_spill] sm:$0xff] }
 0x852   :  { %v6999_v57 = vpop.f32.mrf.mxu0 }
 0x853   :  { %7320 = vmatpush.msra.mxu2 %v7242_v6 }
 0x854   :  { %v6718_v36 = vpop.f32.mrf.mxu3 }
 0x855   :  { %7321 = vmatpush.msra.mxu2 %v7241_v1  ;;  %v6842_v16 = vadd.f32 %v6718_v36, %v6502_v24  ;;  %v6167_v54 = vpop.f32.mrf.mxu1  ;;  %8357 = vmatmul.msk.f32.gmra.mxu0 %vm2804_vm2, %v16946_v43 }
 0x856   :  { %8233 = vmatmul.msk.f32.gmra.mxu2 %vm2804_vm2, %v16945_v4  ;;  %v6505_v63 = vadd.f32 %v6504_v27, %v6167_v54 }
 0x857   :  { %v14927_v46 = vadd.f32 %v6999_v57, %v6842_v16  ;;  %7322 = vmatpush.msra.mxu2 %v7240_v51  ;;  %v16956_v57 = vld [vmem:[#allocation167_spill] sm:$0xff] }
 0x858   :  { %8168 = vmatmul.msk.f32.gmra.mxu1 %vm2804_vm2, %v16944_v60 }
 0x859   :  { %8296 = vmatmul.msk.f32.gmra.mxu3 %vm2804_vm2, %v16947_v58  ;;  %7323 = vmatpush.msra.mxu2 %v7239_v28  ;;  %v6507_v18 = vpop.f32.mrf.mxu2  ;;  %v16959_v28 = vld [vmem:[#allocation166_spill] sm:$0xff] }
 0x85a   :  { %v7002_v14 = vpop.f32.mrf.mxu0 }
 0x85b   :  { %7324 = vmatpush.msra.mxu2 %v7238_v32 }
 0x85c   :  { %v6721_v35 = vpop.f32.mrf.mxu3 }
 0x85d   :  { %7325 = vmatpush.msra.mxu2 %v7237_v49  ;;  %v6843_v11 = vadd.f32 %v6721_v35, %v6505_v63  ;;  %v6170_v31 = vpop.f32.mrf.mxu1  ;;  %8358 = vmatmul.msk.f32.gmra.mxu0 %vm2804_vm2, %v16948_v56 }
 0x85e   :  { %8234 = vmatmul.msk.f32.gmra.mxu2 %vm2804_vm2, %v16947_v58  ;;  %v6508_v12 = vadd.f32 %v6507_v18, %v6170_v31  ;;  %v16961_v18 = vld [vmem:[#allocation48_spill] sm:$0xff] }
 0x85f   :  { %v14943_v3 = vadd.f32 %v7002_v14, %v6843_v11  ;;  %7326 = vmatpush.msra.mxu2 %v7236_v44  ;;  %v16962_v11 = vld [vmem:[#allocation40_spill] sm:$0xff]  ;;  %v16963_v44 = vld [vmem:[#allocation13_spill] sm:$0xff] }
 0x860   :  { %8169 = vmatmul.msk.f32.gmra.mxu1 %vm2804_vm2, %v16946_v43  ;;  %v16958_v43 = vld [vmem:[#allocation50_spill] sm:$0xff] }
 0x861   :  { %8297 = vmatmul.msk.f32.gmra.mxu3 %vm2804_vm2, %v16949_v15  ;;  %7327 = vmatpush.msra.mxu2 %v7235_v17  ;;  %v6510_v55 = vpop.f32.mrf.mxu2 }
 0x862   :  { %v7005_v45 = vpop.f32.mrf.mxu0 }
 0x863   :  { %7328 = vmatpush.msra.mxu2 %v7234_v50  ;;  %v16965_v50 = vld [vmem:[#allocation169_spill] sm:$0xff] }
 0x864   :  { %v6724_v20 = vpop.f32.mrf.mxu3 }
 0x865   :  { %v6844_v59 = vadd.f32 %v6724_v20, %v6508_v12  ;;  %v6173_v39 = vpop.f32.mrf.mxu1  ;;  %8359 = vmatmul.msk.f32.gmra.mxu0 %vm2804_vm2, %v16950_v26  ;;  %v16964_v12 = vld [vmem:[#allocation7_spill] sm:$0xff] }
 0x866   :  { %8235 = vmatmul.msk.f32.gmra.mxu2 %vm2804_vm2, %v16949_v15  ;;  %v6511_v30 = vadd.f32 %v6510_v55, %v6173_v39  ;;  %v16966_v39 = vld [vmem:[#allocation170_spill] sm:$0xff] }
 0x867   :  { %v14953_v37 = vadd.f32 %v7005_v45, %v6844_v59 }
 0x868   :  { %8170 = vmatmul.msk.f32.gmra.mxu1 %vm2804_vm2, %v16948_v56 }
 0x869   :  { %8298 = vmatmul.msk.f32.gmra.mxu3 %vm2804_vm2, %v16951_v13  ;;  %v6513_v23 = vpop.f32.mrf.mxu2 }
 0x86a   :  { %v7008_v22 = vpop.f32.mrf.mxu0 }
 0x86c   :  { %v6727_v53 = vpop.f32.mrf.mxu3 }
 0x86d   :  { %v6845_v48 = vadd.f32 %v6727_v53, %v6511_v30  ;;  %v6176_v40 = vpop.f32.mrf.mxu1  ;;  %8360 = vmatmul.msk.f32.gmra.mxu0 %vm2804_vm2, %v16952_v5 }
 0x86e   :  { %8236 = vmatmul.msk.f32.gmra.mxu2 %vm2804_vm2, %v16951_v13  ;;  %v6514_v10 = vadd.f32 %v6513_v23, %v6176_v40  ;;  %v16969_v40 = vmov 0.0  }
 0x86f   :  { %v14963_v61 = vadd.f32 %v7008_v22, %v6845_v48 }
 0x870   :  { %8171 = vmatmul.msk.f32.gmra.mxu1 %vm2804_vm2, %v16950_v26  ;;  %v16967_v26 = vld [vmem:[#allocation34_spill] sm:$0xff] }
 0x871   :  { %8299 = vmatmul.msk.f32.gmra.mxu3 %vm2804_vm2, %v16953_v52  ;;  %v6516_v42 = vpop.f32.mrf.mxu2  ;;  %v16968_v53 = vrot.slane %v16967_v26, 1 }
 0x872   :  { %v7011_v25 = vpop.f32.mrf.mxu0 }
 0x873   :  { %v5899_v22 = vsel %vm153_vm1, %v16968_v53, 0.0 }
 0x874   :  { %v6730_v8 = vpop.f32.mrf.mxu3 }
 0x875   :  { %v6846_v62 = vadd.f32 %v6730_v8, %v6514_v10  ;;  %v6179_v60 = vpop.f32.mrf.mxu1  ;;  %8361 = vmatmul.msk.f32.gmra.mxu0 %vm2804_vm2, %v16954_v9 }
 0x876   :  { %8237 = vmatmul.msk.f32.gmra.mxu2 %vm2804_vm2, %v16953_v52  ;;  %v6517_v4 = vadd.f32 %v6516_v42, %v6179_v60 }
 0x877   :  { %v14973_v33 = vadd.f32 %v7011_v25, %v6846_v62 }
 0x878   :  { %8172 = vmatmul.msk.f32.gmra.mxu1 %vm2804_vm2, %v16952_v5 }
 0x879   :  { %8300 = vmatmul.msk.f32.gmra.mxu3 %vm2804_vm2, %v16955_v21  ;;  %v14983_v24 = vpop.f32.mrf.mxu2 }
 0x87a   :  { %v7014_v7 = vpop.f32.mrf.mxu0 }
 0x87c   :  { %v6733_v6 = vpop.f32.mrf.mxu3 }
 0x87d   :  { %v6847_v27 = vadd.f32 %v6733_v6, %v6517_v4  ;;  %v14987_v36 = vpop.f32.mrf.mxu1  ;;  %8362 = vmatmul.msk.f32.gmra.mxu0 %vm2804_vm2, %v16956_v57 }
 0x87e   :  { %8238 = vmatmul.msk.f32.gmra.mxu2 %vm2804_vm2, %v16955_v21 }
 0x87f   :  { %v14985_v1 = vadd.f32 %v7014_v7, %v6847_v27 }
 0x880   :  { %8173 = vmatmul.msk.f32.gmra.mxu1 %vm2804_vm2, %v16954_v9 }
 0x881   :  { %8301 = vmatmul.msk.f32.gmra.mxu3 %vm2804_vm2, %v16957_v29  ;;  %v14997_v16 = vpop.f32.mrf.mxu2 }
 0x882   :  { %v15001_v38 = vpop.f32.mrf.mxu0 }
 0x884   :  { %v14999_v51 = vpop.f32.mrf.mxu3 }
 0x885   :  { %v15003_v54 = vpop.f32.mrf.mxu1  ;;  %8363 = vmatmul.msk.f32.gmra.mxu0 %vm2804_vm2, %v16958_v43 }
 0x886   :  { %8239 = vmatmul.msk.f32.gmra.mxu2 %vm2804_vm2, %v16957_v29 }
 0x888   :  { %8174 = vmatmul.msk.f32.gmra.mxu1 %vm2804_vm2, %v16956_v57 }
 0x889   :  { %8302 = vmatmul.msk.f32.gmra.mxu3 %vm2804_vm2, %v16959_v28  ;;  %v6525_v19 = vpop.f32.mrf.mxu2 }
 0x88a   :  { %v15015_v63 = vpop.f32.mrf.mxu0 }
 0x88c   :  { %v15013_v58 = vpop.f32.mrf.mxu3 }
 0x88d   :  { %v6188_v32 = vpop.f32.mrf.mxu1  ;;  %8364 = vmatmul.msk.f32.gmra.mxu0 %vm2804_vm2, %v16960_v2 }
 0x88e   :  { %8240 = vmatmul.msk.f32.gmra.mxu2 %vm2804_vm2, %v16959_v28  ;;  %v6526_v57 = vadd.f32 %v6525_v19, %v6188_v32 }
 0x890   :  { %8175 = vmatmul.msk.f32.gmra.mxu1 %vm2804_vm2, %v16958_v43 }
 0x891   :  { %8303 = vmatmul.msk.f32.gmra.mxu3 %vm2804_vm2, %v16961_v18  ;;  %v6528_v49 = vpop.f32.mrf.mxu2 }
 0x892   :  { %v15025_v14 = vpop.f32.mrf.mxu0 }
 0x894   :  { %v6742_v35 = vpop.f32.mrf.mxu3 }
 0x895   :  { %v6191_v41 = vpop.f32.mrf.mxu1  ;;  %8365 = vmatmul.msk.f32.gmra.mxu0 %vm2804_vm2, %v16962_v11 }
 0x896   :  { %8241 = vmatmul.msk.f32.gmra.mxu2 %vm2804_vm2, %v16961_v18  ;;  %v6529_v21 = vadd.f32 %v6528_v49, %v6191_v41  ;;  %v6520_v49 = vadd.f32 %v14983_v24, %v14987_v36 }
 0x898   :  { %8176 = vmatmul.msk.f32.gmra.mxu1 %vm2804_vm2, %v16960_v2  ;;  %v6523_v2 = vadd.f32 %v14997_v16, %v15003_v54 }
 0x899   :  { %8304 = vmatmul.msk.f32.gmra.mxu3 %vm2804_vm2, %v16963_v44  ;;  %v6531_v31 = vpop.f32.mrf.mxu2 }
 0x89a   :  { %v7026_v17 = vpop.f32.mrf.mxu0 }
 0x89c   :  { %v6745_v56 = vpop.f32.mrf.mxu3 }
 0x89d   :  { %v6194_v15 = vpop.f32.mrf.mxu1  ;;  %8366 = vmatmul.msk.f32.gmra.mxu0 %vm2804_vm2, %v16964_v12  ;;  %v6851_v18 = vadd.f32 %v6745_v56, %v6529_v21 }
 0x89e   :  { %8242 = vmatmul.msk.f32.gmra.mxu2 %vm2804_vm2, %v16963_v44  ;;  %v6532_v62 = vadd.f32 %v6531_v31, %v6194_v15  ;;  %v6850_v15 = vadd.f32 %v6742_v35, %v6526_v57 }
 0x8a0   :  { %8177 = vmatmul.msk.f32.gmra.mxu1 %vm2804_vm2, %v16962_v11  ;;  %v7131_v24 = vadd.f32 %v15025_v14, %v6850_v15 }
 0x8a1   :  { %8305 = vmatmul.msk.f32.gmra.mxu3 %vm2804_vm2, %v16965_v50  ;;  %v6534_v55 = vpop.f32.mrf.mxu2 }
 0x8a2   :  { %v7029_v45 = vpop.f32.mrf.mxu0  ;;  %v7196_v53 = vadd.f32 %v14687_v0, %v7131_v24 }
 0x8a4   :  { %v6748_v20 = vpop.f32.mrf.mxu3 }
 0x8a5   :  { %v6197_v59 = vpop.f32.mrf.mxu1  ;;  %8367 = vmatmul.msk.f32.gmra.mxu0 %vm2804_vm2, %v16966_v39  ;;  %v6852_v29 = vadd.f32 %v6748_v20, %v6532_v62  ;;  %v6848_v20 = vadd.f32 %v14999_v51, %v6520_v49 }
 0x8a6   :  { %8243 = vmatmul.msk.f32.gmra.mxu2 %vm2804_vm2, %v16965_v50  ;;  %v6535_v8 = vadd.f32 %v6534_v55, %v6197_v59  ;;  %v6849_v50 = vadd.f32 %v15013_v58, %v6523_v2  ;;  %v7132_v55 = vadd.f32 %v7026_v17, %v6851_v18 }
 0x8a7   :  { %v7129_v51 = vadd.f32 %v15001_v38, %v6848_v20 }
 0x8a8   :  { %8178 = vmatmul.msk.f32.gmra.mxu1 %vm2804_vm2, %v16964_v12  ;;  %v7133_v12 = vadd.f32 %v7029_v45, %v6852_v29  ;;  %v7197_v58 = vadd.f32 %v14687_v0, %v7132_v55 }
 0x8a9   :  { %8306 = vmatmul.msk.f32.gmra.mxu3 %vm2804_vm2, %v16967_v26  ;;  %v6537_v13 = vpop.f32.mrf.mxu2 }
 0x8aa   :  { %v7032_v23 = vpop.f32.mrf.mxu0  ;;  %v7198_v36 = vadd.f32 %v14687_v0, %v7133_v12 }
 0x8ac   :  { %v6751_v30 = vpop.f32.mrf.mxu3  ;;  %v7262_v14 = vmax.f32 %v7198_v36, 0.0 }
 0x8ad   :  { %v6200_v48 = vpop.f32.mrf.mxu1  ;;  %8368 = vmatmul.msk.f32.gmra.mxu0 %vm2804_vm2, %v5899_v22  ;;  %v6853_v4 = vadd.f32 %v6751_v30, %v6535_v8  ;;  %v7193_v8 = vadd.f32 %v14687_v0, %v14985_v1  ;;  %v7190_v1 = vadd.f32 %v14687_v0, %v14953_v37 }
 0x8ae   :  { %8244 = vmatmul.msk.f32.gmra.mxu2 %vm2804_vm2, %v16967_v26  ;;  %v6538_v42 = vadd.f32 %v6537_v13, %v6200_v48  ;;  %v7130_v26 = vadd.f32 %v15015_v63, %v6849_v50  ;;  %v7261_v48 = vmax.f32 %v7197_v58, 0.0 }
 0x8af   :  { %v7134_v11 = vadd.f32 %v7032_v23, %v6853_v4  ;;  %v7191_v4 = vadd.f32 %v14687_v0, %v14963_v61 }
 0x8b0   :  { %8179 = vmatmul.msk.f32.gmra.mxu1 %vm2804_vm2, %v16966_v39 }
 0x8b1   :  { %6801 = vmatmul.f32.gmra.mxu3 %v16969_v40  ;;  %v6540_v5 = vpop.f32.mrf.mxu2  ;;  %v7199_v16 = vadd.f32 %v14687_v0, %v7134_v11  ;;  %v7255_v18 = vmax.f32 %v7191_v4, 0.0  ;;  %v15100_v11 = vld [vmem:[%s15221_s2 + $0x34b] ss:$0 sm:$0xff] }
 0x8b2   :  { %v7035_v10 = vpop.f32.mrf.mxu0  ;;  %v7188_v37 = vadd.f32 %v15100_v11, %v14927_v46  ;;  %v7186_v15 = vadd.f32 %v15100_v11, %v14893_v34 }
 0x8b3   :  { %v7263_v17 = vmax.f32 %v7199_v16, 0.0 }
 0x8b4   :  { %v6754_v52 = vpop.f32.mrf.mxu3  ;;  %v7250_v16 = vmax.f32 %v7186_v15, 0.0 }
 0x8b5   :  { %v6203_v25 = vpop.f32.mrf.mxu1  ;;  %7082 = vmatmul.f32.gmra.mxu0 %v16969_v40  ;;  %v6854_v60 = vadd.f32 %v6754_v52, %v6538_v42  ;;  %v7194_v52 = vadd.f32 %v14687_v0, %v7129_v51 }
 0x8b6   :  { %v6541_v9 = vadd.f32 %v6540_v5, %v6203_v25 }
 0x8b7   :  { %v7135_v43 = vadd.f32 %v7035_v10, %v6854_v60  ;;  %v7260_v10 = vmax.f32 %v7196_v53, 0.0  ;;  %v7258_v21 = vmax.f32 %v7194_v52, 0.0 }
 0x8b8   :  { %8180 = vmatmul.msk.f32.gmra.mxu1 %vm2804_vm2, %v5899_v22  ;;  %v7195_v22 = vadd.f32 %v14687_v0, %v7130_v26 }
 0x8b9   :  { %6804 = vmatmul.f32.gmra.mxu3 %v16969_v40  ;;  %v6543_v6 = vpop.f32.mrf.mxu2  ;;  %v7200_v19 = vadd.f32 %v14687_v0, %v7135_v43 }
 0x8ba   :  { %v7038_v27 = vpop.f32.mrf.mxu0  ;;  %v7259_v38 = vmax.f32 %v7195_v22, 0.0 }
 0x8bb   :  { %v7264_v35 = vmax.f32 %v7200_v19, 0.0  ;;  %v7252_v19 = vmax.f32 %v7188_v37, 0.0 }
 0x8bc   :  { %v6757_v7 = vpop.f32.mrf.mxu3 }
 0x8bd   :  { %v6855_v28 = vadd.f32 %v6757_v7, %v6541_v9  ;;  %v6206_v31 = vpop.f32.mrf.mxu1  ;;  %7085 = vmatmul.f32.gmra.mxu0 %v16969_v40  ;;  %v7192_v9 = vadd.f32 %v14687_v0, %v14973_v33  ;;  %v7257_v7 = vmax.f32 %v7193_v8, 0.0 }
 0x8be   :  { %v6544_v41 = vadd.f32 %v6543_v6, %v6206_v31  ;;  %v7187_v31 = vadd.f32 %v15100_v11, %v14909_v47 }
 0x8bf   :  { %v7136_v44 = vadd.f32 %v7038_v27, %v6855_v28  ;;  %v7256_v43 = vmax.f32 %v7192_v9, 0.0  ;;  %v7189_v28 = vadd.f32 %v14687_v0, %v14943_v3 }
 0x8c0   :  { %v7251_v50 = vmax.f32 %v7187_v31, 0.0 }
 0x8c1   :  { %v7201_v32 = vadd.f32 %v14687_v0, %v7136_v44  ;;  %v6546_v56 = vpop.f32.mrf.mxu2  ;;  %v7254_v44 = vmax.f32 %v7190_v1, 0.0  ;;  %v7253_v3 = vmax.f32 %v7189_v28, 0.0 }
 0x8c2   :  { %v7041_v39 = vpop.f32.mrf.mxu0 }
 0x8c3   :  { %v7265_v54 = vmax.f32 %v7201_v32, 0.0 }
 0x8c4   :  { %v6760_v59 = vpop.f32.mrf.mxu3 }
 0x8c5   :  { %7333 = vmatpush.msra.mxu3 %v7265_v54  ;;  %v6856_v45 = vadd.f32 %v6760_v59, %v6544_v41  ;;  %v6209_v30 = vpop.f32.mrf.mxu1 }
 0x8c6   :  { %v6547_v23 = vadd.f32 %v6546_v56, %v6209_v30 }
 0x8c7   :  { %v15077_v13 = vadd.f32 %v7041_v39, %v6856_v45  ;;  %7334 = vmatpush.msra.mxu3 %v7264_v35 }
 0x8c9   :  { %7335 = vmatpush.msra.mxu3 %v7263_v17  ;;  %v6549_v40 = vpop.f32.mrf.mxu2 }
 0x8ca   :  { %v7044_v5 = vpop.f32.mrf.mxu0 }
 0x8cb   :  { %7336 = vmatpush.msra.mxu3 %v7262_v14 }
 0x8cc   :  { %v6763_v63 = vpop.f32.mrf.mxu3 }
 0x8cd   :  { %7337 = vmatpush.msra.mxu3 %v7261_v48  ;;  %v6857_v42 = vadd.f32 %v6763_v63, %v6547_v23  ;;  %v6212_v62 = vpop.f32.mrf.mxu1 }
 0x8ce   :  { %v6550_v60 = vadd.f32 %v6549_v40, %v6212_v62 }
 0x8cf   :  { %v15085_v25 = vadd.f32 %v7044_v5, %v6857_v42  ;;  %7338 = vmatpush.msra.mxu3 %v7260_v10 }
 0x8d1   :  { %7339 = vmatpush.msra.mxu3 %v7259_v38  ;;  %v6552_v6 = vpop.f32.mrf.mxu2 }
 0x8d2   :  { %v7047_v57 = vpop.f32.mrf.mxu0 }
 0x8d3   :  { %7340 = vmatpush.msra.mxu3 %v7258_v21 }
 0x8d4   :  { %v6766_v27 = vpop.f32.mrf.mxu3 }
 0x8d5   :  { %7341 = vmatpush.msra.mxu3 %v7257_v7  ;;  %v6858_v29 = vadd.f32 %v6766_v27, %v6550_v60  ;;  %v6215_v2 = vpop.f32.mrf.mxu1 }
 0x8d6   :  { %v6553_v61 = vadd.f32 %v6552_v6, %v6215_v2 }
 0x8d7   :  { %v15095_v33 = vadd.f32 %v7047_v57, %v6858_v29  ;;  %7342 = vmatpush.msra.mxu3 %v7256_v43 }
 0x8d9   :  { %7343 = vmatpush.msra.mxu3 %v7255_v18  ;;  %v6555_v0 = vpop.f32.mrf.mxu2 }
 0x8da   :  { %v7050_v41 = vpop.f32.mrf.mxu0 }
 0x8db   :  { %7344 = vmatpush.msra.mxu3 %v7254_v44 }
 0x8dc   :  { %v6769_v49 = vpop.f32.mrf.mxu3 }
 0x8dd   :  { %7345 = vmatpush.msra.mxu3 %v7253_v3  ;;  %v6859_v12 = vadd.f32 %v6769_v49, %v6553_v61  ;;  %v6218_v46 = vpop.f32.mrf.mxu1 }
 0x8de   :  { %v6556_v55 = vadd.f32 %v6555_v0, %v6218_v46 }
 0x8df   :  { %v15108_v32 = vadd.f32 %v7050_v41, %v6859_v12  ;;  %7346 = vmatpush.msra.mxu3 %v7252_v19 }
 0x8e1   :  { %7347 = vmatpush.msra.mxu3 %v7251_v50  ;;  %v6558_v47 = vpop.f32.mrf.mxu2 }
 0x8e2   :  { %v7053_v56 = vpop.f32.mrf.mxu0 }
 0x8e3   :  { %7348 = vmatpush.msra.mxu3 %v7250_v16 }
 0x8e4   :  { %v6772_v54 = vpop.f32.mrf.mxu3 }
 0x8e5   :  { %v6860_v20 = vadd.f32 %v6772_v54, %v6556_v55  ;;  %v6221_v39 = vpop.f32.mrf.mxu1 }
 0x8e6   :  { %v6559_v34 = vadd.f32 %v6558_v47, %v6221_v39  ;;  %v7282_v39 = vld [vmem:[%s15223_s3] sm:$0xff] }
 0x8e7   :  { %v15110_v59 = vadd.f32 %v7053_v56, %v6860_v20  ;;  %7284 = vst [vmem:[#allocation1] ss:$4 sm:$0xff] %v7282_v39  ;;  %v7373_v39 = vld [vmem:[%s15222_s4 + $0x4e] sm:$0xff] }
 0x8e9   :  { %v6561_v24 = vpop.f32.mrf.mxu2 }
 0x8ea   :  { %v7056_v35 = vpop.f32.mrf.mxu0 }
 0x8ec   :  { %v6775_v36 = vpop.f32.mrf.mxu3 }
 0x8ed   :  { %v6861_v45 = vadd.f32 %v6775_v36, %v6559_v34  ;;  %v6224_v58 = vpop.f32.mrf.mxu1 }
 0x8ee   :  { %v6562_v17 = vadd.f32 %v6561_v24, %v6224_v58 }
 0x8ef   :  { %v15112_v26 = vadd.f32 %v7056_v35, %v6861_v45 }
 0x8f1   :  { %v6564_v30 = vpop.f32.mrf.mxu2 }
 0x8f2   :  { %v7059_v51 = vpop.f32.mrf.mxu0 }
 0x8f4   :  { %v6778_v23 = vpop.f32.mrf.mxu3 }
 0x8f5   :  { %v6862_v53 = vadd.f32 %v6778_v23, %v6562_v17  ;;  %v6227_v22 = vpop.f32.mrf.mxu1 }
 0x8f6   :  { %v6565_v48 = vadd.f32 %v6564_v30, %v6227_v22 }
 0x8f7   :  { %v15114_v14 = vadd.f32 %v7059_v51, %v6862_v53 }
 0x8f9   :  { %v6567_v40 = vpop.f32.mrf.mxu2 }
 0x8fa   :  { %v7062_v5 = vpop.f32.mrf.mxu0 }
 0x8fc   :  { %v6781_v63 = vpop.f32.mrf.mxu3 }
 0x8fd   :  { %v6863_v52 = vadd.f32 %v6781_v63, %v6565_v48  ;;  %v6230_v42 = vpop.f32.mrf.mxu1 }
 0x8fe   :  { %v6568_v8 = vadd.f32 %v6567_v40, %v6230_v42  ;;  %v7285_v42 = vld.sshfl [vmem:[#allocation1] sm:$0xff pattern:$0x73625140] }
 0x8ff   :  { %v15116_v10 = vadd.f32 %v7062_v5, %v6863_v52  ;;  %v7286_v52 = vld.sshfl [vmem:[#allocation1 + $0x8] sm:$0xff pattern:$0x73625140]  ;;  %7309 = vmatmul.f32.vlgmr.msra.gmra.mxu1 %v7285_v42 }
 0x900   :  { %7329 = vmatmul.f32.vlgmr.msra.gmra.mxu2 %v7286_v52 }
 0x901   :  { %v6570_v38 = vpop.f32.mrf.mxu2 }
 0x902   :  { %v7065_v60 = vpop.f32.mrf.mxu0 }
 0x904   :  { %v6784_v62 = vpop.f32.mrf.mxu3 }
 0x905   :  { %v6864_v9 = vadd.f32 %v6784_v62, %v6568_v8  ;;  %v6233_v4 = vpop.f32.mrf.mxu1  ;;  %v7287_v8 = vld.sshfl [vmem:[#allocation1 + $0x10] sm:$0xff pattern:$0x73625140] }
 0x906   :  { %v6571_v23 = vadd.f32 %v6570_v38, %v6233_v4  ;;  %7349 = vmatmul.f32.vlgmr.msra.gmra.mxu3 %v7287_v8  ;;  %v7407_v38 = vld [vmem:[%s15222_s4 + $0x1] sm:$0xff] }
 0x907   :  { %v15118_v21 = vadd.f32 %v7065_v60, %v6864_v9  ;;  %v7380_v4 = vld [vmem:[%s15222_s4 + $0x86] sm:$0xff]  ;;  %7431 = vmatpush.msrb.mxu3 %v7407_v38 }
 0x908   :  { %7394 = vmatpush.msrb.mxu2 %v7380_v4  ;;  %v7484_v38 = vld [vmem:[%s15222_s4 + $0x25] sm:$0xff] }
 0x909   :  { %v6573_v6 = vpop.f32.mrf.mxu2  ;;  %v7488_v4 = vld [vmem:[%s15222_s4 + $0x46] sm:$0xff] }
 0x90a   :  { %v15120_v27 = vpop.f32.mrf.mxu0 }
 0x90c   :  { %v6787_v7 = vpop.f32.mrf.mxu3 }
 0x90d   :  { %v6236_v57 = vpop.f32.mrf.mxu1  ;;  %v6865_v62 = vadd.f32 %v6787_v7, %v6571_v23  ;;  %v7379_v7 = vld [vmem:[%s15222_s4 + $0x7e] sm:$0xff] }
 0x90e   :  { %v6574_v45 = vadd.f32 %v6573_v6, %v6236_v57  ;;  %7395 = vmatpush.msrb.mxu2 %v7379_v7  ;;  %v7411_v23 = vld [vmem:[%s15222_s4 + $0x21] sm:$0xf] }
 0x90f   :  { %8371 = vmatpush.msk.msra.mxu3 %vm7447_vm4, %v7411_v23 }
 0x911   :  { %v6576_v1 = vpop.f32.mrf.mxu2 }
 0x912   :  { %v7071_v43 = vpop.f32.mrf.mxu0 }
 0x914   :  { %v6790_v29 = vpop.f32.mrf.mxu3 }
 0x915   :  { %v6239_v28 = vpop.f32.mrf.mxu1  ;;  %v6866_v48 = vadd.f32 %v6790_v29, %v6574_v45 }
 0x916   :  { %v6577_v34 = vadd.f32 %v6576_v1, %v6239_v28  ;;  %v7146_v28 = vadd.f32 %v15120_v27, %v6865_v62  ;;  %v7210_v27 = vadd.f32 %v15100_v11, %v15118_v21  ;;  %v7206_v21 = vadd.f32 %v15100_v11, %v15110_v59 }
 0x917   :  { %v7147_v57 = vadd.f32 %v7071_v43, %v6866_v48  ;;  %v7406_v43 = vld [vmem:[%s15224_s1] sm:$0x3]  ;;  %v7202_v59 = vadd.f32 %v15100_v11, %v15077_v13  ;;  %v7376_v13 = vld [vmem:[%s15222_s4 + $0x66] sm:$0xff] }
 0x918   :  { %8370 = vmatmul.msk.f32.vlgmr.msrb.gmra.mxu3 %vm7412_vm3, %v7406_v43  ;;  %7474 = vrot.lane.b32.xlu2 %v7406_v43, %s8430_s18  ;;  %v8414_v48 = vld [vmem:[%s15222_s4] ss:$0 sm:$0xff]  ;;  %v7485_v43 = vld [vmem:[%s15222_s4 + $0x2e] sm:$0xff] }
 0x919   :  { %v6579_v2 = vpop.f32.mrf.mxu2 }
 0x91a   :  { %v7074_v61 = vpop.f32.mrf.mxu0 }
 0x91c   :  { %v6793_v18 = vpop.f32.mrf.mxu3 }
 0x91d   :  { %v6242_v37 = vpop.f32.mrf.mxu1  ;;  %v6867_v51 = vadd.f32 %v6793_v18, %v6577_v34 }
 0x91e   :  { %v6580_v54 = vadd.f32 %v6579_v2, %v6242_v37 }
 0x91f   :  { %v7148_v60 = vadd.f32 %v7074_v61, %v6867_v51  ;;  %v7212_v61 = vadd.f32 %v15100_v11, %v7147_v57  ;;  %v7410_v51 = vld [vmem:[%s15222_s4 + $0x19] sm:$0xff] }
 0x920   :  { %7464 = vmatpush.msra.mxu3 %v7410_v51 }
 0x921   :  { %v6582_v44 = vpop.f32.mrf.mxu2  ;;  %v7213_v2 = vadd.f32 %v15100_v11, %v7148_v60 }
 0x922   :  { %v7077_v0 = vpop.f32.mrf.mxu0 }
 0x924   :  { %v6796_v31 = vpop.f32.mrf.mxu3 }
 0x925   :  { %v6245_v3 = vpop.f32.mrf.mxu1  ;;  %v6868_v58 = vadd.f32 %v6796_v31, %v6580_v54  ;;  %v7277_v31 = vmax.f32 %v7213_v2, 0.0  ;;  %v7487_v2 = vld [vmem:[%s15222_s4 + $0x3e] sm:$0xff] }
 0x926   :  { %v6583_v55 = vadd.f32 %v6582_v44, %v6245_v3  ;;  %v7211_v44 = vadd.f32 %v15100_v11, %v7146_v28  ;;  %v7209_v3 = vadd.f32 %v15100_v11, %v15116_v10  ;;  %v7205_v10 = vadd.f32 %v15100_v11, %v15108_v32  ;;  %v8415_v28 = vld [vmem:[%s15222_s4 + $0x2d] ss:$0 sm:$0xff] }
 0x927   :  { %v7149_v40 = vadd.f32 %v7077_v0, %v6868_v58  ;;  %v7276_v0 = vmax.f32 %v7212_v61, 0.0  ;;  %v7266_v32 = vmax.f32 %v7202_v59, 0.0 }
 0x929   :  { %v6585_v15 = vpop.f32.mrf.mxu2  ;;  %v7214_v1 = vadd.f32 %v15100_v11, %v7149_v40 }
 0x92a   :  { %v7080_v41 = vpop.f32.mrf.mxu0 }
 0x92b   :  { %v7278_v37 = vmax.f32 %v7214_v1, 0.0 }
 0x92c   :  { %v6799_v49 = vpop.f32.mrf.mxu3 }
 0x92d   :  { %v6248_v12 = vpop.f32.mrf.mxu1  ;;  %v6869_v24 = vadd.f32 %v6799_v49, %v6583_v55  ;;  %v7275_v49 = vmax.f32 %v7211_v44, 0.0  ;;  %v7270_v55 = vmax.f32 %v7206_v21, 0.0 }
 0x92e   :  { %v6586_v50 = vadd.f32 %v6585_v15, %v6248_v12  ;;  %v7274_v15 = vmax.f32 %v7210_v27, 0.0  ;;  %v7207_v12 = vadd.f32 %v15100_v11, %v15112_v26  ;;  %v7203_v26 = vadd.f32 %v15100_v11, %v15085_v25  ;;  %v7377_v25 = vld [vmem:[%s15222_s4 + $0x6e] sm:$0xff] }
 0x92f   :  { %v7150_v53 = vadd.f32 %v7080_v41, %v6869_v24  ;;  %v7208_v41 = vadd.f32 %v15100_v11, %v15114_v14  ;;  %v7204_v14 = vadd.f32 %v15100_v11, %v15095_v33  ;;  %v7378_v33 = vld [vmem:[%s15222_s4 + $0x76] sm:$0xff] }
 0x930   :  { %v7267_v54 = vmax.f32 %v7203_v26, 0.0  ;;  %7396 = vmatpush.msrb.mxu2 %v7378_v33 }
 0x931   :  { %v6588_v47 = vpop.f32.mrf.mxu2  ;;  %v7215_v9 = vadd.f32 %v15100_v11, %v7150_v53  ;;  %v7409_v53 = vld [vmem:[%s15222_s4 + $0x11] sm:$0xff] }
 0x932   :  { %v7083_v46 = vpop.f32.mrf.mxu0  ;;  %7397 = vmatpush.msrb.mxu2 %v7377_v25  ;;  %7465 = vmatpush.msra.mxu3 %v7409_v53 }
 0x933   :  { %v7279_v18 = vmax.f32 %v7215_v9, 0.0 }
 0x934   :  { %v6802_v19 = vpop.f32.mrf.mxu3  ;;  %7398 = vmatpush.msrb.mxu2 %v7376_v13 }
 0x935   :  { %v6251_v16 = vpop.f32.mrf.mxu1  ;;  %v6870_v56 = vadd.f32 %v6802_v19, %v6586_v50  ;;  %v7273_v19 = vmax.f32 %v7209_v3, 0.0  ;;  %v7271_v50 = vmax.f32 %v7207_v12, 0.0 }
 0x936   :  { %v6589_v20 = vadd.f32 %v6588_v47, %v6251_v16  ;;  %v7269_v16 = vmax.f32 %v7205_v10, 0.0  ;;  %v7268_v47 = vmax.f32 %v7204_v14, 0.0 }
 0x937   :  { %v7151_v17 = vadd.f32 %v7083_v46, %v6870_v56  ;;  %v7272_v46 = vmax.f32 %v7208_v41, 0.0  ;;  %v7288_v56 = vld.sshfl [vmem:[#allocation1 + $0x18] sm:$0xff pattern:$0x73625140] }
 0x939   :  { %v7216_v63 = vadd.f32 %v15100_v11, %v7151_v17 }
 0x93a   :  { %v7086_v35 = vpop.f32.mrf.mxu0 }
 0x93b   :  { %v7280_v29 = vmax.f32 %v7216_v63, 0.0 }
 0x93c   :  { %v6805_v36 = vpop.f32.mrf.mxu3 }
 0x93d   :  { %v6871_v30 = vadd.f32 %v6805_v36, %v6589_v20  ;;  %v7374_v20 = vld [vmem:[%s15222_s4 + $0x56] sm:$0xff] }
 0x93f   :  { %v7152_v22 = vadd.f32 %v7086_v35, %v6871_v30 }
 0x941   :  { %v7217_v5 = vadd.f32 %v15100_v11, %v7152_v22  ;;  %v7375_v11 = vld [vmem:[%s15222_s4 + $0x5e] sm:$0xff]  ;;  %v7408_v22 = vld [vmem:[%s15222_s4 + $0x9] sm:$0xff] }
 0x942   :  { %7399 = vmatpush.msrb.mxu2 %v7375_v11  ;;  %7466 = vmatpush.msra.mxu3 %v7408_v22 }
 0x943   :  { %v7281_v6 = vmax.f32 %v7217_v5, 0.0 }
 0x944   :  { %7400 = vmatpush.msrb.mxu2 %v7374_v20  ;;  %7535 = vmatpush.msrb.mxu3 %v7488_v4 }
 0x945   :  { %7353 = vmatpush.msrb.mxu1 %v7281_v6 }
 0x946   :  { %7401 = vmatpush.msrb.mxu2 %v7373_v39  ;;  %7536 = vmatpush.msrb.mxu3 %v7487_v2 }
 0x947   :  { %7354 = vmatpush.msrb.mxu1 %v7280_v29 }
 0x948   :  { %7509 = vmatpush.msra.mxu2 %v7484_v38 }
 0x949   :  { %7355 = vmatpush.msrb.mxu1 %v7279_v18  ;;  %v7486_v18 = vld [vmem:[%s15222_s4 + $0x36] sm:$0xff] }
 0x94a   :  { %7537 = vmatpush.msrb.mxu3 %v7486_v18 }
 0x94b   :  { %7356 = vmatpush.msrb.mxu1 %v7278_v37 }
 0x94c   :  { %7538 = vmatpush.msrb.mxu3 %v7485_v43 }
 0x94d   :  { %7357 = vmatpush.msrb.mxu1 %v7277_v31 }
 0x94f   :  { %7358 = vmatpush.msrb.mxu1 %v7276_v0 }
 0x951   :  { %7359 = vmatpush.msrb.mxu1 %v7275_v49 }
 0x953   :  { %7360 = vmatpush.msrb.mxu1 %v7274_v15 }
 0x955   :  { %7361 = vmatpush.msrb.mxu1 %v7273_v19 }
 0x957   :  { %7362 = vmatpush.msrb.mxu1 %v7272_v46 }
 0x959   :  { %7363 = vmatpush.msrb.mxu1 %v7271_v50 }
 0x95b   :  { %7364 = vmatpush.msrb.mxu1 %v7270_v55 }
 0x95d   :  { %7365 = vmatpush.msrb.mxu1 %v7269_v16 }
 0x95f   :  { %7366 = vmatpush.msrb.mxu1 %v7268_v47 }
 0x961   :  { %7367 = vmatpush.msrb.mxu1 %v7267_v54 }
 0x963   :  { %7368 = vmatpush.msrb.mxu1 %v7266_v32 }
 0x964   :  { %7369 = vmatmul.f32.vlgmr.msrb.gmra.mxu1 %v7288_v56 }
 0x972   :  { %v7475_v60 = vpop.permute.xlu2 %7474 }
 0x97c   :  { %v7310_v36 = vpop.f32.mrf.mxu1 }
 0x983   :  { %v7330_v35 = vpop.f32.mrf.mxu2 }
 0x984   :  { %v7331_v45 = vadd.f32 %v7330_v35, %v7310_v36 }
 0x989   :  { %v7350_v34 = vpop.f32.mrf.mxu3 }
 0x98a   :  { %v7351_v58 = vadd.f32 %v7350_v34, %v7331_v45 }
 0x99b   :  { %v7433_v24 = vpop.f32.mrf.mxu3 }
 0x99c   :  { %7437 = vrot.lane.b32.xlu0 %v7433_v24, %s8429_s17 }
 0x9e1   :  { %v7370_v17 = vpop.f32.mrf.mxu1 }
 0x9e2   :  { %v7371_v30 = vadd.f32 %v7370_v17, %v7351_v58 }
 0x9e4   :  { %8369 = vmatmul.msk.f32.vlgmr.msrb.gmra.mxu2 %vm2804_vm2, %v7371_v30 }
 0xa0e   :  { %v7438_v63 = vpop.permute.xlu0 %7437 }
 0xa67   :  { %v7403_v40 = vpop.f32.mrf.mxu2 }
 0xa68   :  { %v7404_v5 = vadd.f32 %v8414_v48, %v7403_v40 }
 0xa6a   :  { %v7440_v52 = vmul.f32 %v7438_v63, %v7404_v5  ;;  %7544 = vrot.lane.b32.xlu2 %v7404_v5, %s8431_s26  ;;  %v7471_v42 = vmul.f32 0.5, %v7404_v5 }
 0xa6c   :  { %7442 = vrot.lane.b32.xlu1 %v7440_v52, %s8432_s27  ;;  %v7472_v8 = vmul.f32 1.442695, %v7471_v42 }
 0xa6e   :  { %8416 = vpow2.f32 %v7472_v8 }
 0xa74   :  { %v8417_v62 = vpop.eup %8416  ;;  %7516 = vrot.lane.b32.xlu1 %v8415_v28, %s8434_s9 }
 0xa75   :  { %v7477_v9 = vmul.f32 %v8417_v62, %v7475_v60 }
 0xa77   :  { %7479 = vrot.lane.b32.xlu0 %v7477_v9, %s8433_s28 }
 0xac4   :  { %v7545_v3 = vpop.permute.xlu2 %7544 }
 0xade   :  { %v7443_v6 = vpop.permute.xlu1 %7442 }
 0xadf   :  { %8372 = vmatmul.msk.f32.vlgmr.msra.gmra.mxu3 %vm7444_vm5, %v7443_v6 }
 0xae6   :  { %v7517_v31 = vpop.permute.xlu1 %7516 }
 0xae9   :  { %v7480_v57 = vpop.permute.xlu0 %7479 }
 0xaea   :  { %v7482_v1 = vadd.f32 %v7480_v57, %v7404_v5 }
 0xb62   :  { %v7468_v29 = vpop.f32.mrf.mxu3 }
 0xb63   :  { %v7483_v7 = vadd.f32 %v7482_v1, %v7468_v29 }
 0xb65   :  { %8373 = vmatmul.msk.f32.vlgmr.msra.gmra.mxu2 %vm7412_vm3, %v7483_v7 }
 0xbe8   :  { %v7511_v61 = vpop.f32.mrf.mxu2 }
 0xbe9   :  { %v7512_v37 = vadd.f32 %v8415_v28, %v7511_v61 }
 0xbeb   :  { %v7514_v44 = vmax.f32 %v7512_v37, 0.0 }
 0xbed   :  { %8374 = vmatmul.msk.f32.vlgmr.msrb.gmra.mxu3 %vm7519_vm6, %v7514_v44 }
 0xc70   :  { %v7540_v27 = vpop.f32.mrf.mxu3 }
 0xc71   :  { %v7541_v0 = vadd.f32 %v7540_v27, %v7517_v31 }
 0xc73   :  { %v7548_v49 = vsel %vm7547_vm7, %v7541_v0, %v7545_v3 }
 0xc74   :  { %v7550_v41 = vsel %vm7549_vm8, %v7548_v49, %v7545_v3 }
 0xc75   :  { %v7552_v15 = vsel %vm7551_vm9, %v7550_v41, %v7545_v3 }
 0xc76   :  { %7554 = vst.msk [vmem:[%s15225_s5] sm:$0x3] %vm7553_vm10, %v7552_v15 }

</bundles_post_ra>
